<compile_context>
chip_gen: v5e
topology: v5e:2x2
jax: 0.10.0
libtpu: 0.0.40
codegen_flags: <defaults>
</compile_context>

<pallas_src>
import jax
import jax.numpy as jnp
from jax import lax
from jax.experimental import pallas as pl
from jax.experimental.pallas import tpu as pltpu

L = 100        # conv sequence length
C = 5          # conv channels
K = 5          # conv kernel size (padding=2, stride=1 -> "same")
LANES = 128    # per-channel lane-padded row width


def _conv1d_relu(hs, w_ref, b_ref, cin, cout, valid, mask_out):
    """hs: list of cin arrays (B, LANES) f32, zero in lanes >= L.

    w_ref: SMEM (cout*cin*K,) f32, PyTorch (o, c, t) row-major order.
    b_ref: SMEM (cout,) f32.
    Returns list of cout arrays (B, LANES).
    """
    # Build the 5 shifted taps per input channel ONCE (XLU rolls), reuse for
    # every output channel.  shifted[c][t][l] == hs[c][l + (t - K//2)], with
    # zero padding at the edges because lanes >= L of hs[c] are zero.
    taps = []
    for c in range(cin):
        row = []
        for t in range(K):
            s = ((K // 2) - t) % LANES          # roll by -(t - K//2)
            row.append(hs[c] if s == 0 else pltpu.roll(hs[c], shift=s, axis=1))
        taps.append(row)

    outs = []
    for o in range(cout):
        # bias folded into the accumulator init (no extra broadcast + add)
        acc = jnp.full(hs[0].shape, b_ref[o], dtype=jnp.float32)
        for c in range(cin):
            base = (o * cin + c) * K
            for t in range(K):
                acc = acc + w_ref[base + t] * taps[c][t]   # scalar-broadcast FMA (VPU)
        out = jnp.maximum(acc, 0.0)                        # ReLU
        if mask_out:
            # keep padding lanes exactly zero for the next layer's roll-padding
            out = jnp.where(valid, out, 0.0)
        outs.append(out)
    return outs


def collision_kernel(x_ref, wpre_ref, bpre_ref,
                     w1_ref, b1_ref, w2_ref, b2_ref,
                     w3_ref, b3_ref, w4_ref, b4_ref,
                     wfc_ref, bfc_ref,
                     final_ref, pre_ref):
    B = x_ref.shape[0]

    # Frozen pretrained stand-in: bf16 x bf16 -> f32 on the MXU.
    pre = jnp.dot(x_ref[...], wpre_ref[...],
                  preferred_element_type=jnp.float32) + bpre_ref[...]   # (B, C*128)
    pre_ref[...] = pre                     # lane-dense (multiple of 128) unmasked store

    lane = lax.broadcasted_iota(jnp.int32, (B, LANES), 1)
    valid = lane < L                       # hoisted once, reused by every layer

    # Channel rows: 128-lane-aligned static slices (no relayout); lanes >= 100
    # are exactly zero because the matching w_pre / b_pre padding columns are 0.
    hs = [pre[:, c * LANES:(c + 1) * LANES] for c in range(C)]

    hs = _conv1d_relu(hs, w1_ref, b1_ref, C, C, valid, mask_out=True)
    hs = _conv1d_relu(hs, w2_ref, b2_ref, C, C, valid, mask_out=True)
    hs = _conv1d_relu(hs, w3_ref, b3_ref, C, C, valid, mask_out=True)
    # last layer: its padding lanes are killed by the zero-padded fc weights below
    hs = _conv1d_relu(hs, w4_ref, b4_ref, C, 1, valid, mask_out=False)

    # fc(100 -> 1) as a VPU multiply + lane reduction (no MXU N=1 drain).
    logits = jnp.sum(hs[0] * wfc_ref[...], axis=-1, keepdims=True) + bfc_ref[0]  # (B, 1)

    # sigmoid via EUP exp + approximate EUP reciprocal; broadcast to 128 lanes
    # so the final store is an unmasked lane-dense vst (sliced in the wrapper).
    sig = pl.reciprocal(1.0 + jnp.exp(-logits), approx=True)                     # (B, 1)
    final_ref[...] = jnp.broadcast_to(sig, final_ref.shape)


@jax.jit
def collision_classifier(x, params):
    B = x.shape[0]
    x_flat = x.reshape(B, -1).astype(jnp.bfloat16)     # plain-JAX glue

    vmem = pl.BlockSpec(memory_space=pltpu.MemorySpace.VMEM)
    smem = pl.BlockSpec(memory_space=pltpu.MemorySpace.SMEM)

    inputs = (
        x_flat,
        params["w_pre_pad"], params["b_pre_pad"],
        params["w1"], params["b1"],
        params["w2"], params["b2"],
        params["w3"], params["b3"],
        params["w4"], params["b4"],
        params["w_fc_pad"], params["b_fc"],
    )
    in_specs = [vmem, vmem, vmem,                 # x, w_pre, b_pre
                smem, smem, smem, smem,           # w1, b1, w2, b2
                smem, smem, smem, smem,           # w3, b3, w4, b4
                vmem, smem]                       # w_fc, b_fc

    final_pad, pre_pad = pl.pallas_call(
        collision_kernel,
        out_shape=(
            jax.ShapeDtypeStruct((B, LANES), jnp.float32),      # lane-dense sigmoid
            jax.ShapeDtypeStruct((B, C * LANES), jnp.float32),  # padded pretrained output
        ),
        in_specs=in_specs,
        out_specs=(vmem, vmem),
    )(*inputs)

    # free wrapper-side slices/reshapes of the lane-padded outputs
    final_output = final_pad[:, :1]                                  # (B, 1)
    pretrained_output = pre_pad.reshape(B, C, LANES)[:, :, :L]       # view(B, 5, 100)
    return final_output, pretrained_output


def init_params(key, in_features):
    ks = jax.random.split(key, 12)

    def u(k, shape, fan_in):
        bound = 1.0 / jnp.sqrt(jnp.float32(fan_in))
        return jax.random.uniform(k, shape, jnp.float32, -bound, bound)

    # frozen pretrained stand-in: Linear(in_features -> 500)
    w_pre = u(ks[0], (in_features, C * L), in_features)        # (in, 500)
    b_pre = u(ks[1], (C * L,), in_features)                    # (500,)
    # channel-padded layout: columns [c*128, c*128+100) hold channel c, rest 0
    w_pre_pad = jnp.pad(w_pre.reshape(in_features, C, L),
                        ((0, 0), (0, 0), (0, LANES - L))).reshape(in_features, C * LANES)
    b_pre_pad = jnp.pad(b_pre.reshape(C, L),
                        ((0, 0), (0, LANES - L))).reshape(1, C * LANES)

    # Linear(100 -> 1), weight lane-padded to 128 with zeros
    w_fc = u(ks[2], (L,), L)
    b_fc = u(ks[3], (1,), L)
    w_fc_pad = jnp.pad(w_fc, (0, LANES - L)).reshape(1, LANES)

    params = {
        "w_pre_pad": w_pre_pad.astype(jnp.bfloat16),   # dominant HBM traffic -> bf16
        "b_pre_pad": b_pre_pad,
        "w_fc_pad": w_fc_pad,
        "b_fc": b_fc,
    }
    # Conv1d weights, flattened (o, c, t) row-major for SMEM scalar reads
    convs = [(5, 5), (5, 5), (5, 5), (1, 5)]   # (cout, cin)
    ki = 4
    for i, (cout, cin) in enumerate(convs, start=1):
        fan_in = cin * K
        params[f"w{i}"] = u(ks[ki], (cout, cin, K), fan_in).reshape(-1); ki += 1
        params[f"b{i}"] = u(ks[ki], (cout,), fan_in); ki += 1
    return params


# ----------------------- pure-JAX reference (for checking) -----------------------

def _ref_conv1d_relu(h, w, b):
    B_, _, L_ = h.shape
    hp = jnp.pad(h, ((0, 0), (0, 0), (K // 2, K // 2)))
    acc = jnp.zeros((B_, w.shape[0], L_), jnp.float32)
    for t in range(K):
        acc = acc + jnp.einsum("oc,bcl->bol", w[:, :, t], hp[:, :, t:t + L_])
    return jnp.maximum(acc + b[None, :, None], 0.0)


def reference_forward(x, params):
    B_ = x.shape[0]
    xf = x.reshape(B_, -1).astype(jnp.bfloat16)
    pre_pad = jnp.dot(xf, params["w_pre_pad"],
                      preferred_element_type=jnp.float32) + params["b_pre_pad"]
    pre = pre_pad.reshape(B_, C, LANES)[:, :, :L]
    h = pre
    for i, (cout, cin) in enumerate(((5, 5), (5, 5), (5, 5), (1, 5)), start=1):
        w = params[f"w{i}"].reshape(cout, cin, K)
        h = _ref_conv1d_relu(h, w, params[f"b{i}"])
    h2 = h[:, 0, :]                                            # squeeze(1)
    logits = h2 @ params["w_fc_pad"][0, :L] + params["b_fc"][0]
    final = jax.nn.sigmoid(logits)[:, None]
    return final, pre


if __name__ == "__main__":
    key = jax.random.PRNGKey(0)
    kx, kp = jax.random.split(key)

    B, Cin, H, W = 2, 4, 16, 16
    x = jax.random.normal(kx, (B, Cin, H, W), jnp.float32)     # NCHW, like PyTorch
    params = init_params(kp, Cin * H * W)

    final_out, pretrained_out = collision_classifier(x, params)
    jax.block_until_ready((final_out, pretrained_out))

    # shape / range checks
    assert final_out.shape == (B, 1)
    assert pretrained_out.shape == (B, C, L)
    assert bool(jnp.all((final_out >= 0.0) & (final_out <= 1.0)))

    # numerical check against a pure-JAX reference of the same forward
    final_ref, pre_ref = reference_forward(x, params)
    assert bool(jnp.allclose(pretrained_out, pre_ref, rtol=5e-3, atol=5e-3))
    assert bool(jnp.allclose(final_out, final_ref, rtol=2e-2, atol=2e-2))

    print("KERNEL_OK")
</pallas_src>

<mosaic_0001>
module attributes {stable_mosaic.version = 11 : i64} {
  func.func @collision_kernel(%arg0: memref<2x1024xbf16, #tpu.memory_space<vmem>>, %arg1: memref<1024x640xbf16, #tpu.memory_space<vmem>>, %arg2: memref<1x640xf32, #tpu.memory_space<vmem>>, %arg3: memref<125xf32, #tpu.memory_space<smem>>, %arg4: memref<5xf32, #tpu.memory_space<smem>>, %arg5: memref<125xf32, #tpu.memory_space<smem>>, %arg6: memref<5xf32, #tpu.memory_space<smem>>, %arg7: memref<125xf32, #tpu.memory_space<smem>>, %arg8: memref<5xf32, #tpu.memory_space<smem>>, %arg9: memref<25xf32, #tpu.memory_space<smem>>, %arg10: memref<1xf32, #tpu.memory_space<smem>>, %arg11: memref<1x128xf32, #tpu.memory_space<vmem>>, %arg12: memref<1xf32, #tpu.memory_space<smem>>, %arg13: memref<2x128xf32, #tpu.memory_space<vmem>>, %arg14: memref<2x640xf32, #tpu.memory_space<vmem>>) attributes {dimension_semantics = [], scalar_prefetch = 0 : i64, scratch_operands = 0 : i64, tpu.core_type = #tpu.core_type<tc>} {
    %c0 = arith.constant 0 : index
    %c0_0 = arith.constant 0 : index
    %0 = vector.load %arg0[%c0, %c0_0] : memref<2x1024xbf16, #tpu.memory_space<vmem>>, vector<2x1024xbf16>
    %c0_1 = arith.constant 0 : index
    %c0_2 = arith.constant 0 : index
    %1 = vector.load %arg1[%c0_1, %c0_2] : memref<1024x640xbf16, #tpu.memory_space<vmem>>, vector<1024x640xbf16>
    %cst = arith.constant dense<0.000000e+00> : vector<2x640xf32>
    %2 = tpu.matmul %0, %1, %cst {dimension_numbers = #tpu.dot_dimension_numbers<[1], [0], [0], [1], [0, 0, 1, 1], [], []>} : vector<2x1024xbf16>, vector<1024x640xbf16>, vector<2x640xf32> -> vector<2x640xf32>
    %c0_3 = arith.constant 0 : index
    %c0_4 = arith.constant 0 : index
    %3 = vector.load %arg2[%c0_3, %c0_4] : memref<1x640xf32, #tpu.memory_space<vmem>>, vector<1x640xf32>
    %4 = vector.broadcast %3 : vector<1x640xf32> to vector<2x640xf32>
    %5 = arith.addf %2, %4 : vector<2x640xf32>
    %c0_5 = arith.constant 0 : index
    %c0_6 = arith.constant 0 : index
    %6 = vector.load %arg14[%c0_5, %c0_6] : memref<2x640xf32, #tpu.memory_space<vmem>>, vector<2x640xf32>
    tpu.vector_store %arg14[%c0_5, %c0_6], %5 {strides = array<i32>} : memref<2x640xf32, #tpu.memory_space<vmem>>, vector<2x640xf32>,
    %7 = tpu.iota {dimensions = array<i32: 1>} : vector<2x128xi32>
    %c100_i32 = arith.constant 100 : i32
    %8 = vector.broadcast %c100_i32 : i32 to vector<2x128xi32>
    %9 = arith.cmpi slt, %7, %8 : vector<2x128xi32>
    %10 = vector.extract_strided_slice %5 {offsets = [0, 0], sizes = [2, 128], strides = [1, 1]} : vector<2x640xf32> to vector<2x128xf32>
    %11 = vector.extract_strided_slice %5 {offsets = [0, 128], sizes = [2, 128], strides = [1, 1]} : vector<2x640xf32> to vector<2x128xf32>
    %12 = vector.extract_strided_slice %5 {offsets = [0, 256], sizes = [2, 128], strides = [1, 1]} : vector<2x640xf32> to vector<2x128xf32>
    %13 = vector.extract_strided_slice %5 {offsets = [0, 384], sizes = [2, 128], strides = [1, 1]} : vector<2x640xf32> to vector<2x128xf32>
    %14 = vector.extract_strided_slice %5 {offsets = [0, 512], sizes = [2, 128], strides = [1, 1]} : vector<2x640xf32> to vector<2x128xf32>
    %c2_i32 = arith.constant 2 : i32
    %15 = tpu.dynamic_rotate %10 by %c2_i32 dim 1 : vector<2x128xf32>, i32 -> vector<2x128xf32>
    %c1_i32 = arith.constant 1 : i32
    %16 = tpu.dynamic_rotate %10 by %c1_i32 dim 1 : vector<2x128xf32>, i32 -> vector<2x128xf32>
    %c127_i32 = arith.constant 127 : i32
    %17 = tpu.dynamic_rotate %10 by %c127_i32 dim 1 : vector<2x128xf32>, i32 -> vector<2x128xf32>
    %c126_i32 = arith.constant 126 : i32
    %18 = tpu.dynamic_rotate %10 by %c126_i32 dim 1 : vector<2x128xf32>, i32 -> vector<2x128xf32>
    %c2_i32_7 = arith.constant 2 : i32
    %19 = tpu.dynamic_rotate %11 by %c2_i32_7 dim 1 : vector<2x128xf32>, i32 -> vector<2x128xf32>
    %c1_i32_8 = arith.constant 1 : i32
    %20 = tpu.dynamic_rotate %11 by %c1_i32_8 dim 1 : vector<2x128xf32>, i32 -> vector<2x128xf32>
    %c127_i32_9 = arith.constant 127 : i32
    %21 = tpu.dynamic_rotate %11 by %c127_i32_9 dim 1 : vector<2x128xf32>, i32 -> vector<2x128xf32>
    %c126_i32_10 = arith.constant 126 : i32
    %22 = tpu.dynamic_rotate %11 by %c126_i32_10 dim 1 : vector<2x128xf32>, i32 -> vector<2x128xf32>
    %c2_i32_11 = arith.constant 2 : i32
    %23 = tpu.dynamic_rotate %12 by %c2_i32_11 dim 1 : vector<2x128xf32>, i32 -> vector<2x128xf32>
    %c1_i32_12 = arith.constant 1 : i32
    %24 = tpu.dynamic_rotate %12 by %c1_i32_12 dim 1 : vector<2x128xf32>, i32 -> vector<2x128xf32>
    %c127_i32_13 = arith.constant 127 : i32
    %25 = tpu.dynamic_rotate %12 by %c127_i32_13 dim 1 : vector<2x128xf32>, i32 -> vector<2x128xf32>
    %c126_i32_14 = arith.constant 126 : i32
    %26 = tpu.dynamic_rotate %12 by %c126_i32_14 dim 1 : vector<2x128xf32>, i32 -> vector<2x128xf32>
    %c2_i32_15 = arith.constant 2 : i32
    %27 = tpu.dynamic_rotate %13 by %c2_i32_15 dim 1 : vector<2x128xf32>, i32 -> vector<2x128xf32>
    %c1_i32_16 = arith.constant 1 : i32
    %28 = tpu.dynamic_rotate %13 by %c1_i32_16 dim 1 : vector<2x128xf32>, i32 -> vector<2x128xf32>
    %c127_i32_17 = arith.constant 127 : i32
    %29 = tpu.dynamic_rotate %13 by %c127_i32_17 dim 1 : vector<2x128xf32>, i32 -> vector<2x128xf32>
    %c126_i32_18 = arith.constant 126 : i32
    %30 = tpu.dynamic_rotate %13 by %c126_i32_18 dim 1 : vector<2x128xf32>, i32 -> vector<2x128xf32>
    %c2_i32_19 = arith.constant 2 : i32
    %31 = tpu.dynamic_rotate %14 by %c2_i32_19 dim 1 : vector<2x128xf32>, i32 -> vector<2x128xf32>
    %c1_i32_20 = arith.constant 1 : i32
    %32 = tpu.dynamic_rotate %14 by %c1_i32_20 dim 1 : vector<2x128xf32>, i32 -> vector<2x128xf32>
    %c127_i32_21 = arith.constant 127 : i32
    %33 = tpu.dynamic_rotate %14 by %c127_i32_21 dim 1 : vector<2x128xf32>, i32 -> vector<2x128xf32>
    %c126_i32_22 = arith.constant 126 : i32
    %34 = tpu.dynamic_rotate %14 by %c126_i32_22 dim 1 : vector<2x128xf32>, i32 -> vector<2x128xf32>
    %c0_23 = arith.constant 0 : index
    %35 = memref.load %arg4[%c0_23] : memref<5xf32, #tpu.memory_space<smem>>
    %36 = vector.broadcast %35 : f32 to vector<2x128xf32>
    %c0_24 = arith.constant 0 : index
    %37 = memref.load %arg3[%c0_24] : memref<125xf32, #tpu.memory_space<smem>>
    %38 = vector.broadcast %37 : f32 to vector<2x128xf32>
    %39 = arith.mulf %38, %15 : vector<2x128xf32>
    %40 = arith.addf %36, %39 : vector<2x128xf32>
    %c1 = arith.constant 1 : index
    %41 = memref.load %arg3[%c1] : memref<125xf32, #tpu.memory_space<smem>>
    %42 = vector.broadcast %41 : f32 to vector<2x128xf32>
    %43 = arith.mulf %42, %16 : vector<2x128xf32>
    %44 = arith.addf %40, %43 : vector<2x128xf32>
    %c2 = arith.constant 2 : index
    %45 = memref.load %arg3[%c2] : memref<125xf32, #tpu.memory_space<smem>>
    %46 = vector.broadcast %45 : f32 to vector<2x128xf32>
    %47 = arith.mulf %46, %10 : vector<2x128xf32>
    %48 = arith.addf %44, %47 : vector<2x128xf32>
    %c3 = arith.constant 3 : index
    %49 = memref.load %arg3[%c3] : memref<125xf32, #tpu.memory_space<smem>>
    %50 = vector.broadcast %49 : f32 to vector<2x128xf32>
    %51 = arith.mulf %50, %17 : vector<2x128xf32>
    %52 = arith.addf %48, %51 : vector<2x128xf32>
    %c4 = arith.constant 4 : index
    %53 = memref.load %arg3[%c4] : memref<125xf32, #tpu.memory_space<smem>>
    %54 = vector.broadcast %53 : f32 to vector<2x128xf32>
    %55 = arith.mulf %54, %18 : vector<2x128xf32>
    %56 = arith.addf %52, %55 : vector<2x128xf32>
    %c5 = arith.constant 5 : index
    %57 = memref.load %arg3[%c5] : memref<125xf32, #tpu.memory_space<smem>>
    %58 = vector.broadcast %57 : f32 to vector<2x128xf32>
    %59 = arith.mulf %58, %19 : vector<2x128xf32>
    %60 = arith.addf %56, %59 : vector<2x128xf32>
    %c6 = arith.constant 6 : index
    %61 = memref.load %arg3[%c6] : memref<125xf32, #tpu.memory_space<smem>>
    %62 = vector.broadcast %61 : f32 to vector<2x128xf32>
    %63 = arith.mulf %62, %20 : vector<2x128xf32>
    %64 = arith.addf %60, %63 : vector<2x128xf32>
    %c7 = arith.constant 7 : index
    %65 = memref.load %arg3[%c7] : memref<125xf32, #tpu.memory_space<smem>>
    %66 = vector.broadcast %65 : f32 to vector<2x128xf32>
    %67 = arith.mulf %66, %11 : vector<2x128xf32>
    %68 = arith.addf %64, %67 : vector<2x128xf32>
    %c8 = arith.constant 8 : index
    %69 = memref.load %arg3[%c8] : memref<125xf32, #tpu.memory_space<smem>>
    %70 = vector.broadcast %69 : f32 to vector<2x128xf32>
    %71 = arith.mulf %70, %21 : vector<2x128xf32>
    %72 = arith.addf %68, %71 : vector<2x128xf32>
    %c9 = arith.constant 9 : index
    %73 = memref.load %arg3[%c9] : memref<125xf32, #tpu.memory_space<smem>>
    %74 = vector.broadcast %73 : f32 to vector<2x128xf32>
    %75 = arith.mulf %74, %22 : vector<2x128xf32>
    %76 = arith.addf %72, %75 : vector<2x128xf32>
    %c10 = arith.constant 10 : index
    %77 = memref.load %arg3[%c10] : memref<125xf32, #tpu.memory_space<smem>>
    %78 = vector.broadcast %77 : f32 to vector<2x128xf32>
    %79 = arith.mulf %78, %23 : vector<2x128xf32>
    %80 = arith.addf %76, %79 : vector<2x128xf32>
    %c11 = arith.constant 11 : index
    %81 = memref.load %arg3[%c11] : memref<125xf32, #tpu.memory_space<smem>>
    %82 = vector.broadcast %81 : f32 to vector<2x128xf32>
    %83 = arith.mulf %82, %24 : vector<2x128xf32>
    %84 = arith.addf %80, %83 : vector<2x128xf32>
    %c12 = arith.constant 12 : index
    %85 = memref.load %arg3[%c12] : memref<125xf32, #tpu.memory_space<smem>>
    %86 = vector.broadcast %85 : f32 to vector<2x128xf32>
    %87 = arith.mulf %86, %12 : vector<2x128xf32>
    %88 = arith.addf %84, %87 : vector<2x128xf32>
    %c13 = arith.constant 13 : index
    %89 = memref.load %arg3[%c13] : memref<125xf32, #tpu.memory_space<smem>>
    %90 = vector.broadcast %89 : f32 to vector<2x128xf32>
    %91 = arith.mulf %90, %25 : vector<2x128xf32>
    %92 = arith.addf %88, %91 : vector<2x128xf32>
    %c14 = arith.constant 14 : index
    %93 = memref.load %arg3[%c14] : memref<125xf32, #tpu.memory_space<smem>>
    %94 = vector.broadcast %93 : f32 to vector<2x128xf32>
    %95 = arith.mulf %94, %26 : vector<2x128xf32>
    %96 = arith.addf %92, %95 : vector<2x128xf32>
    %c15 = arith.constant 15 : index
    %97 = memref.load %arg3[%c15] : memref<125xf32, #tpu.memory_space<smem>>
    %98 = vector.broadcast %97 : f32 to vector<2x128xf32>
    %99 = arith.mulf %98, %27 : vector<2x128xf32>
    %100 = arith.addf %96, %99 : vector<2x128xf32>
    %c16 = arith.constant 16 : index
    %101 = memref.load %arg3[%c16] : memref<125xf32, #tpu.memory_space<smem>>
    %102 = vector.broadcast %101 : f32 to vector<2x128xf32>
    %103 = arith.mulf %102, %28 : vector<2x128xf32>
    %104 = arith.addf %100, %103 : vector<2x128xf32>
    %c17 = arith.constant 17 : index
    %105 = memref.load %arg3[%c17] : memref<125xf32, #tpu.memory_space<smem>>
    %106 = vector.broadcast %105 : f32 to vector<2x128xf32>
    %107 = arith.mulf %106, %13 : vector<2x128xf32>
    %108 = arith.addf %104, %107 : vector<2x128xf32>
    %c18 = arith.constant 18 : index
    %109 = memref.load %arg3[%c18] : memref<125xf32, #tpu.memory_space<smem>>
    %110 = vector.broadcast %109 : f32 to vector<2x128xf32>
    %111 = arith.mulf %110, %29 : vector<2x128xf32>
    %112 = arith.addf %108, %111 : vector<2x128xf32>
    %c19 = arith.constant 19 : index
    %113 = memref.load %arg3[%c19] : memref<125xf32, #tpu.memory_space<smem>>
    %114 = vector.broadcast %113 : f32 to vector<2x128xf32>
    %115 = arith.mulf %114, %30 : vector<2x128xf32>
    %116 = arith.addf %112, %115 : vector<2x128xf32>
    %c20 = arith.constant 20 : index
    %117 = memref.load %arg3[%c20] : memref<125xf32, #tpu.memory_space<smem>>
    %118 = vector.broadcast %117 : f32 to vector<2x128xf32>
    %119 = arith.mulf %118, %31 : vector<2x128xf32>
    %120 = arith.addf %116, %119 : vector<2x128xf32>
    %c21 = arith.constant 21 : index
    %121 = memref.load %arg3[%c21] : memref<125xf32, #tpu.memory_space<smem>>
    %122 = vector.broadcast %121 : f32 to vector<2x128xf32>
    %123 = arith.mulf %122, %32 : vector<2x128xf32>
    %124 = arith.addf %120, %123 : vector<2x128xf32>
    %c22 = arith.constant 22 : index
    %125 = memref.load %arg3[%c22] : memref<125xf32, #tpu.memory_space<smem>>
    %126 = vector.broadcast %125 : f32 to vector<2x128xf32>
    %127 = arith.mulf %126, %14 : vector<2x128xf32>
    %128 = arith.addf %124, %127 : vector<2x128xf32>
    %c23 = arith.constant 23 : index
    %129 = memref.load %arg3[%c23] : memref<125xf32, #tpu.memory_space<smem>>
    %130 = vector.broadcast %129 : f32 to vector<2x128xf32>
    %131 = arith.mulf %130, %33 : vector<2x128xf32>
    %132 = arith.addf %128, %131 : vector<2x128xf32>
    %c24 = arith.constant 24 : index
    %133 = memref.load %arg3[%c24] : memref<125xf32, #tpu.memory_space<smem>>
    %134 = vector.broadcast %133 : f32 to vector<2x128xf32>
    %135 = arith.mulf %134, %34 : vector<2x128xf32>
    %136 = arith.addf %132, %135 : vector<2x128xf32>
    %cst_25 = arith.constant 0.000000e+00 : f32
    %137 = vector.broadcast %cst_25 : f32 to vector<2x128xf32>
    %138 = arith.maximumf %136, %137 : vector<2x128xf32>
    %cst_26 = arith.constant 0.000000e+00 : f32
    %139 = vector.broadcast %cst_26 : f32 to vector<2x128xf32>
    %140 = arith.select %9, %138, %139 : vector<2x128xi1>, vector<2x128xf32>
    %c1_27 = arith.constant 1 : index
    %141 = memref.load %arg4[%c1_27] : memref<5xf32, #tpu.memory_space<smem>>
    %142 = vector.broadcast %141 : f32 to vector<2x128xf32>
    %c25 = arith.constant 25 : index
    %143 = memref.load %arg3[%c25] : memref<125xf32, #tpu.memory_space<smem>>
    %144 = vector.broadcast %143 : f32 to vector<2x128xf32>
    %145 = arith.mulf %144, %15 : vector<2x128xf32>
    %146 = arith.addf %142, %145 : vector<2x128xf32>
    %c26 = arith.constant 26 : index
    %147 = memref.load %arg3[%c26] : memref<125xf32, #tpu.memory_space<smem>>
    %148 = vector.broadcast %147 : f32 to vector<2x128xf32>
    %149 = arith.mulf %148, %16 : vector<2x128xf32>
    %150 = arith.addf %146, %149 : vector<2x128xf32>
    %c27 = arith.constant 27 : index
    %151 = memref.load %arg3[%c27] : memref<125xf32, #tpu.memory_space<smem>>
    %152 = vector.broadcast %151 : f32 to vector<2x128xf32>
    %153 = arith.mulf %152, %10 : vector<2x128xf32>
    %154 = arith.addf %150, %153 : vector<2x128xf32>
    %c28 = arith.constant 28 : index
    %155 = memref.load %arg3[%c28] : memref<125xf32, #tpu.memory_space<smem>>
    %156 = vector.broadcast %155 : f32 to vector<2x128xf32>
    %157 = arith.mulf %156, %17 : vector<2x128xf32>
    %158 = arith.addf %154, %157 : vector<2x128xf32>
    %c29 = arith.constant 29 : index
    %159 = memref.load %arg3[%c29] : memref<125xf32, #tpu.memory_space<smem>>
    %160 = vector.broadcast %159 : f32 to vector<2x128xf32>
    %161 = arith.mulf %160, %18 : vector<2x128xf32>
    %162 = arith.addf %158, %161 : vector<2x128xf32>
    %c30 = arith.constant 30 : index
    %163 = memref.load %arg3[%c30] : memref<125xf32, #tpu.memory_space<smem>>
    %164 = vector.broadcast %163 : f32 to vector<2x128xf32>
    %165 = arith.mulf %164, %19 : vector<2x128xf32>
    %166 = arith.addf %162, %165 : vector<2x128xf32>
    %c31 = arith.constant 31 : index
    %167 = memref.load %arg3[%c31] : memref<125xf32, #tpu.memory_space<smem>>
    %168 = vector.broadcast %167 : f32 to vector<2x128xf32>
    %169 = arith.mulf %168, %20 : vector<2x128xf32>
    %170 = arith.addf %166, %169 : vector<2x128xf32>
    %c32 = arith.constant 32 : index
    %171 = memref.load %arg3[%c32] : memref<125xf32, #tpu.memory_space<smem>>
    %172 = vector.broadcast %171 : f32 to vector<2x128xf32>
    %173 = arith.mulf %172, %11 : vector<2x128xf32>
    %174 = arith.addf %170, %173 : vector<2x128xf32>
    %c33 = arith.constant 33 : index
    %175 = memref.load %arg3[%c33] : memref<125xf32, #tpu.memory_space<smem>>
    %176 = vector.broadcast %175 : f32 to vector<2x128xf32>
    %177 = arith.mulf %176, %21 : vector<2x128xf32>
    %178 = arith.addf %174, %177 : vector<2x128xf32>
    %c34 = arith.constant 34 : index
    %179 = memref.load %arg3[%c34] : memref<125xf32, #tpu.memory_space<smem>>
    %180 = vector.broadcast %179 : f32 to vector<2x128xf32>
    %181 = arith.mulf %180, %22 : vector<2x128xf32>
    %182 = arith.addf %178, %181 : vector<2x128xf32>
    %c35 = arith.constant 35 : index
    %183 = memref.load %arg3[%c35] : memref<125xf32, #tpu.memory_space<smem>>
    %184 = vector.broadcast %183 : f32 to vector<2x128xf32>
    %185 = arith.mulf %184, %23 : vector<2x128xf32>
    %186 = arith.addf %182, %185 : vector<2x128xf32>
    %c36 = arith.constant 36 : index
    %187 = memref.load %arg3[%c36] : memref<125xf32, #tpu.memory_space<smem>>
    %188 = vector.broadcast %187 : f32 to vector<2x128xf32>
    %189 = arith.mulf %188, %24 : vector<2x128xf32>
    %190 = arith.addf %186, %189 : vector<2x128xf32>
    %c37 = arith.constant 37 : index
    %191 = memref.load %arg3[%c37] : memref<125xf32, #tpu.memory_space<smem>>
    %192 = vector.broadcast %191 : f32 to vector<2x128xf32>
    %193 = arith.mulf %192, %12 : vector<2x128xf32>
    %194 = arith.addf %190, %193 : vector<2x128xf32>
    %c38 = arith.constant 38 : index
    %195 = memref.load %arg3[%c38] : memref<125xf32, #tpu.memory_space<smem>>
    %196 = vector.broadcast %195 : f32 to vector<2x128xf32>
    %197 = arith.mulf %196, %25 : vector<2x128xf32>
    %198 = arith.addf %194, %197 : vector<2x128xf32>
    %c39 = arith.constant 39 : index
    %199 = memref.load %arg3[%c39] : memref<125xf32, #tpu.memory_space<smem>>
    %200 = vector.broadcast %199 : f32 to vector<2x128xf32>
    %201 = arith.mulf %200, %26 : vector<2x128xf32>
    %202 = arith.addf %198, %201 : vector<2x128xf32>
    %c40 = arith.constant 40 : index
    %203 = memref.load %arg3[%c40] : memref<125xf32, #tpu.memory_space<smem>>
    %204 = vector.broadcast %203 : f32 to vector<2x128xf32>
    %205 = arith.mulf %204, %27 : vector<2x128xf32>
    %206 = arith.addf %202, %205 : vector<2x128xf32>
    %c41 = arith.constant 41 : index
    %207 = memref.load %arg3[%c41] : memref<125xf32, #tpu.memory_space<smem>>
    %208 = vector.broadcast %207 : f32 to vector<2x128xf32>
    %209 = arith.mulf %208, %28 : vector<2x128xf32>
    %210 = arith.addf %206, %209 : vector<2x128xf32>
    %c42 = arith.constant 42 : index
    %211 = memref.load %arg3[%c42] : memref<125xf32, #tpu.memory_space<smem>>
    %212 = vector.broadcast %211 : f32 to vector<2x128xf32>
    %213 = arith.mulf %212, %13 : vector<2x128xf32>
    %214 = arith.addf %210, %213 : vector<2x128xf32>
    %c43 = arith.constant 43 : index
    %215 = memref.load %arg3[%c43] : memref<125xf32, #tpu.memory_space<smem>>
    %216 = vector.broadcast %215 : f32 to vector<2x128xf32>
    %217 = arith.mulf %216, %29 : vector<2x128xf32>
    %218 = arith.addf %214, %217 : vector<2x128xf32>
    %c44 = arith.constant 44 : index
    %219 = memref.load %arg3[%c44] : memref<125xf32, #tpu.memory_space<smem>>
    %220 = vector.broadcast %219 : f32 to vector<2x128xf32>
    %221 = arith.mulf %220, %30 : vector<2x128xf32>
    %222 = arith.addf %218, %221 : vector<2x128xf32>
    %c45 = arith.constant 45 : index
    %223 = memref.load %arg3[%c45] : memref<125xf32, #tpu.memory_space<smem>>
    %224 = vector.broadcast %223 : f32 to vector<2x128xf32>
    %225 = arith.mulf %224, %31 : vector<2x128xf32>
    %226 = arith.addf %222, %225 : vector<2x128xf32>
    %c46 = arith.constant 46 : index
    %227 = memref.load %arg3[%c46] : memref<125xf32, #tpu.memory_space<smem>>
    %228 = vector.broadcast %227 : f32 to vector<2x128xf32>
    %229 = arith.mulf %228, %32 : vector<2x128xf32>
    %230 = arith.addf %226, %229 : vector<2x128xf32>
    %c47 = arith.constant 47 : index
    %231 = memref.load %arg3[%c47] : memref<125xf32, #tpu.memory_space<smem>>
    %232 = vector.broadcast %231 : f32 to vector<2x128xf32>
    %233 = arith.mulf %232, %14 : vector<2x128xf32>
    %234 = arith.addf %230, %233 : vector<2x128xf32>
    %c48 = arith.constant 48 : index
    %235 = memref.load %arg3[%c48] : memref<125xf32, #tpu.memory_space<smem>>
    %236 = vector.broadcast %235 : f32 to vector<2x128xf32>
    %237 = arith.mulf %236, %33 : vector<2x128xf32>
    %238 = arith.addf %234, %237 : vector<2x128xf32>
    %c49 = arith.constant 49 : index
    %239 = memref.load %arg3[%c49] : memref<125xf32, #tpu.memory_space<smem>>
    %240 = vector.broadcast %239 : f32 to vector<2x128xf32>
    %241 = arith.mulf %240, %34 : vector<2x128xf32>
    %242 = arith.addf %238, %241 : vector<2x128xf32>
    %cst_28 = arith.constant 0.000000e+00 : f32
    %243 = vector.broadcast %cst_28 : f32 to vector<2x128xf32>
    %244 = arith.maximumf %242, %243 : vector<2x128xf32>
    %cst_29 = arith.constant 0.000000e+00 : f32
    %245 = vector.broadcast %cst_29 : f32 to vector<2x128xf32>
    %246 = arith.select %9, %244, %245 : vector<2x128xi1>, vector<2x128xf32>
    %c2_30 = arith.constant 2 : index
    %247 = memref.load %arg4[%c2_30] : memref<5xf32, #tpu.memory_space<smem>>
    %248 = vector.broadcast %247 : f32 to vector<2x128xf32>
    %c50 = arith.constant 50 : index
    %249 = memref.load %arg3[%c50] : memref<125xf32, #tpu.memory_space<smem>>
    %250 = vector.broadcast %249 : f32 to vector<2x128xf32>
    %251 = arith.mulf %250, %15 : vector<2x128xf32>
    %252 = arith.addf %248, %251 : vector<2x128xf32>
    %c51 = arith.constant 51 : index
    %253 = memref.load %arg3[%c51] : memref<125xf32, #tpu.memory_space<smem>>
    %254 = vector.broadcast %253 : f32 to vector<2x128xf32>
    %255 = arith.mulf %254, %16 : vector<2x128xf32>
    %256 = arith.addf %252, %255 : vector<2x128xf32>
    %c52 = arith.constant 52 : index
    %257 = memref.load %arg3[%c52] : memref<125xf32, #tpu.memory_space<smem>>
    %258 = vector.broadcast %257 : f32 to vector<2x128xf32>
    %259 = arith.mulf %258, %10 : vector<2x128xf32>
    %260 = arith.addf %256, %259 : vector<2x128xf32>
    %c53 = arith.constant 53 : index
    %261 = memref.load %arg3[%c53] : memref<125xf32, #tpu.memory_space<smem>>
    %262 = vector.broadcast %261 : f32 to vector<2x128xf32>
    %263 = arith.mulf %262, %17 : vector<2x128xf32>
    %264 = arith.addf %260, %263 : vector<2x128xf32>
    %c54 = arith.constant 54 : index
    %265 = memref.load %arg3[%c54] : memref<125xf32, #tpu.memory_space<smem>>
    %266 = vector.broadcast %265 : f32 to vector<2x128xf32>
    %267 = arith.mulf %266, %18 : vector<2x128xf32>
    %268 = arith.addf %264, %267 : vector<2x128xf32>
    %c55 = arith.constant 55 : index
    %269 = memref.load %arg3[%c55] : memref<125xf32, #tpu.memory_space<smem>>
    %270 = vector.broadcast %269 : f32 to vector<2x128xf32>
    %271 = arith.mulf %270, %19 : vector<2x128xf32>
    %272 = arith.addf %268, %271 : vector<2x128xf32>
    %c56 = arith.constant 56 : index
    %273 = memref.load %arg3[%c56] : memref<125xf32, #tpu.memory_space<smem>>
    %274 = vector.broadcast %273 : f32 to vector<2x128xf32>
    %275 = arith.mulf %274, %20 : vector<2x128xf32>
    %276 = arith.addf %272, %275 : vector<2x128xf32>
    %c57 = arith.constant 57 : index
    %277 = memref.load %arg3[%c57] : memref<125xf32, #tpu.memory_space<smem>>
    %278 = vector.broadcast %277 : f32 to vector<2x128xf32>
    %279 = arith.mulf %278, %11 : vector<2x128xf32>
    %280 = arith.addf %276, %279 : vector<2x128xf32>
    %c58 = arith.constant 58 : index
    %281 = memref.load %arg3[%c58] : memref<125xf32, #tpu.memory_space<smem>>
    %282 = vector.broadcast %281 : f32 to vector<2x128xf32>
    %283 = arith.mulf %282, %21 : vector<2x128xf32>
    %284 = arith.addf %280, %283 : vector<2x128xf32>
    %c59 = arith.constant 59 : index
    %285 = memref.load %arg3[%c59] : memref<125xf32, #tpu.memory_space<smem>>
    %286 = vector.broadcast %285 : f32 to vector<2x128xf32>
    %287 = arith.mulf %286, %22 : vector<2x128xf32>
    %288 = arith.addf %284, %287 : vector<2x128xf32>
    %c60 = arith.constant 60 : index
    %289 = memref.load %arg3[%c60] : memref<125xf32, #tpu.memory_space<smem>>
    %290 = vector.broadcast %289 : f32 to vector<2x128xf32>
    %291 = arith.mulf %290, %23 : vector<2x128xf32>
    %292 = arith.addf %288, %291 : vector<2x128xf32>
    %c61 = arith.constant 61 : index
    %293 = memref.load %arg3[%c61] : memref<125xf32, #tpu.memory_space<smem>>
    %294 = vector.broadcast %293 : f32 to vector<2x128xf32>
    %295 = arith.mulf %294, %24 : vector<2x128xf32>
    %296 = arith.addf %292, %295 : vector<2x128xf32>
    %c62 = arith.constant 62 : index
    %297 = memref.load %arg3[%c62] : memref<125xf32, #tpu.memory_space<smem>>
    %298 = vector.broadcast %297 : f32 to vector<2x128xf32>
    %299 = arith.mulf %298, %12 : vector<2x128xf32>
    %300 = arith.addf %296, %299 : vector<2x128xf32>
    %c63 = arith.constant 63 : index
    %301 = memref.load %arg3[%c63] : memref<125xf32, #tpu.memory_space<smem>>
    %302 = vector.broadcast %301 : f32 to vector<2x128xf32>
    %303 = arith.mulf %302, %25 : vector<2x128xf32>
    %304 = arith.addf %300, %303 : vector<2x128xf32>
    %c64 = arith.constant 64 : index
    %305 = memref.load %arg3[%c64] : memref<125xf32, #tpu.memory_space<smem>>
    %306 = vector.broadcast %305 : f32 to vector<2x128xf32>
    %307 = arith.mulf %306, %26 : vector<2x128xf32>
    %308 = arith.addf %304, %307 : vector<2x128xf32>
    %c65 = arith.constant 65 : index
    %309 = memref.load %arg3[%c65] : memref<125xf32, #tpu.memory_space<smem>>
    %310 = vector.broadcast %309 : f32 to vector<2x128xf32>
    %311 = arith.mulf %310, %27 : vector<2x128xf32>
    %312 = arith.addf %308, %311 : vector<2x128xf32>
    %c66 = arith.constant 66 : index
    %313 = memref.load %arg3[%c66] : memref<125xf32, #tpu.memory_space<smem>>
    %314 = vector.broadcast %313 : f32 to vector<2x128xf32>
    %315 = arith.mulf %314, %28 : vector<2x128xf32>
    %316 = arith.addf %312, %315 : vector<2x128xf32>
    %c67 = arith.constant 67 : index
    %317 = memref.load %arg3[%c67] : memref<125xf32, #tpu.memory_space<smem>>
    %318 = vector.broadcast %317 : f32 to vector<2x128xf32>
    %319 = arith.mulf %318, %13 : vector<2x128xf32>
    %320 = arith.addf %316, %319 : vector<2x128xf32>
    %c68 = arith.constant 68 : index
    %321 = memref.load %arg3[%c68] : memref<125xf32, #tpu.memory_space<smem>>
    %322 = vector.broadcast %321 : f32 to vector<2x128xf32>
    %323 = arith.mulf %322, %29 : vector<2x128xf32>
    %324 = arith.addf %320, %323 : vector<2x128xf32>
    %c69 = arith.constant 69 : index
    %325 = memref.load %arg3[%c69] : memref<125xf32, #tpu.memory_space<smem>>
    %326 = vector.broadcast %325 : f32 to vector<2x128xf32>
    %327 = arith.mulf %326, %30 : vector<2x128xf32>
    %328 = arith.addf %324, %327 : vector<2x128xf32>
    %c70 = arith.constant 70 : index
    %329 = memref.load %arg3[%c70] : memref<125xf32, #tpu.memory_space<smem>>
    %330 = vector.broadcast %329 : f32 to vector<2x128xf32>
    %331 = arith.mulf %330, %31 : vector<2x128xf32>
    %332 = arith.addf %328, %331 : vector<2x128xf32>
    %c71 = arith.constant 71 : index
    %333 = memref.load %arg3[%c71] : memref<125xf32, #tpu.memory_space<smem>>
    %334 = vector.broadcast %333 : f32 to vector<2x128xf32>
    %335 = arith.mulf %334, %32 : vector<2x128xf32>
    %336 = arith.addf %332, %335 : vector<2x128xf32>
    %c72 = arith.constant 72 : index
    %337 = memref.load %arg3[%c72] : memref<125xf32, #tpu.memory_space<smem>>
    %338 = vector.broadcast %337 : f32 to vector<2x128xf32>
    %339 = arith.mulf %338, %14 : vector<2x128xf32>
    %340 = arith.addf %336, %339 : vector<2x128xf32>
    %c73 = arith.constant 73 : index
    %341 = memref.load %arg3[%c73] : memref<125xf32, #tpu.memory_space<smem>>
    %342 = vector.broadcast %341 : f32 to vector<2x128xf32>
    %343 = arith.mulf %342, %33 : vector<2x128xf32>
    %344 = arith.addf %340, %343 : vector<2x128xf32>
    %c74 = arith.constant 74 : index
    %345 = memref.load %arg3[%c74] : memref<125xf32, #tpu.memory_space<smem>>
    %346 = vector.broadcast %345 : f32 to vector<2x128xf32>
    %347 = arith.mulf %346, %34 : vector<2x128xf32>
    %348 = arith.addf %344, %347 : vector<2x128xf32>
    %cst_31 = arith.constant 0.000000e+00 : f32
    %349 = vector.broadcast %cst_31 : f32 to vector<2x128xf32>
    %350 = arith.maximumf %348, %349 : vector<2x128xf32>
    %cst_32 = arith.constant 0.000000e+00 : f32
    %351 = vector.broadcast %cst_32 : f32 to vector<2x128xf32>
    %352 = arith.select %9, %350, %351 : vector<2x128xi1>, vector<2x128xf32>
    %c3_33 = arith.constant 3 : index
    %353 = memref.load %arg4[%c3_33] : memref<5xf32, #tpu.memory_space<smem>>
    %354 = vector.broadcast %353 : f32 to vector<2x128xf32>
    %c75 = arith.constant 75 : index
    %355 = memref.load %arg3[%c75] : memref<125xf32, #tpu.memory_space<smem>>
    %356 = vector.broadcast %355 : f32 to vector<2x128xf32>
    %357 = arith.mulf %356, %15 : vector<2x128xf32>
    %358 = arith.addf %354, %357 : vector<2x128xf32>
    %c76 = arith.constant 76 : index
    %359 = memref.load %arg3[%c76] : memref<125xf32, #tpu.memory_space<smem>>
    %360 = vector.broadcast %359 : f32 to vector<2x128xf32>
    %361 = arith.mulf %360, %16 : vector<2x128xf32>
    %362 = arith.addf %358, %361 : vector<2x128xf32>
    %c77 = arith.constant 77 : index
    %363 = memref.load %arg3[%c77] : memref<125xf32, #tpu.memory_space<smem>>
    %364 = vector.broadcast %363 : f32 to vector<2x128xf32>
    %365 = arith.mulf %364, %10 : vector<2x128xf32>
    %366 = arith.addf %362, %365 : vector<2x128xf32>
    %c78 = arith.constant 78 : index
    %367 = memref.load %arg3[%c78] : memref<125xf32, #tpu.memory_space<smem>>
    %368 = vector.broadcast %367 : f32 to vector<2x128xf32>
    %369 = arith.mulf %368, %17 : vector<2x128xf32>
    %370 = arith.addf %366, %369 : vector<2x128xf32>
    %c79 = arith.constant 79 : index
    %371 = memref.load %arg3[%c79] : memref<125xf32, #tpu.memory_space<smem>>
    %372 = vector.broadcast %371 : f32 to vector<2x128xf32>
    %373 = arith.mulf %372, %18 : vector<2x128xf32>
    %374 = arith.addf %370, %373 : vector<2x128xf32>
    %c80 = arith.constant 80 : index
    %375 = memref.load %arg3[%c80] : memref<125xf32, #tpu.memory_space<smem>>
    %376 = vector.broadcast %375 : f32 to vector<2x128xf32>
    %377 = arith.mulf %376, %19 : vector<2x128xf32>
    %378 = arith.addf %374, %377 : vector<2x128xf32>
    %c81 = arith.constant 81 : index
    %379 = memref.load %arg3[%c81] : memref<125xf32, #tpu.memory_space<smem>>
    %380 = vector.broadcast %379 : f32 to vector<2x128xf32>
    %381 = arith.mulf %380, %20 : vector<2x128xf32>
    %382 = arith.addf %378, %381 : vector<2x128xf32>
    %c82 = arith.constant 82 : index
    %383 = memref.load %arg3[%c82] : memref<125xf32, #tpu.memory_space<smem>>
    %384 = vector.broadcast %383 : f32 to vector<2x128xf32>
    %385 = arith.mulf %384, %11 : vector<2x128xf32>
    %386 = arith.addf %382, %385 : vector<2x128xf32>
    %c83 = arith.constant 83 : index
    %387 = memref.load %arg3[%c83] : memref<125xf32, #tpu.memory_space<smem>>
    %388 = vector.broadcast %387 : f32 to vector<2x128xf32>
    %389 = arith.mulf %388, %21 : vector<2x128xf32>
    %390 = arith.addf %386, %389 : vector<2x128xf32>
    %c84 = arith.constant 84 : index
    %391 = memref.load %arg3[%c84] : memref<125xf32, #tpu.memory_space<smem>>
    %392 = vector.broadcast %391 : f32 to vector<2x128xf32>
    %393 = arith.mulf %392, %22 : vector<2x128xf32>
    %394 = arith.addf %390, %393 : vector<2x128xf32>
    %c85 = arith.constant 85 : index
    %395 = memref.load %arg3[%c85] : memref<125xf32, #tpu.memory_space<smem>>
    %396 = vector.broadcast %395 : f32 to vector<2x128xf32>
    %397 = arith.mulf %396, %23 : vector<2x128xf32>
    %398 = arith.addf %394, %397 : vector<2x128xf32>
    %c86 = arith.constant 86 : index
    %399 = memref.load %arg3[%c86] : memref<125xf32, #tpu.memory_space<smem>>
    %400 = vector.broadcast %399 : f32 to vector<2x128xf32>
    %401 = arith.mulf %400, %24 : vector<2x128xf32>
    %402 = arith.addf %398, %401 : vector<2x128xf32>
    %c87 = arith.constant 87 : index
    %403 = memref.load %arg3[%c87] : memref<125xf32, #tpu.memory_space<smem>>
    %404 = vector.broadcast %403 : f32 to vector<2x128xf32>
    %405 = arith.mulf %404, %12 : vector<2x128xf32>
    %406 = arith.addf %402, %405 : vector<2x128xf32>
    %c88 = arith.constant 88 : index
    %407 = memref.load %arg3[%c88] : memref<125xf32, #tpu.memory_space<smem>>
    %408 = vector.broadcast %407 : f32 to vector<2x128xf32>
    %409 = arith.mulf %408, %25 : vector<2x128xf32>
    %410 = arith.addf %406, %409 : vector<2x128xf32>
    %c89 = arith.constant 89 : index
    %411 = memref.load %arg3[%c89] : memref<125xf32, #tpu.memory_space<smem>>
    %412 = vector.broadcast %411 : f32 to vector<2x128xf32>
    %413 = arith.mulf %412, %26 : vector<2x128xf32>
    %414 = arith.addf %410, %413 : vector<2x128xf32>
    %c90 = arith.constant 90 : index
    %415 = memref.load %arg3[%c90] : memref<125xf32, #tpu.memory_space<smem>>
    %416 = vector.broadcast %415 : f32 to vector<2x128xf32>
    %417 = arith.mulf %416, %27 : vector<2x128xf32>
    %418 = arith.addf %414, %417 : vector<2x128xf32>
    %c91 = arith.constant 91 : index
    %419 = memref.load %arg3[%c91] : memref<125xf32, #tpu.memory_space<smem>>
    %420 = vector.broadcast %419 : f32 to vector<2x128xf32>
    %421 = arith.mulf %420, %28 : vector<2x128xf32>
    %422 = arith.addf %418, %421 : vector<2x128xf32>
    %c92 = arith.constant 92 : index
    %423 = memref.load %arg3[%c92] : memref<125xf32, #tpu.memory_space<smem>>
    %424 = vector.broadcast %423 : f32 to vector<2x128xf32>
    %425 = arith.mulf %424, %13 : vector<2x128xf32>
    %426 = arith.addf %422, %425 : vector<2x128xf32>
    %c93 = arith.constant 93 : index
    %427 = memref.load %arg3[%c93] : memref<125xf32, #tpu.memory_space<smem>>
    %428 = vector.broadcast %427 : f32 to vector<2x128xf32>
    %429 = arith.mulf %428, %29 : vector<2x128xf32>
    %430 = arith.addf %426, %429 : vector<2x128xf32>
    %c94 = arith.constant 94 : index
    %431 = memref.load %arg3[%c94] : memref<125xf32, #tpu.memory_space<smem>>
    %432 = vector.broadcast %431 : f32 to vector<2x128xf32>
    %433 = arith.mulf %432, %30 : vector<2x128xf32>
    %434 = arith.addf %430, %433 : vector<2x128xf32>
    %c95 = arith.constant 95 : index
    %435 = memref.load %arg3[%c95] : memref<125xf32, #tpu.memory_space<smem>>
    %436 = vector.broadcast %435 : f32 to vector<2x128xf32>
    %437 = arith.mulf %436, %31 : vector<2x128xf32>
    %438 = arith.addf %434, %437 : vector<2x128xf32>
    %c96 = arith.constant 96 : index
    %439 = memref.load %arg3[%c96] : memref<125xf32, #tpu.memory_space<smem>>
    %440 = vector.broadcast %439 : f32 to vector<2x128xf32>
    %441 = arith.mulf %440, %32 : vector<2x128xf32>
    %442 = arith.addf %438, %441 : vector<2x128xf32>
    %c97 = arith.constant 97 : index
    %443 = memref.load %arg3[%c97] : memref<125xf32, #tpu.memory_space<smem>>
    %444 = vector.broadcast %443 : f32 to vector<2x128xf32>
    %445 = arith.mulf %444, %14 : vector<2x128xf32>
    %446 = arith.addf %442, %445 : vector<2x128xf32>
    %c98 = arith.constant 98 : index
    %447 = memref.load %arg3[%c98] : memref<125xf32, #tpu.memory_space<smem>>
    %448 = vector.broadcast %447 : f32 to vector<2x128xf32>
    %449 = arith.mulf %448, %33 : vector<2x128xf32>
    %450 = arith.addf %446, %449 : vector<2x128xf32>
    %c99 = arith.constant 99 : index
    %451 = memref.load %arg3[%c99] : memref<125xf32, #tpu.memory_space<smem>>
    %452 = vector.broadcast %451 : f32 to vector<2x128xf32>
    %453 = arith.mulf %452, %34 : vector<2x128xf32>
    %454 = arith.addf %450, %453 : vector<2x128xf32>
    %cst_34 = arith.constant 0.000000e+00 : f32
    %455 = vector.broadcast %cst_34 : f32 to vector<2x128xf32>
    %456 = arith.maximumf %454, %455 : vector<2x128xf32>
    %cst_35 = arith.constant 0.000000e+00 : f32
    %457 = vector.broadcast %cst_35 : f32 to vector<2x128xf32>
    %458 = arith.select %9, %456, %457 : vector<2x128xi1>, vector<2x128xf32>
    %c4_36 = arith.constant 4 : index
    %459 = memref.load %arg4[%c4_36] : memref<5xf32, #tpu.memory_space<smem>>
    %460 = vector.broadcast %459 : f32 to vector<2x128xf32>
    %c100 = arith.constant 100 : index
    %461 = memref.load %arg3[%c100] : memref<125xf32, #tpu.memory_space<smem>>
    %462 = vector.broadcast %461 : f32 to vector<2x128xf32>
    %463 = arith.mulf %462, %15 : vector<2x128xf32>
    %464 = arith.addf %460, %463 : vector<2x128xf32>
    %c101 = arith.constant 101 : index
    %465 = memref.load %arg3[%c101] : memref<125xf32, #tpu.memory_space<smem>>
    %466 = vector.broadcast %465 : f32 to vector<2x128xf32>
    %467 = arith.mulf %466, %16 : vector<2x128xf32>
    %468 = arith.addf %464, %467 : vector<2x128xf32>
    %c102 = arith.constant 102 : index
    %469 = memref.load %arg3[%c102] : memref<125xf32, #tpu.memory_space<smem>>
    %470 = vector.broadcast %469 : f32 to vector<2x128xf32>
    %471 = arith.mulf %470, %10 : vector<2x128xf32>
    %472 = arith.addf %468, %471 : vector<2x128xf32>
    %c103 = arith.constant 103 : index
    %473 = memref.load %arg3[%c103] : memref<125xf32, #tpu.memory_space<smem>>
    %474 = vector.broadcast %473 : f32 to vector<2x128xf32>
    %475 = arith.mulf %474, %17 : vector<2x128xf32>
    %476 = arith.addf %472, %475 : vector<2x128xf32>
    %c104 = arith.constant 104 : index
    %477 = memref.load %arg3[%c104] : memref<125xf32, #tpu.memory_space<smem>>
    %478 = vector.broadcast %477 : f32 to vector<2x128xf32>
    %479 = arith.mulf %478, %18 : vector<2x128xf32>
    %480 = arith.addf %476, %479 : vector<2x128xf32>
    %c105 = arith.constant 105 : index
    %481 = memref.load %arg3[%c105] : memref<125xf32, #tpu.memory_space<smem>>
    %482 = vector.broadcast %481 : f32 to vector<2x128xf32>
    %483 = arith.mulf %482, %19 : vector<2x128xf32>
    %484 = arith.addf %480, %483 : vector<2x128xf32>
    %c106 = arith.constant 106 : index
    %485 = memref.load %arg3[%c106] : memref<125xf32, #tpu.memory_space<smem>>
    %486 = vector.broadcast %485 : f32 to vector<2x128xf32>
    %487 = arith.mulf %486, %20 : vector<2x128xf32>
    %488 = arith.addf %484, %487 : vector<2x128xf32>
    %c107 = arith.constant 107 : index
    %489 = memref.load %arg3[%c107] : memref<125xf32, #tpu.memory_space<smem>>
    %490 = vector.broadcast %489 : f32 to vector<2x128xf32>
    %491 = arith.mulf %490, %11 : vector<2x128xf32>
    %492 = arith.addf %488, %491 : vector<2x128xf32>
    %c108 = arith.constant 108 : index
    %493 = memref.load %arg3[%c108] : memref<125xf32, #tpu.memory_space<smem>>
    %494 = vector.broadcast %493 : f32 to vector<2x128xf32>
    %495 = arith.mulf %494, %21 : vector<2x128xf32>
    %496 = arith.addf %492, %495 : vector<2x128xf32>
    %c109 = arith.constant 109 : index
    %497 = memref.load %arg3[%c109] : memref<125xf32, #tpu.memory_space<smem>>
    %498 = vector.broadcast %497 : f32 to vector<2x128xf32>
    %499 = arith.mulf %498, %22 : vector<2x128xf32>
    %500 = arith.addf %496, %499 : vector<2x128xf32>
    %c110 = arith.constant 110 : index
    %501 = memref.load %arg3[%c110] : memref<125xf32, #tpu.memory_space<smem>>
    %502 = vector.broadcast %501 : f32 to vector<2x128xf32>
    %503 = arith.mulf %502, %23 : vector<2x128xf32>
    %504 = arith.addf %500, %503 : vector<2x128xf32>
    %c111 = arith.constant 111 : index
    %505 = memref.load %arg3[%c111] : memref<125xf32, #tpu.memory_space<smem>>
    %506 = vector.broadcast %505 : f32 to vector<2x128xf32>
    %507 = arith.mulf %506, %24 : vector<2x128xf32>
    %508 = arith.addf %504, %507 : vector<2x128xf32>
    %c112 = arith.constant 112 : index
    %509 = memref.load %arg3[%c112] : memref<125xf32, #tpu.memory_space<smem>>
    %510 = vector.broadcast %509 : f32 to vector<2x128xf32>
    %511 = arith.mulf %510, %12 : vector<2x128xf32>
    %512 = arith.addf %508, %511 : vector<2x128xf32>
    %c113 = arith.constant 113 : index
    %513 = memref.load %arg3[%c113] : memref<125xf32, #tpu.memory_space<smem>>
    %514 = vector.broadcast %513 : f32 to vector<2x128xf32>
    %515 = arith.mulf %514, %25 : vector<2x128xf32>
    %516 = arith.addf %512, %515 : vector<2x128xf32>
    %c114 = arith.constant 114 : index
    %517 = memref.load %arg3[%c114] : memref<125xf32, #tpu.memory_space<smem>>
    %518 = vector.broadcast %517 : f32 to vector<2x128xf32>
    %519 = arith.mulf %518, %26 : vector<2x128xf32>
    %520 = arith.addf %516, %519 : vector<2x128xf32>
    %c115 = arith.constant 115 : index
    %521 = memref.load %arg3[%c115] : memref<125xf32, #tpu.memory_space<smem>>
    %522 = vector.broadcast %521 : f32 to vector<2x128xf32>
    %523 = arith.mulf %522, %27 : vector<2x128xf32>
    %524 = arith.addf %520, %523 : vector<2x128xf32>
    %c116 = arith.constant 116 : index
    %525 = memref.load %arg3[%c116] : memref<125xf32, #tpu.memory_space<smem>>
    %526 = vector.broadcast %525 : f32 to vector<2x128xf32>
    %527 = arith.mulf %526, %28 : vector<2x128xf32>
    %528 = arith.addf %524, %527 : vector<2x128xf32>
    %c117 = arith.constant 117 : index
    %529 = memref.load %arg3[%c117] : memref<125xf32, #tpu.memory_space<smem>>
    %530 = vector.broadcast %529 : f32 to vector<2x128xf32>
    %531 = arith.mulf %530, %13 : vector<2x128xf32>
    %532 = arith.addf %528, %531 : vector<2x128xf32>
    %c118 = arith.constant 118 : index
    %533 = memref.load %arg3[%c118] : memref<125xf32, #tpu.memory_space<smem>>
    %534 = vector.broadcast %533 : f32 to vector<2x128xf32>
    %535 = arith.mulf %534, %29 : vector<2x128xf32>
    %536 = arith.addf %532, %535 : vector<2x128xf32>
    %c119 = arith.constant 119 : index
    %537 = memref.load %arg3[%c119] : memref<125xf32, #tpu.memory_space<smem>>
    %538 = vector.broadcast %537 : f32 to vector<2x128xf32>
    %539 = arith.mulf %538, %30 : vector<2x128xf32>
    %540 = arith.addf %536, %539 : vector<2x128xf32>
    %c120 = arith.constant 120 : index
    %541 = memref.load %arg3[%c120] : memref<125xf32, #tpu.memory_space<smem>>
    %542 = vector.broadcast %541 : f32 to vector<2x128xf32>
    %543 = arith.mulf %542, %31 : vector<2x128xf32>
    %544 = arith.addf %540, %543 : vector<2x128xf32>
    %c121 = arith.constant 121 : index
    %545 = memref.load %arg3[%c121] : memref<125xf32, #tpu.memory_space<smem>>
    %546 = vector.broadcast %545 : f32 to vector<2x128xf32>
    %547 = arith.mulf %546, %32 : vector<2x128xf32>
    %548 = arith.addf %544, %547 : vector<2x128xf32>
    %c122 = arith.constant 122 : index
    %549 = memref.load %arg3[%c122] : memref<125xf32, #tpu.memory_space<smem>>
    %550 = vector.broadcast %549 : f32 to vector<2x128xf32>
    %551 = arith.mulf %550, %14 : vector<2x128xf32>
    %552 = arith.addf %548, %551 : vector<2x128xf32>
    %c123 = arith.constant 123 : index
    %553 = memref.load %arg3[%c123] : memref<125xf32, #tpu.memory_space<smem>>
    %554 = vector.broadcast %553 : f32 to vector<2x128xf32>
    %555 = arith.mulf %554, %33 : vector<2x128xf32>
    %556 = arith.addf %552, %555 : vector<2x128xf32>
    %c124 = arith.constant 124 : index
    %557 = memref.load %arg3[%c124] : memref<125xf32, #tpu.memory_space<smem>>
    %558 = vector.broadcast %557 : f32 to vector<2x128xf32>
    %559 = arith.mulf %558, %34 : vector<2x128xf32>
    %560 = arith.addf %556, %559 : vector<2x128xf32>
    %cst_37 = arith.constant 0.000000e+00 : f32
    %561 = vector.broadcast %cst_37 : f32 to vector<2x128xf32>
    %562 = arith.maximumf %560, %561 : vector<2x128xf32>
    %cst_38 = arith.constant 0.000000e+00 : f32
    %563 = vector.broadcast %cst_38 : f32 to vector<2x128xf32>
    %564 = arith.select %9, %562, %563 : vector<2x128xi1>, vector<2x128xf32>
    %c2_i32_39 = arith.constant 2 : i32
    %565 = tpu.dynamic_rotate %140 by %c2_i32_39 dim 1 : vector<2x128xf32>, i32 -> vector<2x128xf32>
    %c1_i32_40 = arith.constant 1 : i32
    %566 = tpu.dynamic_rotate %140 by %c1_i32_40 dim 1 : vector<2x128xf32>, i32 -> vector<2x128xf32>
    %c127_i32_41 = arith.constant 127 : i32
    %567 = tpu.dynamic_rotate %140 by %c127_i32_41 dim 1 : vector<2x128xf32>, i32 -> vector<2x128xf32>
    %c126_i32_42 = arith.constant 126 : i32
    %568 = tpu.dynamic_rotate %140 by %c126_i32_42 dim 1 : vector<2x128xf32>, i32 -> vector<2x128xf32>
    %c2_i32_43 = arith.constant 2 : i32
    %569 = tpu.dynamic_rotate %246 by %c2_i32_43 dim 1 : vector<2x128xf32>, i32 -> vector<2x128xf32>
    %c1_i32_44 = arith.constant 1 : i32
    %570 = tpu.dynamic_rotate %246 by %c1_i32_44 dim 1 : vector<2x128xf32>, i32 -> vector<2x128xf32>
    %c127_i32_45 = arith.constant 127 : i32
    %571 = tpu.dynamic_rotate %246 by %c127_i32_45 dim 1 : vector<2x128xf32>, i32 -> vector<2x128xf32>
    %c126_i32_46 = arith.constant 126 : i32
    %572 = tpu.dynamic_rotate %246 by %c126_i32_46 dim 1 : vector<2x128xf32>, i32 -> vector<2x128xf32>
    %c2_i32_47 = arith.constant 2 : i32
    %573 = tpu.dynamic_rotate %352 by %c2_i32_47 dim 1 : vector<2x128xf32>, i32 -> vector<2x128xf32>
    %c1_i32_48 = arith.constant 1 : i32
    %574 = tpu.dynamic_rotate %352 by %c1_i32_48 dim 1 : vector<2x128xf32>, i32 -> vector<2x128xf32>
    %c127_i32_49 = arith.constant 127 : i32
    %575 = tpu.dynamic_rotate %352 by %c127_i32_49 dim 1 : vector<2x128xf32>, i32 -> vector<2x128xf32>
    %c126_i32_50 = arith.constant 126 : i32
    %576 = tpu.dynamic_rotate %352 by %c126_i32_50 dim 1 : vector<2x128xf32>, i32 -> vector<2x128xf32>
    %c2_i32_51 = arith.constant 2 : i32
    %577 = tpu.dynamic_rotate %458 by %c2_i32_51 dim 1 : vector<2x128xf32>, i32 -> vector<2x128xf32>
    %c1_i32_52 = arith.constant 1 : i32
    %578 = tpu.dynamic_rotate %458 by %c1_i32_52 dim 1 : vector<2x128xf32>, i32 -> vector<2x128xf32>
    %c127_i32_53 = arith.constant 127 : i32
    %579 = tpu.dynamic_rotate %458 by %c127_i32_53 dim 1 : vector<2x128xf32>, i32 -> vector<2x128xf32>
    %c126_i32_54 = arith.constant 126 : i32
    %580 = tpu.dynamic_rotate %458 by %c126_i32_54 dim 1 : vector<2x128xf32>, i32 -> vector<2x128xf32>
    %c2_i32_55 = arith.constant 2 : i32
    %581 = tpu.dynamic_rotate %564 by %c2_i32_55 dim 1 : vector<2x128xf32>, i32 -> vector<2x128xf32>
    %c1_i32_56 = arith.constant 1 : i32
    %582 = tpu.dynamic_rotate %564 by %c1_i32_56 dim 1 : vector<2x128xf32>, i32 -> vector<2x128xf32>
    %c127_i32_57 = arith.constant 127 : i32
    %583 = tpu.dynamic_rotate %564 by %c127_i32_57 dim 1 : vector<2x128xf32>, i32 -> vector<2x128xf32>
    %c126_i32_58 = arith.constant 126 : i32
    %584 = tpu.dynamic_rotate %564 by %c126_i32_58 dim 1 : vector<2x128xf32>, i32 -> vector<2x128xf32>
    %c0_59 = arith.constant 0 : index
    %585 = memref.load %arg6[%c0_59] : memref<5xf32, #tpu.memory_space<smem>>
    %586 = vector.broadcast %585 : f32 to vector<2x128xf32>
    %c0_60 = arith.constant 0 : index
    %587 = memref.load %arg5[%c0_60] : memref<125xf32, #tpu.memory_space<smem>>
    %588 = vector.broadcast %587 : f32 to vector<2x128xf32>
    %589 = arith.mulf %588, %565 : vector<2x128xf32>
    %590 = arith.addf %586, %589 : vector<2x128xf32>
    %c1_61 = arith.constant 1 : index
    %591 = memref.load %arg5[%c1_61] : memref<125xf32, #tpu.memory_space<smem>>
    %592 = vector.broadcast %591 : f32 to vector<2x128xf32>
    %593 = arith.mulf %592, %566 : vector<2x128xf32>
    %594 = arith.addf %590, %593 : vector<2x128xf32>
    %c2_62 = arith.constant 2 : index
    %595 = memref.load %arg5[%c2_62] : memref<125xf32, #tpu.memory_space<smem>>
    %596 = vector.broadcast %595 : f32 to vector<2x128xf32>
    %597 = arith.mulf %596, %140 : vector<2x128xf32>
    %598 = arith.addf %594, %597 : vector<2x128xf32>
    %c3_63 = arith.constant 3 : index
    %599 = memref.load %arg5[%c3_63] : memref<125xf32, #tpu.memory_space<smem>>
    %600 = vector.broadcast %599 : f32 to vector<2x128xf32>
    %601 = arith.mulf %600, %567 : vector<2x128xf32>
    %602 = arith.addf %598, %601 : vector<2x128xf32>
    %c4_64 = arith.constant 4 : index
    %603 = memref.load %arg5[%c4_64] : memref<125xf32, #tpu.memory_space<smem>>
    %604 = vector.broadcast %603 : f32 to vector<2x128xf32>
    %605 = arith.mulf %604, %568 : vector<2x128xf32>
    %606 = arith.addf %602, %605 : vector<2x128xf32>
    %c5_65 = arith.constant 5 : index
    %607 = memref.load %arg5[%c5_65] : memref<125xf32, #tpu.memory_space<smem>>
    %608 = vector.broadcast %607 : f32 to vector<2x128xf32>
    %609 = arith.mulf %608, %569 : vector<2x128xf32>
    %610 = arith.addf %606, %609 : vector<2x128xf32>
    %c6_66 = arith.constant 6 : index
    %611 = memref.load %arg5[%c6_66] : memref<125xf32, #tpu.memory_space<smem>>
    %612 = vector.broadcast %611 : f32 to vector<2x128xf32>
    %613 = arith.mulf %612, %570 : vector<2x128xf32>
    %614 = arith.addf %610, %613 : vector<2x128xf32>
    %c7_67 = arith.constant 7 : index
    %615 = memref.load %arg5[%c7_67] : memref<125xf32, #tpu.memory_space<smem>>
    %616 = vector.broadcast %615 : f32 to vector<2x128xf32>
    %617 = arith.mulf %616, %246 : vector<2x128xf32>
    %618 = arith.addf %614, %617 : vector<2x128xf32>
    %c8_68 = arith.constant 8 : index
    %619 = memref.load %arg5[%c8_68] : memref<125xf32, #tpu.memory_space<smem>>
    %620 = vector.broadcast %619 : f32 to vector<2x128xf32>
    %621 = arith.mulf %620, %571 : vector<2x128xf32>
    %622 = arith.addf %618, %621 : vector<2x128xf32>
    %c9_69 = arith.constant 9 : index
    %623 = memref.load %arg5[%c9_69] : memref<125xf32, #tpu.memory_space<smem>>
    %624 = vector.broadcast %623 : f32 to vector<2x128xf32>
    %625 = arith.mulf %624, %572 : vector<2x128xf32>
    %626 = arith.addf %622, %625 : vector<2x128xf32>
    %c10_70 = arith.constant 10 : index
    %627 = memref.load %arg5[%c10_70] : memref<125xf32, #tpu.memory_space<smem>>
    %628 = vector.broadcast %627 : f32 to vector<2x128xf32>
    %629 = arith.mulf %628, %573 : vector<2x128xf32>
    %630 = arith.addf %626, %629 : vector<2x128xf32>
    %c11_71 = arith.constant 11 : index
    %631 = memref.load %arg5[%c11_71] : memref<125xf32, #tpu.memory_space<smem>>
    %632 = vector.broadcast %631 : f32 to vector<2x128xf32>
    %633 = arith.mulf %632, %574 : vector<2x128xf32>
    %634 = arith.addf %630, %633 : vector<2x128xf32>
    %c12_72 = arith.constant 12 : index
    %635 = memref.load %arg5[%c12_72] : memref<125xf32, #tpu.memory_space<smem>>
    %636 = vector.broadcast %635 : f32 to vector<2x128xf32>
    %637 = arith.mulf %636, %352 : vector<2x128xf32>
    %638 = arith.addf %634, %637 : vector<2x128xf32>
    %c13_73 = arith.constant 13 : index
    %639 = memref.load %arg5[%c13_73] : memref<125xf32, #tpu.memory_space<smem>>
    %640 = vector.broadcast %639 : f32 to vector<2x128xf32>
    %641 = arith.mulf %640, %575 : vector<2x128xf32>
    %642 = arith.addf %638, %641 : vector<2x128xf32>
    %c14_74 = arith.constant 14 : index
    %643 = memref.load %arg5[%c14_74] : memref<125xf32, #tpu.memory_space<smem>>
    %644 = vector.broadcast %643 : f32 to vector<2x128xf32>
    %645 = arith.mulf %644, %576 : vector<2x128xf32>
    %646 = arith.addf %642, %645 : vector<2x128xf32>
    %c15_75 = arith.constant 15 : index
    %647 = memref.load %arg5[%c15_75] : memref<125xf32, #tpu.memory_space<smem>>
    %648 = vector.broadcast %647 : f32 to vector<2x128xf32>
    %649 = arith.mulf %648, %577 : vector<2x128xf32>
    %650 = arith.addf %646, %649 : vector<2x128xf32>
    %c16_76 = arith.constant 16 : index
    %651 = memref.load %arg5[%c16_76] : memref<125xf32, #tpu.memory_space<smem>>
    %652 = vector.broadcast %651 : f32 to vector<2x128xf32>
    %653 = arith.mulf %652, %578 : vector<2x128xf32>
    %654 = arith.addf %650, %653 : vector<2x128xf32>
    %c17_77 = arith.constant 17 : index
    %655 = memref.load %arg5[%c17_77] : memref<125xf32, #tpu.memory_space<smem>>
    %656 = vector.broadcast %655 : f32 to vector<2x128xf32>
    %657 = arith.mulf %656, %458 : vector<2x128xf32>
    %658 = arith.addf %654, %657 : vector<2x128xf32>
    %c18_78 = arith.constant 18 : index
    %659 = memref.load %arg5[%c18_78] : memref<125xf32, #tpu.memory_space<smem>>
    %660 = vector.broadcast %659 : f32 to vector<2x128xf32>
    %661 = arith.mulf %660, %579 : vector<2x128xf32>
    %662 = arith.addf %658, %661 : vector<2x128xf32>
    %c19_79 = arith.constant 19 : index
    %663 = memref.load %arg5[%c19_79] : memref<125xf32, #tpu.memory_space<smem>>
    %664 = vector.broadcast %663 : f32 to vector<2x128xf32>
    %665 = arith.mulf %664, %580 : vector<2x128xf32>
    %666 = arith.addf %662, %665 : vector<2x128xf32>
    %c20_80 = arith.constant 20 : index
    %667 = memref.load %arg5[%c20_80] : memref<125xf32, #tpu.memory_space<smem>>
    %668 = vector.broadcast %667 : f32 to vector<2x128xf32>
    %669 = arith.mulf %668, %581 : vector<2x128xf32>
    %670 = arith.addf %666, %669 : vector<2x128xf32>
    %c21_81 = arith.constant 21 : index
    %671 = memref.load %arg5[%c21_81] : memref<125xf32, #tpu.memory_space<smem>>
    %672 = vector.broadcast %671 : f32 to vector<2x128xf32>
    %673 = arith.mulf %672, %582 : vector<2x128xf32>
    %674 = arith.addf %670, %673 : vector<2x128xf32>
    %c22_82 = arith.constant 22 : index
    %675 = memref.load %arg5[%c22_82] : memref<125xf32, #tpu.memory_space<smem>>
    %676 = vector.broadcast %675 : f32 to vector<2x128xf32>
    %677 = arith.mulf %676, %564 : vector<2x128xf32>
    %678 = arith.addf %674, %677 : vector<2x128xf32>
    %c23_83 = arith.constant 23 : index
    %679 = memref.load %arg5[%c23_83] : memref<125xf32, #tpu.memory_space<smem>>
    %680 = vector.broadcast %679 : f32 to vector<2x128xf32>
    %681 = arith.mulf %680, %583 : vector<2x128xf32>
    %682 = arith.addf %678, %681 : vector<2x128xf32>
    %c24_84 = arith.constant 24 : index
    %683 = memref.load %arg5[%c24_84] : memref<125xf32, #tpu.memory_space<smem>>
    %684 = vector.broadcast %683 : f32 to vector<2x128xf32>
    %685 = arith.mulf %684, %584 : vector<2x128xf32>
    %686 = arith.addf %682, %685 : vector<2x128xf32>
    %cst_85 = arith.constant 0.000000e+00 : f32
    %687 = vector.broadcast %cst_85 : f32 to vector<2x128xf32>
    %688 = arith.maximumf %686, %687 : vector<2x128xf32>
    %cst_86 = arith.constant 0.000000e+00 : f32
    %689 = vector.broadcast %cst_86 : f32 to vector<2x128xf32>
    %690 = arith.select %9, %688, %689 : vector<2x128xi1>, vector<2x128xf32>
    %c1_87 = arith.constant 1 : index
    %691 = memref.load %arg6[%c1_87] : memref<5xf32, #tpu.memory_space<smem>>
    %692 = vector.broadcast %691 : f32 to vector<2x128xf32>
    %c25_88 = arith.constant 25 : index
    %693 = memref.load %arg5[%c25_88] : memref<125xf32, #tpu.memory_space<smem>>
    %694 = vector.broadcast %693 : f32 to vector<2x128xf32>
    %695 = arith.mulf %694, %565 : vector<2x128xf32>
    %696 = arith.addf %692, %695 : vector<2x128xf32>
    %c26_89 = arith.constant 26 : index
    %697 = memref.load %arg5[%c26_89] : memref<125xf32, #tpu.memory_space<smem>>
    %698 = vector.broadcast %697 : f32 to vector<2x128xf32>
    %699 = arith.mulf %698, %566 : vector<2x128xf32>
    %700 = arith.addf %696, %699 : vector<2x128xf32>
    %c27_90 = arith.constant 27 : index
    %701 = memref.load %arg5[%c27_90] : memref<125xf32, #tpu.memory_space<smem>>
    %702 = vector.broadcast %701 : f32 to vector<2x128xf32>
    %703 = arith.mulf %702, %140 : vector<2x128xf32>
    %704 = arith.addf %700, %703 : vector<2x128xf32>
    %c28_91 = arith.constant 28 : index
    %705 = memref.load %arg5[%c28_91] : memref<125xf32, #tpu.memory_space<smem>>
    %706 = vector.broadcast %705 : f32 to vector<2x128xf32>
    %707 = arith.mulf %706, %567 : vector<2x128xf32>
    %708 = arith.addf %704, %707 : vector<2x128xf32>
    %c29_92 = arith.constant 29 : index
    %709 = memref.load %arg5[%c29_92] : memref<125xf32, #tpu.memory_space<smem>>
    %710 = vector.broadcast %709 : f32 to vector<2x128xf32>
    %711 = arith.mulf %710, %568 : vector<2x128xf32>
    %712 = arith.addf %708, %711 : vector<2x128xf32>
    %c30_93 = arith.constant 30 : index
    %713 = memref.load %arg5[%c30_93] : memref<125xf32, #tpu.memory_space<smem>>
    %714 = vector.broadcast %713 : f32 to vector<2x128xf32>
    %715 = arith.mulf %714, %569 : vector<2x128xf32>
    %716 = arith.addf %712, %715 : vector<2x128xf32>
    %c31_94 = arith.constant 31 : index
    %717 = memref.load %arg5[%c31_94] : memref<125xf32, #tpu.memory_space<smem>>
    %718 = vector.broadcast %717 : f32 to vector<2x128xf32>
    %719 = arith.mulf %718, %570 : vector<2x128xf32>
    %720 = arith.addf %716, %719 : vector<2x128xf32>
    %c32_95 = arith.constant 32 : index
    %721 = memref.load %arg5[%c32_95] : memref<125xf32, #tpu.memory_space<smem>>
    %722 = vector.broadcast %721 : f32 to vector<2x128xf32>
    %723 = arith.mulf %722, %246 : vector<2x128xf32>
    %724 = arith.addf %720, %723 : vector<2x128xf32>
    %c33_96 = arith.constant 33 : index
    %725 = memref.load %arg5[%c33_96] : memref<125xf32, #tpu.memory_space<smem>>
    %726 = vector.broadcast %725 : f32 to vector<2x128xf32>
    %727 = arith.mulf %726, %571 : vector<2x128xf32>
    %728 = arith.addf %724, %727 : vector<2x128xf32>
    %c34_97 = arith.constant 34 : index
    %729 = memref.load %arg5[%c34_97] : memref<125xf32, #tpu.memory_space<smem>>
    %730 = vector.broadcast %729 : f32 to vector<2x128xf32>
    %731 = arith.mulf %730, %572 : vector<2x128xf32>
    %732 = arith.addf %728, %731 : vector<2x128xf32>
    %c35_98 = arith.constant 35 : index
    %733 = memref.load %arg5[%c35_98] : memref<125xf32, #tpu.memory_space<smem>>
    %734 = vector.broadcast %733 : f32 to vector<2x128xf32>
    %735 = arith.mulf %734, %573 : vector<2x128xf32>
    %736 = arith.addf %732, %735 : vector<2x128xf32>
    %c36_99 = arith.constant 36 : index
    %737 = memref.load %arg5[%c36_99] : memref<125xf32, #tpu.memory_space<smem>>
    %738 = vector.broadcast %737 : f32 to vector<2x128xf32>
    %739 = arith.mulf %738, %574 : vector<2x128xf32>
    %740 = arith.addf %736, %739 : vector<2x128xf32>
    %c37_100 = arith.constant 37 : index
    %741 = memref.load %arg5[%c37_100] : memref<125xf32, #tpu.memory_space<smem>>
    %742 = vector.broadcast %741 : f32 to vector<2x128xf32>
    %743 = arith.mulf %742, %352 : vector<2x128xf32>
    %744 = arith.addf %740, %743 : vector<2x128xf32>
    %c38_101 = arith.constant 38 : index
    %745 = memref.load %arg5[%c38_101] : memref<125xf32, #tpu.memory_space<smem>>
    %746 = vector.broadcast %745 : f32 to vector<2x128xf32>
    %747 = arith.mulf %746, %575 : vector<2x128xf32>
    %748 = arith.addf %744, %747 : vector<2x128xf32>
    %c39_102 = arith.constant 39 : index
    %749 = memref.load %arg5[%c39_102] : memref<125xf32, #tpu.memory_space<smem>>
    %750 = vector.broadcast %749 : f32 to vector<2x128xf32>
    %751 = arith.mulf %750, %576 : vector<2x128xf32>
    %752 = arith.addf %748, %751 : vector<2x128xf32>
    %c40_103 = arith.constant 40 : index
    %753 = memref.load %arg5[%c40_103] : memref<125xf32, #tpu.memory_space<smem>>
    %754 = vector.broadcast %753 : f32 to vector<2x128xf32>
    %755 = arith.mulf %754, %577 : vector<2x128xf32>
    %756 = arith.addf %752, %755 : vector<2x128xf32>
    %c41_104 = arith.constant 41 : index
    %757 = memref.load %arg5[%c41_104] : memref<125xf32, #tpu.memory_space<smem>>
    %758 = vector.broadcast %757 : f32 to vector<2x128xf32>
    %759 = arith.mulf %758, %578 : vector<2x128xf32>
    %760 = arith.addf %756, %759 : vector<2x128xf32>
    %c42_105 = arith.constant 42 : index
    %761 = memref.load %arg5[%c42_105] : memref<125xf32, #tpu.memory_space<smem>>
    %762 = vector.broadcast %761 : f32 to vector<2x128xf32>
    %763 = arith.mulf %762, %458 : vector<2x128xf32>
    %764 = arith.addf %760, %763 : vector<2x128xf32>
    %c43_106 = arith.constant 43 : index
    %765 = memref.load %arg5[%c43_106] : memref<125xf32, #tpu.memory_space<smem>>
    %766 = vector.broadcast %765 : f32 to vector<2x128xf32>
    %767 = arith.mulf %766, %579 : vector<2x128xf32>
    %768 = arith.addf %764, %767 : vector<2x128xf32>
    %c44_107 = arith.constant 44 : index
    %769 = memref.load %arg5[%c44_107] : memref<125xf32, #tpu.memory_space<smem>>
    %770 = vector.broadcast %769 : f32 to vector<2x128xf32>
    %771 = arith.mulf %770, %580 : vector<2x128xf32>
    %772 = arith.addf %768, %771 : vector<2x128xf32>
    %c45_108 = arith.constant 45 : index
    %773 = memref.load %arg5[%c45_108] : memref<125xf32, #tpu.memory_space<smem>>
    %774 = vector.broadcast %773 : f32 to vector<2x128xf32>
    %775 = arith.mulf %774, %581 : vector<2x128xf32>
    %776 = arith.addf %772, %775 : vector<2x128xf32>
    %c46_109 = arith.constant 46 : index
    %777 = memref.load %arg5[%c46_109] : memref<125xf32, #tpu.memory_space<smem>>
    %778 = vector.broadcast %777 : f32 to vector<2x128xf32>
    %779 = arith.mulf %778, %582 : vector<2x128xf32>
    %780 = arith.addf %776, %779 : vector<2x128xf32>
    %c47_110 = arith.constant 47 : index
    %781 = memref.load %arg5[%c47_110] : memref<125xf32, #tpu.memory_space<smem>>
    %782 = vector.broadcast %781 : f32 to vector<2x128xf32>
    %783 = arith.mulf %782, %564 : vector<2x128xf32>
    %784 = arith.addf %780, %783 : vector<2x128xf32>
    %c48_111 = arith.constant 48 : index
    %785 = memref.load %arg5[%c48_111] : memref<125xf32, #tpu.memory_space<smem>>
    %786 = vector.broadcast %785 : f32 to vector<2x128xf32>
    %787 = arith.mulf %786, %583 : vector<2x128xf32>
    %788 = arith.addf %784, %787 : vector<2x128xf32>
    %c49_112 = arith.constant 49 : index
    %789 = memref.load %arg5[%c49_112] : memref<125xf32, #tpu.memory_space<smem>>
    %790 = vector.broadcast %789 : f32 to vector<2x128xf32>
    %791 = arith.mulf %790, %584 : vector<2x128xf32>
    %792 = arith.addf %788, %791 : vector<2x128xf32>
    %cst_113 = arith.constant 0.000000e+00 : f32
    %793 = vector.broadcast %cst_113 : f32 to vector<2x128xf32>
    %794 = arith.maximumf %792, %793 : vector<2x128xf32>
    %cst_114 = arith.constant 0.000000e+00 : f32
    %795 = vector.broadcast %cst_114 : f32 to vector<2x128xf32>
    %796 = arith.select %9, %794, %795 : vector<2x128xi1>, vector<2x128xf32>
    %c2_115 = arith.constant 2 : index
    %797 = memref.load %arg6[%c2_115] : memref<5xf32, #tpu.memory_space<smem>>
    %798 = vector.broadcast %797 : f32 to vector<2x128xf32>
    %c50_116 = arith.constant 50 : index
    %799 = memref.load %arg5[%c50_116] : memref<125xf32, #tpu.memory_space<smem>>
    %800 = vector.broadcast %799 : f32 to vector<2x128xf32>
    %801 = arith.mulf %800, %565 : vector<2x128xf32>
    %802 = arith.addf %798, %801 : vector<2x128xf32>
    %c51_117 = arith.constant 51 : index
    %803 = memref.load %arg5[%c51_117] : memref<125xf32, #tpu.memory_space<smem>>
    %804 = vector.broadcast %803 : f32 to vector<2x128xf32>
    %805 = arith.mulf %804, %566 : vector<2x128xf32>
    %806 = arith.addf %802, %805 : vector<2x128xf32>
    %c52_118 = arith.constant 52 : index
    %807 = memref.load %arg5[%c52_118] : memref<125xf32, #tpu.memory_space<smem>>
    %808 = vector.broadcast %807 : f32 to vector<2x128xf32>
    %809 = arith.mulf %808, %140 : vector<2x128xf32>
    %810 = arith.addf %806, %809 : vector<2x128xf32>
    %c53_119 = arith.constant 53 : index
    %811 = memref.load %arg5[%c53_119] : memref<125xf32, #tpu.memory_space<smem>>
    %812 = vector.broadcast %811 : f32 to vector<2x128xf32>
    %813 = arith.mulf %812, %567 : vector<2x128xf32>
    %814 = arith.addf %810, %813 : vector<2x128xf32>
    %c54_120 = arith.constant 54 : index
    %815 = memref.load %arg5[%c54_120] : memref<125xf32, #tpu.memory_space<smem>>
    %816 = vector.broadcast %815 : f32 to vector<2x128xf32>
    %817 = arith.mulf %816, %568 : vector<2x128xf32>
    %818 = arith.addf %814, %817 : vector<2x128xf32>
    %c55_121 = arith.constant 55 : index
    %819 = memref.load %arg5[%c55_121] : memref<125xf32, #tpu.memory_space<smem>>
    %820 = vector.broadcast %819 : f32 to vector<2x128xf32>
    %821 = arith.mulf %820, %569 : vector<2x128xf32>
    %822 = arith.addf %818, %821 : vector<2x128xf32>
    %c56_122 = arith.constant 56 : index
    %823 = memref.load %arg5[%c56_122] : memref<125xf32, #tpu.memory_space<smem>>
    %824 = vector.broadcast %823 : f32 to vector<2x128xf32>
    %825 = arith.mulf %824, %570 : vector<2x128xf32>
    %826 = arith.addf %822, %825 : vector<2x128xf32>
    %c57_123 = arith.constant 57 : index
    %827 = memref.load %arg5[%c57_123] : memref<125xf32, #tpu.memory_space<smem>>
    %828 = vector.broadcast %827 : f32 to vector<2x128xf32>
    %829 = arith.mulf %828, %246 : vector<2x128xf32>
    %830 = arith.addf %826, %829 : vector<2x128xf32>
    %c58_124 = arith.constant 58 : index
    %831 = memref.load %arg5[%c58_124] : memref<125xf32, #tpu.memory_space<smem>>
    %832 = vector.broadcast %831 : f32 to vector<2x128xf32>
    %833 = arith.mulf %832, %571 : vector<2x128xf32>
    %834 = arith.addf %830, %833 : vector<2x128xf32>
    %c59_125 = arith.constant 59 : index
    %835 = memref.load %arg5[%c59_125] : memref<125xf32, #tpu.memory_space<smem>>
    %836 = vector.broadcast %835 : f32 to vector<2x128xf32>
    %837 = arith.mulf %836, %572 : vector<2x128xf32>
    %838 = arith.addf %834, %837 : vector<2x128xf32>
    %c60_126 = arith.constant 60 : index
    %839 = memref.load %arg5[%c60_126] : memref<125xf32, #tpu.memory_space<smem>>
    %840 = vector.broadcast %839 : f32 to vector<2x128xf32>
    %841 = arith.mulf %840, %573 : vector<2x128xf32>
    %842 = arith.addf %838, %841 : vector<2x128xf32>
    %c61_127 = arith.constant 61 : index
    %843 = memref.load %arg5[%c61_127] : memref<125xf32, #tpu.memory_space<smem>>
    %844 = vector.broadcast %843 : f32 to vector<2x128xf32>
    %845 = arith.mulf %844, %574 : vector<2x128xf32>
    %846 = arith.addf %842, %845 : vector<2x128xf32>
    %c62_128 = arith.constant 62 : index
    %847 = memref.load %arg5[%c62_128] : memref<125xf32, #tpu.memory_space<smem>>
    %848 = vector.broadcast %847 : f32 to vector<2x128xf32>
    %849 = arith.mulf %848, %352 : vector<2x128xf32>
    %850 = arith.addf %846, %849 : vector<2x128xf32>
    %c63_129 = arith.constant 63 : index
    %851 = memref.load %arg5[%c63_129] : memref<125xf32, #tpu.memory_space<smem>>
    %852 = vector.broadcast %851 : f32 to vector<2x128xf32>
    %853 = arith.mulf %852, %575 : vector<2x128xf32>
    %854 = arith.addf %850, %853 : vector<2x128xf32>
    %c64_130 = arith.constant 64 : index
    %855 = memref.load %arg5[%c64_130] : memref<125xf32, #tpu.memory_space<smem>>
    %856 = vector.broadcast %855 : f32 to vector<2x128xf32>
    %857 = arith.mulf %856, %576 : vector<2x128xf32>
    %858 = arith.addf %854, %857 : vector<2x128xf32>
    %c65_131 = arith.constant 65 : index
    %859 = memref.load %arg5[%c65_131] : memref<125xf32, #tpu.memory_space<smem>>
    %860 = vector.broadcast %859 : f32 to vector<2x128xf32>
    %861 = arith.mulf %860, %577 : vector<2x128xf32>
    %862 = arith.addf %858, %861 : vector<2x128xf32>
    %c66_132 = arith.constant 66 : index
    %863 = memref.load %arg5[%c66_132] : memref<125xf32, #tpu.memory_space<smem>>
    %864 = vector.broadcast %863 : f32 to vector<2x128xf32>
    %865 = arith.mulf %864, %578 : vector<2x128xf32>
    %866 = arith.addf %862, %865 : vector<2x128xf32>
    %c67_133 = arith.constant 67 : index
    %867 = memref.load %arg5[%c67_133] : memref<125xf32, #tpu.memory_space<smem>>
    %868 = vector.broadcast %867 : f32 to vector<2x128xf32>
    %869 = arith.mulf %868, %458 : vector<2x128xf32>
    %870 = arith.addf %866, %869 : vector<2x128xf32>
    %c68_134 = arith.constant 68 : index
    %871 = memref.load %arg5[%c68_134] : memref<125xf32, #tpu.memory_space<smem>>
    %872 = vector.broadcast %871 : f32 to vector<2x128xf32>
    %873 = arith.mulf %872, %579 : vector<2x128xf32>
    %874 = arith.addf %870, %873 : vector<2x128xf32>
    %c69_135 = arith.constant 69 : index
    %875 = memref.load %arg5[%c69_135] : memref<125xf32, #tpu.memory_space<smem>>
    %876 = vector.broadcast %875 : f32 to vector<2x128xf32>
    %877 = arith.mulf %876, %580 : vector<2x128xf32>
    %878 = arith.addf %874, %877 : vector<2x128xf32>
    %c70_136 = arith.constant 70 : index
    %879 = memref.load %arg5[%c70_136] : memref<125xf32, #tpu.memory_space<smem>>
    %880 = vector.broadcast %879 : f32 to vector<2x128xf32>
    %881 = arith.mulf %880, %581 : vector<2x128xf32>
    %882 = arith.addf %878, %881 : vector<2x128xf32>
    %c71_137 = arith.constant 71 : index
    %883 = memref.load %arg5[%c71_137] : memref<125xf32, #tpu.memory_space<smem>>
    %884 = vector.broadcast %883 : f32 to vector<2x128xf32>
    %885 = arith.mulf %884, %582 : vector<2x128xf32>
    %886 = arith.addf %882, %885 : vector<2x128xf32>
    %c72_138 = arith.constant 72 : index
    %887 = memref.load %arg5[%c72_138] : memref<125xf32, #tpu.memory_space<smem>>
    %888 = vector.broadcast %887 : f32 to vector<2x128xf32>
    %889 = arith.mulf %888, %564 : vector<2x128xf32>
    %890 = arith.addf %886, %889 : vector<2x128xf32>
    %c73_139 = arith.constant 73 : index
    %891 = memref.load %arg5[%c73_139] : memref<125xf32, #tpu.memory_space<smem>>
    %892 = vector.broadcast %891 : f32 to vector<2x128xf32>
    %893 = arith.mulf %892, %583 : vector<2x128xf32>
    %894 = arith.addf %890, %893 : vector<2x128xf32>
    %c74_140 = arith.constant 74 : index
    %895 = memref.load %arg5[%c74_140] : memref<125xf32, #tpu.memory_space<smem>>
    %896 = vector.broadcast %895 : f32 to vector<2x128xf32>
    %897 = arith.mulf %896, %584 : vector<2x128xf32>
    %898 = arith.addf %894, %897 : vector<2x128xf32>
    %cst_141 = arith.constant 0.000000e+00 : f32
    %899 = vector.broadcast %cst_141 : f32 to vector<2x128xf32>
    %900 = arith.maximumf %898, %899 : vector<2x128xf32>
    %cst_142 = arith.constant 0.000000e+00 : f32
    %901 = vector.broadcast %cst_142 : f32 to vector<2x128xf32>
    %902 = arith.select %9, %900, %901 : vector<2x128xi1>, vector<2x128xf32>
    %c3_143 = arith.constant 3 : index
    %903 = memref.load %arg6[%c3_143] : memref<5xf32, #tpu.memory_space<smem>>
    %904 = vector.broadcast %903 : f32 to vector<2x128xf32>
    %c75_144 = arith.constant 75 : index
    %905 = memref.load %arg5[%c75_144] : memref<125xf32, #tpu.memory_space<smem>>
    %906 = vector.broadcast %905 : f32 to vector<2x128xf32>
    %907 = arith.mulf %906, %565 : vector<2x128xf32>
    %908 = arith.addf %904, %907 : vector<2x128xf32>
    %c76_145 = arith.constant 76 : index
    %909 = memref.load %arg5[%c76_145] : memref<125xf32, #tpu.memory_space<smem>>
    %910 = vector.broadcast %909 : f32 to vector<2x128xf32>
    %911 = arith.mulf %910, %566 : vector<2x128xf32>
    %912 = arith.addf %908, %911 : vector<2x128xf32>
    %c77_146 = arith.constant 77 : index
    %913 = memref.load %arg5[%c77_146] : memref<125xf32, #tpu.memory_space<smem>>
    %914 = vector.broadcast %913 : f32 to vector<2x128xf32>
    %915 = arith.mulf %914, %140 : vector<2x128xf32>
    %916 = arith.addf %912, %915 : vector<2x128xf32>
    %c78_147 = arith.constant 78 : index
    %917 = memref.load %arg5[%c78_147] : memref<125xf32, #tpu.memory_space<smem>>
    %918 = vector.broadcast %917 : f32 to vector<2x128xf32>
    %919 = arith.mulf %918, %567 : vector<2x128xf32>
    %920 = arith.addf %916, %919 : vector<2x128xf32>
    %c79_148 = arith.constant 79 : index
    %921 = memref.load %arg5[%c79_148] : memref<125xf32, #tpu.memory_space<smem>>
    %922 = vector.broadcast %921 : f32 to vector<2x128xf32>
    %923 = arith.mulf %922, %568 : vector<2x128xf32>
    %924 = arith.addf %920, %923 : vector<2x128xf32>
    %c80_149 = arith.constant 80 : index
    %925 = memref.load %arg5[%c80_149] : memref<125xf32, #tpu.memory_space<smem>>
    %926 = vector.broadcast %925 : f32 to vector<2x128xf32>
    %927 = arith.mulf %926, %569 : vector<2x128xf32>
    %928 = arith.addf %924, %927 : vector<2x128xf32>
    %c81_150 = arith.constant 81 : index
    %929 = memref.load %arg5[%c81_150] : memref<125xf32, #tpu.memory_space<smem>>
    %930 = vector.broadcast %929 : f32 to vector<2x128xf32>
    %931 = arith.mulf %930, %570 : vector<2x128xf32>
    %932 = arith.addf %928, %931 : vector<2x128xf32>
    %c82_151 = arith.constant 82 : index
    %933 = memref.load %arg5[%c82_151] : memref<125xf32, #tpu.memory_space<smem>>
    %934 = vector.broadcast %933 : f32 to vector<2x128xf32>
    %935 = arith.mulf %934, %246 : vector<2x128xf32>
    %936 = arith.addf %932, %935 : vector<2x128xf32>
    %c83_152 = arith.constant 83 : index
    %937 = memref.load %arg5[%c83_152] : memref<125xf32, #tpu.memory_space<smem>>
    %938 = vector.broadcast %937 : f32 to vector<2x128xf32>
    %939 = arith.mulf %938, %571 : vector<2x128xf32>
    %940 = arith.addf %936, %939 : vector<2x128xf32>
    %c84_153 = arith.constant 84 : index
    %941 = memref.load %arg5[%c84_153] : memref<125xf32, #tpu.memory_space<smem>>
    %942 = vector.broadcast %941 : f32 to vector<2x128xf32>
    %943 = arith.mulf %942, %572 : vector<2x128xf32>
    %944 = arith.addf %940, %943 : vector<2x128xf32>
    %c85_154 = arith.constant 85 : index
    %945 = memref.load %arg5[%c85_154] : memref<125xf32, #tpu.memory_space<smem>>
    %946 = vector.broadcast %945 : f32 to vector<2x128xf32>
    %947 = arith.mulf %946, %573 : vector<2x128xf32>
    %948 = arith.addf %944, %947 : vector<2x128xf32>
    %c86_155 = arith.constant 86 : index
    %949 = memref.load %arg5[%c86_155] : memref<125xf32, #tpu.memory_space<smem>>
    %950 = vector.broadcast %949 : f32 to vector<2x128xf32>
    %951 = arith.mulf %950, %574 : vector<2x128xf32>
    %952 = arith.addf %948, %951 : vector<2x128xf32>
    %c87_156 = arith.constant 87 : index
    %953 = memref.load %arg5[%c87_156] : memref<125xf32, #tpu.memory_space<smem>>
    %954 = vector.broadcast %953 : f32 to vector<2x128xf32>
    %955 = arith.mulf %954, %352 : vector<2x128xf32>
    %956 = arith.addf %952, %955 : vector<2x128xf32>
    %c88_157 = arith.constant 88 : index
    %957 = memref.load %arg5[%c88_157] : memref<125xf32, #tpu.memory_space<smem>>
    %958 = vector.broadcast %957 : f32 to vector<2x128xf32>
    %959 = arith.mulf %958, %575 : vector<2x128xf32>
    %960 = arith.addf %956, %959 : vector<2x128xf32>
    %c89_158 = arith.constant 89 : index
    %961 = memref.load %arg5[%c89_158] : memref<125xf32, #tpu.memory_space<smem>>
    %962 = vector.broadcast %961 : f32 to vector<2x128xf32>
    %963 = arith.mulf %962, %576 : vector<2x128xf32>
    %964 = arith.addf %960, %963 : vector<2x128xf32>
    %c90_159 = arith.constant 90 : index
    %965 = memref.load %arg5[%c90_159] : memref<125xf32, #tpu.memory_space<smem>>
    %966 = vector.broadcast %965 : f32 to vector<2x128xf32>
    %967 = arith.mulf %966, %577 : vector<2x128xf32>
    %968 = arith.addf %964, %967 : vector<2x128xf32>
    %c91_160 = arith.constant 91 : index
    %969 = memref.load %arg5[%c91_160] : memref<125xf32, #tpu.memory_space<smem>>
    %970 = vector.broadcast %969 : f32 to vector<2x128xf32>
    %971 = arith.mulf %970, %578 : vector<2x128xf32>
    %972 = arith.addf %968, %971 : vector<2x128xf32>
    %c92_161 = arith.constant 92 : index
    %973 = memref.load %arg5[%c92_161] : memref<125xf32, #tpu.memory_space<smem>>
    %974 = vector.broadcast %973 : f32 to vector<2x128xf32>
    %975 = arith.mulf %974, %458 : vector<2x128xf32>
    %976 = arith.addf %972, %975 : vector<2x128xf32>
    %c93_162 = arith.constant 93 : index
    %977 = memref.load %arg5[%c93_162] : memref<125xf32, #tpu.memory_space<smem>>
    %978 = vector.broadcast %977 : f32 to vector<2x128xf32>
    %979 = arith.mulf %978, %579 : vector<2x128xf32>
    %980 = arith.addf %976, %979 : vector<2x128xf32>
    %c94_163 = arith.constant 94 : index
    %981 = memref.load %arg5[%c94_163] : memref<125xf32, #tpu.memory_space<smem>>
    %982 = vector.broadcast %981 : f32 to vector<2x128xf32>
    %983 = arith.mulf %982, %580 : vector<2x128xf32>
    %984 = arith.addf %980, %983 : vector<2x128xf32>
    %c95_164 = arith.constant 95 : index
    %985 = memref.load %arg5[%c95_164] : memref<125xf32, #tpu.memory_space<smem>>
    %986 = vector.broadcast %985 : f32 to vector<2x128xf32>
    %987 = arith.mulf %986, %581 : vector<2x128xf32>
    %988 = arith.addf %984, %987 : vector<2x128xf32>
    %c96_165 = arith.constant 96 : index
    %989 = memref.load %arg5[%c96_165] : memref<125xf32, #tpu.memory_space<smem>>
    %990 = vector.broadcast %989 : f32 to vector<2x128xf32>
    %991 = arith.mulf %990, %582 : vector<2x128xf32>
    %992 = arith.addf %988, %991 : vector<2x128xf32>
    %c97_166 = arith.constant 97 : index
    %993 = memref.load %arg5[%c97_166] : memref<125xf32, #tpu.memory_space<smem>>
    %994 = vector.broadcast %993 : f32 to vector<2x128xf32>
    %995 = arith.mulf %994, %564 : vector<2x128xf32>
    %996 = arith.addf %992, %995 : vector<2x128xf32>
    %c98_167 = arith.constant 98 : index
    %997 = memref.load %arg5[%c98_167] : memref<125xf32, #tpu.memory_space<smem>>
    %998 = vector.broadcast %997 : f32 to vector<2x128xf32>
    %999 = arith.mulf %998, %583 : vector<2x128xf32>
    %1000 = arith.addf %996, %999 : vector<2x128xf32>
    %c99_168 = arith.constant 99 : index
    %1001 = memref.load %arg5[%c99_168] : memref<125xf32, #tpu.memory_space<smem>>
    %1002 = vector.broadcast %1001 : f32 to vector<2x128xf32>
    %1003 = arith.mulf %1002, %584 : vector<2x128xf32>
    %1004 = arith.addf %1000, %1003 : vector<2x128xf32>
    %cst_169 = arith.constant 0.000000e+00 : f32
    %1005 = vector.broadcast %cst_169 : f32 to vector<2x128xf32>
    %1006 = arith.maximumf %1004, %1005 : vector<2x128xf32>
    %cst_170 = arith.constant 0.000000e+00 : f32
    %1007 = vector.broadcast %cst_170 : f32 to vector<2x128xf32>
    %1008 = arith.select %9, %1006, %1007 : vector<2x128xi1>, vector<2x128xf32>
    %c4_171 = arith.constant 4 : index
    %1009 = memref.load %arg6[%c4_171] : memref<5xf32, #tpu.memory_space<smem>>
    %1010 = vector.broadcast %1009 : f32 to vector<2x128xf32>
    %c100_172 = arith.constant 100 : index
    %1011 = memref.load %arg5[%c100_172] : memref<125xf32, #tpu.memory_space<smem>>
    %1012 = vector.broadcast %1011 : f32 to vector<2x128xf32>
    %1013 = arith.mulf %1012, %565 : vector<2x128xf32>
    %1014 = arith.addf %1010, %1013 : vector<2x128xf32>
    %c101_173 = arith.constant 101 : index
    %1015 = memref.load %arg5[%c101_173] : memref<125xf32, #tpu.memory_space<smem>>
    %1016 = vector.broadcast %1015 : f32 to vector<2x128xf32>
    %1017 = arith.mulf %1016, %566 : vector<2x128xf32>
    %1018 = arith.addf %1014, %1017 : vector<2x128xf32>
    %c102_174 = arith.constant 102 : index
    %1019 = memref.load %arg5[%c102_174] : memref<125xf32, #tpu.memory_space<smem>>
    %1020 = vector.broadcast %1019 : f32 to vector<2x128xf32>
    %1021 = arith.mulf %1020, %140 : vector<2x128xf32>
    %1022 = arith.addf %1018, %1021 : vector<2x128xf32>
    %c103_175 = arith.constant 103 : index
    %1023 = memref.load %arg5[%c103_175] : memref<125xf32, #tpu.memory_space<smem>>
    %1024 = vector.broadcast %1023 : f32 to vector<2x128xf32>
    %1025 = arith.mulf %1024, %567 : vector<2x128xf32>
    %1026 = arith.addf %1022, %1025 : vector<2x128xf32>
    %c104_176 = arith.constant 104 : index
    %1027 = memref.load %arg5[%c104_176] : memref<125xf32, #tpu.memory_space<smem>>
    %1028 = vector.broadcast %1027 : f32 to vector<2x128xf32>
    %1029 = arith.mulf %1028, %568 : vector<2x128xf32>
    %1030 = arith.addf %1026, %1029 : vector<2x128xf32>
    %c105_177 = arith.constant 105 : index
    %1031 = memref.load %arg5[%c105_177] : memref<125xf32, #tpu.memory_space<smem>>
    %1032 = vector.broadcast %1031 : f32 to vector<2x128xf32>
    %1033 = arith.mulf %1032, %569 : vector<2x128xf32>
    %1034 = arith.addf %1030, %1033 : vector<2x128xf32>
    %c106_178 = arith.constant 106 : index
    %1035 = memref.load %arg5[%c106_178] : memref<125xf32, #tpu.memory_space<smem>>
    %1036 = vector.broadcast %1035 : f32 to vector<2x128xf32>
    %1037 = arith.mulf %1036, %570 : vector<2x128xf32>
    %1038 = arith.addf %1034, %1037 : vector<2x128xf32>
    %c107_179 = arith.constant 107 : index
    %1039 = memref.load %arg5[%c107_179] : memref<125xf32, #tpu.memory_space<smem>>
    %1040 = vector.broadcast %1039 : f32 to vector<2x128xf32>
    %1041 = arith.mulf %1040, %246 : vector<2x128xf32>
    %1042 = arith.addf %1038, %1041 : vector<2x128xf32>
    %c108_180 = arith.constant 108 : index
    %1043 = memref.load %arg5[%c108_180] : memref<125xf32, #tpu.memory_space<smem>>
    %1044 = vector.broadcast %1043 : f32 to vector<2x128xf32>
    %1045 = arith.mulf %1044, %571 : vector<2x128xf32>
    %1046 = arith.addf %1042, %1045 : vector<2x128xf32>
    %c109_181 = arith.constant 109 : index
    %1047 = memref.load %arg5[%c109_181] : memref<125xf32, #tpu.memory_space<smem>>
    %1048 = vector.broadcast %1047 : f32 to vector<2x128xf32>
    %1049 = arith.mulf %1048, %572 : vector<2x128xf32>
    %1050 = arith.addf %1046, %1049 : vector<2x128xf32>
    %c110_182 = arith.constant 110 : index
    %1051 = memref.load %arg5[%c110_182] : memref<125xf32, #tpu.memory_space<smem>>
    %1052 = vector.broadcast %1051 : f32 to vector<2x128xf32>
    %1053 = arith.mulf %1052, %573 : vector<2x128xf32>
    %1054 = arith.addf %1050, %1053 : vector<2x128xf32>
    %c111_183 = arith.constant 111 : index
    %1055 = memref.load %arg5[%c111_183] : memref<125xf32, #tpu.memory_space<smem>>
    %1056 = vector.broadcast %1055 : f32 to vector<2x128xf32>
    %1057 = arith.mulf %1056, %574 : vector<2x128xf32>
    %1058 = arith.addf %1054, %1057 : vector<2x128xf32>
    %c112_184 = arith.constant 112 : index
    %1059 = memref.load %arg5[%c112_184] : memref<125xf32, #tpu.memory_space<smem>>
    %1060 = vector.broadcast %1059 : f32 to vector<2x128xf32>
    %1061 = arith.mulf %1060, %352 : vector<2x128xf32>
    %1062 = arith.addf %1058, %1061 : vector<2x128xf32>
    %c113_185 = arith.constant 113 : index
    %1063 = memref.load %arg5[%c113_185] : memref<125xf32, #tpu.memory_space<smem>>
    %1064 = vector.broadcast %1063 : f32 to vector<2x128xf32>
    %1065 = arith.mulf %1064, %575 : vector<2x128xf32>
    %1066 = arith.addf %1062, %1065 : vector<2x128xf32>
    %c114_186 = arith.constant 114 : index
    %1067 = memref.load %arg5[%c114_186] : memref<125xf32, #tpu.memory_space<smem>>
    %1068 = vector.broadcast %1067 : f32 to vector<2x128xf32>
    %1069 = arith.mulf %1068, %576 : vector<2x128xf32>
    %1070 = arith.addf %1066, %1069 : vector<2x128xf32>
    %c115_187 = arith.constant 115 : index
    %1071 = memref.load %arg5[%c115_187] : memref<125xf32, #tpu.memory_space<smem>>
    %1072 = vector.broadcast %1071 : f32 to vector<2x128xf32>
    %1073 = arith.mulf %1072, %577 : vector<2x128xf32>
    %1074 = arith.addf %1070, %1073 : vector<2x128xf32>
    %c116_188 = arith.constant 116 : index
    %1075 = memref.load %arg5[%c116_188] : memref<125xf32, #tpu.memory_space<smem>>
    %1076 = vector.broadcast %1075 : f32 to vector<2x128xf32>
    %1077 = arith.mulf %1076, %578 : vector<2x128xf32>
    %1078 = arith.addf %1074, %1077 : vector<2x128xf32>
    %c117_189 = arith.constant 117 : index
    %1079 = memref.load %arg5[%c117_189] : memref<125xf32, #tpu.memory_space<smem>>
    %1080 = vector.broadcast %1079 : f32 to vector<2x128xf32>
    %1081 = arith.mulf %1080, %458 : vector<2x128xf32>
    %1082 = arith.addf %1078, %1081 : vector<2x128xf32>
    %c118_190 = arith.constant 118 : index
    %1083 = memref.load %arg5[%c118_190] : memref<125xf32, #tpu.memory_space<smem>>
    %1084 = vector.broadcast %1083 : f32 to vector<2x128xf32>
    %1085 = arith.mulf %1084, %579 : vector<2x128xf32>
    %1086 = arith.addf %1082, %1085 : vector<2x128xf32>
    %c119_191 = arith.constant 119 : index
    %1087 = memref.load %arg5[%c119_191] : memref<125xf32, #tpu.memory_space<smem>>
    %1088 = vector.broadcast %1087 : f32 to vector<2x128xf32>
    %1089 = arith.mulf %1088, %580 : vector<2x128xf32>
    %1090 = arith.addf %1086, %1089 : vector<2x128xf32>
    %c120_192 = arith.constant 120 : index
    %1091 = memref.load %arg5[%c120_192] : memref<125xf32, #tpu.memory_space<smem>>
    %1092 = vector.broadcast %1091 : f32 to vector<2x128xf32>
    %1093 = arith.mulf %1092, %581 : vector<2x128xf32>
    %1094 = arith.addf %1090, %1093 : vector<2x128xf32>
    %c121_193 = arith.constant 121 : index
    %1095 = memref.load %arg5[%c121_193] : memref<125xf32, #tpu.memory_space<smem>>
    %1096 = vector.broadcast %1095 : f32 to vector<2x128xf32>
    %1097 = arith.mulf %1096, %582 : vector<2x128xf32>
    %1098 = arith.addf %1094, %1097 : vector<2x128xf32>
    %c122_194 = arith.constant 122 : index
    %1099 = memref.load %arg5[%c122_194] : memref<125xf32, #tpu.memory_space<smem>>
    %1100 = vector.broadcast %1099 : f32 to vector<2x128xf32>
    %1101 = arith.mulf %1100, %564 : vector<2x128xf32>
    %1102 = arith.addf %1098, %1101 : vector<2x128xf32>
    %c123_195 = arith.constant 123 : index
    %1103 = memref.load %arg5[%c123_195] : memref<125xf32, #tpu.memory_space<smem>>
    %1104 = vector.broadcast %1103 : f32 to vector<2x128xf32>
    %1105 = arith.mulf %1104, %583 : vector<2x128xf32>
    %1106 = arith.addf %1102, %1105 : vector<2x128xf32>
    %c124_196 = arith.constant 124 : index
    %1107 = memref.load %arg5[%c124_196] : memref<125xf32, #tpu.memory_space<smem>>
    %1108 = vector.broadcast %1107 : f32 to vector<2x128xf32>
    %1109 = arith.mulf %1108, %584 : vector<2x128xf32>
    %1110 = arith.addf %1106, %1109 : vector<2x128xf32>
    %cst_197 = arith.constant 0.000000e+00 : f32
    %1111 = vector.broadcast %cst_197 : f32 to vector<2x128xf32>
    %1112 = arith.maximumf %1110, %1111 : vector<2x128xf32>
    %cst_198 = arith.constant 0.000000e+00 : f32
    %1113 = vector.broadcast %cst_198 : f32 to vector<2x128xf32>
    %1114 = arith.select %9, %1112, %1113 : vector<2x128xi1>, vector<2x128xf32>
    %c2_i32_199 = arith.constant 2 : i32
    %1115 = tpu.dynamic_rotate %690 by %c2_i32_199 dim 1 : vector<2x128xf32>, i32 -> vector<2x128xf32>
    %c1_i32_200 = arith.constant 1 : i32
    %1116 = tpu.dynamic_rotate %690 by %c1_i32_200 dim 1 : vector<2x128xf32>, i32 -> vector<2x128xf32>
    %c127_i32_201 = arith.constant 127 : i32
    %1117 = tpu.dynamic_rotate %690 by %c127_i32_201 dim 1 : vector<2x128xf32>, i32 -> vector<2x128xf32>
    %c126_i32_202 = arith.constant 126 : i32
    %1118 = tpu.dynamic_rotate %690 by %c126_i32_202 dim 1 : vector<2x128xf32>, i32 -> vector<2x128xf32>
    %c2_i32_203 = arith.constant 2 : i32
    %1119 = tpu.dynamic_rotate %796 by %c2_i32_203 dim 1 : vector<2x128xf32>, i32 -> vector<2x128xf32>
    %c1_i32_204 = arith.constant 1 : i32
    %1120 = tpu.dynamic_rotate %796 by %c1_i32_204 dim 1 : vector<2x128xf32>, i32 -> vector<2x128xf32>
    %c127_i32_205 = arith.constant 127 : i32
    %1121 = tpu.dynamic_rotate %796 by %c127_i32_205 dim 1 : vector<2x128xf32>, i32 -> vector<2x128xf32>
    %c126_i32_206 = arith.constant 126 : i32
    %1122 = tpu.dynamic_rotate %796 by %c126_i32_206 dim 1 : vector<2x128xf32>, i32 -> vector<2x128xf32>
    %c2_i32_207 = arith.constant 2 : i32
    %1123 = tpu.dynamic_rotate %902 by %c2_i32_207 dim 1 : vector<2x128xf32>, i32 -> vector<2x128xf32>
    %c1_i32_208 = arith.constant 1 : i32
    %1124 = tpu.dynamic_rotate %902 by %c1_i32_208 dim 1 : vector<2x128xf32>, i32 -> vector<2x128xf32>
    %c127_i32_209 = arith.constant 127 : i32
    %1125 = tpu.dynamic_rotate %902 by %c127_i32_209 dim 1 : vector<2x128xf32>, i32 -> vector<2x128xf32>
    %c126_i32_210 = arith.constant 126 : i32
    %1126 = tpu.dynamic_rotate %902 by %c126_i32_210 dim 1 : vector<2x128xf32>, i32 -> vector<2x128xf32>
    %c2_i32_211 = arith.constant 2 : i32
    %1127 = tpu.dynamic_rotate %1008 by %c2_i32_211 dim 1 : vector<2x128xf32>, i32 -> vector<2x128xf32>
    %c1_i32_212 = arith.constant 1 : i32
    %1128 = tpu.dynamic_rotate %1008 by %c1_i32_212 dim 1 : vector<2x128xf32>, i32 -> vector<2x128xf32>
    %c127_i32_213 = arith.constant 127 : i32
    %1129 = tpu.dynamic_rotate %1008 by %c127_i32_213 dim 1 : vector<2x128xf32>, i32 -> vector<2x128xf32>
    %c126_i32_214 = arith.constant 126 : i32
    %1130 = tpu.dynamic_rotate %1008 by %c126_i32_214 dim 1 : vector<2x128xf32>, i32 -> vector<2x128xf32>
    %c2_i32_215 = arith.constant 2 : i32
    %1131 = tpu.dynamic_rotate %1114 by %c2_i32_215 dim 1 : vector<2x128xf32>, i32 -> vector<2x128xf32>
    %c1_i32_216 = arith.constant 1 : i32
    %1132 = tpu.dynamic_rotate %1114 by %c1_i32_216 dim 1 : vector<2x128xf32>, i32 -> vector<2x128xf32>
    %c127_i32_217 = arith.constant 127 : i32
    %1133 = tpu.dynamic_rotate %1114 by %c127_i32_217 dim 1 : vector<2x128xf32>, i32 -> vector<2x128xf32>
    %c126_i32_218 = arith.constant 126 : i32
    %1134 = tpu.dynamic_rotate %1114 by %c126_i32_218 dim 1 : vector<2x128xf32>, i32 -> vector<2x128xf32>
    %c0_219 = arith.constant 0 : index
    %1135 = memref.load %arg8[%c0_219] : memref<5xf32, #tpu.memory_space<smem>>
    %1136 = vector.broadcast %1135 : f32 to vector<2x128xf32>
    %c0_220 = arith.constant 0 : index
    %1137 = memref.load %arg7[%c0_220] : memref<125xf32, #tpu.memory_space<smem>>
    %1138 = vector.broadcast %1137 : f32 to vector<2x128xf32>
    %1139 = arith.mulf %1138, %1115 : vector<2x128xf32>
    %1140 = arith.addf %1136, %1139 : vector<2x128xf32>
    %c1_221 = arith.constant 1 : index
    %1141 = memref.load %arg7[%c1_221] : memref<125xf32, #tpu.memory_space<smem>>
    %1142 = vector.broadcast %1141 : f32 to vector<2x128xf32>
    %1143 = arith.mulf %1142, %1116 : vector<2x128xf32>
    %1144 = arith.addf %1140, %1143 : vector<2x128xf32>
    %c2_222 = arith.constant 2 : index
    %1145 = memref.load %arg7[%c2_222] : memref<125xf32, #tpu.memory_space<smem>>
    %1146 = vector.broadcast %1145 : f32 to vector<2x128xf32>
    %1147 = arith.mulf %1146, %690 : vector<2x128xf32>
    %1148 = arith.addf %1144, %1147 : vector<2x128xf32>
    %c3_223 = arith.constant 3 : index
    %1149 = memref.load %arg7[%c3_223] : memref<125xf32, #tpu.memory_space<smem>>
    %1150 = vector.broadcast %1149 : f32 to vector<2x128xf32>
    %1151 = arith.mulf %1150, %1117 : vector<2x128xf32>
    %1152 = arith.addf %1148, %1151 : vector<2x128xf32>
    %c4_224 = arith.constant 4 : index
    %1153 = memref.load %arg7[%c4_224] : memref<125xf32, #tpu.memory_space<smem>>
    %1154 = vector.broadcast %1153 : f32 to vector<2x128xf32>
    %1155 = arith.mulf %1154, %1118 : vector<2x128xf32>
    %1156 = arith.addf %1152, %1155 : vector<2x128xf32>
    %c5_225 = arith.constant 5 : index
    %1157 = memref.load %arg7[%c5_225] : memref<125xf32, #tpu.memory_space<smem>>
    %1158 = vector.broadcast %1157 : f32 to vector<2x128xf32>
    %1159 = arith.mulf %1158, %1119 : vector<2x128xf32>
    %1160 = arith.addf %1156, %1159 : vector<2x128xf32>
    %c6_226 = arith.constant 6 : index
    %1161 = memref.load %arg7[%c6_226] : memref<125xf32, #tpu.memory_space<smem>>
    %1162 = vector.broadcast %1161 : f32 to vector<2x128xf32>
    %1163 = arith.mulf %1162, %1120 : vector<2x128xf32>
    %1164 = arith.addf %1160, %1163 : vector<2x128xf32>
    %c7_227 = arith.constant 7 : index
    %1165 = memref.load %arg7[%c7_227] : memref<125xf32, #tpu.memory_space<smem>>
    %1166 = vector.broadcast %1165 : f32 to vector<2x128xf32>
    %1167 = arith.mulf %1166, %796 : vector<2x128xf32>
    %1168 = arith.addf %1164, %1167 : vector<2x128xf32>
    %c8_228 = arith.constant 8 : index
    %1169 = memref.load %arg7[%c8_228] : memref<125xf32, #tpu.memory_space<smem>>
    %1170 = vector.broadcast %1169 : f32 to vector<2x128xf32>
    %1171 = arith.mulf %1170, %1121 : vector<2x128xf32>
    %1172 = arith.addf %1168, %1171 : vector<2x128xf32>
    %c9_229 = arith.constant 9 : index
    %1173 = memref.load %arg7[%c9_229] : memref<125xf32, #tpu.memory_space<smem>>
    %1174 = vector.broadcast %1173 : f32 to vector<2x128xf32>
    %1175 = arith.mulf %1174, %1122 : vector<2x128xf32>
    %1176 = arith.addf %1172, %1175 : vector<2x128xf32>
    %c10_230 = arith.constant 10 : index
    %1177 = memref.load %arg7[%c10_230] : memref<125xf32, #tpu.memory_space<smem>>
    %1178 = vector.broadcast %1177 : f32 to vector<2x128xf32>
    %1179 = arith.mulf %1178, %1123 : vector<2x128xf32>
    %1180 = arith.addf %1176, %1179 : vector<2x128xf32>
    %c11_231 = arith.constant 11 : index
    %1181 = memref.load %arg7[%c11_231] : memref<125xf32, #tpu.memory_space<smem>>
    %1182 = vector.broadcast %1181 : f32 to vector<2x128xf32>
    %1183 = arith.mulf %1182, %1124 : vector<2x128xf32>
    %1184 = arith.addf %1180, %1183 : vector<2x128xf32>
    %c12_232 = arith.constant 12 : index
    %1185 = memref.load %arg7[%c12_232] : memref<125xf32, #tpu.memory_space<smem>>
    %1186 = vector.broadcast %1185 : f32 to vector<2x128xf32>
    %1187 = arith.mulf %1186, %902 : vector<2x128xf32>
    %1188 = arith.addf %1184, %1187 : vector<2x128xf32>
    %c13_233 = arith.constant 13 : index
    %1189 = memref.load %arg7[%c13_233] : memref<125xf32, #tpu.memory_space<smem>>
    %1190 = vector.broadcast %1189 : f32 to vector<2x128xf32>
    %1191 = arith.mulf %1190, %1125 : vector<2x128xf32>
    %1192 = arith.addf %1188, %1191 : vector<2x128xf32>
    %c14_234 = arith.constant 14 : index
    %1193 = memref.load %arg7[%c14_234] : memref<125xf32, #tpu.memory_space<smem>>
    %1194 = vector.broadcast %1193 : f32 to vector<2x128xf32>
    %1195 = arith.mulf %1194, %1126 : vector<2x128xf32>
    %1196 = arith.addf %1192, %1195 : vector<2x128xf32>
    %c15_235 = arith.constant 15 : index
    %1197 = memref.load %arg7[%c15_235] : memref<125xf32, #tpu.memory_space<smem>>
    %1198 = vector.broadcast %1197 : f32 to vector<2x128xf32>
    %1199 = arith.mulf %1198, %1127 : vector<2x128xf32>
    %1200 = arith.addf %1196, %1199 : vector<2x128xf32>
    %c16_236 = arith.constant 16 : index
    %1201 = memref.load %arg7[%c16_236] : memref<125xf32, #tpu.memory_space<smem>>
    %1202 = vector.broadcast %1201 : f32 to vector<2x128xf32>
    %1203 = arith.mulf %1202, %1128 : vector<2x128xf32>
    %1204 = arith.addf %1200, %1203 : vector<2x128xf32>
    %c17_237 = arith.constant 17 : index
    %1205 = memref.load %arg7[%c17_237] : memref<125xf32, #tpu.memory_space<smem>>
    %1206 = vector.broadcast %1205 : f32 to vector<2x128xf32>
    %1207 = arith.mulf %1206, %1008 : vector<2x128xf32>
    %1208 = arith.addf %1204, %1207 : vector<2x128xf32>
    %c18_238 = arith.constant 18 : index
    %1209 = memref.load %arg7[%c18_238] : memref<125xf32, #tpu.memory_space<smem>>
    %1210 = vector.broadcast %1209 : f32 to vector<2x128xf32>
    %1211 = arith.mulf %1210, %1129 : vector<2x128xf32>
    %1212 = arith.addf %1208, %1211 : vector<2x128xf32>
    %c19_239 = arith.constant 19 : index
    %1213 = memref.load %arg7[%c19_239] : memref<125xf32, #tpu.memory_space<smem>>
    %1214 = vector.broadcast %1213 : f32 to vector<2x128xf32>
    %1215 = arith.mulf %1214, %1130 : vector<2x128xf32>
    %1216 = arith.addf %1212, %1215 : vector<2x128xf32>
    %c20_240 = arith.constant 20 : index
    %1217 = memref.load %arg7[%c20_240] : memref<125xf32, #tpu.memory_space<smem>>
    %1218 = vector.broadcast %1217 : f32 to vector<2x128xf32>
    %1219 = arith.mulf %1218, %1131 : vector<2x128xf32>
    %1220 = arith.addf %1216, %1219 : vector<2x128xf32>
    %c21_241 = arith.constant 21 : index
    %1221 = memref.load %arg7[%c21_241] : memref<125xf32, #tpu.memory_space<smem>>
    %1222 = vector.broadcast %1221 : f32 to vector<2x128xf32>
    %1223 = arith.mulf %1222, %1132 : vector<2x128xf32>
    %1224 = arith.addf %1220, %1223 : vector<2x128xf32>
    %c22_242 = arith.constant 22 : index
    %1225 = memref.load %arg7[%c22_242] : memref<125xf32, #tpu.memory_space<smem>>
    %1226 = vector.broadcast %1225 : f32 to vector<2x128xf32>
    %1227 = arith.mulf %1226, %1114 : vector<2x128xf32>
    %1228 = arith.addf %1224, %1227 : vector<2x128xf32>
    %c23_243 = arith.constant 23 : index
    %1229 = memref.load %arg7[%c23_243] : memref<125xf32, #tpu.memory_space<smem>>
    %1230 = vector.broadcast %1229 : f32 to vector<2x128xf32>
    %1231 = arith.mulf %1230, %1133 : vector<2x128xf32>
    %1232 = arith.addf %1228, %1231 : vector<2x128xf32>
    %c24_244 = arith.constant 24 : index
    %1233 = memref.load %arg7[%c24_244] : memref<125xf32, #tpu.memory_space<smem>>
    %1234 = vector.broadcast %1233 : f32 to vector<2x128xf32>
    %1235 = arith.mulf %1234, %1134 : vector<2x128xf32>
    %1236 = arith.addf %1232, %1235 : vector<2x128xf32>
    %cst_245 = arith.constant 0.000000e+00 : f32
    %1237 = vector.broadcast %cst_245 : f32 to vector<2x128xf32>
    %1238 = arith.maximumf %1236, %1237 : vector<2x128xf32>
    %cst_246 = arith.constant 0.000000e+00 : f32
    %1239 = vector.broadcast %cst_246 : f32 to vector<2x128xf32>
    %1240 = arith.select %9, %1238, %1239 : vector<2x128xi1>, vector<2x128xf32>
    %c1_247 = arith.constant 1 : index
    %1241 = memref.load %arg8[%c1_247] : memref<5xf32, #tpu.memory_space<smem>>
    %1242 = vector.broadcast %1241 : f32 to vector<2x128xf32>
    %c25_248 = arith.constant 25 : index
    %1243 = memref.load %arg7[%c25_248] : memref<125xf32, #tpu.memory_space<smem>>
    %1244 = vector.broadcast %1243 : f32 to vector<2x128xf32>
    %1245 = arith.mulf %1244, %1115 : vector<2x128xf32>
    %1246 = arith.addf %1242, %1245 : vector<2x128xf32>
    %c26_249 = arith.constant 26 : index
    %1247 = memref.load %arg7[%c26_249] : memref<125xf32, #tpu.memory_space<smem>>
    %1248 = vector.broadcast %1247 : f32 to vector<2x128xf32>
    %1249 = arith.mulf %1248, %1116 : vector<2x128xf32>
    %1250 = arith.addf %1246, %1249 : vector<2x128xf32>
    %c27_250 = arith.constant 27 : index
    %1251 = memref.load %arg7[%c27_250] : memref<125xf32, #tpu.memory_space<smem>>
    %1252 = vector.broadcast %1251 : f32 to vector<2x128xf32>
    %1253 = arith.mulf %1252, %690 : vector<2x128xf32>
    %1254 = arith.addf %1250, %1253 : vector<2x128xf32>
    %c28_251 = arith.constant 28 : index
    %1255 = memref.load %arg7[%c28_251] : memref<125xf32, #tpu.memory_space<smem>>
    %1256 = vector.broadcast %1255 : f32 to vector<2x128xf32>
    %1257 = arith.mulf %1256, %1117 : vector<2x128xf32>
    %1258 = arith.addf %1254, %1257 : vector<2x128xf32>
    %c29_252 = arith.constant 29 : index
    %1259 = memref.load %arg7[%c29_252] : memref<125xf32, #tpu.memory_space<smem>>
    %1260 = vector.broadcast %1259 : f32 to vector<2x128xf32>
    %1261 = arith.mulf %1260, %1118 : vector<2x128xf32>
    %1262 = arith.addf %1258, %1261 : vector<2x128xf32>
    %c30_253 = arith.constant 30 : index
    %1263 = memref.load %arg7[%c30_253] : memref<125xf32, #tpu.memory_space<smem>>
    %1264 = vector.broadcast %1263 : f32 to vector<2x128xf32>
    %1265 = arith.mulf %1264, %1119 : vector<2x128xf32>
    %1266 = arith.addf %1262, %1265 : vector<2x128xf32>
    %c31_254 = arith.constant 31 : index
    %1267 = memref.load %arg7[%c31_254] : memref<125xf32, #tpu.memory_space<smem>>
    %1268 = vector.broadcast %1267 : f32 to vector<2x128xf32>
    %1269 = arith.mulf %1268, %1120 : vector<2x128xf32>
    %1270 = arith.addf %1266, %1269 : vector<2x128xf32>
    %c32_255 = arith.constant 32 : index
    %1271 = memref.load %arg7[%c32_255] : memref<125xf32, #tpu.memory_space<smem>>
    %1272 = vector.broadcast %1271 : f32 to vector<2x128xf32>
    %1273 = arith.mulf %1272, %796 : vector<2x128xf32>
    %1274 = arith.addf %1270, %1273 : vector<2x128xf32>
    %c33_256 = arith.constant 33 : index
    %1275 = memref.load %arg7[%c33_256] : memref<125xf32, #tpu.memory_space<smem>>
    %1276 = vector.broadcast %1275 : f32 to vector<2x128xf32>
    %1277 = arith.mulf %1276, %1121 : vector<2x128xf32>
    %1278 = arith.addf %1274, %1277 : vector<2x128xf32>
    %c34_257 = arith.constant 34 : index
    %1279 = memref.load %arg7[%c34_257] : memref<125xf32, #tpu.memory_space<smem>>
    %1280 = vector.broadcast %1279 : f32 to vector<2x128xf32>
    %1281 = arith.mulf %1280, %1122 : vector<2x128xf32>
    %1282 = arith.addf %1278, %1281 : vector<2x128xf32>
    %c35_258 = arith.constant 35 : index
    %1283 = memref.load %arg7[%c35_258] : memref<125xf32, #tpu.memory_space<smem>>
    %1284 = vector.broadcast %1283 : f32 to vector<2x128xf32>
    %1285 = arith.mulf %1284, %1123 : vector<2x128xf32>
    %1286 = arith.addf %1282, %1285 : vector<2x128xf32>
    %c36_259 = arith.constant 36 : index
    %1287 = memref.load %arg7[%c36_259] : memref<125xf32, #tpu.memory_space<smem>>
    %1288 = vector.broadcast %1287 : f32 to vector<2x128xf32>
    %1289 = arith.mulf %1288, %1124 : vector<2x128xf32>
    %1290 = arith.addf %1286, %1289 : vector<2x128xf32>
    %c37_260 = arith.constant 37 : index
    %1291 = memref.load %arg7[%c37_260] : memref<125xf32, #tpu.memory_space<smem>>
    %1292 = vector.broadcast %1291 : f32 to vector<2x128xf32>
    %1293 = arith.mulf %1292, %902 : vector<2x128xf32>
    %1294 = arith.addf %1290, %1293 : vector<2x128xf32>
    %c38_261 = arith.constant 38 : index
    %1295 = memref.load %arg7[%c38_261] : memref<125xf32, #tpu.memory_space<smem>>
    %1296 = vector.broadcast %1295 : f32 to vector<2x128xf32>
    %1297 = arith.mulf %1296, %1125 : vector<2x128xf32>
    %1298 = arith.addf %1294, %1297 : vector<2x128xf32>
    %c39_262 = arith.constant 39 : index
    %1299 = memref.load %arg7[%c39_262] : memref<125xf32, #tpu.memory_space<smem>>
    %1300 = vector.broadcast %1299 : f32 to vector<2x128xf32>
    %1301 = arith.mulf %1300, %1126 : vector<2x128xf32>
    %1302 = arith.addf %1298, %1301 : vector<2x128xf32>
    %c40_263 = arith.constant 40 : index
    %1303 = memref.load %arg7[%c40_263] : memref<125xf32, #tpu.memory_space<smem>>
    %1304 = vector.broadcast %1303 : f32 to vector<2x128xf32>
    %1305 = arith.mulf %1304, %1127 : vector<2x128xf32>
    %1306 = arith.addf %1302, %1305 : vector<2x128xf32>
    %c41_264 = arith.constant 41 : index
    %1307 = memref.load %arg7[%c41_264] : memref<125xf32, #tpu.memory_space<smem>>
    %1308 = vector.broadcast %1307 : f32 to vector<2x128xf32>
    %1309 = arith.mulf %1308, %1128 : vector<2x128xf32>
    %1310 = arith.addf %1306, %1309 : vector<2x128xf32>
    %c42_265 = arith.constant 42 : index
    %1311 = memref.load %arg7[%c42_265] : memref<125xf32, #tpu.memory_space<smem>>
    %1312 = vector.broadcast %1311 : f32 to vector<2x128xf32>
    %1313 = arith.mulf %1312, %1008 : vector<2x128xf32>
    %1314 = arith.addf %1310, %1313 : vector<2x128xf32>
    %c43_266 = arith.constant 43 : index
    %1315 = memref.load %arg7[%c43_266] : memref<125xf32, #tpu.memory_space<smem>>
    %1316 = vector.broadcast %1315 : f32 to vector<2x128xf32>
    %1317 = arith.mulf %1316, %1129 : vector<2x128xf32>
    %1318 = arith.addf %1314, %1317 : vector<2x128xf32>
    %c44_267 = arith.constant 44 : index
    %1319 = memref.load %arg7[%c44_267] : memref<125xf32, #tpu.memory_space<smem>>
    %1320 = vector.broadcast %1319 : f32 to vector<2x128xf32>
    %1321 = arith.mulf %1320, %1130 : vector<2x128xf32>
    %1322 = arith.addf %1318, %1321 : vector<2x128xf32>
    %c45_268 = arith.constant 45 : index
    %1323 = memref.load %arg7[%c45_268] : memref<125xf32, #tpu.memory_space<smem>>
    %1324 = vector.broadcast %1323 : f32 to vector<2x128xf32>
    %1325 = arith.mulf %1324, %1131 : vector<2x128xf32>
    %1326 = arith.addf %1322, %1325 : vector<2x128xf32>
    %c46_269 = arith.constant 46 : index
    %1327 = memref.load %arg7[%c46_269] : memref<125xf32, #tpu.memory_space<smem>>
    %1328 = vector.broadcast %1327 : f32 to vector<2x128xf32>
    %1329 = arith.mulf %1328, %1132 : vector<2x128xf32>
    %1330 = arith.addf %1326, %1329 : vector<2x128xf32>
    %c47_270 = arith.constant 47 : index
    %1331 = memref.load %arg7[%c47_270] : memref<125xf32, #tpu.memory_space<smem>>
    %1332 = vector.broadcast %1331 : f32 to vector<2x128xf32>
    %1333 = arith.mulf %1332, %1114 : vector<2x128xf32>
    %1334 = arith.addf %1330, %1333 : vector<2x128xf32>
    %c48_271 = arith.constant 48 : index
    %1335 = memref.load %arg7[%c48_271] : memref<125xf32, #tpu.memory_space<smem>>
    %1336 = vector.broadcast %1335 : f32 to vector<2x128xf32>
    %1337 = arith.mulf %1336, %1133 : vector<2x128xf32>
    %1338 = arith.addf %1334, %1337 : vector<2x128xf32>
    %c49_272 = arith.constant 49 : index
    %1339 = memref.load %arg7[%c49_272] : memref<125xf32, #tpu.memory_space<smem>>
    %1340 = vector.broadcast %1339 : f32 to vector<2x128xf32>
    %1341 = arith.mulf %1340, %1134 : vector<2x128xf32>
    %1342 = arith.addf %1338, %1341 : vector<2x128xf32>
    %cst_273 = arith.constant 0.000000e+00 : f32
    %1343 = vector.broadcast %cst_273 : f32 to vector<2x128xf32>
    %1344 = arith.maximumf %1342, %1343 : vector<2x128xf32>
    %cst_274 = arith.constant 0.000000e+00 : f32
    %1345 = vector.broadcast %cst_274 : f32 to vector<2x128xf32>
    %1346 = arith.select %9, %1344, %1345 : vector<2x128xi1>, vector<2x128xf32>
    %c2_275 = arith.constant 2 : index
    %1347 = memref.load %arg8[%c2_275] : memref<5xf32, #tpu.memory_space<smem>>
    %1348 = vector.broadcast %1347 : f32 to vector<2x128xf32>
    %c50_276 = arith.constant 50 : index
    %1349 = memref.load %arg7[%c50_276] : memref<125xf32, #tpu.memory_space<smem>>
    %1350 = vector.broadcast %1349 : f32 to vector<2x128xf32>
    %1351 = arith.mulf %1350, %1115 : vector<2x128xf32>
    %1352 = arith.addf %1348, %1351 : vector<2x128xf32>
    %c51_277 = arith.constant 51 : index
    %1353 = memref.load %arg7[%c51_277] : memref<125xf32, #tpu.memory_space<smem>>
    %1354 = vector.broadcast %1353 : f32 to vector<2x128xf32>
    %1355 = arith.mulf %1354, %1116 : vector<2x128xf32>
    %1356 = arith.addf %1352, %1355 : vector<2x128xf32>
    %c52_278 = arith.constant 52 : index
    %1357 = memref.load %arg7[%c52_278] : memref<125xf32, #tpu.memory_space<smem>>
    %1358 = vector.broadcast %1357 : f32 to vector<2x128xf32>
    %1359 = arith.mulf %1358, %690 : vector<2x128xf32>
    %1360 = arith.addf %1356, %1359 : vector<2x128xf32>
    %c53_279 = arith.constant 53 : index
    %1361 = memref.load %arg7[%c53_279] : memref<125xf32, #tpu.memory_space<smem>>
    %1362 = vector.broadcast %1361 : f32 to vector<2x128xf32>
    %1363 = arith.mulf %1362, %1117 : vector<2x128xf32>
    %1364 = arith.addf %1360, %1363 : vector<2x128xf32>
    %c54_280 = arith.constant 54 : index
    %1365 = memref.load %arg7[%c54_280] : memref<125xf32, #tpu.memory_space<smem>>
    %1366 = vector.broadcast %1365 : f32 to vector<2x128xf32>
    %1367 = arith.mulf %1366, %1118 : vector<2x128xf32>
    %1368 = arith.addf %1364, %1367 : vector<2x128xf32>
    %c55_281 = arith.constant 55 : index
    %1369 = memref.load %arg7[%c55_281] : memref<125xf32, #tpu.memory_space<smem>>
    %1370 = vector.broadcast %1369 : f32 to vector<2x128xf32>
    %1371 = arith.mulf %1370, %1119 : vector<2x128xf32>
    %1372 = arith.addf %1368, %1371 : vector<2x128xf32>
    %c56_282 = arith.constant 56 : index
    %1373 = memref.load %arg7[%c56_282] : memref<125xf32, #tpu.memory_space<smem>>
    %1374 = vector.broadcast %1373 : f32 to vector<2x128xf32>
    %1375 = arith.mulf %1374, %1120 : vector<2x128xf32>
    %1376 = arith.addf %1372, %1375 : vector<2x128xf32>
    %c57_283 = arith.constant 57 : index
    %1377 = memref.load %arg7[%c57_283] : memref<125xf32, #tpu.memory_space<smem>>
    %1378 = vector.broadcast %1377 : f32 to vector<2x128xf32>
    %1379 = arith.mulf %1378, %796 : vector<2x128xf32>
    %1380 = arith.addf %1376, %1379 : vector<2x128xf32>
    %c58_284 = arith.constant 58 : index
    %1381 = memref.load %arg7[%c58_284] : memref<125xf32, #tpu.memory_space<smem>>
    %1382 = vector.broadcast %1381 : f32 to vector<2x128xf32>
    %1383 = arith.mulf %1382, %1121 : vector<2x128xf32>
    %1384 = arith.addf %1380, %1383 : vector<2x128xf32>
    %c59_285 = arith.constant 59 : index
    %1385 = memref.load %arg7[%c59_285] : memref<125xf32, #tpu.memory_space<smem>>
    %1386 = vector.broadcast %1385 : f32 to vector<2x128xf32>
    %1387 = arith.mulf %1386, %1122 : vector<2x128xf32>
    %1388 = arith.addf %1384, %1387 : vector<2x128xf32>
    %c60_286 = arith.constant 60 : index
    %1389 = memref.load %arg7[%c60_286] : memref<125xf32, #tpu.memory_space<smem>>
    %1390 = vector.broadcast %1389 : f32 to vector<2x128xf32>
    %1391 = arith.mulf %1390, %1123 : vector<2x128xf32>
    %1392 = arith.addf %1388, %1391 : vector<2x128xf32>
    %c61_287 = arith.constant 61 : index
    %1393 = memref.load %arg7[%c61_287] : memref<125xf32, #tpu.memory_space<smem>>
    %1394 = vector.broadcast %1393 : f32 to vector<2x128xf32>
    %1395 = arith.mulf %1394, %1124 : vector<2x128xf32>
    %1396 = arith.addf %1392, %1395 : vector<2x128xf32>
    %c62_288 = arith.constant 62 : index
    %1397 = memref.load %arg7[%c62_288] : memref<125xf32, #tpu.memory_space<smem>>
    %1398 = vector.broadcast %1397 : f32 to vector<2x128xf32>
    %1399 = arith.mulf %1398, %902 : vector<2x128xf32>
    %1400 = arith.addf %1396, %1399 : vector<2x128xf32>
    %c63_289 = arith.constant 63 : index
    %1401 = memref.load %arg7[%c63_289] : memref<125xf32, #tpu.memory_space<smem>>
    %1402 = vector.broadcast %1401 : f32 to vector<2x128xf32>
    %1403 = arith.mulf %1402, %1125 : vector<2x128xf32>
    %1404 = arith.addf %1400, %1403 : vector<2x128xf32>
    %c64_290 = arith.constant 64 : index
    %1405 = memref.load %arg7[%c64_290] : memref<125xf32, #tpu.memory_space<smem>>
    %1406 = vector.broadcast %1405 : f32 to vector<2x128xf32>
    %1407 = arith.mulf %1406, %1126 : vector<2x128xf32>
    %1408 = arith.addf %1404, %1407 : vector<2x128xf32>
    %c65_291 = arith.constant 65 : index
    %1409 = memref.load %arg7[%c65_291] : memref<125xf32, #tpu.memory_space<smem>>
    %1410 = vector.broadcast %1409 : f32 to vector<2x128xf32>
    %1411 = arith.mulf %1410, %1127 : vector<2x128xf32>
    %1412 = arith.addf %1408, %1411 : vector<2x128xf32>
    %c66_292 = arith.constant 66 : index
    %1413 = memref.load %arg7[%c66_292] : memref<125xf32, #tpu.memory_space<smem>>
    %1414 = vector.broadcast %1413 : f32 to vector<2x128xf32>
    %1415 = arith.mulf %1414, %1128 : vector<2x128xf32>
    %1416 = arith.addf %1412, %1415 : vector<2x128xf32>
    %c67_293 = arith.constant 67 : index
    %1417 = memref.load %arg7[%c67_293] : memref<125xf32, #tpu.memory_space<smem>>
    %1418 = vector.broadcast %1417 : f32 to vector<2x128xf32>
    %1419 = arith.mulf %1418, %1008 : vector<2x128xf32>
    %1420 = arith.addf %1416, %1419 : vector<2x128xf32>
    %c68_294 = arith.constant 68 : index
    %1421 = memref.load %arg7[%c68_294] : memref<125xf32, #tpu.memory_space<smem>>
    %1422 = vector.broadcast %1421 : f32 to vector<2x128xf32>
    %1423 = arith.mulf %1422, %1129 : vector<2x128xf32>
    %1424 = arith.addf %1420, %1423 : vector<2x128xf32>
    %c69_295 = arith.constant 69 : index
    %1425 = memref.load %arg7[%c69_295] : memref<125xf32, #tpu.memory_space<smem>>
    %1426 = vector.broadcast %1425 : f32 to vector<2x128xf32>
    %1427 = arith.mulf %1426, %1130 : vector<2x128xf32>
    %1428 = arith.addf %1424, %1427 : vector<2x128xf32>
    %c70_296 = arith.constant 70 : index
    %1429 = memref.load %arg7[%c70_296] : memref<125xf32, #tpu.memory_space<smem>>
    %1430 = vector.broadcast %1429 : f32 to vector<2x128xf32>
    %1431 = arith.mulf %1430, %1131 : vector<2x128xf32>
    %1432 = arith.addf %1428, %1431 : vector<2x128xf32>
    %c71_297 = arith.constant 71 : index
    %1433 = memref.load %arg7[%c71_297] : memref<125xf32, #tpu.memory_space<smem>>
    %1434 = vector.broadcast %1433 : f32 to vector<2x128xf32>
    %1435 = arith.mulf %1434, %1132 : vector<2x128xf32>
    %1436 = arith.addf %1432, %1435 : vector<2x128xf32>
    %c72_298 = arith.constant 72 : index
    %1437 = memref.load %arg7[%c72_298] : memref<125xf32, #tpu.memory_space<smem>>
    %1438 = vector.broadcast %1437 : f32 to vector<2x128xf32>
    %1439 = arith.mulf %1438, %1114 : vector<2x128xf32>
    %1440 = arith.addf %1436, %1439 : vector<2x128xf32>
    %c73_299 = arith.constant 73 : index
    %1441 = memref.load %arg7[%c73_299] : memref<125xf32, #tpu.memory_space<smem>>
    %1442 = vector.broadcast %1441 : f32 to vector<2x128xf32>
    %1443 = arith.mulf %1442, %1133 : vector<2x128xf32>
    %1444 = arith.addf %1440, %1443 : vector<2x128xf32>
    %c74_300 = arith.constant 74 : index
    %1445 = memref.load %arg7[%c74_300] : memref<125xf32, #tpu.memory_space<smem>>
    %1446 = vector.broadcast %1445 : f32 to vector<2x128xf32>
    %1447 = arith.mulf %1446, %1134 : vector<2x128xf32>
    %1448 = arith.addf %1444, %1447 : vector<2x128xf32>
    %cst_301 = arith.constant 0.000000e+00 : f32
    %1449 = vector.broadcast %cst_301 : f32 to vector<2x128xf32>
    %1450 = arith.maximumf %1448, %1449 : vector<2x128xf32>
    %cst_302 = arith.constant 0.000000e+00 : f32
    %1451 = vector.broadcast %cst_302 : f32 to vector<2x128xf32>
    %1452 = arith.select %9, %1450, %1451 : vector<2x128xi1>, vector<2x128xf32>
    %c3_303 = arith.constant 3 : index
    %1453 = memref.load %arg8[%c3_303] : memref<5xf32, #tpu.memory_space<smem>>
    %1454 = vector.broadcast %1453 : f32 to vector<2x128xf32>
    %c75_304 = arith.constant 75 : index
    %1455 = memref.load %arg7[%c75_304] : memref<125xf32, #tpu.memory_space<smem>>
    %1456 = vector.broadcast %1455 : f32 to vector<2x128xf32>
    %1457 = arith.mulf %1456, %1115 : vector<2x128xf32>
    %1458 = arith.addf %1454, %1457 : vector<2x128xf32>
    %c76_305 = arith.constant 76 : index
    %1459 = memref.load %arg7[%c76_305] : memref<125xf32, #tpu.memory_space<smem>>
    %1460 = vector.broadcast %1459 : f32 to vector<2x128xf32>
    %1461 = arith.mulf %1460, %1116 : vector<2x128xf32>
    %1462 = arith.addf %1458, %1461 : vector<2x128xf32>
    %c77_306 = arith.constant 77 : index
    %1463 = memref.load %arg7[%c77_306] : memref<125xf32, #tpu.memory_space<smem>>
    %1464 = vector.broadcast %1463 : f32 to vector<2x128xf32>
    %1465 = arith.mulf %1464, %690 : vector<2x128xf32>
    %1466 = arith.addf %1462, %1465 : vector<2x128xf32>
    %c78_307 = arith.constant 78 : index
    %1467 = memref.load %arg7[%c78_307] : memref<125xf32, #tpu.memory_space<smem>>
    %1468 = vector.broadcast %1467 : f32 to vector<2x128xf32>
    %1469 = arith.mulf %1468, %1117 : vector<2x128xf32>
    %1470 = arith.addf %1466, %1469 : vector<2x128xf32>
    %c79_308 = arith.constant 79 : index
    %1471 = memref.load %arg7[%c79_308] : memref<125xf32, #tpu.memory_space<smem>>
    %1472 = vector.broadcast %1471 : f32 to vector<2x128xf32>
    %1473 = arith.mulf %1472, %1118 : vector<2x128xf32>
    %1474 = arith.addf %1470, %1473 : vector<2x128xf32>
    %c80_309 = arith.constant 80 : index
    %1475 = memref.load %arg7[%c80_309] : memref<125xf32, #tpu.memory_space<smem>>
    %1476 = vector.broadcast %1475 : f32 to vector<2x128xf32>
    %1477 = arith.mulf %1476, %1119 : vector<2x128xf32>
    %1478 = arith.addf %1474, %1477 : vector<2x128xf32>
    %c81_310 = arith.constant 81 : index
    %1479 = memref.load %arg7[%c81_310] : memref<125xf32, #tpu.memory_space<smem>>
    %1480 = vector.broadcast %1479 : f32 to vector<2x128xf32>
    %1481 = arith.mulf %1480, %1120 : vector<2x128xf32>
    %1482 = arith.addf %1478, %1481 : vector<2x128xf32>
    %c82_311 = arith.constant 82 : index
    %1483 = memref.load %arg7[%c82_311] : memref<125xf32, #tpu.memory_space<smem>>
    %1484 = vector.broadcast %1483 : f32 to vector<2x128xf32>
    %1485 = arith.mulf %1484, %796 : vector<2x128xf32>
    %1486 = arith.addf %1482, %1485 : vector<2x128xf32>
    %c83_312 = arith.constant 83 : index
    %1487 = memref.load %arg7[%c83_312] : memref<125xf32, #tpu.memory_space<smem>>
    %1488 = vector.broadcast %1487 : f32 to vector<2x128xf32>
    %1489 = arith.mulf %1488, %1121 : vector<2x128xf32>
    %1490 = arith.addf %1486, %1489 : vector<2x128xf32>
    %c84_313 = arith.constant 84 : index
    %1491 = memref.load %arg7[%c84_313] : memref<125xf32, #tpu.memory_space<smem>>
    %1492 = vector.broadcast %1491 : f32 to vector<2x128xf32>
    %1493 = arith.mulf %1492, %1122 : vector<2x128xf32>
    %1494 = arith.addf %1490, %1493 : vector<2x128xf32>
    %c85_314 = arith.constant 85 : index
    %1495 = memref.load %arg7[%c85_314] : memref<125xf32, #tpu.memory_space<smem>>
    %1496 = vector.broadcast %1495 : f32 to vector<2x128xf32>
    %1497 = arith.mulf %1496, %1123 : vector<2x128xf32>
    %1498 = arith.addf %1494, %1497 : vector<2x128xf32>
    %c86_315 = arith.constant 86 : index
    %1499 = memref.load %arg7[%c86_315] : memref<125xf32, #tpu.memory_space<smem>>
    %1500 = vector.broadcast %1499 : f32 to vector<2x128xf32>
    %1501 = arith.mulf %1500, %1124 : vector<2x128xf32>
    %1502 = arith.addf %1498, %1501 : vector<2x128xf32>
    %c87_316 = arith.constant 87 : index
    %1503 = memref.load %arg7[%c87_316] : memref<125xf32, #tpu.memory_space<smem>>
    %1504 = vector.broadcast %1503 : f32 to vector<2x128xf32>
    %1505 = arith.mulf %1504, %902 : vector<2x128xf32>
    %1506 = arith.addf %1502, %1505 : vector<2x128xf32>
    %c88_317 = arith.constant 88 : index
    %1507 = memref.load %arg7[%c88_317] : memref<125xf32, #tpu.memory_space<smem>>
    %1508 = vector.broadcast %1507 : f32 to vector<2x128xf32>
    %1509 = arith.mulf %1508, %1125 : vector<2x128xf32>
    %1510 = arith.addf %1506, %1509 : vector<2x128xf32>
    %c89_318 = arith.constant 89 : index
    %1511 = memref.load %arg7[%c89_318] : memref<125xf32, #tpu.memory_space<smem>>
    %1512 = vector.broadcast %1511 : f32 to vector<2x128xf32>
    %1513 = arith.mulf %1512, %1126 : vector<2x128xf32>
    %1514 = arith.addf %1510, %1513 : vector<2x128xf32>
    %c90_319 = arith.constant 90 : index
    %1515 = memref.load %arg7[%c90_319] : memref<125xf32, #tpu.memory_space<smem>>
    %1516 = vector.broadcast %1515 : f32 to vector<2x128xf32>
    %1517 = arith.mulf %1516, %1127 : vector<2x128xf32>
    %1518 = arith.addf %1514, %1517 : vector<2x128xf32>
    %c91_320 = arith.constant 91 : index
    %1519 = memref.load %arg7[%c91_320] : memref<125xf32, #tpu.memory_space<smem>>
    %1520 = vector.broadcast %1519 : f32 to vector<2x128xf32>
    %1521 = arith.mulf %1520, %1128 : vector<2x128xf32>
    %1522 = arith.addf %1518, %1521 : vector<2x128xf32>
    %c92_321 = arith.constant 92 : index
    %1523 = memref.load %arg7[%c92_321] : memref<125xf32, #tpu.memory_space<smem>>
    %1524 = vector.broadcast %1523 : f32 to vector<2x128xf32>
    %1525 = arith.mulf %1524, %1008 : vector<2x128xf32>
    %1526 = arith.addf %1522, %1525 : vector<2x128xf32>
    %c93_322 = arith.constant 93 : index
    %1527 = memref.load %arg7[%c93_322] : memref<125xf32, #tpu.memory_space<smem>>
    %1528 = vector.broadcast %1527 : f32 to vector<2x128xf32>
    %1529 = arith.mulf %1528, %1129 : vector<2x128xf32>
    %1530 = arith.addf %1526, %1529 : vector<2x128xf32>
    %c94_323 = arith.constant 94 : index
    %1531 = memref.load %arg7[%c94_323] : memref<125xf32, #tpu.memory_space<smem>>
    %1532 = vector.broadcast %1531 : f32 to vector<2x128xf32>
    %1533 = arith.mulf %1532, %1130 : vector<2x128xf32>
    %1534 = arith.addf %1530, %1533 : vector<2x128xf32>
    %c95_324 = arith.constant 95 : index
    %1535 = memref.load %arg7[%c95_324] : memref<125xf32, #tpu.memory_space<smem>>
    %1536 = vector.broadcast %1535 : f32 to vector<2x128xf32>
    %1537 = arith.mulf %1536, %1131 : vector<2x128xf32>
    %1538 = arith.addf %1534, %1537 : vector<2x128xf32>
    %c96_325 = arith.constant 96 : index
    %1539 = memref.load %arg7[%c96_325] : memref<125xf32, #tpu.memory_space<smem>>
    %1540 = vector.broadcast %1539 : f32 to vector<2x128xf32>
    %1541 = arith.mulf %1540, %1132 : vector<2x128xf32>
    %1542 = arith.addf %1538, %1541 : vector<2x128xf32>
    %c97_326 = arith.constant 97 : index
    %1543 = memref.load %arg7[%c97_326] : memref<125xf32, #tpu.memory_space<smem>>
    %1544 = vector.broadcast %1543 : f32 to vector<2x128xf32>
    %1545 = arith.mulf %1544, %1114 : vector<2x128xf32>
    %1546 = arith.addf %1542, %1545 : vector<2x128xf32>
    %c98_327 = arith.constant 98 : index
    %1547 = memref.load %arg7[%c98_327] : memref<125xf32, #tpu.memory_space<smem>>
    %1548 = vector.broadcast %1547 : f32 to vector<2x128xf32>
    %1549 = arith.mulf %1548, %1133 : vector<2x128xf32>
    %1550 = arith.addf %1546, %1549 : vector<2x128xf32>
    %c99_328 = arith.constant 99 : index
    %1551 = memref.load %arg7[%c99_328] : memref<125xf32, #tpu.memory_space<smem>>
    %1552 = vector.broadcast %1551 : f32 to vector<2x128xf32>
    %1553 = arith.mulf %1552, %1134 : vector<2x128xf32>
    %1554 = arith.addf %1550, %1553 : vector<2x128xf32>
    %cst_329 = arith.constant 0.000000e+00 : f32
    %1555 = vector.broadcast %cst_329 : f32 to vector<2x128xf32>
    %1556 = arith.maximumf %1554, %1555 : vector<2x128xf32>
    %cst_330 = arith.constant 0.000000e+00 : f32
    %1557 = vector.broadcast %cst_330 : f32 to vector<2x128xf32>
    %1558 = arith.select %9, %1556, %1557 : vector<2x128xi1>, vector<2x128xf32>
    %c4_331 = arith.constant 4 : index
    %1559 = memref.load %arg8[%c4_331] : memref<5xf32, #tpu.memory_space<smem>>
    %1560 = vector.broadcast %1559 : f32 to vector<2x128xf32>
    %c100_332 = arith.constant 100 : index
    %1561 = memref.load %arg7[%c100_332] : memref<125xf32, #tpu.memory_space<smem>>
    %1562 = vector.broadcast %1561 : f32 to vector<2x128xf32>
    %1563 = arith.mulf %1562, %1115 : vector<2x128xf32>
    %1564 = arith.addf %1560, %1563 : vector<2x128xf32>
    %c101_333 = arith.constant 101 : index
    %1565 = memref.load %arg7[%c101_333] : memref<125xf32, #tpu.memory_space<smem>>
    %1566 = vector.broadcast %1565 : f32 to vector<2x128xf32>
    %1567 = arith.mulf %1566, %1116 : vector<2x128xf32>
    %1568 = arith.addf %1564, %1567 : vector<2x128xf32>
    %c102_334 = arith.constant 102 : index
    %1569 = memref.load %arg7[%c102_334] : memref<125xf32, #tpu.memory_space<smem>>
    %1570 = vector.broadcast %1569 : f32 to vector<2x128xf32>
    %1571 = arith.mulf %1570, %690 : vector<2x128xf32>
    %1572 = arith.addf %1568, %1571 : vector<2x128xf32>
    %c103_335 = arith.constant 103 : index
    %1573 = memref.load %arg7[%c103_335] : memref<125xf32, #tpu.memory_space<smem>>
    %1574 = vector.broadcast %1573 : f32 to vector<2x128xf32>
    %1575 = arith.mulf %1574, %1117 : vector<2x128xf32>
    %1576 = arith.addf %1572, %1575 : vector<2x128xf32>
    %c104_336 = arith.constant 104 : index
    %1577 = memref.load %arg7[%c104_336] : memref<125xf32, #tpu.memory_space<smem>>
    %1578 = vector.broadcast %1577 : f32 to vector<2x128xf32>
    %1579 = arith.mulf %1578, %1118 : vector<2x128xf32>
    %1580 = arith.addf %1576, %1579 : vector<2x128xf32>
    %c105_337 = arith.constant 105 : index
    %1581 = memref.load %arg7[%c105_337] : memref<125xf32, #tpu.memory_space<smem>>
    %1582 = vector.broadcast %1581 : f32 to vector<2x128xf32>
    %1583 = arith.mulf %1582, %1119 : vector<2x128xf32>
    %1584 = arith.addf %1580, %1583 : vector<2x128xf32>
    %c106_338 = arith.constant 106 : index
    %1585 = memref.load %arg7[%c106_338] : memref<125xf32, #tpu.memory_space<smem>>
    %1586 = vector.broadcast %1585 : f32 to vector<2x128xf32>
    %1587 = arith.mulf %1586, %1120 : vector<2x128xf32>
    %1588 = arith.addf %1584, %1587 : vector<2x128xf32>
    %c107_339 = arith.constant 107 : index
    %1589 = memref.load %arg7[%c107_339] : memref<125xf32, #tpu.memory_space<smem>>
    %1590 = vector.broadcast %1589 : f32 to vector<2x128xf32>
    %1591 = arith.mulf %1590, %796 : vector<2x128xf32>
    %1592 = arith.addf %1588, %1591 : vector<2x128xf32>
    %c108_340 = arith.constant 108 : index
    %1593 = memref.load %arg7[%c108_340] : memref<125xf32, #tpu.memory_space<smem>>
    %1594 = vector.broadcast %1593 : f32 to vector<2x128xf32>
    %1595 = arith.mulf %1594, %1121 : vector<2x128xf32>
    %1596 = arith.addf %1592, %1595 : vector<2x128xf32>
    %c109_341 = arith.constant 109 : index
    %1597 = memref.load %arg7[%c109_341] : memref<125xf32, #tpu.memory_space<smem>>
    %1598 = vector.broadcast %1597 : f32 to vector<2x128xf32>
    %1599 = arith.mulf %1598, %1122 : vector<2x128xf32>
    %1600 = arith.addf %1596, %1599 : vector<2x128xf32>
    %c110_342 = arith.constant 110 : index
    %1601 = memref.load %arg7[%c110_342] : memref<125xf32, #tpu.memory_space<smem>>
    %1602 = vector.broadcast %1601 : f32 to vector<2x128xf32>
    %1603 = arith.mulf %1602, %1123 : vector<2x128xf32>
    %1604 = arith.addf %1600, %1603 : vector<2x128xf32>
    %c111_343 = arith.constant 111 : index
    %1605 = memref.load %arg7[%c111_343] : memref<125xf32, #tpu.memory_space<smem>>
    %1606 = vector.broadcast %1605 : f32 to vector<2x128xf32>
    %1607 = arith.mulf %1606, %1124 : vector<2x128xf32>
    %1608 = arith.addf %1604, %1607 : vector<2x128xf32>
    %c112_344 = arith.constant 112 : index
    %1609 = memref.load %arg7[%c112_344] : memref<125xf32, #tpu.memory_space<smem>>
    %1610 = vector.broadcast %1609 : f32 to vector<2x128xf32>
    %1611 = arith.mulf %1610, %902 : vector<2x128xf32>
    %1612 = arith.addf %1608, %1611 : vector<2x128xf32>
    %c113_345 = arith.constant 113 : index
    %1613 = memref.load %arg7[%c113_345] : memref<125xf32, #tpu.memory_space<smem>>
    %1614 = vector.broadcast %1613 : f32 to vector<2x128xf32>
    %1615 = arith.mulf %1614, %1125 : vector<2x128xf32>
    %1616 = arith.addf %1612, %1615 : vector<2x128xf32>
    %c114_346 = arith.constant 114 : index
    %1617 = memref.load %arg7[%c114_346] : memref<125xf32, #tpu.memory_space<smem>>
    %1618 = vector.broadcast %1617 : f32 to vector<2x128xf32>
    %1619 = arith.mulf %1618, %1126 : vector<2x128xf32>
    %1620 = arith.addf %1616, %1619 : vector<2x128xf32>
    %c115_347 = arith.constant 115 : index
    %1621 = memref.load %arg7[%c115_347] : memref<125xf32, #tpu.memory_space<smem>>
    %1622 = vector.broadcast %1621 : f32 to vector<2x128xf32>
    %1623 = arith.mulf %1622, %1127 : vector<2x128xf32>
    %1624 = arith.addf %1620, %1623 : vector<2x128xf32>
    %c116_348 = arith.constant 116 : index
    %1625 = memref.load %arg7[%c116_348] : memref<125xf32, #tpu.memory_space<smem>>
    %1626 = vector.broadcast %1625 : f32 to vector<2x128xf32>
    %1627 = arith.mulf %1626, %1128 : vector<2x128xf32>
    %1628 = arith.addf %1624, %1627 : vector<2x128xf32>
    %c117_349 = arith.constant 117 : index
    %1629 = memref.load %arg7[%c117_349] : memref<125xf32, #tpu.memory_space<smem>>
    %1630 = vector.broadcast %1629 : f32 to vector<2x128xf32>
    %1631 = arith.mulf %1630, %1008 : vector<2x128xf32>
    %1632 = arith.addf %1628, %1631 : vector<2x128xf32>
    %c118_350 = arith.constant 118 : index
    %1633 = memref.load %arg7[%c118_350] : memref<125xf32, #tpu.memory_space<smem>>
    %1634 = vector.broadcast %1633 : f32 to vector<2x128xf32>
    %1635 = arith.mulf %1634, %1129 : vector<2x128xf32>
    %1636 = arith.addf %1632, %1635 : vector<2x128xf32>
    %c119_351 = arith.constant 119 : index
    %1637 = memref.load %arg7[%c119_351] : memref<125xf32, #tpu.memory_space<smem>>
    %1638 = vector.broadcast %1637 : f32 to vector<2x128xf32>
    %1639 = arith.mulf %1638, %1130 : vector<2x128xf32>
    %1640 = arith.addf %1636, %1639 : vector<2x128xf32>
    %c120_352 = arith.constant 120 : index
    %1641 = memref.load %arg7[%c120_352] : memref<125xf32, #tpu.memory_space<smem>>
    %1642 = vector.broadcast %1641 : f32 to vector<2x128xf32>
    %1643 = arith.mulf %1642, %1131 : vector<2x128xf32>
    %1644 = arith.addf %1640, %1643 : vector<2x128xf32>
    %c121_353 = arith.constant 121 : index
    %1645 = memref.load %arg7[%c121_353] : memref<125xf32, #tpu.memory_space<smem>>
    %1646 = vector.broadcast %1645 : f32 to vector<2x128xf32>
    %1647 = arith.mulf %1646, %1132 : vector<2x128xf32>
    %1648 = arith.addf %1644, %1647 : vector<2x128xf32>
    %c122_354 = arith.constant 122 : index
    %1649 = memref.load %arg7[%c122_354] : memref<125xf32, #tpu.memory_space<smem>>
    %1650 = vector.broadcast %1649 : f32 to vector<2x128xf32>
    %1651 = arith.mulf %1650, %1114 : vector<2x128xf32>
    %1652 = arith.addf %1648, %1651 : vector<2x128xf32>
    %c123_355 = arith.constant 123 : index
    %1653 = memref.load %arg7[%c123_355] : memref<125xf32, #tpu.memory_space<smem>>
    %1654 = vector.broadcast %1653 : f32 to vector<2x128xf32>
    %1655 = arith.mulf %1654, %1133 : vector<2x128xf32>
    %1656 = arith.addf %1652, %1655 : vector<2x128xf32>
    %c124_356 = arith.constant 124 : index
    %1657 = memref.load %arg7[%c124_356] : memref<125xf32, #tpu.memory_space<smem>>
    %1658 = vector.broadcast %1657 : f32 to vector<2x128xf32>
    %1659 = arith.mulf %1658, %1134 : vector<2x128xf32>
    %1660 = arith.addf %1656, %1659 : vector<2x128xf32>
    %cst_357 = arith.constant 0.000000e+00 : f32
    %1661 = vector.broadcast %cst_357 : f32 to vector<2x128xf32>
    %1662 = arith.maximumf %1660, %1661 : vector<2x128xf32>
    %cst_358 = arith.constant 0.000000e+00 : f32
    %1663 = vector.broadcast %cst_358 : f32 to vector<2x128xf32>
    %1664 = arith.select %9, %1662, %1663 : vector<2x128xi1>, vector<2x128xf32>
    %c2_i32_359 = arith.constant 2 : i32
    %1665 = tpu.dynamic_rotate %1240 by %c2_i32_359 dim 1 : vector<2x128xf32>, i32 -> vector<2x128xf32>
    %c1_i32_360 = arith.constant 1 : i32
    %1666 = tpu.dynamic_rotate %1240 by %c1_i32_360 dim 1 : vector<2x128xf32>, i32 -> vector<2x128xf32>
    %c127_i32_361 = arith.constant 127 : i32
    %1667 = tpu.dynamic_rotate %1240 by %c127_i32_361 dim 1 : vector<2x128xf32>, i32 -> vector<2x128xf32>
    %c126_i32_362 = arith.constant 126 : i32
    %1668 = tpu.dynamic_rotate %1240 by %c126_i32_362 dim 1 : vector<2x128xf32>, i32 -> vector<2x128xf32>
    %c2_i32_363 = arith.constant 2 : i32
    %1669 = tpu.dynamic_rotate %1346 by %c2_i32_363 dim 1 : vector<2x128xf32>, i32 -> vector<2x128xf32>
    %c1_i32_364 = arith.constant 1 : i32
    %1670 = tpu.dynamic_rotate %1346 by %c1_i32_364 dim 1 : vector<2x128xf32>, i32 -> vector<2x128xf32>
    %c127_i32_365 = arith.constant 127 : i32
    %1671 = tpu.dynamic_rotate %1346 by %c127_i32_365 dim 1 : vector<2x128xf32>, i32 -> vector<2x128xf32>
    %c126_i32_366 = arith.constant 126 : i32
    %1672 = tpu.dynamic_rotate %1346 by %c126_i32_366 dim 1 : vector<2x128xf32>, i32 -> vector<2x128xf32>
    %c2_i32_367 = arith.constant 2 : i32
    %1673 = tpu.dynamic_rotate %1452 by %c2_i32_367 dim 1 : vector<2x128xf32>, i32 -> vector<2x128xf32>
    %c1_i32_368 = arith.constant 1 : i32
    %1674 = tpu.dynamic_rotate %1452 by %c1_i32_368 dim 1 : vector<2x128xf32>, i32 -> vector<2x128xf32>
    %c127_i32_369 = arith.constant 127 : i32
    %1675 = tpu.dynamic_rotate %1452 by %c127_i32_369 dim 1 : vector<2x128xf32>, i32 -> vector<2x128xf32>
    %c126_i32_370 = arith.constant 126 : i32
    %1676 = tpu.dynamic_rotate %1452 by %c126_i32_370 dim 1 : vector<2x128xf32>, i32 -> vector<2x128xf32>
    %c2_i32_371 = arith.constant 2 : i32
    %1677 = tpu.dynamic_rotate %1558 by %c2_i32_371 dim 1 : vector<2x128xf32>, i32 -> vector<2x128xf32>
    %c1_i32_372 = arith.constant 1 : i32
    %1678 = tpu.dynamic_rotate %1558 by %c1_i32_372 dim 1 : vector<2x128xf32>, i32 -> vector<2x128xf32>
    %c127_i32_373 = arith.constant 127 : i32
    %1679 = tpu.dynamic_rotate %1558 by %c127_i32_373 dim 1 : vector<2x128xf32>, i32 -> vector<2x128xf32>
    %c126_i32_374 = arith.constant 126 : i32
    %1680 = tpu.dynamic_rotate %1558 by %c126_i32_374 dim 1 : vector<2x128xf32>, i32 -> vector<2x128xf32>
    %c2_i32_375 = arith.constant 2 : i32
    %1681 = tpu.dynamic_rotate %1664 by %c2_i32_375 dim 1 : vector<2x128xf32>, i32 -> vector<2x128xf32>
    %c1_i32_376 = arith.constant 1 : i32
    %1682 = tpu.dynamic_rotate %1664 by %c1_i32_376 dim 1 : vector<2x128xf32>, i32 -> vector<2x128xf32>
    %c127_i32_377 = arith.constant 127 : i32
    %1683 = tpu.dynamic_rotate %1664 by %c127_i32_377 dim 1 : vector<2x128xf32>, i32 -> vector<2x128xf32>
    %c126_i32_378 = arith.constant 126 : i32
    %1684 = tpu.dynamic_rotate %1664 by %c126_i32_378 dim 1 : vector<2x128xf32>, i32 -> vector<2x128xf32>
    %c0_379 = arith.constant 0 : index
    %1685 = memref.load %arg10[%c0_379] : memref<1xf32, #tpu.memory_space<smem>>
    %1686 = vector.broadcast %1685 : f32 to vector<2x128xf32>
    %c0_380 = arith.constant 0 : index
    %1687 = memref.load %arg9[%c0_380] : memref<25xf32, #tpu.memory_space<smem>>
    %1688 = vector.broadcast %1687 : f32 to vector<2x128xf32>
    %1689 = arith.mulf %1688, %1665 : vector<2x128xf32>
    %1690 = arith.addf %1686, %1689 : vector<2x128xf32>
    %c1_381 = arith.constant 1 : index
    %1691 = memref.load %arg9[%c1_381] : memref<25xf32, #tpu.memory_space<smem>>
    %1692 = vector.broadcast %1691 : f32 to vector<2x128xf32>
    %1693 = arith.mulf %1692, %1666 : vector<2x128xf32>
    %1694 = arith.addf %1690, %1693 : vector<2x128xf32>
    %c2_382 = arith.constant 2 : index
    %1695 = memref.load %arg9[%c2_382] : memref<25xf32, #tpu.memory_space<smem>>
    %1696 = vector.broadcast %1695 : f32 to vector<2x128xf32>
    %1697 = arith.mulf %1696, %1240 : vector<2x128xf32>
    %1698 = arith.addf %1694, %1697 : vector<2x128xf32>
    %c3_383 = arith.constant 3 : index
    %1699 = memref.load %arg9[%c3_383] : memref<25xf32, #tpu.memory_space<smem>>
    %1700 = vector.broadcast %1699 : f32 to vector<2x128xf32>
    %1701 = arith.mulf %1700, %1667 : vector<2x128xf32>
    %1702 = arith.addf %1698, %1701 : vector<2x128xf32>
    %c4_384 = arith.constant 4 : index
    %1703 = memref.load %arg9[%c4_384] : memref<25xf32, #tpu.memory_space<smem>>
    %1704 = vector.broadcast %1703 : f32 to vector<2x128xf32>
    %1705 = arith.mulf %1704, %1668 : vector<2x128xf32>
    %1706 = arith.addf %1702, %1705 : vector<2x128xf32>
    %c5_385 = arith.constant 5 : index
    %1707 = memref.load %arg9[%c5_385] : memref<25xf32, #tpu.memory_space<smem>>
    %1708 = vector.broadcast %1707 : f32 to vector<2x128xf32>
    %1709 = arith.mulf %1708, %1669 : vector<2x128xf32>
    %1710 = arith.addf %1706, %1709 : vector<2x128xf32>
    %c6_386 = arith.constant 6 : index
    %1711 = memref.load %arg9[%c6_386] : memref<25xf32, #tpu.memory_space<smem>>
    %1712 = vector.broadcast %1711 : f32 to vector<2x128xf32>
    %1713 = arith.mulf %1712, %1670 : vector<2x128xf32>
    %1714 = arith.addf %1710, %1713 : vector<2x128xf32>
    %c7_387 = arith.constant 7 : index
    %1715 = memref.load %arg9[%c7_387] : memref<25xf32, #tpu.memory_space<smem>>
    %1716 = vector.broadcast %1715 : f32 to vector<2x128xf32>
    %1717 = arith.mulf %1716, %1346 : vector<2x128xf32>
    %1718 = arith.addf %1714, %1717 : vector<2x128xf32>
    %c8_388 = arith.constant 8 : index
    %1719 = memref.load %arg9[%c8_388] : memref<25xf32, #tpu.memory_space<smem>>
    %1720 = vector.broadcast %1719 : f32 to vector<2x128xf32>
    %1721 = arith.mulf %1720, %1671 : vector<2x128xf32>
    %1722 = arith.addf %1718, %1721 : vector<2x128xf32>
    %c9_389 = arith.constant 9 : index
    %1723 = memref.load %arg9[%c9_389] : memref<25xf32, #tpu.memory_space<smem>>
    %1724 = vector.broadcast %1723 : f32 to vector<2x128xf32>
    %1725 = arith.mulf %1724, %1672 : vector<2x128xf32>
    %1726 = arith.addf %1722, %1725 : vector<2x128xf32>
    %c10_390 = arith.constant 10 : index
    %1727 = memref.load %arg9[%c10_390] : memref<25xf32, #tpu.memory_space<smem>>
    %1728 = vector.broadcast %1727 : f32 to vector<2x128xf32>
    %1729 = arith.mulf %1728, %1673 : vector<2x128xf32>
    %1730 = arith.addf %1726, %1729 : vector<2x128xf32>
    %c11_391 = arith.constant 11 : index
    %1731 = memref.load %arg9[%c11_391] : memref<25xf32, #tpu.memory_space<smem>>
    %1732 = vector.broadcast %1731 : f32 to vector<2x128xf32>
    %1733 = arith.mulf %1732, %1674 : vector<2x128xf32>
    %1734 = arith.addf %1730, %1733 : vector<2x128xf32>
    %c12_392 = arith.constant 12 : index
    %1735 = memref.load %arg9[%c12_392] : memref<25xf32, #tpu.memory_space<smem>>
    %1736 = vector.broadcast %1735 : f32 to vector<2x128xf32>
    %1737 = arith.mulf %1736, %1452 : vector<2x128xf32>
    %1738 = arith.addf %1734, %1737 : vector<2x128xf32>
    %c13_393 = arith.constant 13 : index
    %1739 = memref.load %arg9[%c13_393] : memref<25xf32, #tpu.memory_space<smem>>
    %1740 = vector.broadcast %1739 : f32 to vector<2x128xf32>
    %1741 = arith.mulf %1740, %1675 : vector<2x128xf32>
    %1742 = arith.addf %1738, %1741 : vector<2x128xf32>
    %c14_394 = arith.constant 14 : index
    %1743 = memref.load %arg9[%c14_394] : memref<25xf32, #tpu.memory_space<smem>>
    %1744 = vector.broadcast %1743 : f32 to vector<2x128xf32>
    %1745 = arith.mulf %1744, %1676 : vector<2x128xf32>
    %1746 = arith.addf %1742, %1745 : vector<2x128xf32>
    %c15_395 = arith.constant 15 : index
    %1747 = memref.load %arg9[%c15_395] : memref<25xf32, #tpu.memory_space<smem>>
    %1748 = vector.broadcast %1747 : f32 to vector<2x128xf32>
    %1749 = arith.mulf %1748, %1677 : vector<2x128xf32>
    %1750 = arith.addf %1746, %1749 : vector<2x128xf32>
    %c16_396 = arith.constant 16 : index
    %1751 = memref.load %arg9[%c16_396] : memref<25xf32, #tpu.memory_space<smem>>
    %1752 = vector.broadcast %1751 : f32 to vector<2x128xf32>
    %1753 = arith.mulf %1752, %1678 : vector<2x128xf32>
    %1754 = arith.addf %1750, %1753 : vector<2x128xf32>
    %c17_397 = arith.constant 17 : index
    %1755 = memref.load %arg9[%c17_397] : memref<25xf32, #tpu.memory_space<smem>>
    %1756 = vector.broadcast %1755 : f32 to vector<2x128xf32>
    %1757 = arith.mulf %1756, %1558 : vector<2x128xf32>
    %1758 = arith.addf %1754, %1757 : vector<2x128xf32>
    %c18_398 = arith.constant 18 : index
    %1759 = memref.load %arg9[%c18_398] : memref<25xf32, #tpu.memory_space<smem>>
    %1760 = vector.broadcast %1759 : f32 to vector<2x128xf32>
    %1761 = arith.mulf %1760, %1679 : vector<2x128xf32>
    %1762 = arith.addf %1758, %1761 : vector<2x128xf32>
    %c19_399 = arith.constant 19 : index
    %1763 = memref.load %arg9[%c19_399] : memref<25xf32, #tpu.memory_space<smem>>
    %1764 = vector.broadcast %1763 : f32 to vector<2x128xf32>
    %1765 = arith.mulf %1764, %1680 : vector<2x128xf32>
    %1766 = arith.addf %1762, %1765 : vector<2x128xf32>
    %c20_400 = arith.constant 20 : index
    %1767 = memref.load %arg9[%c20_400] : memref<25xf32, #tpu.memory_space<smem>>
    %1768 = vector.broadcast %1767 : f32 to vector<2x128xf32>
    %1769 = arith.mulf %1768, %1681 : vector<2x128xf32>
    %1770 = arith.addf %1766, %1769 : vector<2x128xf32>
    %c21_401 = arith.constant 21 : index
    %1771 = memref.load %arg9[%c21_401] : memref<25xf32, #tpu.memory_space<smem>>
    %1772 = vector.broadcast %1771 : f32 to vector<2x128xf32>
    %1773 = arith.mulf %1772, %1682 : vector<2x128xf32>
    %1774 = arith.addf %1770, %1773 : vector<2x128xf32>
    %c22_402 = arith.constant 22 : index
    %1775 = memref.load %arg9[%c22_402] : memref<25xf32, #tpu.memory_space<smem>>
    %1776 = vector.broadcast %1775 : f32 to vector<2x128xf32>
    %1777 = arith.mulf %1776, %1664 : vector<2x128xf32>
    %1778 = arith.addf %1774, %1777 : vector<2x128xf32>
    %c23_403 = arith.constant 23 : index
    %1779 = memref.load %arg9[%c23_403] : memref<25xf32, #tpu.memory_space<smem>>
    %1780 = vector.broadcast %1779 : f32 to vector<2x128xf32>
    %1781 = arith.mulf %1780, %1683 : vector<2x128xf32>
    %1782 = arith.addf %1778, %1781 : vector<2x128xf32>
    %c24_404 = arith.constant 24 : index
    %1783 = memref.load %arg9[%c24_404] : memref<25xf32, #tpu.memory_space<smem>>
    %1784 = vector.broadcast %1783 : f32 to vector<2x128xf32>
    %1785 = arith.mulf %1784, %1684 : vector<2x128xf32>
    %1786 = arith.addf %1782, %1785 : vector<2x128xf32>
    %cst_405 = arith.constant 0.000000e+00 : f32
    %1787 = vector.broadcast %cst_405 : f32 to vector<2x128xf32>
    %1788 = arith.maximumf %1786, %1787 : vector<2x128xf32>
    %c0_406 = arith.constant 0 : index
    %c0_407 = arith.constant 0 : index
    %1789 = vector.load %arg11[%c0_406, %c0_407] : memref<1x128xf32, #tpu.memory_space<vmem>>, vector<1x128xf32>
    %1790 = vector.broadcast %1789 : vector<1x128xf32> to vector<2x128xf32>
    %1791 = arith.mulf %1788, %1790 : vector<2x128xf32>
    %cst_408 = arith.constant dense<0.000000e+00> : vector<2xf32>
    %1792 = vector.multi_reduction <add>, %1791, %cst_408 [1] : vector<2x128xf32> to vector<2xf32>
    %1793 = vector.shape_cast %1792 : vector<2xf32> to vector<2x1xf32>
    %c0_409 = arith.constant 0 : index
    %1794 = memref.load %arg12[%c0_409] : memref<1xf32, #tpu.memory_space<smem>>
    %1795 = vector.broadcast %1794 : f32 to vector<2x1xf32>
    %1796 = arith.addf %1793, %1795 : vector<2x1xf32>
    %cst_410 = arith.constant 0.000000e+00 : f32
    %1797 = vector.broadcast %cst_410 : f32 to vector<2x1xf32>
    %1798 = arith.subf %1797, %1796 : vector<2x1xf32>
    %1799 = math.exp %1798 : vector<2x1xf32>
    %cst_411 = arith.constant 1.000000e+00 : f32
    %1800 = vector.broadcast %cst_411 : f32 to vector<2x1xf32>
    %1801 = arith.addf %1800, %1799 : vector<2x1xf32>
    %1802 = tpu.reciprocal %1801 {approx = true} : vector<2x1xf32> -> vector<2x1xf32>
    %1803 = vector.shape_cast %1802 : vector<2x1xf32> to vector<2x1xf32>
    %1804 = vector.broadcast %1803 : vector<2x1xf32> to vector<2x128xf32>
    %c0_412 = arith.constant 0 : index
    %c0_413 = arith.constant 0 : index
    %1805 = vector.load %arg13[%c0_412, %c0_413] : memref<2x128xf32, #tpu.memory_space<vmem>>, vector<2x128xf32>
    tpu.vector_store %arg13[%c0_412, %c0_413], %1804 {strides = array<i32>} : memref<2x128xf32, #tpu.memory_space<vmem>>, vector<2x128xf32>,
    return
  }
}

</mosaic_0001>

<bundles_post_ra>
// kernel: collision_classifier.1
= control target key start
LH: loop header
LB: loop body
LE: loop exit
PB: predicated region body
PF: predicated region fallthrough
CT: control target
= control target key end

     0   :  { %s9267_s0 = inlined_call_operand.vmem [shape: bf16[2,1024], index: 0, kind: input, shape index: {}]   ;;  %s9268_s1 = inlined_call_operand.hbm [shape: bf16[1024,640], index: 1, kind: input, shape index: {}]   ;;  %s9269_s2 = inlined_call_operand.hbm [shape: f32[1,640], index: 2, kind: input, shape index: {}]   ;;  %s9270_s3 = inlined_call_operand.hbm [shape: f32[125], index: 3, kind: input, shape index: {}]   ;;  %s9271_s4 = inlined_call_operand.hbm [shape: f32[5], index: 4, kind: input, shape index: {}]   ;;  %s9272_s5 = inlined_call_operand.hbm [shape: f32[125], index: 5, kind: input, shape index: {}]   ;;  %s9273_s6 = inlined_call_operand.hbm [shape: f32[5], index: 6, kind: input, shape index: {}]   ;;  %s9274_s7 = inlined_call_operand.hbm [shape: f32[125], index: 7, kind: input, shape index: {}]   ;;  %s9275_s8 = inlined_call_operand.hbm [shape: f32[5], index: 8, kind: input, shape index: {}]   ;;  %s9276_s9 = inlined_call_operand.hbm [shape: f32[25], index: 9, kind: input, shape index: {}]   ;;  %s9277_s10 = inlined_call_operand.<no memory space> [shape: f32[1], index: 10, kind: input, shape index: {}]   ;;  %s9278_s11 = inlined_call_operand.hbm [shape: f32[1,128], index: 11, kind: input, shape index: {}]   ;;  %s9279_s12 = inlined_call_operand.<no memory space> [shape: f32[1], index: 12, kind: input, shape index: {}]   ;;  %s9280_s13 = inlined_call_operand.vmem [shape: f32[2,128], index: 13, kind: output, shape index: {0}]   ;;  %s9281_s14 = inlined_call_operand.vmem [shape: f32[2,640], index: 14, kind: output, shape index: {1}]  }
   0x1   :  { %9415 = sst [smem:[#allocation87_spill]] %s9277_s10 }
   0x2   :  { %9416 = sst [smem:[#allocation88_spill]] %s9279_s12 }
   0x3   :  { %9417 = sst [smem:[#allocation89_spill]] %s9280_s13 }
   0x4   :  { %9418 = sst [smem:[#allocation90_spill]] %s9281_s14 }
   0x5   :  { %22 = vsyncpa [#allocation5], 0 }
   0x6   :  { %23 = vsyncpa [#allocation8], 0 }
   0x7   :  { %24 = vsyncpa [#allocation6], 0 }
   0x8   :  { %25 = vsyncpa [#allocation11], 0 }
   0x9   :  { %26 = vsyncpa [#allocation14], 0  ;;  %s48_s15 = sshll.u32 %s9269_s2, 4  ;;  %s49_s15 = int_to_ptr.hbm [resolvable:$true] %s48_s15 }
   0xa   :  { %27 = vsyncpa [#allocation17], 0  ;;  %s6861_s16 = smov [#allocation7]   ;;  %s68_s20 = sshll.u32 %s9271_s4, 4  ;;  %s69_s20 = int_to_ptr.hbm [resolvable:$true] %s68_s20 }
   0xb   :  { %s50_s17 = sshll.u32 %s6861_s16, 4  ;;  %s6862_s21 = smov [#allocation10]   ;;  %s51_s17 = int_to_ptr.vmem [resolvable:$true] %s50_s17 }
   0xc   :  { %53 = dma.hbm_to_vmem [thread:$0]  %s49_s15, 80, %s51_s17, [#allocation8]  }
   0xd   :  { %71 = dma.hbm_to_smem %s69_s20, 16, %s6862_s21, [#allocation11]  }
   0xe   :  { %s86_s24 = sshll.u32 %s9273_s6, 4  ;;  %s104_s26 = sshll.u32 %s9275_s8, 4  ;;  %s87_s24 = int_to_ptr.hbm [resolvable:$true] %s86_s24  ;;  %s105_s26 = int_to_ptr.hbm [resolvable:$true] %s104_s26 }
   0xf   :  { %s6863_s27 = smov [#allocation13]   ;;  %s6864_s28 = smov [#allocation16]  }
  0x10   :  { %89 = dma.hbm_to_smem %s87_s24, 16, %s6863_s27, [#allocation14]  }
  0x11   :  { %107 = dma.hbm_to_smem %s105_s26, 16, %s6864_s28, [#allocation17]  }
  0x12   :  { %s34_s30 = sshll.u32 %s9268_s1, 4  ;;  %s6865_s15 = smov [#allocation4]   ;;  %s35_s30 = int_to_ptr.hbm [resolvable:$true] %s34_s30 }
  0x13   :  { %s36_s16 = sshll.u32 %s6865_s15, 4  ;;  %s59_s18 = sshll.u32 %s9270_s3, 4  ;;  %s37_s16 = int_to_ptr.vmem [resolvable:$true] %s36_s16  ;;  %s60_s18 = int_to_ptr.hbm [resolvable:$true] %s59_s18 }
  0x14   :  { %s6866_s19 = smov 320   ;;  %s6867_s20 = smov 20  }
  0x15   :  { %42 = dma.hbm_to_vmem [thread:$0]  %s35_s30, 40960, %s37_s16, [#allocation5], %s6866_s19, %s6866_s19, %s6867_s20  }
  0x16   :  { %s6868_s8 = smov [#allocation9]   ;;  %s77_s23 = sshll.u32 %s9272_s5, 4  ;;  %s78_s23 = int_to_ptr.hbm [resolvable:$true] %s77_s23 }
  0x17   :  { %62 = dma.hbm_to_smem %s60_s18, 16, %s6868_s8, [#allocation6]  }
  0x18   :  { %s95_s25 = sshll.u32 %s9274_s7, 4  ;;  %s6869_s2 = smov [#allocation12]   ;;  %s96_s25 = int_to_ptr.hbm [resolvable:$true] %s95_s25 }
  0x19   :  { %80 = dma.hbm_to_smem %s78_s23, 16, %s6869_s2, [#allocation11]  }
  0x1a   :  { %s6870_s26 = smov [#allocation15]   ;;  %s113_s28 = sshll.u32 %s9276_s9, 4  ;;  %s114_s28 = int_to_ptr.hbm [resolvable:$true] %s113_s28 }
  0x1b   :  { %98 = dma.hbm_to_smem %s96_s25, 16, %s6870_s26, [#allocation14]  }
  0x1c   :  { %s124_s30 = sshll.u32 %s9278_s11, 4  ;;  %s6871_s5 = smov [#allocation18]   ;;  %s125_s30 = int_to_ptr.hbm [resolvable:$true] %s124_s30 }
  0x1d   :  { %116 = dma.hbm_to_smem %s114_s28, 16, %s6871_s5, [#allocation17]  }
  0x1e   :  { %s6872_s15 = smov [#allocation19]  }
  0x1f   :  { %s126_s16 = sshll.u32 %s6872_s15, 4  ;;  %s127_s16 = int_to_ptr.vmem [resolvable:$true] %s126_s16 }
  0x20   :  { %129 = dma.hbm_to_vmem [thread:$0]  %s125_s30, 16, %s127_s16, [#allocation8]  }
  0x21   :  { %6847 = dma.done.wait [#allocation5], 40960  }
  0x22   :  { %6848 = vsyncadd [#allocation5], 4294926336 }
  0x23   :  { %6849 = dma.done.wait [#allocation8], 80  }
  0x24   :  { %6850 = vsyncadd [#allocation8], 4294967216 }
  0x25   :  { %6851 = dma.done.wait [#allocation6], 16  }
  0x26   :  { %6852 = vsyncadd [#allocation6], 4294967280 }
  0x27   :  { %6853 = dma.done.wait [#allocation11], 32  }
  0x28   :  { %6854 = vsyncadd [#allocation11], 4294967264 }
  0x29   :  { %6855 = dma.done.wait [#allocation14], 32  }
  0x2a   :  { %6856 = vsyncadd [#allocation14], 4294967264 }
  0x2b   :  { %6857 = dma.done.wait [#allocation17], 32  }
  0x2c   :  { %6858 = vsyncadd [#allocation17], 4294967264 }
  0x2d   :  { %6859 = dma.done.wait [#allocation8], 16  }
  0x2e   :  { %6860 = vsyncadd [#allocation8], 4294967280 }
  0x2f   :  { %172 = sfence }
  0x30   :  { %v4787_v0 = vld [vmem:[#allocation4 + $0x118] sm:$0xf]  ;;  %v6370_v1 = vld [vmem:[#allocation4 + $0x128] sm:$0xf0]  ;;  %v4767_v11 = vld [vmem:[#allocation4 + $0xf0] sm:$0xf] }
  0x31   :  { %v4947_v2 = vld [vmem:[#allocation4 + $0x258] sm:$0xf]  ;;  %v4788_v3 = vor.u32 %v6370_v1, %v4787_v0  ;;  %v6410_v4 = vld [vmem:[#allocation4 + $0x268] sm:$0xf0]  ;;  %v6365_v13 = vld [vmem:[#allocation4 + $0x100] sm:$0xf0] }
  0x32   :  { %v5107_v5 = vld [vmem:[#allocation4 + $0x398] sm:$0xf]  ;;  %v6450_v6 = vld [vmem:[#allocation4 + $0x3a8] sm:$0xf0]  ;;  %v4948_v7 = vor.u32 %v6410_v4, %v4947_v2  ;;  %v4927_v14 = vld [vmem:[#allocation4 + $0x230] sm:$0xf]  ;;  %v4768_v16 = vor.u32 %v6365_v13, %v4767_v11 }
  0x33   :  { %v5108_v8 = vor.u32 %v6450_v6, %v5107_v5  ;;  %v5267_v9 = vld [vmem:[#allocation4 + $0x4d8] sm:$0xf]  ;;  %v6490_v10 = vld [vmem:[#allocation4 + $0x4e8] sm:$0xf0]  ;;  %2252 = vmatpush.bf16.msra.mxu0 %v4788_v3  ;;  %v6405_v15 = vld [vmem:[#allocation4 + $0x240] sm:$0xf0] }
  0x34   :  { %v5268_v12 = vor.u32 %v6490_v10, %v5267_v9  ;;  %2265 = vmatpush.bf16.msra.mxu1 %v4948_v7  ;;  %v4928_v17 = vor.u32 %v6405_v15, %v4927_v14  ;;  %v5087_v18 = vld [vmem:[#allocation4 + $0x370] sm:$0xf]  ;;  %v6445_v19 = vld [vmem:[#allocation4 + $0x380] sm:$0xf0]  ;;  %v4747_v23 = vld [vmem:[#allocation4 + $0xc8] sm:$0xf] }
  0x35   :  { %2278 = vmatpush.bf16.msra.mxu2 %v5108_v8  ;;  %v5247_v20 = vld [vmem:[#allocation4 + $0x4b0] sm:$0xf]  ;;  %v5088_v21 = vor.u32 %v6445_v19, %v5087_v18  ;;  %v6485_v22 = vld [vmem:[#allocation4 + $0x4c0] sm:$0xf0]  ;;  %v6360_v24 = vld [vmem:[#allocation4 + $0xd8] sm:$0xf0] }
  0x36   :  { %2291 = vmatpush.bf16.msra.mxu3 %v5268_v12  ;;  %v5248_v25 = vor.u32 %v6485_v22, %v5247_v20  ;;  %v4907_v26 = vld [vmem:[#allocation4 + $0x208] sm:$0xf]  ;;  %v6400_v27 = vld [vmem:[#allocation4 + $0x218] sm:$0xf0]  ;;  %v4748_v29 = vor.u32 %v6360_v24, %v4747_v23  ;;  %v4727_v35 = vld [vmem:[#allocation4 + $0xa0] sm:$0xf] }
  0x37   :  { %v5067_v28 = vld [vmem:[#allocation4 + $0x348] sm:$0xf]  ;;  %2253 = vmatpush.bf16.msra.mxu0 %v4768_v16  ;;  %v6440_v30 = vld [vmem:[#allocation4 + $0x358] sm:$0xf0]  ;;  %v4908_v33 = vor.u32 %v6400_v27, %v4907_v26  ;;  %v6355_v36 = vld [vmem:[#allocation4 + $0xb0] sm:$0xf0] }
  0x38   :  { %v5227_v31 = vld [vmem:[#allocation4 + $0x488] sm:$0xf]  ;;  %v6480_v32 = vld [vmem:[#allocation4 + $0x498] sm:$0xf0]  ;;  %2266 = vmatpush.bf16.msra.mxu1 %v4928_v17  ;;  %v5068_v34 = vor.u32 %v6440_v30, %v5067_v28  ;;  %v4887_v37 = vld [vmem:[#allocation4 + $0x1e0] sm:$0xf]  ;;  %v4728_v44 = vor.u32 %v6355_v36, %v4727_v35 }
  0x39   :  { %2279 = vmatpush.bf16.msra.mxu2 %v5088_v21  ;;  %v5228_v38 = vor.u32 %v6480_v32, %v5227_v31  ;;  %v6395_v39 = vld [vmem:[#allocation4 + $0x1f0] sm:$0xf0]  ;;  %v5047_v40 = vld [vmem:[#allocation4 + $0x320] sm:$0xf]  ;;  %v4707_v47 = vld [vmem:[#allocation4 + $0x78] sm:$0xf] }
  0x3a   :  { %2292 = vmatpush.bf16.msra.mxu3 %v5248_v25  ;;  %v6435_v41 = vld [vmem:[#allocation4 + $0x330] sm:$0xf0]  ;;  %v5207_v42 = vld [vmem:[#allocation4 + $0x460] sm:$0xf]  ;;  %v4888_v45 = vor.u32 %v6395_v39, %v4887_v37  ;;  %v6350_v48 = vld [vmem:[#allocation4 + $0x88] sm:$0xf0] }
  0x3b   :  { %v6475_v43 = vld [vmem:[#allocation4 + $0x470] sm:$0xf0]  ;;  %2254 = vmatpush.bf16.msra.mxu0 %v4748_v29  ;;  %v5048_v46 = vor.u32 %v6435_v41, %v5047_v40  ;;  %v4867_v49 = vld [vmem:[#allocation4 + $0x1b8] sm:$0xf]  ;;  %v6390_v51 = vld [vmem:[#allocation4 + $0x1c8] sm:$0xf0]  ;;  %v4708_v56 = vor.u32 %v6350_v48, %v4707_v47 }
  0x3c   :  { %2267 = vmatpush.bf16.msra.mxu1 %v4908_v33  ;;  %v5208_v50 = vor.u32 %v6475_v43, %v5207_v42  ;;  %v5027_v52 = vld [vmem:[#allocation4 + $0x2f8] sm:$0xf]  ;;  %v6430_v53 = vld [vmem:[#allocation4 + $0x308] sm:$0xf0]  ;;  %v4868_v57 = vor.u32 %v6390_v51, %v4867_v49  ;;  %v4687_v59 = vld [vmem:[#allocation4 + $0x50] sm:$0xf] }
  0x3d   :  { %2280 = vmatpush.bf16.msra.mxu2 %v5068_v34  ;;  %v5187_v54 = vld [vmem:[#allocation4 + $0x438] sm:$0xf]  ;;  %v6470_v55 = vld [vmem:[#allocation4 + $0x448] sm:$0xf0]  ;;  %v5028_v58 = vor.u32 %v6430_v53, %v5027_v52  ;;  %v6345_v60 = vld [vmem:[#allocation4 + $0x60] sm:$0xf0] }
  0x3e   :  { %2293 = vmatpush.bf16.msra.mxu3 %v5228_v38  ;;  %v4847_v61 = vld [vmem:[#allocation4 + $0x190] sm:$0xf]  ;;  %v5188_v62 = vor.u32 %v6470_v55, %v5187_v54  ;;  %v6385_v63 = vld [vmem:[#allocation4 + $0x1a0] sm:$0xf0]  ;;  %v4688_v4 = vor.u32 %v6345_v60, %v4687_v59  ;;  %v4667_v7 = vld [vmem:[#allocation4 + $0x28] sm:$0xf] }
  0x3f   :  { %2255 = vmatpush.bf16.msra.mxu0 %v4728_v44  ;;  %v5007_v0 = vld [vmem:[#allocation4 + $0x2d0] sm:$0xf]  ;;  %v6425_v1 = vld [vmem:[#allocation4 + $0x2e0] sm:$0xf0]  ;;  %v4848_v5 = vor.u32 %v6385_v63, %v4847_v61  ;;  %v6340_v8 = vld [vmem:[#allocation4 + $0x38] sm:$0xf0] }
  0x40   :  { %2268 = vmatpush.bf16.msra.mxu1 %v4888_v45  ;;  %v5167_v2 = vld [vmem:[#allocation4 + $0x410] sm:$0xf]  ;;  %v6465_v3 = vld [vmem:[#allocation4 + $0x420] sm:$0xf0]  ;;  %v5008_v6 = vor.u32 %v6425_v1, %v5007_v0  ;;  %v4827_v9 = vld [vmem:[#allocation4 + $0x168] sm:$0xf]  ;;  %v4668_v16 = vor.u32 %v6340_v8, %v4667_v7 }
  0x41   :  { %2281 = vmatpush.bf16.msra.mxu2 %v5048_v46  ;;  %v5168_v10 = vor.u32 %v6465_v3, %v5167_v2  ;;  %v6380_v11 = vld [vmem:[#allocation4 + $0x178] sm:$0xf0]  ;;  %v4987_v12 = vld [vmem:[#allocation4 + $0x2a8] sm:$0xf]  ;;  %v4647_v17 = vld [vmem:[#allocation4] sm:$0xf] }
  0x42   :  { %2294 = vmatpush.bf16.msra.mxu3 %v5208_v50  ;;  %v6420_v13 = vld [vmem:[#allocation4 + $0x2b8] sm:$0xf0]  ;;  %v5147_v14 = vld [vmem:[#allocation4 + $0x3e8] sm:$0xf]  ;;  %v6335_v18 = vld [vmem:[#allocation4 + $0x10] sm:$0xf0]  ;;  %v4828_v19 = vor.u32 %v6380_v11, %v4827_v9 }
  0x43   :  { %2256 = vmatpush.bf16.msra.mxu0 %v4708_v56  ;;  %v6460_v15 = vld [vmem:[#allocation4 + $0x3f8] sm:$0xf0]  ;;  %v4988_v20 = vor.u32 %v6420_v13, %v4987_v12  ;;  %v4807_v21 = vld [vmem:[#allocation4 + $0x140] sm:$0xf]  ;;  %v6375_v22 = vld [vmem:[#allocation4 + $0x150] sm:$0xf0]  ;;  %v4648_v31 = vor.u32 %v6335_v18, %v4647_v17 }
  0x44   :  { %2269 = vmatpush.bf16.msra.mxu1 %v4868_v57  ;;  %v4967_v23 = vld [vmem:[#allocation4 + $0x280] sm:$0xf]  ;;  %v5148_v24 = vor.u32 %v6460_v15, %v5147_v14  ;;  %v6415_v25 = vld [vmem:[#allocation4 + $0x290] sm:$0xf0]  ;;  %v5427_v28 = vld [vmem:[#allocation4 + $0x618] sm:$0xf]  ;;  %v4808_v35 = vor.u32 %v6375_v22, %v4807_v21 }
  0x45   :  { %2282 = vmatpush.bf16.msra.mxu2 %v5028_v58  ;;  %v5127_v26 = vld [vmem:[#allocation4 + $0x3c0] sm:$0xf]  ;;  %v6455_v27 = vld [vmem:[#allocation4 + $0x3d0] sm:$0xf0]  ;;  %v6530_v29 = vld [vmem:[#allocation4 + $0x628] sm:$0xf0]  ;;  %v4968_v36 = vor.u32 %v6415_v25, %v4967_v23 }
  0x46   :  { %2295 = vmatpush.bf16.msra.mxu3 %v5188_v62  ;;  %v5587_v30 = vld [vmem:[#allocation4 + $0x758] sm:$0xf]  ;;  %v6570_v32 = vld [vmem:[#allocation4 + $0x768] sm:$0xf0]  ;;  %v5128_v39 = vor.u32 %v6455_v27, %v5127_v26  ;;  %v5428_v40 = vor.u32 %v6530_v29, %v5427_v28  ;;  %v5407_v43 = vld [vmem:[#allocation4 + $0x5f0] sm:$0xf] }
  0x47   :  { %2257 = vmatpush.bf16.msra.mxu0 %v4688_v4  ;;  %v5747_v33 = vld [vmem:[#allocation4 + $0x898] sm:$0xf]  ;;  %v6610_v34 = vld [vmem:[#allocation4 + $0x8a8] sm:$0xf0]  ;;  %v5588_v41 = vor.u32 %v6570_v32, %v5587_v30  ;;  %v6525_v44 = vld [vmem:[#allocation4 + $0x600] sm:$0xf0] }
  0x48   :  { %2270 = vmatpush.bf16.msra.mxu1 %v4848_v5  ;;  %v5907_v37 = vld [vmem:[#allocation4 + $0x9d8] sm:$0xf]  ;;  %v6650_v38 = vld [vmem:[#allocation4 + $0x9e8] sm:$0xf0]  ;;  %v5748_v42 = vor.u32 %v6610_v34, %v5747_v33  ;;  %v5567_v45 = vld [vmem:[#allocation4 + $0x730] sm:$0xf]  ;;  %v5408_v53 = vor.u32 %v6525_v44, %v5407_v43 }
  0x49   :  { %2283 = vmatpush.bf16.msra.mxu2 %v5008_v6  ;;  %v5908_v46 = vor.u32 %v6650_v38, %v5907_v37  ;;  %v6565_v47 = vld [vmem:[#allocation4 + $0x740] sm:$0xf0]  ;;  %v5727_v48 = vld [vmem:[#allocation4 + $0x870] sm:$0xf]  ;;  %v173_v52 = vld [vmem:[%s9267_s0] sm:$0xff]  ;;  %s9286_s0 = smov 127  }
  0x4a   :  { %2296 = vmatpush.bf16.msra.mxu3 %v5168_v10  ;;  %v6605_v49 = vld [vmem:[#allocation4 + $0x880] sm:$0xf0]  ;;  %v5887_v50 = vld [vmem:[#allocation4 + $0x9b0] sm:$0xf]  ;;  %571 = vst [vmem:[#allocation1] ss:$9 sm:$0xff] %v173_v52  ;;  %v5568_v54 = vor.u32 %v6565_v47, %v5567_v45 }
  0x4b   :  { %2258 = vmatpush.bf16.msra.mxu0 %v4668_v16  ;;  %v6645_v51 = vld [vmem:[#allocation4 + $0x9c0] sm:$0xf0]  ;;  %v5728_v55 = vor.u32 %v6605_v49, %v5727_v48  ;;  %v5387_v56 = vld [vmem:[#allocation4 + $0x5c8] sm:$0xf]  ;;  %v6520_v57 = vld [vmem:[#allocation4 + $0x5d8] sm:$0xf0] }
  0x4c   :  { %2271 = vmatpush.bf16.msra.mxu1 %v4828_v19  ;;  %v5547_v58 = vld [vmem:[#allocation4 + $0x708] sm:$0xf]  ;;  %v5888_v59 = vor.u32 %v6645_v51, %v5887_v50  ;;  %v6560_v60 = vld [vmem:[#allocation4 + $0x718] sm:$0xf0]  ;;  %v5388_v1 = vor.u32 %v6520_v57, %v5387_v56  ;;  %v5367_v2 = vld [vmem:[#allocation4 + $0x5a0] sm:$0xf] }
  0x4d   :  { %2284 = vmatpush.bf16.msra.mxu2 %v4988_v20  ;;  %v5707_v61 = vld [vmem:[#allocation4 + $0x848] sm:$0xf]  ;;  %v6600_v62 = vld [vmem:[#allocation4 + $0x858] sm:$0xf0]  ;;  %v5548_v3 = vor.u32 %v6560_v60, %v5547_v58  ;;  %v6515_v5 = vld [vmem:[#allocation4 + $0x5b0] sm:$0xf0] }
  0x4e   :  { %2297 = vmatpush.bf16.msra.mxu3 %v5148_v24  ;;  %v5867_v63 = vld [vmem:[#allocation4 + $0x988] sm:$0xf]  ;;  %v6640_v0 = vld [vmem:[#allocation4 + $0x998] sm:$0xf0]  ;;  %v5708_v4 = vor.u32 %v6600_v62, %v5707_v61  ;;  %v5527_v6 = vld [vmem:[#allocation4 + $0x6e0] sm:$0xf]  ;;  %v5368_v15 = vor.u32 %v6515_v5, %v5367_v2 }
  0x4f   :  { %2259 = vmatpush.bf16.msra.mxu0 %v4648_v31  ;;  %v6555_v7 = vld [vmem:[#allocation4 + $0x6f0] sm:$0xf0]  ;;  %v5868_v8 = vor.u32 %v6640_v0, %v5867_v63  ;;  %v5687_v9 = vld [vmem:[#allocation4 + $0x820] sm:$0xf]  ;;  %v5347_v20 = vld [vmem:[#allocation4 + $0x578] sm:$0xf] }
  0x50   :  { %2272 = vmatpush.bf16.msra.mxu1 %v4808_v35  ;;  %v6595_v10 = vld [vmem:[#allocation4 + $0x830] sm:$0xf0]  ;;  %v5847_v11 = vld [vmem:[#allocation4 + $0x960] sm:$0xf]  ;;  %v5528_v18 = vor.u32 %v6555_v7, %v5527_v6  ;;  %v6510_v21 = vld [vmem:[#allocation4 + $0x588] sm:$0xf0] }
  0x51   :  { %2285 = vmatpush.bf16.msra.mxu2 %v4968_v36  ;;  %v6635_v12 = vld [vmem:[#allocation4 + $0x970] sm:$0xf0]  ;;  %v6985_v13 = vld [vmem:[#allocation1 + $0x12] sm:$0xff]  ;;  %v6987_v14 = vld [vmem:[#allocation1] sm:$0xff]  ;;  %v5688_v19 = vor.u32 %v6595_v10, %v5687_v9  ;;  %v5348_v29 = vor.u32 %v6510_v21, %v5347_v20  ;;  %s9284_s11 = smov 2   ;;  %s9288_s17 = smov 126  }
  0x52   :  { %2298 = vmatpush.bf16.msra.mxu3 %v5128_v39  ;;  %v6990_v16 = vld [vmem:[#allocation1 + $0x1b] sm:$0xff]  ;;  %v6992_v17 = vld [vmem:[#allocation1 + $0x9] sm:$0xff]  ;;  %v5848_v23 = vor.u32 %v6635_v12, %v5847_v11  ;;  %v6550_v24 = vld [vmem:[#allocation4 + $0x6c8] sm:$0xf0]  ;;  %2260 = vmatmul.bf16.vlgmr.msra.gmra.mxu0 %v6987_v14  ;;  %s9282_s6 = smov 1   ;;  %vm2779_vm0 = vcmask 1041408  }
  0x53   :  { %2304 = vmatpush.bf16.msrb.mxu0 %v5428_v40  ;;  %v5507_v22 = vld [vmem:[#allocation4 + $0x6b8] sm:$0xf]  ;;  %v6590_v26 = vld [vmem:[#allocation4 + $0x808] sm:$0xf0]  ;;  %2273 = vmatmul.bf16.vlgmr.msra.gmra.mxu1 %v6992_v17  ;;  %v5327_v32 = vld [vmem:[#allocation4 + $0x550] sm:$0xf] }
  0x54   :  { %2317 = vmatpush.bf16.msrb.mxu1 %v5588_v41  ;;  %2286 = vmatmul.bf16.vlgmr.msra.gmra.mxu2 %v6985_v13  ;;  %v5667_v25 = vld [vmem:[#allocation4 + $0x7f8] sm:$0xf]  ;;  %v6630_v28 = vld [vmem:[#allocation4 + $0x948] sm:$0xf0]  ;;  %v5508_v30 = vor.u32 %v6550_v24, %v5507_v22  ;;  %v6505_v33 = vld [vmem:[#allocation4 + $0x560] sm:$0xf0] }
  0x55   :  { %2330 = vmatpush.bf16.msrb.mxu2 %v5748_v42  ;;  %v5827_v27 = vld [vmem:[#allocation4 + $0x938] sm:$0xf]  ;;  %2299 = vmatmul.bf16.vlgmr.msra.gmra.mxu3 %v6990_v16  ;;  %v5668_v31 = vor.u32 %v6590_v26, %v5667_v25  ;;  %v5487_v34 = vld [vmem:[#allocation4 + $0x690] sm:$0xf]  ;;  %v6545_v36 = vld [vmem:[#allocation4 + $0x6a0] sm:$0xf0]  ;;  %v5328_v41 = vor.u32 %v6505_v33, %v5327_v32 }
  0x56   :  { %2343 = vmatpush.bf16.msrb.mxu3 %v5908_v46  ;;  %v5828_v35 = vor.u32 %v6630_v28, %v5827_v27  ;;  %v5647_v37 = vld [vmem:[#allocation4 + $0x7d0] sm:$0xf]  ;;  %v6585_v38 = vld [vmem:[#allocation4 + $0x7e0] sm:$0xf0]  ;;  %v5488_v42 = vor.u32 %v6545_v36, %v5487_v34  ;;  %v5307_v44 = vld [vmem:[#allocation4 + $0x528] sm:$0xf] }
  0x57   :  { %2305 = vmatpush.bf16.msrb.mxu0 %v5408_v53  ;;  %v5807_v39 = vld [vmem:[#allocation4 + $0x910] sm:$0xf]  ;;  %v6625_v40 = vld [vmem:[#allocation4 + $0x920] sm:$0xf0]  ;;  %v5648_v43 = vor.u32 %v6585_v38, %v5647_v37  ;;  %v6500_v45 = vld [vmem:[#allocation4 + $0x538] sm:$0xf0] }
  0x58   :  { %2318 = vmatpush.bf16.msrb.mxu1 %v5568_v54  ;;  %v5467_v46 = vld [vmem:[#allocation4 + $0x668] sm:$0xf]  ;;  %v5808_v47 = vor.u32 %v6625_v40, %v5807_v39  ;;  %v6540_v48 = vld [vmem:[#allocation4 + $0x678] sm:$0xf0]  ;;  %v5308_v53 = vor.u32 %v6500_v45, %v5307_v44  ;;  %v5287_v54 = vld [vmem:[#allocation4 + $0x500] sm:$0xf] }
  0x59   :  { %2331 = vmatpush.bf16.msrb.mxu2 %v5728_v55  ;;  %v5627_v49 = vld [vmem:[#allocation4 + $0x7a8] sm:$0xf]  ;;  %v6580_v50 = vld [vmem:[#allocation4 + $0x7b8] sm:$0xf0]  ;;  %v6495_v55 = vld [vmem:[#allocation4 + $0x510] sm:$0xf0]  ;;  %v5468_v56 = vor.u32 %v6540_v48, %v5467_v46 }
  0x5a   :  { %2344 = vmatpush.bf16.msrb.mxu3 %v5888_v59  ;;  %v5787_v51 = vld [vmem:[#allocation4 + $0x8e8] sm:$0xf]  ;;  %v6620_v52 = vld [vmem:[#allocation4 + $0x8f8] sm:$0xf0]  ;;  %v5628_v57 = vor.u32 %v6580_v50, %v5627_v49  ;;  %v5447_v58 = vld [vmem:[#allocation4 + $0x640] sm:$0xf] }
  0x5b   :  { %2306 = vmatpush.bf16.msrb.mxu0 %v5388_v1  ;;  %v6535_v59 = vld [vmem:[#allocation4 + $0x650] sm:$0xf0]  ;;  %v5607_v60 = vld [vmem:[#allocation4 + $0x780] sm:$0xf]  ;;  %v5788_v61 = vor.u32 %v6620_v52, %v5787_v51  ;;  %v6368_v1 = vld [vmem:[#allocation4 + $0x11c] sm:$0xf] }
  0x5c   :  { %2319 = vmatpush.bf16.msrb.mxu1 %v5548_v3  ;;  %v6575_v62 = vld [vmem:[#allocation4 + $0x790] sm:$0xf0]  ;;  %v5767_v63 = vld [vmem:[#allocation4 + $0x8c0] sm:$0xf]  ;;  %v4789_v2 = vld [vmem:[#allocation4 + $0x12c] sm:$0xf0] }
  0x5d   :  { %2332 = vmatpush.bf16.msrb.mxu2 %v5708_v4  ;;  %v6615_v0 = vld [vmem:[#allocation4 + $0x8d0] sm:$0xf0]  ;;  %v6408_v3 = vld [vmem:[#allocation4 + $0x25c] sm:$0xf]  ;;  %v5288_v4 = vor.u32 %v6495_v55, %v5287_v54  ;;  %v4949_v5 = vld [vmem:[#allocation4 + $0x26c] sm:$0xf0]  ;;  %v5608_v9 = vor.u32 %v6575_v62, %v5607_v60 }
  0x5e   :  { %2345 = vmatpush.bf16.msrb.mxu3 %v5868_v8  ;;  %v6448_v6 = vld [vmem:[#allocation4 + $0x39c] sm:$0xf]  ;;  %v5109_v7 = vld [vmem:[#allocation4 + $0x3ac] sm:$0xf0]  ;;  %v5448_v8 = vor.u32 %v6535_v59, %v5447_v58  ;;  %v5768_v12 = vor.u32 %v6615_v0, %v5767_v63  ;;  %v6363_v20 = vld [vmem:[#allocation4 + $0xf4] sm:$0xf] }
  0x5f   :  { %2307 = vmatpush.bf16.msrb.mxu0 %v5368_v15  ;;  %v6488_v10 = vld [vmem:[#allocation4 + $0x4dc] sm:$0xf]  ;;  %v5269_v11 = vld [vmem:[#allocation4 + $0x4ec] sm:$0xf0]  ;;  %v4792_v15 = vor.u32 %v6368_v1, %v4789_v2  ;;  %v4769_v21 = vld [vmem:[#allocation4 + $0x104] sm:$0xf0] }
  0x60   :  { %2320 = vmatpush.bf16.msrb.mxu1 %v5528_v18  ;;  %v4952_v18 = vor.u32 %v6408_v3, %v4949_v5  ;;  %v6403_v22 = vld [vmem:[#allocation4 + $0x234] sm:$0xf]  ;;  %v4929_v24 = vld [vmem:[#allocation4 + $0x244] sm:$0xf0]  ;;  %v4772_v32 = vor.u32 %v6363_v20, %v4769_v21  ;;  %v6358_v36 = vld [vmem:[#allocation4 + $0xcc] sm:$0xf] }
  0x61   :  { %2333 = vmatpush.bf16.msrb.mxu2 %v5688_v19  ;;  %v5112_v19 = vor.u32 %v6448_v6, %v5109_v7  ;;  %v6443_v25 = vld [vmem:[#allocation4 + $0x374] sm:$0xf]  ;;  %v5089_v26 = vld [vmem:[#allocation4 + $0x384] sm:$0xf0]  ;;  %v4932_v34 = vor.u32 %v6403_v22, %v4929_v24  ;;  %v4749_v37 = vld [vmem:[#allocation4 + $0xdc] sm:$0xf0] }
  0x62   :  { %2346 = vmatpush.bf16.msrb.mxu3 %v5848_v23  ;;  %v5272_v23 = vor.u32 %v6488_v10, %v5269_v11  ;;  %v6997_v27 = vld [vmem:[#allocation1 + $0x36] sm:$0xff]  ;;  %v7003_v33 = vld [vmem:[#allocation1 + $0x2d] sm:$0xff]  ;;  %v4909_v40 = vld [vmem:[#allocation4 + $0x21c] sm:$0xf0]  ;;  %v4752_v45 = vor.u32 %v6358_v36, %v4749_v37  ;;  %s7104_s18 = sld [smem:[#allocation9 + $0x2]]  ;;  %s9421_s13 = smov 126  }
  0x63   :  { %2308 = vmatpush.bf16.msrb.mxu0 %v5348_v29  ;;  %v6483_v28 = vld [vmem:[#allocation4 + $0x4b4] sm:$0xf]  ;;  %v5249_v29 = vld [vmem:[#allocation4 + $0x4c4] sm:$0xf0]  ;;  %v6398_v38 = vld [vmem:[#allocation4 + $0x20c] sm:$0xf] }
  0x64   :  { %2321 = vmatpush.bf16.msrb.mxu1 %v5508_v30  ;;  %v6999_v30 = vld [vmem:[#allocation1 + $0x24] sm:$0xff]  ;;  %v5252_v39 = vor.u32 %v6483_v28, %v5249_v29  ;;  %v4912_v46 = vor.u32 %v6398_v38, %v4909_v40  ;;  %v6353_v48 = vld [vmem:[#allocation4 + $0xa4] sm:$0xf]  ;;  %v4729_v49 = vld [vmem:[#allocation4 + $0xb4] sm:$0xf0]  ;;  %s7106_s19 = sld [smem:[#allocation9 + $0x1b]] }
  0x65   :  { %2334 = vmatpush.bf16.msrb.mxu2 %v5668_v31  ;;  %v7001_v31 = vld [vmem:[#allocation1 + $0x3f] sm:$0xff]  ;;  %v5229_v44 = vld [vmem:[#allocation4 + $0x49c] sm:$0xf0]  ;;  %v6393_v50 = vld [vmem:[#allocation4 + $0x1e4] sm:$0xf]  ;;  %s7108_s20 = sld [smem:[#allocation9 + $0x34]] }
  0x66   :  { %2347 = vmatpush.bf16.msrb.mxu3 %v5828_v35  ;;  %v5092_v35 = vor.u32 %v6443_v25, %v5089_v26  ;;  %v4889_v52 = vld [vmem:[#allocation4 + $0x1f4] sm:$0xf0]  ;;  %v6473_v55 = vld [vmem:[#allocation4 + $0x464] sm:$0xf]  ;;  %v6348_v60 = vld [vmem:[#allocation4 + $0x7c] sm:$0xf] }
  0x67   :  { %2309 = vmatpush.bf16.msrb.mxu0 %v5328_v41  ;;  %v6438_v41 = vld [vmem:[#allocation4 + $0x34c] sm:$0xf]  ;;  %v5049_v54 = vld [vmem:[#allocation4 + $0x334] sm:$0xf0]  ;;  %v4892_v58 = vor.u32 %v6393_v50, %v4889_v52  ;;  %v6388_v62 = vld [vmem:[#allocation4 + $0x1bc] sm:$0xf] }
  0x68   :  { %2322 = vmatpush.bf16.msrb.mxu1 %v5488_v42  ;;  %v5069_v42 = vld [vmem:[#allocation4 + $0x35c] sm:$0xf0]  ;;  %v4869_v0 = vld [vmem:[#allocation4 + $0x1cc] sm:$0xf0]  ;;  %v6428_v1 = vld [vmem:[#allocation4 + $0x2fc] sm:$0xf] }
  0x69   :  { %2335 = vmatpush.bf16.msrb.mxu2 %v5648_v43  ;;  %v6478_v43 = vld [vmem:[#allocation4 + $0x48c] sm:$0xf]  ;;  %v5029_v2 = vld [vmem:[#allocation4 + $0x30c] sm:$0xf0]  ;;  %v6468_v3 = vld [vmem:[#allocation4 + $0x43c] sm:$0xf]  ;;  %v4872_v6 = vor.u32 %v6388_v62, %v4869_v0 }
  0x6a   :  { %2348 = vmatpush.bf16.msrb.mxu3 %v5808_v47  ;;  %v5072_v47 = vor.u32 %v6438_v41, %v5069_v42  ;;  %v5232_v51 = vor.u32 %v6478_v43, %v5229_v44  ;;  %v5032_v7 = vor.u32 %v6428_v1, %v5029_v2  ;;  %v6383_v10 = vld [vmem:[#allocation4 + $0x194] sm:$0xf]  ;;  %v5169_v20 = vld [vmem:[#allocation4 + $0x424] sm:$0xf0]  ;;  %v6338_v24 = vld [vmem:[#allocation4 + $0x2c] sm:$0xf] }
  0x6b   :  { %2310 = vmatpush.bf16.msrb.mxu0 %v5308_v53  ;;  %v6433_v53 = vld [vmem:[#allocation4 + $0x324] sm:$0xf]  ;;  %v4669_v25 = vld [vmem:[#allocation4 + $0x3c] sm:$0xf0]  ;;  %v6378_v26 = vld [vmem:[#allocation4 + $0x16c] sm:$0xf] }
  0x6c   :  { %2323 = vmatpush.bf16.msrb.mxu1 %v5468_v56  ;;  %v5209_v56 = vld [vmem:[#allocation4 + $0x474] sm:$0xf0]  ;;  %v5052_v59 = vor.u32 %v6433_v53, %v5049_v54  ;;  %v4829_v29 = vld [vmem:[#allocation4 + $0x17c] sm:$0xf0]  ;;  %v4672_v37 = vor.u32 %v6338_v24, %v4669_v25  ;;  %v6333_v38 = vld [vmem:[#allocation4 + $0x4] sm:$0xf] }
  0x6d   :  { %2336 = vmatpush.bf16.msrb.mxu2 %v5628_v57  ;;  %v4732_v57 = vor.u32 %v6353_v48, %v4729_v49  ;;  %v5212_v63 = vor.u32 %v6473_v55, %v5209_v56  ;;  %v5149_v36 = vld [vmem:[#allocation4 + $0x3fc] sm:$0xf0]  ;;  %v6373_v40 = vld [vmem:[#allocation4 + $0x144] sm:$0xf]  ;;  %v4832_v41 = vor.u32 %v6378_v26, %v4829_v29  ;;  %v4809_v43 = vld [vmem:[#allocation4 + $0x154] sm:$0xf0] }
  0x6e   :  { %2349 = vmatpush.bf16.msrb.mxu3 %v5788_v61  ;;  %v4709_v61 = vld [vmem:[#allocation4 + $0x8c] sm:$0xf0]  ;;  %v6413_v44 = vld [vmem:[#allocation4 + $0x284] sm:$0xf]  ;;  %v5129_v48 = vld [vmem:[#allocation4 + $0x3d4] sm:$0xf0]  ;;  %v4812_v56 = vor.u32 %v6373_v40, %v4809_v43 }
  0x6f   :  { %2311 = vmatpush.bf16.msrb.mxu0 %v5288_v4  ;;  %v5189_v4 = vld [vmem:[#allocation4 + $0x44c] sm:$0xf0]  ;;  %v4712_v5 = vor.u32 %v6348_v60, %v4709_v61  ;;  %v6528_v49 = vld [vmem:[#allocation4 + $0x61c] sm:$0xf]  ;;  %v6523_v0 = vld [vmem:[#allocation4 + $0x5f4] sm:$0xf] }
  0x70   :  { %2324 = vmatpush.bf16.msrb.mxu1 %v5448_v8  ;;  %v6343_v8 = vld [vmem:[#allocation4 + $0x54] sm:$0xf]  ;;  %v5192_v11 = vor.u32 %v6468_v3, %v5189_v4  ;;  %v5429_v50 = vld [vmem:[#allocation4 + $0x62c] sm:$0xf0]  ;;  %v6608_v54 = vld [vmem:[#allocation4 + $0x89c] sm:$0xf] }
  0x71   :  { %2337 = vmatpush.bf16.msrb.mxu2 %v5608_v9  ;;  %v4689_v9 = vld [vmem:[#allocation4 + $0x64] sm:$0xf0]  ;;  %v5589_v53 = vld [vmem:[#allocation4 + $0x76c] sm:$0xf0]  ;;  %v5432_v61 = vor.u32 %v6528_v49, %v5429_v50  ;;  %v6563_v2 = vld [vmem:[#allocation4 + $0x734] sm:$0xf] }
  0x72   :  { %2350 = vmatpush.bf16.msrb.mxu3 %v5768_v12  ;;  %2312 = vmatmul.bf16.vlgmr.msrb.gmra.mxu0 %v6999_v30  ;;  %v4849_v12 = vld [vmem:[#allocation4 + $0x1a4] sm:$0xf0]  ;;  %v4692_v21 = vor.u32 %v6343_v8, %v4689_v9  ;;  %v5749_v55 = vld [vmem:[#allocation4 + $0x8ac] sm:$0xf0]  ;;  %v5869_v24 = vld [vmem:[#allocation4 + $0x99c] sm:$0xf0] }
  0x73   :  { %2356 = vmatpush.bf16.msra.mxu0 %v4792_v15  ;;  %2325 = vmatmul.bf16.vlgmr.msrb.gmra.mxu1 %v7003_v33  ;;  %v6423_v15 = vld [vmem:[#allocation4 + $0x2d4] sm:$0xf]  ;;  %v4852_v22 = vor.u32 %v6383_v10, %v4849_v12  ;;  %v5409_v1 = vld [vmem:[#allocation4 + $0x604] sm:$0xf0]  ;;  %v6518_v12 = vld [vmem:[#allocation4 + $0x5cc] sm:$0xf] }
  0x74   :  { %2369 = vmatpush.bf16.msra.mxu1 %v4952_v18  ;;  %2338 = vmatmul.bf16.vlgmr.msrb.gmra.mxu2 %v6997_v27  ;;  %v5009_v18 = vld [vmem:[#allocation4 + $0x2e4] sm:$0xf0]  ;;  %v5412_v9 = vor.u32 %v6523_v0, %v5409_v1  ;;  %v6513_v29 = vld [vmem:[#allocation4 + $0x5a4] sm:$0xf]  ;;  %v6508_v40 = vld [vmem:[#allocation4 + $0x57c] sm:$0xf] }
  0x75   :  { %2382 = vmatpush.bf16.msra.mxu2 %v5112_v19  ;;  %2351 = vmatmul.bf16.vlgmr.msrb.gmra.mxu3 %v7001_v31  ;;  %v6463_v19 = vld [vmem:[#allocation4 + $0x414] sm:$0xf]  ;;  %v5569_v4 = vld [vmem:[#allocation4 + $0x744] sm:$0xf0]  ;;  %v6498_v0 = vld [vmem:[#allocation4 + $0x52c] sm:$0xf] }
  0x76   :  { %2395 = vmatpush.bf16.msra.mxu3 %v5272_v23  ;;  %v5012_v23 = vor.u32 %v6423_v15, %v5009_v18  ;;  %v5172_v28 = vor.u32 %v6463_v19, %v5169_v20  ;;  %v5889_v8 = vld [vmem:[#allocation4 + $0x9c4] sm:$0xf0]  ;;  %v5572_v10 = vor.u32 %v6563_v2, %v5569_v4  ;;  %v5389_v15 = vld [vmem:[#allocation4 + $0x5dc] sm:$0xf0]  ;;  %v6558_v18 = vld [vmem:[#allocation4 + $0x70c] sm:$0xf] }
  0x77   :  { %2357 = vmatpush.bf16.msra.mxu0 %v4772_v32  ;;  %v6418_v32 = vld [vmem:[#allocation4 + $0x2ac] sm:$0xf]  ;;  %v5549_v20 = vld [vmem:[#allocation4 + $0x71c] sm:$0xf0]  ;;  %v5392_v25 = vor.u32 %v6518_v12, %v5389_v15  ;;  %s7110_s8 = sld [smem:[#allocation9 + $0x4d]]  ;;  %vm2781_vm1 = vcmask 1045508  }
  0x78   :  { %2370 = vmatpush.bf16.msra.mxu1 %v4932_v34  ;;  %v4989_v34 = vld [vmem:[#allocation4 + $0x2bc] sm:$0xf0]  ;;  %v5552_v26 = vor.u32 %v6558_v18, %v5549_v20  ;;  %v6538_v2 = vld [vmem:[#allocation4 + $0x66c] sm:$0xf]  ;;  %v6533_v18 = vld [vmem:[#allocation4 + $0x644] sm:$0xf] }
  0x79   :  { %2383 = vmatpush.bf16.msra.mxu2 %v5092_v35  ;;  %v6458_v35 = vld [vmem:[#allocation4 + $0x3ec] sm:$0xf]  ;;  %v4992_v42 = vor.u32 %v6418_v32, %v4989_v34  ;;  %v5369_v32 = vld [vmem:[#allocation4 + $0x5b4] sm:$0xf0]  ;;  %v6553_v34 = vld [vmem:[#allocation4 + $0x6e4] sm:$0xf] }
  0x7a   :  { %2396 = vmatpush.bf16.msra.mxu3 %v5252_v39  ;;  %v4649_v39 = vld [vmem:[#allocation4 + $0x14] sm:$0xf0]  ;;  %v5309_v1 = vld [vmem:[#allocation4 + $0x53c] sm:$0xf0]  ;;  %v6573_v20 = vld [vmem:[#allocation4 + $0x784] sm:$0xf] }
  0x7b   :  { %2358 = vmatpush.bf16.msra.mxu0 %v4752_v45  ;;  %v4969_v45 = vld [vmem:[#allocation4 + $0x294] sm:$0xf0]  ;;  %v4652_v52 = vor.u32 %v6333_v38, %v4649_v39  ;;  %v6633_v38 = vld [vmem:[#allocation4 + $0x964] sm:$0xf]  ;;  %v5469_v4 = vld [vmem:[#allocation4 + $0x67c] sm:$0xf0] }
  0x7c   :  { %2371 = vmatpush.bf16.msra.mxu1 %v4912_v46  ;;  %v5152_v46 = vor.u32 %v6458_v35, %v5149_v36  ;;  %v6593_v36 = vld [vmem:[#allocation4 + $0x824] sm:$0xf]  ;;  %v5472_v12 = vor.u32 %v6538_v2, %v5469_v4  ;;  %v5055_v4 = vld [vmem:[#allocation4 + $0x328] sm:$0xf]  ;;  %s7112_s21 = sld [smem:[#allocation9 + $0x66]]  ;;  %vm2783_vm2 = vcmask 1043456  }
  0x7d   :  { %2384 = vmatpush.bf16.msra.mxu2 %v5072_v47  ;;  %v6453_v47 = vld [vmem:[#allocation4 + $0x3c4] sm:$0xf]  ;;  %s7115_s22 = sld [smem:[#allocation9 + $0x7]] }
  0x7e   :  { %2397 = vmatpush.bf16.msra.mxu3 %v5232_v51  ;;  %v6568_v51 = vld [vmem:[#allocation4 + $0x75c] sm:$0xf]  ;;  %v5132_v60 = vor.u32 %v6453_v47, %v5129_v48  ;;  %v5829_v48 = vld [vmem:[#allocation4 + $0x94c] sm:$0xf0]  ;;  %s7117_s23 = sld [smem:[#allocation9 + $0x20]] }
  0x7f   :  { %2359 = vmatpush.bf16.msra.mxu0 %v4732_v57  ;;  %v4972_v57 = vor.u32 %v6413_v44, %v4969_v45  ;;  %v5592_v62 = vor.u32 %v6568_v51, %v5589_v53  ;;  %v5509_v44 = vld [vmem:[#allocation4 + $0x6cc] sm:$0xf0]  ;;  %v6588_v45 = vld [vmem:[#allocation4 + $0x7fc] sm:$0xf]  ;;  %v5329_v53 = vld [vmem:[#allocation4 + $0x564] sm:$0xf0] }
  0x80   :  { %2372 = vmatpush.bf16.msra.mxu1 %v4892_v58  ;;  %v6648_v58 = vld [vmem:[#allocation4 + $0x9dc] sm:$0xf]  ;;  %s7119_s1 = sld [smem:[#allocation9 + $0x39]] }
  0x81   :  { %2385 = vmatpush.bf16.msra.mxu2 %v5052_v59  ;;  %v5909_v59 = vld [vmem:[#allocation4 + $0x9ec] sm:$0xf0]  ;;  %v6628_v47 = vld [vmem:[#allocation4 + $0x93c] sm:$0xf]  ;;  %s7121_s24 = sld [smem:[#allocation9 + $0x52]] }
  0x82   :  { %2398 = vmatpush.bf16.msra.mxu3 %v5212_v63  ;;  %v5752_v63 = vor.u32 %v6608_v54, %v5749_v55  ;;  %v5912_v3 = vor.u32 %v6648_v58, %v5909_v59  ;;  %v6543_v54 = vld [vmem:[#allocation4 + $0x694] sm:$0xf]  ;;  %v5832_v55 = vor.u32 %v6628_v47, %v5829_v48  ;;  %v5649_v58 = vld [vmem:[#allocation4 + $0x7e4] sm:$0xf0]  ;;  %v5255_v47 = vld [vmem:[#allocation4 + $0x4b8] sm:$0xf] }
  0x83   :  { %2360 = vmatpush.bf16.msra.mxu0 %v4712_v5  ;;  %v6603_v5 = vld [vmem:[#allocation4 + $0x874] sm:$0xf]  ;;  %v6486_v48 = vld [vmem:[#allocation4 + $0x4c8] sm:$0xf0]  ;;  %s7123_s25 = sld [smem:[#allocation9 + $0x6b]] }
  0x84   :  { %2373 = vmatpush.bf16.msra.mxu1 %v4872_v6  ;;  %v5729_v6 = vld [vmem:[#allocation4 + $0x884] sm:$0xf0]  ;;  %v6623_v59 = vld [vmem:[#allocation4 + $0x914] sm:$0xf]  ;;  %s7125_s2 = sld [smem:[#allocation9 + $0x3]] }
  0x85   :  { %2386 = vmatpush.bf16.msra.mxu2 %v5032_v7  ;;  %v6643_v7 = vld [vmem:[#allocation4 + $0x9b4] sm:$0xf]  ;;  %s7127_s26 = sld [smem:[#allocation9 + $0x1c]] }
  0x86   :  { %2399 = vmatpush.bf16.msra.mxu3 %v5192_v11  ;;  %v5732_v11 = vor.u32 %v6603_v5, %v5729_v6  ;;  %v5892_v19 = vor.u32 %v6643_v7, %v5889_v8  ;;  %v6578_v5 = vld [vmem:[#allocation4 + $0x7ac] sm:$0xf]  ;;  %v5629_v6 = vld [vmem:[#allocation4 + $0x7bc] sm:$0xf0]  ;;  %s7129_s3 = sld [smem:[#allocation9 + $0x35]] }
  0x87   :  { %2361 = vmatpush.bf16.msra.mxu0 %v4692_v21  ;;  %v6598_v21 = vld [vmem:[#allocation4 + $0x84c] sm:$0xf]  ;;  %v5789_v8 = vld [vmem:[#allocation4 + $0x8fc] sm:$0xf0]  ;;  %v5632_v15 = vor.u32 %v6578_v5, %v5629_v6  ;;  %v5215_v5 = vld [vmem:[#allocation4 + $0x468] sm:$0xf] }
  0x88   :  { %2374 = vmatpush.bf16.msra.mxu1 %v4852_v22  ;;  %v5709_v22 = vld [vmem:[#allocation4 + $0x85c] sm:$0xf0]  ;;  %v6618_v7 = vld [vmem:[#allocation4 + $0x8ec] sm:$0xf]  ;;  %s7131_s27 = sld [smem:[#allocation9 + $0x4e]] }
  0x89   :  { %2387 = vmatpush.bf16.msra.mxu2 %v5012_v23  ;;  %v6638_v23 = vld [vmem:[#allocation4 + $0x98c] sm:$0xf]  ;;  %s7133_s28 = sld [smem:[#allocation10]] }
  0x8a   :  { %2400 = vmatpush.bf16.msra.mxu3 %v5172_v28  ;;  %v5712_v28 = vor.u32 %v6598_v21, %v5709_v22  ;;  %v5872_v35 = vor.u32 %v6638_v23, %v5869_v24  ;;  %v5792_v21 = vor.u32 %v6618_v7, %v5789_v8  ;;  %v5609_v22 = vld [vmem:[#allocation4 + $0x794] sm:$0xf0]  ;;  %v6613_v23 = vld [vmem:[#allocation4 + $0x8c4] sm:$0xf]  ;;  %v4715_v8 = vld [vmem:[#allocation4 + $0x80] sm:$0xf] }
  0x8b   :  { %2362 = vmatpush.bf16.msra.mxu0 %v4672_v37  ;;  %v5689_v37 = vld [vmem:[#allocation4 + $0x834] sm:$0xf0]  ;;  %s7135_s29 = sld [smem:[#allocation9]] }
  0x8c   :  { %2375 = vmatpush.bf16.msra.mxu1 %v4832_v41  ;;  %v5349_v41 = vld [vmem:[#allocation4 + $0x58c] sm:$0xf0]  ;;  %v5769_v24 = vld [vmem:[#allocation4 + $0x8d4] sm:$0xf0]  ;;  %9419 = sst [smem:[#allocation27_spill]] %s7129_s3 }
  0x8d   :  { %2388 = vmatpush.bf16.msra.mxu2 %v4992_v42  ;;  %v6548_v42 = vld [vmem:[#allocation4 + $0x6bc] sm:$0xf]  ;;  %v5352_v49 = vor.u32 %v6508_v40, %v5349_v41  ;;  %v4775_v40 = vld [vmem:[#allocation4 + $0xf8] sm:$0xf]  ;;  %v6366_v41 = vld [vmem:[#allocation4 + $0x108] sm:$0xf0] }
  0x8e   :  { %2401 = vmatpush.bf16.msra.mxu3 %v5152_v46  ;;  %v5669_v46 = vld [vmem:[#allocation4 + $0x80c] sm:$0xf0]  ;;  %v5512_v50 = vor.u32 %v6548_v42, %v5509_v44  ;;  %v4935_v42 = vld [vmem:[#allocation4 + $0x238] sm:$0xf]  ;;  %v6406_v44 = vld [vmem:[#allocation4 + $0x248] sm:$0xf0] }
  0x8f   :  { %2363 = vmatpush.bf16.msra.mxu0 %v4652_v52  ;;  %v5672_v51 = vor.u32 %v6588_v45, %v5669_v46  ;;  %v6503_v52 = vld [vmem:[#allocation4 + $0x554] sm:$0xf]  ;;  %v5095_v45 = vld [vmem:[#allocation4 + $0x378] sm:$0xf]  ;;  %v6446_v46 = vld [vmem:[#allocation4 + $0x388] sm:$0xf0] }
  0x90   :  { %2376 = vmatpush.bf16.msra.mxu1 %v4812_v56  ;;  %v5489_v56 = vld [vmem:[#allocation4 + $0x6a4] sm:$0xf0]  ;;  %9420 = sst [smem:[#allocation28_spill]] %s7131_s27 }
  0x91   :  { %2389 = vmatpush.bf16.msra.mxu2 %v4972_v57  ;;  %v6583_v57 = vld [vmem:[#allocation4 + $0x7d4] sm:$0xf]  ;;  %s7139_s4 = sld [smem:[#allocation10 + $0x1]] }
  0x92   :  { %2402 = vmatpush.bf16.msra.mxu3 %v5132_v60  ;;  %2364 = vmatmul.bf16.vlgmr.msra.gmra.mxu0 %v6987_v14  ;;  %v5849_v14 = vld [vmem:[#allocation4 + $0x974] sm:$0xf0]  ;;  %v5809_v60 = vld [vmem:[#allocation4 + $0x924] sm:$0xf0]  ;;  %s7141_s30 = sld [smem:[#allocation9 + $0x19]] }
  0x93   :  { %2408 = vmatpush.bf16.msrb.mxu0 %v5432_v61  ;;  %2377 = vmatmul.bf16.vlgmr.msra.gmra.mxu1 %v6992_v17  ;;  %v5692_v17 = vor.u32 %v6593_v36, %v5689_v37  ;;  %v5852_v43 = vor.u32 %v6633_v38, %v5849_v14  ;;  %v5332_v61 = vor.u32 %v6503_v52, %v5329_v53  ;;  %v5275_v37 = vld [vmem:[#allocation4 + $0x4e0] sm:$0xf]  ;;  %v6491_v38 = vld [vmem:[#allocation4 + $0x4f0] sm:$0xf0]  ;;  %v4755_v52 = vld [vmem:[#allocation4 + $0xd0] sm:$0xf] }
  0x94   :  { %2421 = vmatpush.bf16.msrb.mxu1 %v5592_v62  ;;  %2390 = vmatmul.bf16.vlgmr.msra.gmra.mxu2 %v6985_v13  ;;  %v5529_v13 = vld [vmem:[#allocation4 + $0x6f4] sm:$0xf0]  ;;  %v5492_v62 = vor.u32 %v6543_v54, %v5489_v56  ;;  %v5612_v36 = vor.u32 %v6573_v20, %v5609_v22  ;;  %v5772_v14 = vor.u32 %v6613_v23, %v5769_v24  ;;  %v6361_v53 = vld [vmem:[#allocation4 + $0xe0] sm:$0xf0]  ;;  %v4915_v54 = vld [vmem:[#allocation4 + $0x210] sm:$0xf] }
  0x95   :  { %2434 = vmatpush.bf16.msrb.mxu2 %v5752_v63  ;;  %2403 = vmatmul.bf16.vlgmr.msra.gmra.mxu3 %v6990_v16  ;;  %v5372_v16 = vor.u32 %v6513_v29, %v5369_v32  ;;  %v5532_v39 = vor.u32 %v6553_v34, %v5529_v13  ;;  %v5652_v63 = vor.u32 %v6583_v57, %v5649_v58  ;;  %v6411_v32 = vld [vmem:[#allocation4 + $0x270] sm:$0xf0]  ;;  %v5115_v34 = vld [vmem:[#allocation4 + $0x3a0] sm:$0xf]  ;;  %v6401_v56 = vld [vmem:[#allocation4 + $0x220] sm:$0xf0] }
  0x96   :  { %2447 = vmatpush.bf16.msrb.mxu3 %v5912_v3  ;;  %v5812_v3 = vor.u32 %v6623_v59, %v5809_v60  ;;  %v5075_v57 = vld [vmem:[#allocation4 + $0x350] sm:$0xf]  ;;  %v6441_v58 = vld [vmem:[#allocation4 + $0x360] sm:$0xf0]  ;;  %v6471_v20 = vld [vmem:[#allocation4 + $0x450] sm:$0xf0] }
  0x97   :  { %2409 = vmatpush.bf16.msrb.mxu0 %v5412_v9  ;;  %v5312_v9 = vor.u32 %v6498_v0, %v5309_v1  ;;  %v5235_v59 = vld [vmem:[#allocation4 + $0x490] sm:$0xf]  ;;  %v6481_v60 = vld [vmem:[#allocation4 + $0x4a0] sm:$0xf0]  ;;  %v4735_v0 = vld [vmem:[#allocation4 + $0xa8] sm:$0xf] }
  0x98   :  { %2422 = vmatpush.bf16.msrb.mxu1 %v5572_v10  ;;  %v6493_v10 = vld [vmem:[#allocation4 + $0x504] sm:$0xf]  ;;  %v4895_v1 = vld [vmem:[#allocation4 + $0x1e8] sm:$0xf]  ;;  %v5236_v2 = vor.u32 %v6481_v60, %v5235_v59  ;;  %v4695_v24 = vld [vmem:[#allocation4 + $0x58] sm:$0xf] }
  0x99   :  { %2435 = vmatpush.bf16.msrb.mxu2 %v5732_v11  ;;  %v5289_v11 = vld [vmem:[#allocation4 + $0x514] sm:$0xf0]  ;;  %v5595_v59 = vld [vmem:[#allocation4 + $0x760] sm:$0xf]  ;;  %s7143_s5 = sld [smem:[#allocation10 + $0x2]] }
  0x9a   :  { %2448 = vmatpush.bf16.msrb.mxu3 %v5892_v19  ;;  %v5449_v19 = vld [vmem:[#allocation4 + $0x654] sm:$0xf0]  ;;  %v5292_v29 = vor.u32 %v6493_v10, %v5289_v11  ;;  %v4875_v10 = vld [vmem:[#allocation4 + $0x1c0] sm:$0xf]  ;;  %s7149_s15 = sld [smem:[#allocation9 + $0x32]] }
  0x9b   :  { %2410 = vmatpush.bf16.msrb.mxu0 %v5392_v25  ;;  %v4795_v25 = vld [vmem:[#allocation4 + $0x120] sm:$0xf]  ;;  %v5452_v13 = vor.u32 %v6533_v18, %v5449_v19  ;;  %v6431_v18 = vld [vmem:[#allocation4 + $0x310] sm:$0xf0]  ;;  %s7153_s16 = sld [smem:[#allocation10 + $0x3]] }
  0x9c   :  { %2423 = vmatpush.bf16.msrb.mxu1 %v5552_v26  ;;  %v6371_v26 = vld [vmem:[#allocation4 + $0x130] sm:$0xf0]  ;;  %v5195_v19 = vld [vmem:[#allocation4 + $0x440] sm:$0xf]  ;;  %s7155_s7 = sld [smem:[#allocation9 + $0x4b]] }
  0x9d   :  { %2436 = vmatpush.bf16.msrb.mxu2 %v5712_v28  ;;  %v4955_v28 = vld [vmem:[#allocation4 + $0x260] sm:$0xf]  ;;  %s7157_s9 = sld [smem:[#allocation10 + $0x4]] }
  0x9e   :  { %2449 = vmatpush.bf16.msrb.mxu3 %v5872_v35  ;;  %v6451_v35 = vld [vmem:[#allocation4 + $0x3b0] sm:$0xf0]  ;;  %s7169_s12 = sld [smem:[#allocation9 + $0x4c]] }
  0x9f   :  { %2411 = vmatpush.bf16.msrb.mxu0 %v5372_v16  ;;  %v4796_v16 = vor.u32 %v6371_v26, %v4795_v25  ;;  %v6346_v25 = vld [vmem:[#allocation4 + $0x68] sm:$0xf0]  ;;  %v4855_v26 = vld [vmem:[#allocation4 + $0x198] sm:$0xf]  ;;  %s7171_s10 = sld [smem:[#allocation9 + $0x65]] }
  0xa0   :  { %2424 = vmatpush.bf16.msrb.mxu1 %v5532_v39  ;;  %v4956_v39 = vor.u32 %v6411_v32, %v4955_v28  ;;  %v5196_v28 = vor.u32 %v6471_v20, %v5195_v19  ;;  %v5015_v32 = vld [vmem:[#allocation4 + $0x2d8] sm:$0xf]  ;;  %v5395_v20 = vld [vmem:[#allocation4 + $0x5d0] sm:$0xf]  ;;  %s7173_s14 = sld [smem:[#allocation9 + $0x67]] }
  0xa1   :  { %2437 = vmatpush.bf16.msrb.mxu2 %v5692_v17  ;;  %v5116_v17 = vor.u32 %v6451_v35, %v5115_v34  ;;  %v6426_v34 = vld [vmem:[#allocation4 + $0x2e8] sm:$0xf0]  ;;  %v5175_v35 = vld [vmem:[#allocation4 + $0x418] sm:$0xf]  ;;  %s7180_s27 = sld [smem:[#allocation9 + $0x4]] }
  0xa2   :  { %2450 = vmatpush.bf16.msrb.mxu3 %v5852_v43  ;;  %v5276_v43 = vor.u32 %v6491_v38, %v5275_v37  ;;  %v5016_v38 = vor.u32 %v6426_v34, %v5015_v32  ;;  %v6641_v32 = vld [vmem:[#allocation4 + $0x9a0] sm:$0xf0]  ;;  %v7020_v34 = vld [vmem:[#allocation1] sm:$0xff]  ;;  %s7183_s3 = sld [smem:[#allocation9 + $0x1d]] }
  0xa3   :  { %2412 = vmatpush.bf16.msrb.mxu0 %v5352_v49  ;;  %v4776_v49 = vor.u32 %v6366_v41, %v4775_v40  ;;  %v6381_v40 = vld [vmem:[#allocation4 + $0x180] sm:$0xf0]  ;;  %v4995_v41 = vld [vmem:[#allocation4 + $0x2b0] sm:$0xf] }
  0xa4   :  { %2425 = vmatpush.bf16.msrb.mxu1 %v5512_v50  ;;  %v4936_v50 = vor.u32 %v6406_v44, %v4935_v42  ;;  %v6421_v42 = vld [vmem:[#allocation4 + $0x2c0] sm:$0xf0] }
  0xa5   :  { %2438 = vmatpush.bf16.msrb.mxu2 %v5672_v51  ;;  %v5096_v51 = vor.u32 %v6446_v46, %v5095_v45  ;;  %v6461_v44 = vld [vmem:[#allocation4 + $0x400] sm:$0xf0]  ;;  %v4655_v46 = vld [vmem:[#allocation4 + $0x8] sm:$0xf] }
  0xa6   :  { %2451 = vmatpush.bf16.msrb.mxu3 %v5832_v55  ;;  %v5256_v55 = vor.u32 %v6486_v48, %v5255_v47  ;;  %v6336_v47 = vld [vmem:[#allocation4 + $0x18] sm:$0xf0] }
  0xa7   :  { %2413 = vmatpush.bf16.msrb.mxu0 %v5332_v61  ;;  %v4756_v61 = vor.u32 %v6361_v53, %v4755_v52  ;;  %v4975_v52 = vld [vmem:[#allocation4 + $0x288] sm:$0xf]  ;;  %v4656_v60 = vor.u32 %v6336_v47, %v4655_v46 }
  0xa8   :  { %2426 = vmatpush.bf16.msrb.mxu1 %v5492_v62  ;;  %v4916_v62 = vor.u32 %v6401_v56, %v4915_v54  ;;  %v6416_v54 = vld [vmem:[#allocation4 + $0x298] sm:$0xf0] }
  0xa9   :  { %2439 = vmatpush.bf16.msrb.mxu2 %v5652_v63  ;;  %v5076_v63 = vor.u32 %v6441_v58, %v5075_v57  ;;  %v6456_v56 = vld [vmem:[#allocation4 + $0x3d8] sm:$0xf0]  ;;  %v5435_v57 = vld [vmem:[#allocation4 + $0x620] sm:$0xf]  ;;  %v6531_v58 = vld [vmem:[#allocation4 + $0x630] sm:$0xf0] }
  0xaa   :  { %2452 = vmatpush.bf16.msrb.mxu3 %v5812_v3  ;;  %v6396_v3 = vld [vmem:[#allocation4 + $0x1f8] sm:$0xf0] }
  0xab   :  { %2414 = vmatpush.bf16.msrb.mxu0 %v5312_v9  ;;  %v6351_v9 = vld [vmem:[#allocation4 + $0x90] sm:$0xf0] }
  0xac   :  { %2427 = vmatpush.bf16.msrb.mxu1 %v5472_v12  ;;  %v6391_v12 = vld [vmem:[#allocation4 + $0x1d0] sm:$0xf0] }
  0xad   :  { %2440 = vmatpush.bf16.msrb.mxu2 %v5632_v15  ;;  %v5035_v15 = vld [vmem:[#allocation4 + $0x300] sm:$0xf]  ;;  %v4876_v22 = vor.u32 %v6391_v12, %v4875_v10  ;;  %v6606_v10 = vld [vmem:[#allocation4 + $0x888] sm:$0xf0] }
  0xae   :  { %2453 = vmatpush.bf16.msrb.mxu3 %v5792_v21  ;;  %v4716_v21 = vor.u32 %v6351_v9, %v4715_v8  ;;  %v5036_v23 = vor.u32 %v6431_v18, %v5035_v15  ;;  %v6566_v8 = vld [vmem:[#allocation4 + $0x748] sm:$0xf0]  ;;  %v5735_v9 = vld [vmem:[#allocation4 + $0x878] sm:$0xf] }
  0xaf   :  { %2415 = vmatpush.bf16.msrb.mxu0 %v5292_v29  ;;  %v6386_v29 = vld [vmem:[#allocation4 + $0x1a8] sm:$0xf0]  ;;  %v5736_v19 = vor.u32 %v6606_v10, %v5735_v9  ;;  %v5475_v9 = vld [vmem:[#allocation4 + $0x670] sm:$0xf] }
  0xb0   :  { %2428 = vmatpush.bf16.msrb.mxu1 %v5452_v13  ;;  %v6466_v13 = vld [vmem:[#allocation4 + $0x428] sm:$0xf0]  ;;  %v4856_v37 = vor.u32 %v6386_v29, %v4855_v26  ;;  %v6601_v26 = vld [vmem:[#allocation4 + $0x860] sm:$0xf0]  ;;  %v5875_v29 = vld [vmem:[#allocation4 + $0x990] sm:$0xf] }
  0xb1   :  { %2441 = vmatpush.bf16.msrb.mxu2 %v5612_v36  ;;  %v4696_v36 = vor.u32 %v6346_v25, %v4695_v24  ;;  %v6646_v12 = vld [vmem:[#allocation4 + $0x9c8] sm:$0xf0]  ;;  %v6561_v24 = vld [vmem:[#allocation4 + $0x720] sm:$0xf0]  ;;  %v5715_v25 = vld [vmem:[#allocation4 + $0x850] sm:$0xf] }
  0xb2   :  { %2454 = vmatpush.bf16.msrb.mxu3 %v5772_v14  ;;  %2416 = vmatmul.bf16.vlgmr.msrb.gmra.mxu0 %v6999_v30  ;;  %v6436_v30 = vld [vmem:[#allocation4 + $0x338] sm:$0xf0]  ;;  %v4675_v14 = vld [vmem:[#allocation4 + $0x30] sm:$0xf] }
  0xb3   :  { %2460 = vmatpush.bf16.msra.mxu0 %v4796_v16  ;;  %2429 = vmatmul.bf16.vlgmr.msrb.gmra.mxu1 %v7003_v33  ;;  %v4896_v33 = vor.u32 %v6396_v3, %v4895_v1  ;;  %v5056_v7 = vor.u32 %v6436_v30, %v5055_v4  ;;  %v6341_v16 = vld [vmem:[#allocation4 + $0x40] sm:$0xf0]  ;;  %v5915_v1 = vld [vmem:[#allocation4 + $0x9e0] sm:$0xf]  ;;  %v5436_v4 = vor.u32 %v6531_v58, %v5435_v57 }
  0xb4   :  { %2473 = vmatpush.bf16.msra.mxu1 %v4956_v39  ;;  %2442 = vmatmul.bf16.vlgmr.msrb.gmra.mxu2 %v6997_v27  ;;  %v6356_v27 = vld [vmem:[#allocation4 + $0xb8] sm:$0xf0]  ;;  %v4835_v39 = vld [vmem:[#allocation4 + $0x170] sm:$0xf]  ;;  %v4676_v45 = vor.u32 %v6341_v16, %v4675_v14  ;;  %v5375_v14 = vld [vmem:[#allocation4 + $0x5a8] sm:$0xf] }
  0xb5   :  { %2486 = vmatpush.bf16.msra.mxu2 %v5116_v17  ;;  %2455 = vmatmul.bf16.vlgmr.msrb.gmra.mxu3 %v7001_v31  ;;  %v6476_v31 = vld [vmem:[#allocation4 + $0x478] sm:$0xf0]  ;;  %v4736_v6 = vor.u32 %v6356_v27, %v4735_v0  ;;  %v5176_v17 = vor.u32 %v6466_v13, %v5175_v35  ;;  %v4836_v48 = vor.u32 %v6381_v40, %v4835_v39  ;;  %v7023_v35 = vld [vmem:[#allocation1 + $0x1b] sm:$0xff]  ;;  %v5535_v39 = vld [vmem:[#allocation4 + $0x6e8] sm:$0xf] }
  0xb6   :  { %2499 = vmatpush.bf16.msra.mxu3 %v5276_v43  ;;  %v5216_v11 = vor.u32 %v6476_v31, %v5215_v5  ;;  %v5155_v43 = vld [vmem:[#allocation4 + $0x3f0] sm:$0xf]  ;;  %v4976_v27 = vor.u32 %v6416_v54, %v4975_v52  ;;  %v5415_v31 = vld [vmem:[#allocation4 + $0x5f8] sm:$0xf]  ;;  %v6516_v16 = vld [vmem:[#allocation4 + $0x5b8] sm:$0xf0] }
  0xb7   :  { %2461 = vmatpush.bf16.msra.mxu0 %v4776_v49  ;;  %v4996_v49 = vor.u32 %v6421_v42, %v4995_v41  ;;  %v5156_v53 = vor.u32 %v6461_v44, %v5155_v43  ;;  %v6556_v40 = vld [vmem:[#allocation4 + $0x6f8] sm:$0xf0]  ;;  %v5695_v41 = vld [vmem:[#allocation4 + $0x828] sm:$0xf]  ;;  %v6551_v52 = vld [vmem:[#allocation4 + $0x6d0] sm:$0xf0] }
  0xb8   :  { %2474 = vmatpush.bf16.msra.mxu1 %v4936_v50  ;;  %v4815_v50 = vld [vmem:[#allocation4 + $0x148] sm:$0xf]  ;;  %v6596_v42 = vld [vmem:[#allocation4 + $0x838] sm:$0xf0]  ;;  %v5536_v46 = vor.u32 %v6556_v40, %v5535_v39  ;;  %v6591_v54 = vld [vmem:[#allocation4 + $0x810] sm:$0xf0] }
  0xb9   :  { %2487 = vmatpush.bf16.msra.mxu2 %v5096_v51  ;;  %v6376_v51 = vld [vmem:[#allocation4 + $0x158] sm:$0xf0]  ;;  %v5855_v43 = vld [vmem:[#allocation4 + $0x968] sm:$0xf]  ;;  %v5696_v47 = vor.u32 %v6596_v42, %v5695_v41  ;;  %v6369_v40 = vld [vmem:[#allocation4 + $0x124] sm:$0xf] }
  0xba   :  { %2500 = vmatpush.bf16.msra.mxu3 %v5256_v55  ;;  %v5135_v55 = vld [vmem:[#allocation4 + $0x3c8] sm:$0xf]  ;;  %v4816_v0 = vor.u32 %v6376_v51, %v4815_v50  ;;  %v6636_v44 = vld [vmem:[#allocation4 + $0x978] sm:$0xf0]  ;;  %v5515_v50 = vld [vmem:[#allocation4 + $0x6c0] sm:$0xf] }
  0xbb   :  { %2462 = vmatpush.bf16.msra.mxu0 %v4756_v61  ;;  %v6571_v61 = vld [vmem:[#allocation4 + $0x770] sm:$0xf0]  ;;  %v5136_v3 = vor.u32 %v6456_v56, %v5135_v55  ;;  %v5856_v51 = vor.u32 %v6636_v44, %v5855_v43  ;;  %v5835_v55 = vld [vmem:[#allocation4 + $0x940] sm:$0xf]  ;;  %v5516_v58 = vor.u32 %v6551_v52, %v5515_v50  ;;  %v4797_v41 = vld [vmem:[#allocation4 + $0x134] sm:$0xf0] }
  0xbc   :  { %2475 = vmatpush.bf16.msra.mxu1 %v4916_v62  ;;  %v5755_v62 = vld [vmem:[#allocation4 + $0x8a0] sm:$0xf]  ;;  %v5596_v30 = vor.u32 %v6571_v61, %v5595_v59  ;;  %v6631_v56 = vld [vmem:[#allocation4 + $0x950] sm:$0xf0]  ;;  %v6506_v61 = vld [vmem:[#allocation4 + $0x568] sm:$0xf0] }
  0xbd   :  { %2488 = vmatpush.bf16.msra.mxu2 %v5076_v63  ;;  %v6611_v63 = vld [vmem:[#allocation4 + $0x8b0] sm:$0xf0]  ;;  %v6409_v42 = vld [vmem:[#allocation4 + $0x264] sm:$0xf]  ;;  %v5277_v52 = vld [vmem:[#allocation4 + $0x4f4] sm:$0xf0] }
  0xbe   :  { %2501 = vmatpush.bf16.msra.mxu3 %v5236_v2  ;;  %v6651_v2 = vld [vmem:[#allocation4 + $0x9f0] sm:$0xf0]  ;;  %v5756_v5 = vor.u32 %v6611_v63, %v5755_v62  ;;  %v5495_v62 = vld [vmem:[#allocation4 + $0x698] sm:$0xf]  ;;  %v5836_v63 = vor.u32 %v6631_v56, %v5835_v55 }
  0xbf   :  { %2463 = vmatpush.bf16.msra.mxu0 %v4736_v6  ;;  %v6526_v6 = vld [vmem:[#allocation4 + $0x608] sm:$0xf0] }
  0xc0   :  { %2476 = vmatpush.bf16.msra.mxu1 %v4896_v33  ;;  %v5575_v33 = vld [vmem:[#allocation4 + $0x738] sm:$0xf]  ;;  %v5416_v15 = vor.u32 %v6526_v6, %v5415_v31 }
  0xc1   :  { %2489 = vmatpush.bf16.msra.mxu2 %v5056_v7  ;;  %v5916_v7 = vor.u32 %v6651_v2, %v5915_v1  ;;  %v5576_v18 = vor.u32 %v6566_v8, %v5575_v33  ;;  %v6586_v1 = vld [vmem:[#allocation4 + $0x7e8] sm:$0xf0]  ;;  %v5815_v2 = vld [vmem:[#allocation4 + $0x918] sm:$0xf]  ;;  %v6501_v8 = vld [vmem:[#allocation4 + $0x540] sm:$0xf0] }
  0xc2   :  { %2502 = vmatpush.bf16.msra.mxu3 %v5216_v11  ;;  %v5895_v11 = vld [vmem:[#allocation4 + $0x9b8] sm:$0xf] }
  0xc3   :  { %2464 = vmatpush.bf16.msra.mxu0 %v4716_v21  ;;  %v6521_v21 = vld [vmem:[#allocation4 + $0x5e0] sm:$0xf0] }
  0xc4   :  { %2477 = vmatpush.bf16.msra.mxu1 %v4876_v22  ;;  %v5555_v22 = vld [vmem:[#allocation4 + $0x710] sm:$0xf]  ;;  %v5396_v13 = vor.u32 %v6521_v21, %v5395_v20 }
  0xc5   :  { %2490 = vmatpush.bf16.msra.mxu2 %v5036_v23  ;;  %v5896_v23 = vor.u32 %v6646_v12, %v5895_v11  ;;  %v6541_v11 = vld [vmem:[#allocation4 + $0x680] sm:$0xf0]  ;;  %v5635_v12 = vld [vmem:[#allocation4 + $0x7b0] sm:$0xf] }
  0xc6   :  { %2503 = vmatpush.bf16.msra.mxu3 %v5196_v28  ;;  %v7017_v28 = vld [vmem:[#allocation1 + $0x12] sm:$0xff] }
  0xc7   :  { %2465 = vmatpush.bf16.msra.mxu0 %v4696_v36  ;;  %v7026_v36 = vld [vmem:[#allocation1 + $0x9] sm:$0xff] }
  0xc8   :  { %2478 = vmatpush.bf16.msra.mxu1 %v4856_v37  ;;  %v5556_v37 = vor.u32 %v6561_v24, %v5555_v22  ;;  %v6496_v24 = vld [vmem:[#allocation4 + $0x518] sm:$0xf0] }
  0xc9   :  { %2491 = vmatpush.bf16.msra.mxu2 %v5016_v38  ;;  %v5716_v38 = vor.u32 %v6601_v26, %v5715_v25  ;;  %v5476_v25 = vor.u32 %v6541_v11, %v5475_v9  ;;  %v7034_v9 = vld [vmem:[#allocation1 + $0x36] sm:$0xff]  ;;  %v4917_v11 = vld [vmem:[#allocation4 + $0x224] sm:$0xf0] }
  0xca   :  { %2504 = vmatpush.bf16.msra.mxu3 %v5176_v17  ;;  %v5876_v17 = vor.u32 %v6641_v32, %v5875_v29  ;;  %v5455_v29 = vld [vmem:[#allocation4 + $0x648] sm:$0xf]  ;;  %v6536_v32 = vld [vmem:[#allocation4 + $0x658] sm:$0xf0] }
  0xcb   :  { %2466 = vmatpush.bf16.msra.mxu0 %v4676_v45  ;;  %v5376_v45 = vor.u32 %v6516_v16, %v5375_v14  ;;  %v5775_v14 = vld [vmem:[#allocation4 + $0x8c8] sm:$0xf]  ;;  %v6616_v16 = vld [vmem:[#allocation4 + $0x8d8] sm:$0xf0] }
  0xcc   :  { %2479 = vmatpush.bf16.msra.mxu1 %v4836_v48  ;;  %v5355_v48 = vld [vmem:[#allocation4 + $0x580] sm:$0xf] }
  0xcd   :  { %2492 = vmatpush.bf16.msra.mxu2 %v4996_v49  ;;  %v6511_v49 = vld [vmem:[#allocation4 + $0x590] sm:$0xf0] }
  0xce   :  { %2505 = vmatpush.bf16.msra.mxu3 %v5156_v53  ;;  %v5675_v53 = vld [vmem:[#allocation4 + $0x800] sm:$0xf]  ;;  %v5356_v57 = vor.u32 %v6511_v49, %v5355_v48  ;;  %v5456_v49 = vor.u32 %v6536_v32, %v5455_v29  ;;  %v6354_v29 = vld [vmem:[#allocation4 + $0xac] sm:$0xf] }
  0xcf   :  { %2467 = vmatpush.bf16.msra.mxu0 %v4656_v60  ;;  %v5676_v59 = vor.u32 %v6591_v54, %v5675_v53  ;;  %v5335_v60 = vld [vmem:[#allocation4 + $0x558] sm:$0xf]  ;;  %v5776_v53 = vor.u32 %v6616_v16, %v5775_v14  ;;  %v4800_v54 = vor.u32 %v6369_v40, %v4797_v41  ;;  %v4737_v32 = vld [vmem:[#allocation4 + $0xbc] sm:$0xf0]  ;;  %v6434_v14 = vld [vmem:[#allocation4 + $0x32c] sm:$0xf] }
  0xd0   :  { %2480 = vmatpush.bf16.msra.mxu1 %v4816_v0  ;;  %v6546_v0 = vld [vmem:[#allocation4 + $0x6a8] sm:$0xf0]  ;;  %v2274_v31 = vpop.f32.mrf.mxu1  ;;  %v5057_v16 = vld [vmem:[#allocation4 + $0x33c] sm:$0xf0]  ;;  %v4740_v41 = vor.u32 %v6354_v29, %v4737_v32 }
  0xd1   :  { %2493 = vmatpush.bf16.msra.mxu2 %v4976_v27  ;;  %v5655_v27 = vld [vmem:[#allocation4 + $0x7d8] sm:$0xf]  ;;  %v5496_v6 = vor.u32 %v6546_v0, %v5495_v62  ;;  %v6444_v0 = vld [vmem:[#allocation4 + $0x37c] sm:$0xf]  ;;  %v5217_v40 = vld [vmem:[#allocation4 + $0x47c] sm:$0xf0] }
  0xd2   :  { %2506 = vmatpush.bf16.msra.mxu3 %v5136_v3  ;;  %2468 = vmatmul.bf16.vlgmr.msra.gmra.mxu0 %v7020_v34  ;;  %v6626_v3 = vld [vmem:[#allocation4 + $0x928] sm:$0xf0]  ;;  %v5656_v33 = vor.u32 %v6586_v1, %v5655_v27  ;;  %v5097_v27 = vld [vmem:[#allocation4 + $0x38c] sm:$0xf0]  ;;  %v6484_v1 = vld [vmem:[#allocation4 + $0x4bc] sm:$0xf] }
  0xd3   :  { %2512 = vmatpush.bf16.msrb.mxu0 %v5436_v4  ;;  %2481 = vmatmul.bf16.vlgmr.msra.gmra.mxu1 %v7026_v36  ;;  %v2261_v4 = vpop.f32.mrf.mxu0  ;;  %v5816_v10 = vor.u32 %v6626_v3, %v5815_v2  ;;  %v5257_v2 = vld [vmem:[#allocation4 + $0x4cc] sm:$0xf0]  ;;  %v6334_v32 = vld [vmem:[#allocation4 + $0xc] sm:$0xf] }
  0xd4   :  { %2525 = vmatpush.bf16.msrb.mxu1 %v5596_v30  ;;  %2494 = vmatmul.bf16.vlgmr.msra.gmra.mxu2 %v7017_v28  ;;  %v5336_v30 = vor.u32 %v6506_v61, %v5335_v60  ;;  %v6404_v60 = vld [vmem:[#allocation4 + $0x23c] sm:$0xf] }
  0xd5   :  { %2538 = vmatpush.bf16.msrb.mxu2 %v5756_v5  ;;  %2507 = vmatmul.bf16.vlgmr.msra.gmra.mxu3 %v7023_v35  ;;  %v7029_v5 = vld [vmem:[#allocation7] sm:$0x1f] }
  0xd6   :  { %2551 = vmatpush.bf16.msrb.mxu3 %v5916_v7  ;;  %v5315_v7 = vld [vmem:[#allocation4 + $0x530] sm:$0xf]  ;;  %v560_v20 = vperm.slane %v7029_v5, 0 }
  0xd7   :  { %2513 = vmatpush.bf16.msrb.mxu0 %v5416_v15  ;;  %v6581_v15 = vld [vmem:[#allocation4 + $0x7c0] sm:$0xf0]  ;;  %v2287_v21 = vpop.f32.mrf.mxu2  ;;  %v5316_v22 = vor.u32 %v6501_v8, %v5315_v7  ;;  %v4757_v7 = vld [vmem:[#allocation4 + $0xe4] sm:$0xf0]  ;;  %v6399_v8 = vld [vmem:[#allocation4 + $0x214] sm:$0xf] }
  0xd8   :  { %2526 = vmatpush.bf16.msrb.mxu1 %v5576_v18  ;;  %v5795_v18 = vld [vmem:[#allocation4 + $0x8f0] sm:$0xf]  ;;  %v5636_v26 = vor.u32 %v6581_v15, %v5635_v12  ;;  %v7032_v39 = vpop.f32.mrf.mxu3  ;;  %v2276_v48 = vpop.f32.mrf.mxu1  ;;  %v6439_v12 = vld [vmem:[#allocation4 + $0x354] sm:$0xf]  ;;  %v5077_v15 = vld [vmem:[#allocation4 + $0x364] sm:$0xf0] }
  0xd9   :  { %2539 = vmatpush.bf16.msrb.mxu2 %v5736_v19  ;;  %v6621_v19 = vld [vmem:[#allocation4 + $0x900] sm:$0xf0] }
  0xda   :  { %2552 = vmatpush.bf16.msrb.mxu3 %v5896_v23  ;;  %v5295_v23 = vld [vmem:[#allocation4 + $0x508] sm:$0xf]  ;;  %v6389_v48 = vld [vmem:[#allocation4 + $0x1c4] sm:$0xf] }
  0xdb   :  { %2514 = vmatpush.bf16.msrb.mxu0 %v5396_v13  ;;  %v5615_v13 = vld [vmem:[#allocation4 + $0x788] sm:$0xf]  ;;  %v2263_v43 = vpop.f32.mrf.mxu0  ;;  %v5296_v44 = vor.u32 %v6496_v24, %v5295_v23 }
  0xdc   :  { %2527 = vmatpush.bf16.msrb.mxu1 %v5556_v37  ;;  %v5796_v37 = vor.u32 %v6621_v19, %v5795_v18  ;;  %v7037_v18 = vld [vmem:[#allocation1 + $0x24] sm:$0xff]  ;;  %v5060_v43 = vor.u32 %v6434_v14, %v5057_v16  ;;  %v6374_v14 = vld [vmem:[#allocation4 + $0x14c] sm:$0xf] }
  0xdd   :  { %2540 = vmatpush.bf16.msrb.mxu2 %v5716_v38  ;;  %v6576_v38 = vld [vmem:[#allocation4 + $0x798] sm:$0xf0]  ;;  %v4817_v16 = vld [vmem:[#allocation4 + $0x15c] sm:$0xf0] }
  0xde   :  { %2553 = vmatpush.bf16.msrb.mxu3 %v5876_v17  ;;  %v2262_v17 = vadd.f32 %v2261_v4, %v560_v20  ;;  %v5616_v50 = vor.u32 %v6576_v38, %v5615_v13  ;;  %v7040_v19 = vld [vmem:[#allocation1 + $0x3f] sm:$0xff]  ;;  %v6394_v13 = vld [vmem:[#allocation4 + $0x1ec] sm:$0xf]  ;;  %v4897_v38 = vld [vmem:[#allocation4 + $0x1fc] sm:$0xf0] }
  0xdf   :  { %2515 = vmatpush.bf16.msrb.mxu0 %v5376_v45  ;;  %v4957_v45 = vld [vmem:[#allocation4 + $0x274] sm:$0xf0]  ;;  %v2289_v61 = vpop.f32.mrf.mxu2  ;;  %v6479_v20 = vld [vmem:[#allocation4 + $0x494] sm:$0xf] }
  0xe0   :  { %2528 = vmatpush.bf16.msrb.mxu1 %v5536_v46  ;;  %v6449_v46 = vld [vmem:[#allocation4 + $0x3a4] sm:$0xf]  ;;  %v2275_v55 = vadd.f32 %v2274_v31, %v2262_v17  ;;  %v4960_v56 = vor.u32 %v6409_v42, %v4957_v45  ;;  %v2302_v4 = vpop.f32.mrf.mxu3  ;;  %v6474_v17 = vld [vmem:[#allocation4 + $0x46c] sm:$0xf]  ;;  %v4697_v61 = vld [vmem:[#allocation4 + $0x6c] sm:$0xf0] }
  0xe1   :  { %2541 = vmatpush.bf16.msrb.mxu2 %v5696_v47  ;;  %v5117_v47 = vld [vmem:[#allocation4 + $0x3b4] sm:$0xf0]  ;;  %v6464_v4 = vld [vmem:[#allocation4 + $0x41c] sm:$0xf] }
  0xe2   :  { %2554 = vmatpush.bf16.msrb.mxu3 %v5856_v51  ;;  %v6489_v51 = vld [vmem:[#allocation4 + $0x4e4] sm:$0xf] }
  0xe3   :  { %2516 = vmatpush.bf16.msrb.mxu0 %v5356_v57  ;;  %v5120_v57 = vor.u32 %v6449_v46, %v5117_v47  ;;  %v5280_v62 = vor.u32 %v6489_v51, %v5277_v52  ;;  %v6349_v46 = vld [vmem:[#allocation4 + $0x84] sm:$0xf]  ;;  %v4717_v47 = vld [vmem:[#allocation4 + $0x94] sm:$0xf0] }
  0xe4   :  { %2529 = vmatpush.bf16.msrb.mxu1 %v5516_v58  ;;  %v6364_v58 = vld [vmem:[#allocation4 + $0xfc] sm:$0xf]  ;;  %v6429_v51 = vld [vmem:[#allocation4 + $0x304] sm:$0xf]  ;;  %v5037_v52 = vld [vmem:[#allocation4 + $0x314] sm:$0xf0] }
  0xe5   :  { %2542 = vmatpush.bf16.msrb.mxu2 %v5676_v59  ;;  %v4777_v59 = vld [vmem:[#allocation4 + $0x10c] sm:$0xf0] }
  0xe6   :  { %2555 = vmatpush.bf16.msrb.mxu3 %v5836_v63  ;;  %v4937_v63 = vld [vmem:[#allocation4 + $0x24c] sm:$0xf0]  ;;  %v4780_v3 = vor.u32 %v6364_v58, %v4777_v59  ;;  %v5040_v58 = vor.u32 %v6429_v51, %v5037_v52  ;;  %v5757_v51 = vld [vmem:[#allocation4 + $0x8b4] sm:$0xf0]  ;;  %v4820_v52 = vor.u32 %v6374_v14, %v4817_v16  ;;  %v6634_v14 = vld [vmem:[#allocation4 + $0x96c] sm:$0xf] }
  0xe7   :  { %2517 = vmatpush.bf16.msrb.mxu0 %v5336_v30  ;;  %v2288_v30 = vadd.f32 %v2287_v21, %v2275_v55  ;;  %v4940_v31 = vor.u32 %v6404_v60, %v4937_v63  ;;  %v5237_v21 = vld [vmem:[#allocation4 + $0x4a4] sm:$0xf0]  ;;  %v5197_v55 = vld [vmem:[#allocation4 + $0x454] sm:$0xf0]  ;;  %v6344_v60 = vld [vmem:[#allocation4 + $0x5c] sm:$0xf] }
  0xe8   :  { %2530 = vmatpush.bf16.msrb.mxu1 %v5496_v6  ;;  %v5100_v6 = vor.u32 %v6444_v0, %v5097_v27 }
  0xe9   :  { %2543 = vmatpush.bf16.msrb.mxu2 %v5656_v33  ;;  %v6359_v33 = vld [vmem:[#allocation4 + $0xd4] sm:$0xf]  ;;  %v2301_v24 = vadd.f32 %v7032_v39, %v2288_v30  ;;  %v4900_v39 = vor.u32 %v6394_v13, %v4897_v38  ;;  %v5177_v30 = vld [vmem:[#allocation4 + $0x42c] sm:$0xf0]  ;;  %v4657_v13 = vld [vmem:[#allocation4 + $0x1c] sm:$0xf0] }
  0xea   :  { %2556 = vmatpush.bf16.msrb.mxu3 %v5816_v10  ;;  %v5260_v10 = vor.u32 %v6484_v1, %v5257_v2  ;;  %v4760_v23 = vor.u32 %v6359_v33, %v4757_v7  ;;  %v4857_v1 = vld [vmem:[#allocation4 + $0x1ac] sm:$0xf0]  ;;  %v6424_v2 = vld [vmem:[#allocation4 + $0x2dc] sm:$0xf] }
  0xeb   :  { %2518 = vmatpush.bf16.msrb.mxu0 %v5316_v22  ;;  %v7043_v22 = vld [vmem:[#allocation1 + $0x2d] sm:$0xff] }
  0xec   :  { %2531 = vmatpush.bf16.msrb.mxu1 %v5476_v25  ;;  %v4920_v25 = vor.u32 %v6399_v8, %v4917_v11  ;;  %v4677_v11 = vld [vmem:[#allocation4 + $0x44] sm:$0xf0] }
  0xed   :  { %2544 = vmatpush.bf16.msrb.mxu2 %v5636_v26  ;;  %v5080_v26 = vor.u32 %v6439_v12, %v5077_v15  ;;  %v6379_v12 = vld [vmem:[#allocation4 + $0x174] sm:$0xf] }
  0xee   :  { %2557 = vmatpush.bf16.msrb.mxu3 %v5796_v37  ;;  %v5240_v37 = vor.u32 %v6479_v20, %v5237_v21  ;;  %v5180_v20 = vor.u32 %v6464_v4, %v5177_v30  ;;  %v4837_v21 = vld [vmem:[#allocation4 + $0x184] sm:$0xf0] }
  0xef   :  { %2519 = vmatpush.bf16.msrb.mxu0 %v5296_v44  ;;  %v2313_v42 = vpop.f32.mrf.mxu0 }
  0xf0   :  { %2532 = vmatpush.bf16.msrb.mxu1 %v5456_v49  ;;  %v2314_v44 = vadd.f32 %v2313_v42, %v2301_v24  ;;  %v2326_v45 = vpop.f32.mrf.mxu1  ;;  %v5220_v49 = vor.u32 %v6474_v17, %v5217_v40  ;;  %v4997_v24 = vld [vmem:[#allocation4 + $0x2c4] sm:$0xf0]  ;;  %v6414_v17 = vld [vmem:[#allocation4 + $0x28c] sm:$0xf]  ;;  %v4977_v42 = vld [vmem:[#allocation4 + $0x29c] sm:$0xf0] }
  0xf1   :  { %2545 = vmatpush.bf16.msrb.mxu2 %v5616_v50  ;;  %v4877_v50 = vld [vmem:[#allocation4 + $0x1d4] sm:$0xf0] }
  0xf2   :  { %2558 = vmatpush.bf16.msrb.mxu3 %v5776_v53  ;;  %2520 = vmatmul.bf16.vlgmr.msrb.gmra.mxu0 %v7037_v18  ;;  %v2327_v53 = vadd.f32 %v2326_v45, %v2314_v44  ;;  %v6529_v45 = vld [vmem:[#allocation4 + $0x624] sm:$0xf] }
  0xf3   :  { %2564 = vmatpush.bf16.msra.mxu0 %v4800_v54  ;;  %2533 = vmatmul.bf16.vlgmr.msrb.gmra.mxu1 %v7043_v22  ;;  %v6469_v54 = vld [vmem:[#allocation4 + $0x444] sm:$0xf] }
  0xf4   :  { %2577 = vmatpush.bf16.msra.mxu1 %v4960_v56  ;;  %2546 = vmatmul.bf16.vlgmr.msrb.gmra.mxu2 %v7034_v9  ;;  %v4720_v56 = vor.u32 %v6349_v46, %v4717_v47  ;;  %v5200_v63 = vor.u32 %v6469_v54, %v5197_v55  ;;  %v5437_v46 = vld [vmem:[#allocation4 + $0x634] sm:$0xf0]  ;;  %v6569_v47 = vld [vmem:[#allocation4 + $0x764] sm:$0xf] }
  0xf5   :  { %2590 = vmatpush.bf16.msra.mxu2 %v5120_v57  ;;  %2559 = vmatmul.bf16.vlgmr.msrb.gmra.mxu3 %v7040_v19  ;;  %v4880_v57 = vor.u32 %v6389_v48, %v4877_v50  ;;  %v4660_v48 = vor.u32 %v6334_v32, %v4657_v13  ;;  %v6609_v50 = vld [vmem:[#allocation4 + $0x8a4] sm:$0xf]  ;;  %v5917_v55 = vld [vmem:[#allocation4 + $0x9f4] sm:$0xf0]  ;;  %v6554_v32 = vld [vmem:[#allocation4 + $0x6ec] sm:$0xf] }
  0xf6   :  { %2603 = vmatpush.bf16.msra.mxu3 %v5280_v62  ;;  %v6384_v62 = vld [vmem:[#allocation4 + $0x19c] sm:$0xf]  ;;  %v6649_v54 = vld [vmem:[#allocation4 + $0x9e4] sm:$0xf] }
  0xf7   :  { %2565 = vmatpush.bf16.msra.mxu0 %v4780_v3  ;;  %v2339_v59 = vpop.f32.mrf.mxu2  ;;  %v5017_v3 = vld [vmem:[#allocation4 + $0x2ec] sm:$0xf0]  ;;  %v2315_v33 = vpop.f32.mrf.mxu0  ;;  %v4860_v7 = vor.u32 %v6384_v62, %v4857_v1  ;;  %v6564_v62 = vld [vmem:[#allocation4 + $0x73c] sm:$0xf] }
  0xf8   :  { %2578 = vmatpush.bf16.msra.mxu1 %v4940_v31  ;;  %v2340_v0 = vadd.f32 %v2339_v59, %v2327_v53  ;;  %v2352_v27 = vpop.f32.mrf.mxu3  ;;  %v5020_v8 = vor.u32 %v6424_v2, %v5017_v3  ;;  %v2328_v15 = vpop.f32.mrf.mxu1  ;;  %v4980_v53 = vor.u32 %v6414_v17, %v4977_v42  ;;  %v5760_v59 = vor.u32 %v6609_v50, %v5757_v51  ;;  %v5737_v1 = vld [vmem:[#allocation4 + $0x88c] sm:$0xf0]  ;;  %v6644_v2 = vld [vmem:[#allocation4 + $0x9bc] sm:$0xf]  ;;  %v6519_v33 = vld [vmem:[#allocation4 + $0x5d4] sm:$0xf] }
  0xf9   :  { %2591 = vmatpush.bf16.msra.mxu2 %v5100_v6  ;;  %v4700_v6 = vor.u32 %v6344_v60, %v4697_v61  ;;  %v6524_v60 = vld [vmem:[#allocation4 + $0x5fc] sm:$0xf]  ;;  %v5417_v61 = vld [vmem:[#allocation4 + $0x60c] sm:$0xf0]  ;;  %v5717_v15 = vld [vmem:[#allocation4 + $0x864] sm:$0xf0] }
  0xfa   :  { %2604 = vmatpush.bf16.msra.mxu3 %v5260_v10  ;;  %v7047_v31 = vadd.f32 %v2352_v27, %v2340_v0  ;;  %v6339_v10 = vld [vmem:[#allocation4 + $0x34] sm:$0xf]  ;;  %v5577_v0 = vld [vmem:[#allocation4 + $0x74c] sm:$0xf0]  ;;  %v6604_v27 = vld [vmem:[#allocation4 + $0x87c] sm:$0xf]  ;;  %v5420_v4 = vor.u32 %v6524_v60, %v5417_v61 }
  0xfb   :  { %2566 = vmatpush.bf16.msra.mxu0 %v4760_v23  ;;  %v6419_v23 = vld [vmem:[#allocation4 + $0x2b4] sm:$0xf]  ;;  %v4680_v29 = vor.u32 %v6339_v10, %v4677_v11  ;;  %v5897_v3 = vld [vmem:[#allocation4 + $0x9cc] sm:$0xf0]  ;;  %v5580_v30 = vor.u32 %v6564_v62, %v5577_v0  ;;  %v5557_v11 = vld [vmem:[#allocation4 + $0x724] sm:$0xf0] }
  0xfc   :  { %2579 = vmatpush.bf16.msra.mxu1 %v4920_v25  ;;  %2795 = vrot.lane.b32.xlu1 %v7047_v31, %s9286_s0  ;;  %v6459_v25 = vld [vmem:[#allocation4 + $0x3f4] sm:$0xf]  ;;  %v5000_v38 = vor.u32 %v6419_v23, %v4997_v24  ;;  %v5900_v10 = vor.u32 %v6644_v2, %v5897_v3  ;;  %v6549_v42 = vld [vmem:[#allocation4 + $0x6c4] sm:$0xf]  ;;  %v6624_v61 = vld [vmem:[#allocation4 + $0x91c] sm:$0xf] }
  0xfd   :  { %2592 = vmatpush.bf16.msra.mxu2 %v5080_v26  ;;  %2791 = vrot.lane.b32.xlu0 %v7047_v31, %s9284_s11  ;;  %v5157_v26 = vld [vmem:[#allocation4 + $0x404] sm:$0xf0]  ;;  %v5817_v62 = vld [vmem:[#allocation4 + $0x92c] sm:$0xf0]  ;;  %v6499_v2 = vld [vmem:[#allocation4 + $0x534] sm:$0xf] }
  0xfe   :  { %2605 = vmatpush.bf16.msra.mxu3 %v5240_v37  ;;  %v4840_v37 = vor.u32 %v6379_v12, %v4837_v21  ;;  %v6599_v12 = vld [vmem:[#allocation4 + $0x854] sm:$0xf]  ;;  %v5877_v21 = vld [vmem:[#allocation4 + $0x9a4] sm:$0xf0] }
  0xff   :  { %2567 = vmatpush.bf16.msra.mxu0 %v4740_v41  ;;  %v2341_v40 = vpop.f32.mrf.mxu2  ;;  %v5160_v41 = vor.u32 %v6459_v25, %v5157_v26  ;;  %v5720_v25 = vor.u32 %v6599_v12, %v5717_v15  ;;  %v6514_v26 = vld [vmem:[#allocation4 + $0x5ac] sm:$0xf]  ;;  %v5317_v3 = vld [vmem:[#allocation4 + $0x544] sm:$0xf0]  ;;  %v561_v12 = vperm.slane %v7029_v5, 1 }
 0x100   :  { %2580 = vmatpush.bf16.msra.mxu1 %v4900_v39  ;;  %v6454_v39 = vld [vmem:[#allocation4 + $0x3cc] sm:$0xf]  ;;  %v2354_v44 = vpop.f32.mrf.mxu3  ;;  %v6509_v40 = vld [vmem:[#allocation4 + $0x584] sm:$0xf]  ;;  %v5320_v15 = vor.u32 %v6499_v2, %v5317_v3  ;;  %v4923_v2 = vld [vmem:[#allocation4 + $0x218] sm:$0xf] }
 0x101   :  { %2593 = vmatpush.bf16.msra.mxu2 %v5060_v43  ;;  %v5137_v43 = vld [vmem:[#allocation4 + $0x3dc] sm:$0xf0]  ;;  %v5517_v44 = vld [vmem:[#allocation4 + $0x6d4] sm:$0xf0] }
 0x102   :  { %2606 = vmatpush.bf16.msra.mxu3 %v5220_v49  ;;  %v5597_v49 = vld [vmem:[#allocation4 + $0x774] sm:$0xf0]  ;;  %v5520_v50 = vor.u32 %v6549_v42, %v5517_v44  ;;  %v6452_v42 = vld [vmem:[#allocation4 + $0x3b8] sm:$0xf0] }
 0x103   :  { %2568 = vmatpush.bf16.msra.mxu0 %v4720_v56  ;;  %v5140_v56 = vor.u32 %v6454_v39, %v5137_v43 }
 0x104   :  { %2581 = vmatpush.bf16.msra.mxu1 %v4880_v57  ;;  %v5440_v57 = vor.u32 %v6529_v45, %v5437_v46  ;;  %2797 = vrot.lane.b32.xlu1 %v7047_v31, %s9288_s17  ;;  %v6589_v45 = vld [vmem:[#allocation4 + $0x804] sm:$0xf]  ;;  %v5677_v46 = vld [vmem:[#allocation4 + $0x814] sm:$0xf0] }
 0x105   :  { %2594 = vmatpush.bf16.msra.mxu2 %v5040_v58  ;;  %v5600_v58 = vor.u32 %v6569_v47, %v5597_v49  ;;  %2793 = vrot.lane.b32.xlu0 %v7047_v31, %s9282_s6  ;;  %v6629_v47 = vld [vmem:[#allocation4 + $0x944] sm:$0xf]  ;;  %v5680_v51 = vor.u32 %v6589_v45, %v5677_v46  ;;  %v5283_v45 = vld [vmem:[#allocation4 + $0x4e8] sm:$0xf]  ;;  %v6492_v46 = vld [vmem:[#allocation4 + $0x4f8] sm:$0xf0] }
 0x106   :  { %2607 = vmatpush.bf16.msra.mxu3 %v5200_v63  ;;  %v5920_v63 = vor.u32 %v6649_v54, %v5917_v55  ;;  %v6544_v54 = vld [vmem:[#allocation4 + $0x69c] sm:$0xf] }
 0x107   :  { %2569 = vmatpush.bf16.msra.mxu0 %v4700_v6  ;;  %v5740_v6 = vor.u32 %v6604_v27, %v5737_v1 }
 0x108   :  { %2582 = vmatpush.bf16.msra.mxu1 %v4860_v7  ;;  %v5397_v7 = vld [vmem:[#allocation4 + $0x5e4] sm:$0xf0] }
 0x109   :  { %2595 = vmatpush.bf16.msra.mxu2 %v5020_v8  ;;  %v6559_v8 = vld [vmem:[#allocation4 + $0x714] sm:$0xf]  ;;  %v5400_v23 = vor.u32 %v6519_v33, %v5397_v7  ;;  %v5477_v33 = vld [vmem:[#allocation4 + $0x684] sm:$0xf0] }
 0x10a   :  { %2608 = vmatpush.bf16.msra.mxu3 %v5180_v20  ;;  %v6639_v20 = vld [vmem:[#allocation4 + $0x994] sm:$0xf]  ;;  %v5560_v24 = vor.u32 %v6559_v8, %v5557_v11  ;;  %v5637_v8 = vld [vmem:[#allocation4 + $0x7c4] sm:$0xf0] }
 0x10b   :  { %2570 = vmatpush.bf16.msra.mxu0 %v4680_v29  ;;  %v5377_v29 = vld [vmem:[#allocation4 + $0x5bc] sm:$0xf0]  ;;  %v5880_v13 = vor.u32 %v6639_v20, %v5877_v21  ;;  %v6579_v7 = vld [vmem:[#allocation4 + $0x7b4] sm:$0xf]  ;;  %v5797_v11 = vld [vmem:[#allocation4 + $0x904] sm:$0xf0] }
 0x10c   :  { %2583 = vmatpush.bf16.msra.mxu1 %v4840_v37  ;;  %v6594_v37 = vld [vmem:[#allocation4 + $0x82c] sm:$0xf]  ;;  %v5297_v21 = vld [vmem:[#allocation4 + $0x51c] sm:$0xf0] }
 0x10d   :  { %2596 = vmatpush.bf16.msra.mxu2 %v5000_v38  ;;  %v5697_v38 = vld [vmem:[#allocation4 + $0x83c] sm:$0xf0]  ;;  %v6494_v20 = vld [vmem:[#allocation4 + $0x50c] sm:$0xf] }
 0x10e   :  { %2609 = vmatpush.bf16.msra.mxu3 %v5160_v41  ;;  %v5700_v17 = vor.u32 %v6594_v37, %v5697_v38  ;;  %v5357_v41 = vld [vmem:[#allocation4 + $0x594] sm:$0xf0]  ;;  %v6614_v37 = vld [vmem:[#allocation4 + $0x8cc] sm:$0xf]  ;;  %v5777_v38 = vld [vmem:[#allocation4 + $0x8dc] sm:$0xf0] }
 0x10f   :  { %2571 = vmatpush.bf16.msra.mxu0 %v4660_v48  ;;  %v7061_v16 = vpop.f32.mrf.mxu0  ;;  %v5837_v48 = vld [vmem:[#allocation4 + $0x954] sm:$0xf0]  ;;  %v5360_v49 = vor.u32 %v6509_v40, %v5357_v41  ;;  %v6412_v40 = vld [vmem:[#allocation4 + $0x278] sm:$0xf0]  ;;  %v5123_v41 = vld [vmem:[#allocation4 + $0x3a8] sm:$0xf] }
 0x110   :  { %2584 = vmatpush.bf16.msra.mxu1 %v4820_v52  ;;  %v7063_v39 = vpop.f32.mrf.mxu1  ;;  %v6504_v52 = vld [vmem:[#allocation4 + $0x55c] sm:$0xf]  ;;  %v2366_v5 = vadd.f32 %v7061_v16, %v561_v12  ;;  %v6357_v12 = vld [vmem:[#allocation4 + $0xc0] sm:$0xf0] }
 0x111   :  { %2597 = vmatpush.bf16.msra.mxu2 %v4980_v53  ;;  %v5337_v53 = vld [vmem:[#allocation4 + $0x56c] sm:$0xf0] }
 0x112   :  { %2610 = vmatpush.bf16.msra.mxu3 %v5140_v56  ;;  %2572 = vmatmul.bf16.vlgmr.msra.gmra.mxu0 %v7020_v34  ;;  %v5857_v34 = vld [vmem:[#allocation4 + $0x97c] sm:$0xf0]  ;;  %v5840_v56 = vor.u32 %v6629_v47, %v5837_v48  ;;  %v5780_v47 = vor.u32 %v6614_v37, %v5777_v38  ;;  %v4883_v37 = vld [vmem:[#allocation4 + $0x1c8] sm:$0xf] }
 0x113   :  { %2616 = vmatpush.bf16.msrb.mxu0 %v5440_v57  ;;  %2585 = vmatmul.bf16.vlgmr.msra.gmra.mxu1 %v7026_v36  ;;  %v5860_v43 = vor.u32 %v6634_v14, %v5857_v34  ;;  %v5497_v57 = vld [vmem:[#allocation4 + $0x6ac] sm:$0xf0]  ;;  %v4803_v34 = vld [vmem:[#allocation4 + $0x128] sm:$0xf] }
 0x114   :  { %2629 = vmatpush.bf16.msrb.mxu1 %v5600_v58  ;;  %2598 = vmatmul.bf16.vlgmr.msra.gmra.mxu2 %v7017_v28  ;;  %v5537_v28 = vld [vmem:[#allocation4 + $0x6fc] sm:$0xf0]  ;;  %v6584_v58 = vld [vmem:[#allocation4 + $0x7dc] sm:$0xf]  ;;  %v5500_v27 = vor.u32 %v6544_v54, %v5497_v57  ;;  %v5284_v54 = vor.u32 %v6492_v46, %v5283_v45  ;;  %v6347_v45 = vld [vmem:[#allocation4 + $0x70] sm:$0xf0] }
 0x115   :  { %2642 = vmatpush.bf16.msrb.mxu2 %v5760_v59  ;;  %2611 = vmatmul.bf16.vlgmr.msra.gmra.mxu3 %v7023_v35  ;;  %v5380_v35 = vor.u32 %v6514_v26, %v5377_v29  ;;  %v5540_v36 = vor.u32 %v6554_v32, %v5537_v28  ;;  %v5657_v59 = vld [vmem:[#allocation4 + $0x7ec] sm:$0xf0]  ;;  %v5457_v26 = vld [vmem:[#allocation4 + $0x65c] sm:$0xf0]  ;;  %v6574_v29 = vld [vmem:[#allocation4 + $0x78c] sm:$0xf] }
 0x116   :  { %2655 = vmatpush.bf16.msrb.mxu3 %v5920_v63  ;;  %v5340_v63 = vor.u32 %v6504_v52, %v5337_v53  ;;  %v5660_v1 = vor.u32 %v6584_v58, %v5657_v59  ;;  %v5617_v28 = vld [vmem:[#allocation4 + $0x79c] sm:$0xf0]  ;;  %v6367_v52 = vld [vmem:[#allocation4 + $0x110] sm:$0xf0] }
 0x117   :  { %2617 = vmatpush.bf16.msrb.mxu0 %v5420_v4  ;;  %v7065_v55 = vpop.f32.mrf.mxu2  ;;  %v2367_v0 = vpop.f32.mrf.mxu0  ;;  %v6539_v4 = vld [vmem:[#allocation4 + $0x674] sm:$0xf]  ;;  %v5620_v44 = vor.u32 %v6574_v29, %v5617_v28  ;;  %v4943_v53 = vld [vmem:[#allocation4 + $0x240] sm:$0xf]  ;;  %v6352_v28 = vld [vmem:[#allocation4 + $0x98] sm:$0xf0] }
 0x118   :  { %2630 = vmatpush.bf16.msrb.mxu1 %v5580_v30  ;;  %v7067_v60 = vpop.f32.mrf.mxu3  ;;  %v2380_v30 = vpop.f32.mrf.mxu1  ;;  %v5103_v57 = vld [vmem:[#allocation4 + $0x380] sm:$0xf]  ;;  %v6447_v58 = vld [vmem:[#allocation4 + $0x390] sm:$0xf0] }
 0x119   :  { %2643 = vmatpush.bf16.msrb.mxu2 %v5740_v6  ;;  %v5820_v6 = vor.u32 %v6624_v61, %v5817_v62  ;;  %v5263_v59 = vld [vmem:[#allocation4 + $0x4c0] sm:$0xf]  ;;  %v6487_v61 = vld [vmem:[#allocation4 + $0x4d0] sm:$0xf0]  ;;  %v5104_v0 = vor.u32 %v6447_v58, %v5103_v57  ;;  %v5083_v30 = vld [vmem:[#allocation4 + $0x358] sm:$0xf] }
 0x11a   :  { %2656 = vmatpush.bf16.msrb.mxu3 %v5900_v10  ;;  %v6619_v10 = vld [vmem:[#allocation4 + $0x8f4] sm:$0xf]  ;;  %v5264_v3 = vor.u32 %v6487_v61, %v5263_v59  ;;  %v4863_v46 = vld [vmem:[#allocation4 + $0x1a0] sm:$0xf]  ;;  %v4683_v57 = vld [vmem:[#allocation4 + $0x38] sm:$0xf] }
 0x11b   :  { %2618 = vmatpush.bf16.msrb.mxu0 %v5400_v23  ;;  %v5480_v23 = vor.u32 %v6539_v4, %v5477_v33  ;;  %v6402_v4 = vld [vmem:[#allocation4 + $0x228] sm:$0xf0]  ;;  %v5243_v33 = vld [vmem:[#allocation4 + $0x498] sm:$0xf] }
 0x11c   :  { %2631 = vmatpush.bf16.msrb.mxu1 %v5560_v24  ;;  %v5640_v24 = vor.u32 %v6579_v7, %v5637_v8  ;;  %v6482_v7 = vld [vmem:[#allocation4 + $0x4a8] sm:$0xf0] }
 0x11d   :  { %2644 = vmatpush.bf16.msrb.mxu2 %v5720_v25  ;;  %v6534_v25 = vld [vmem:[#allocation4 + $0x64c] sm:$0xf] }
 0x11e   :  { %2657 = vmatpush.bf16.msrb.mxu3 %v5880_v13  ;;  %v5800_v13 = vor.u32 %v6619_v10, %v5797_v11  ;;  %v4924_v10 = vor.u32 %v6402_v4, %v4923_v2  ;;  %v4743_v11 = vld [vmem:[#allocation4 + $0xb0] sm:$0xf]  ;;  %v6422_v2 = vld [vmem:[#allocation4 + $0x2c8] sm:$0xf0] }
 0x11f   :  { %2619 = vmatpush.bf16.msrb.mxu0 %v5380_v35  ;;  %v2393_v32 = vpop.f32.mrf.mxu2  ;;  %v6372_v35 = vld [vmem:[#allocation4 + $0x138] sm:$0xf0]  ;;  %v6462_v4 = vld [vmem:[#allocation4 + $0x408] sm:$0xf0] }
 0x120   :  { %2632 = vmatpush.bf16.msrb.mxu1 %v5540_v36  ;;  %v2406_v14 = vpop.f32.mrf.mxu3  ;;  %v4963_v36 = vld [vmem:[#allocation4 + $0x268] sm:$0xf]  ;;  %v4804_v48 = vor.u32 %v6372_v35, %v4803_v34  ;;  %v6432_v34 = vld [vmem:[#allocation4 + $0x318] sm:$0xf0] }
 0x121   :  { %2645 = vmatpush.bf16.msrb.mxu2 %v5700_v17  ;;  %v5300_v17 = vor.u32 %v6494_v20, %v5297_v21  ;;  %v4964_v16 = vor.u32 %v6412_v40, %v4963_v36  ;;  %v5244_v20 = vor.u32 %v6482_v7, %v5243_v33  ;;  %v5063_v21 = vld [vmem:[#allocation4 + $0x330] sm:$0xf]  ;;  %v6392_v14 = vld [vmem:[#allocation4 + $0x1d8] sm:$0xf0]  ;;  %v5203_v36 = vld [vmem:[#allocation4 + $0x448] sm:$0xf] }
 0x122   :  { %2658 = vmatpush.bf16.msrb.mxu3 %v5860_v43  ;;  %v5460_v43 = vor.u32 %v6534_v25, %v5457_v26  ;;  %v4744_v25 = vor.u32 %v6357_v12, %v4743_v11  ;;  %v4663_v33 = vld [vmem:[#allocation4 + $0x10] sm:$0xf]  ;;  %v6337_v7 = vld [vmem:[#allocation4 + $0x20] sm:$0xf0] }
 0x123   :  { %2620 = vmatpush.bf16.msrb.mxu0 %v5360_v49  ;;  %v2379_v49 = vadd.f32 %v7063_v39, %v2366_v5  ;;  %v5043_v5 = vld [vmem:[#allocation4 + $0x308] sm:$0xf]  ;;  %v4983_v11 = vld [vmem:[#allocation4 + $0x290] sm:$0xf] }
 0x124   :  { %2633 = vmatpush.bf16.msrb.mxu1 %v5520_v50  ;;  %v5124_v50 = vor.u32 %v6452_v42, %v5123_v41  ;;  %v4884_v41 = vor.u32 %v6392_v14, %v4883_v37  ;;  %v5044_v42 = vor.u32 %v6432_v34, %v5043_v5  ;;  %v5923_v37 = vld [vmem:[#allocation4 + $0x9e8] sm:$0xf] }
 0x125   :  { %2646 = vmatpush.bf16.msrb.mxu2 %v5680_v51  ;;  %v4783_v51 = vld [vmem:[#allocation4 + $0x100] sm:$0xf]  ;;  %v2392_v39 = vadd.f32 %v7065_v55, %v2379_v49 }
 0x126   :  { %2659 = vmatpush.bf16.msrb.mxu3 %v5840_v56  ;;  %v6407_v56 = vld [vmem:[#allocation4 + $0x250] sm:$0xf0]  ;;  %v4784_v62 = vor.u32 %v6367_v52, %v4783_v51  ;;  %v5183_v52 = vld [vmem:[#allocation4 + $0x420] sm:$0xf] }
 0x127   :  { %2621 = vmatpush.bf16.msrb.mxu0 %v5340_v63  ;;  %v4944_v63 = vor.u32 %v6407_v56, %v4943_v53  ;;  %v2405_v8 = vadd.f32 %v7067_v60, %v2392_v39  ;;  %v6427_v51 = vld [vmem:[#allocation4 + $0x2f0] sm:$0xf0]  ;;  %v4843_v39 = vld [vmem:[#allocation4 + $0x178] sm:$0xf] }
 0x128   :  { %2634 = vmatpush.bf16.msrb.mxu1 %v5500_v27  ;;  %v4763_v27 = vld [vmem:[#allocation4 + $0xd8] sm:$0xf]  ;;  %v6467_v53 = vld [vmem:[#allocation4 + $0x430] sm:$0xf0] }
 0x129   :  { %2647 = vmatpush.bf16.msrb.mxu2 %v5660_v1  ;;  %v6362_v1 = vld [vmem:[#allocation4 + $0xe8] sm:$0xf0] }
 0x12a   :  { %2660 = vmatpush.bf16.msrb.mxu3 %v5820_v6  ;;  %v6442_v6 = vld [vmem:[#allocation4 + $0x368] sm:$0xf0]  ;;  %v4764_v55 = vor.u32 %v6362_v1, %v4763_v27  ;;  %v5184_v27 = vor.u32 %v6467_v53, %v5183_v52  ;;  %v5003_v1 = vld [vmem:[#allocation4 + $0x2b8] sm:$0xf] }
 0x12b   :  { %2622 = vmatpush.bf16.msrb.mxu0 %v5320_v15  ;;  %v4903_v15 = vld [vmem:[#allocation4 + $0x1f0] sm:$0xf] }
 0x12c   :  { %2635 = vmatpush.bf16.msrb.mxu1 %v5480_v23  ;;  %v5223_v23 = vld [vmem:[#allocation4 + $0x470] sm:$0xf] }
 0x12d   :  { %2648 = vmatpush.bf16.msrb.mxu2 %v5640_v24  ;;  %v6477_v24 = vld [vmem:[#allocation4 + $0x480] sm:$0xf0]  ;;  %v6682_v53 = vld [vmem:[#allocation1 + $0x12] sm:$0xff] }
 0x12e   :  { %2661 = vmatpush.bf16.msrb.mxu3 %v5800_v13  ;;  %v4723_v13 = vld [vmem:[#allocation4 + $0x88] sm:$0xf]  ;;  %v5224_v38 = vor.u32 %v6477_v24, %v5223_v23 }
 0x12f   :  { %2623 = vmatpush.bf16.msrb.mxu0 %v5300_v17  ;;  %v6472_v17 = vld [vmem:[#allocation4 + $0x458] sm:$0xf0]  ;;  %v4724_v40 = vor.u32 %v6352_v28, %v4723_v13  ;;  %v5443_v24 = vld [vmem:[#allocation4 + $0x628] sm:$0xf] }
 0x130   :  { %2636 = vmatpush.bf16.msrb.mxu1 %v5460_v43  ;;  %v2430_v32 = vpop.f32.mrf.mxu1 }
 0x131   :  { %2649 = vmatpush.bf16.msrb.mxu2 %v5620_v44  ;;  %v4703_v44 = vld [vmem:[#allocation4 + $0x60] sm:$0xf] }
 0x132   :  { %2662 = vmatpush.bf16.msrb.mxu3 %v5780_v47  ;;  %2624 = vmatmul.bf16.vlgmr.msrb.gmra.mxu0 %v7037_v18  ;;  %v6397_v18 = vld [vmem:[#allocation4 + $0x200] sm:$0xf0]  ;;  %v5204_v47 = vor.u32 %v6472_v17, %v5203_v36  ;;  %v4704_v56 = vor.u32 %v6347_v45, %v4703_v44  ;;  %v5423_v36 = vld [vmem:[#allocation4 + $0x600] sm:$0xf]  ;;  %v6527_v17 = vld [vmem:[#allocation4 + $0x610] sm:$0xf0] }
 0x133   :  { %2668 = vmatpush.bf16.msra.mxu0 %v4804_v48  ;;  %2637 = vmatmul.bf16.vlgmr.msrb.gmra.mxu1 %v7043_v22  ;;  %v2417_v22 = vpop.f32.mrf.mxu0  ;;  %v4904_v60 = vor.u32 %v6397_v18, %v4903_v15  ;;  %v6417_v18 = vld [vmem:[#allocation4 + $0x2a0] sm:$0xf0]  ;;  %v6607_v44 = vld [vmem:[#allocation4 + $0x890] sm:$0xf0]  ;;  %v5903_v45 = vld [vmem:[#allocation4 + $0x9c0] sm:$0xf] }
 0x134   :  { %2681 = vmatpush.bf16.msra.mxu1 %v4964_v16  ;;  %2650 = vmatmul.bf16.vlgmr.msrb.gmra.mxu2 %v7034_v9  ;;  %v5084_v9 = vor.u32 %v6442_v6, %v5083_v30  ;;  %v2418_v29 = vadd.f32 %v2417_v22, %v2405_v8  ;;  %v6387_v16 = vld [vmem:[#allocation4 + $0x1b0] sm:$0xf0]  ;;  %v5004_v8 = vor.u32 %v6422_v2, %v5003_v1  ;;  %v5603_v22 = vld [vmem:[#allocation4 + $0x768] sm:$0xf]  ;;  %v5383_v2 = vld [vmem:[#allocation4 + $0x5b0] sm:$0xf] }
 0x135   :  { %2694 = vmatpush.bf16.msra.mxu2 %v5124_v50  ;;  %2663 = vmatmul.bf16.vlgmr.msrb.gmra.mxu3 %v7040_v19  ;;  %v6437_v19 = vld [vmem:[#allocation4 + $0x340] sm:$0xf0]  ;;  %v5023_v50 = vld [vmem:[#allocation4 + $0x2e0] sm:$0xf]  ;;  %v4864_v59 = vor.u32 %v6387_v16, %v4863_v46  ;;  %v4984_v28 = vor.u32 %v6417_v18, %v4983_v11  ;;  %v6647_v46 = vld [vmem:[#allocation4 + $0x9d0] sm:$0xf0] }
 0x136   :  { %2707 = vmatpush.bf16.msra.mxu3 %v5284_v54  ;;  %v5064_v26 = vor.u32 %v6437_v19, %v5063_v21  ;;  %v2431_v35 = vadd.f32 %v2430_v32, %v2418_v29  ;;  %v5024_v61 = vor.u32 %v6427_v51, %v5023_v50  ;;  %v5143_v21 = vld [vmem:[#allocation4 + $0x3d0] sm:$0xf]  ;;  %v6457_v19 = vld [vmem:[#allocation4 + $0x3e0] sm:$0xf0]  ;;  %v5763_v29 = vld [vmem:[#allocation4 + $0x8a8] sm:$0xf]  ;;  %v5904_v52 = vor.u32 %v6647_v46, %v5903_v45 }
 0x137   :  { %2669 = vmatpush.bf16.msra.mxu0 %v4784_v62  ;;  %v2443_v43 = vpop.f32.mrf.mxu2  ;;  %v6342_v62 = vld [vmem:[#allocation4 + $0x48] sm:$0xf0]  ;;  %v6612_v32 = vld [vmem:[#allocation4 + $0x8b8] sm:$0xf0]  ;;  %v5144_v14 = vor.u32 %v6457_v19, %v5143_v21  ;;  %v5403_v16 = vld [vmem:[#allocation4 + $0x5d8] sm:$0xf] }
 0x138   :  { %2682 = vmatpush.bf16.msra.mxu1 %v4944_v63  ;;  %v2444_v48 = vadd.f32 %v2443_v43, %v2431_v35  ;;  %v2456_v49 = vpop.f32.mrf.mxu3  ;;  %v6382_v63 = vld [vmem:[#allocation4 + $0x188] sm:$0xf0]  ;;  %v4684_v6 = vor.u32 %v6342_v62, %v4683_v57  ;;  %v5764_v35 = vor.u32 %v6612_v32, %v5763_v29  ;;  %v5743_v43 = vld [vmem:[#allocation4 + $0x880] sm:$0xf]  ;;  %v5563_v51 = vld [vmem:[#allocation4 + $0x718] sm:$0xf] }
 0x139   :  { %2695 = vmatpush.bf16.msra.mxu2 %v5104_v0  ;;  %v2432_v0 = vpop.f32.mrf.mxu1  ;;  %v6522_v50 = vld [vmem:[#allocation4 + $0x5e8] sm:$0xf0]  ;;  %v5723_v57 = vld [vmem:[#allocation4 + $0x858] sm:$0xf]  ;;  %v6512_v18 = vld [vmem:[#allocation4 + $0x598] sm:$0xf0] }
 0x13a   :  { %2708 = vmatpush.bf16.msra.mxu3 %v5264_v3  ;;  %v7078_v54 = vadd.f32 %v2456_v49, %v2444_v48  ;;  %v5163_v3 = vld [vmem:[#allocation4 + $0x3f8] sm:$0xf]  ;;  %v5744_v49 = vor.u32 %v6607_v44, %v5743_v43  ;;  %v6685_v0 = vld [vmem:[#allocation1 + $0x9] sm:$0xff] }
 0x13b   :  { %2670 = vmatpush.bf16.msra.mxu0 %v4764_v55  ;;  %v2419_v58 = vpop.f32.mrf.mxu0  ;;  %v4844_v55 = vor.u32 %v6382_v63, %v4843_v39  ;;  %v6683_v62 = vld [vmem:[#allocation1] sm:$0xff]  ;;  %v5404_v63 = vor.u32 %v6522_v50, %v5403_v16  ;;  %v5523_v21 = vld [vmem:[#allocation4 + $0x6c8] sm:$0xf]  ;;  %v6542_v50 = vld [vmem:[#allocation4 + $0x688] sm:$0xf0] }
 0x13c   :  { %2683 = vmatpush.bf16.msra.mxu1 %v4924_v10  ;;  %2799 = vrot.lane.b32.xlu2 %v7078_v54, %s9284_s11  ;;  %v2776_v30 = vrot.slane %v7078_v54, 6  ;;  %v4823_v10 = vld [vmem:[#allocation4 + $0x150] sm:$0xf]  ;;  %v6602_v58 = vld [vmem:[#allocation4 + $0x868] sm:$0xf0] }
 0x13d   :  { %2696 = vmatpush.bf16.msra.mxu2 %v5084_v9  ;;  %2803 = vrot.lane.b32.xlu0 %v7078_v54, %s9286_s0  ;;  %v6377_v9 = vld [vmem:[#allocation4 + $0x160] sm:$0xf0]  ;;  %v6684_v39 = vld [vmem:[#allocation1 + $0x1b] sm:$0xff]  ;;  %v5724_v1 = vor.u32 %v6602_v58, %v5723_v57 }
 0x13e   :  { %2709 = vmatpush.bf16.msra.mxu3 %v5244_v20  ;;  %2805 = vrot.lane.b32.xlu1 %v7078_v54, %s9288_s17  ;;  %v7089_v15 = vsel %vm2779_vm0, %v7047_v31, %v2776_v30  ;;  %v5164_v20 = vor.u32 %v6462_v4, %v5163_v3  ;;  %v4824_v13 = vor.u32 %v6377_v9, %v4823_v10  ;;  %v6517_v3 = vld [vmem:[#allocation4 + $0x5c0] sm:$0xf0]  ;;  %v5543_v4 = vld [vmem:[#allocation4 + $0x6f0] sm:$0xf]  ;;  %v5323_v46 = vld [vmem:[#allocation4 + $0x538] sm:$0xf] }
 0x13f   :  { %2671 = vmatpush.bf16.msra.mxu0 %v4744_v25  ;;  %v2445_v12 = vpop.f32.mrf.mxu2  ;;  %v6532_v25 = vld [vmem:[#allocation4 + $0x638] sm:$0xf0]  ;;  %v5384_v10 = vor.u32 %v6517_v3, %v5383_v2  ;;  %v7099_v57 = vld [vmem:[#allocation7] sm:$0x1f]  ;;  %v5623_v3 = vld [vmem:[#allocation4 + $0x790] sm:$0xf] }
 0x140   :  { %2684 = vmatpush.bf16.msra.mxu1 %v4904_v60  ;;  %v2458_v23 = vpop.f32.mrf.mxu3  ;;  %v4664_v60 = vor.u32 %v6337_v7, %v4663_v33  ;;  %v5444_v5 = vor.u32 %v6532_v25, %v5443_v24  ;;  %v5703_v33 = vld [vmem:[#allocation4 + $0x830] sm:$0xf]  ;;  %v6597_v7 = vld [vmem:[#allocation4 + $0x840] sm:$0xf0]  ;;  %v6552_v24 = vld [vmem:[#allocation4 + $0x6d8] sm:$0xf0] }
 0x141   :  { %2697 = vmatpush.bf16.msra.mxu2 %v5064_v26  ;;  %v6572_v26 = vld [vmem:[#allocation4 + $0x778] sm:$0xf0]  ;;  %v5704_v12 = vor.u32 %v6597_v7, %v5703_v33  ;;  %v5683_v25 = vld [vmem:[#allocation4 + $0x808] sm:$0xf]  ;;  %v5524_v32 = vor.u32 %v6552_v24, %v5523_v21  ;;  %v562_v58 = vperm.slane %v7099_v57, 2  ;;  %v6689_v21 = vld [vmem:[#allocation1 + $0x36] sm:$0xff] }
 0x142   :  { %2710 = vmatpush.bf16.msra.mxu3 %v5224_v38  ;;  %v6652_v38 = vld [vmem:[#allocation4 + $0x9f8] sm:$0xf0]  ;;  %v5604_v34 = vor.u32 %v6572_v26, %v5603_v22  ;;  %v6537_v2 = vld [vmem:[#allocation4 + $0x660] sm:$0xf0]  ;;  %v5783_v33 = vld [vmem:[#allocation4 + $0x8d0] sm:$0xf] }
 0x143   :  { %2672 = vmatpush.bf16.msra.mxu0 %v4724_v40  ;;  %v5583_v40 = vld [vmem:[#allocation4 + $0x740] sm:$0xf]  ;;  %v6592_v22 = vld [vmem:[#allocation4 + $0x818] sm:$0xf0]  ;;  %v6617_v7 = vld [vmem:[#allocation4 + $0x8e0] sm:$0xf0] }
 0x144   :  { %2685 = vmatpush.bf16.msra.mxu1 %v4884_v41  ;;  %2801 = vrot.lane.b32.xlu2 %v7078_v54, %s9282_s6  ;;  %v5924_v41 = vor.u32 %v6652_v38, %v5923_v37  ;;  %v6632_v26 = vld [vmem:[#allocation4 + $0x958] sm:$0xf0]  ;;  %v6507_v37 = vld [vmem:[#allocation4 + $0x570] sm:$0xf0]  ;;  %v5503_v38 = vld [vmem:[#allocation4 + $0x6a0] sm:$0xf] }
 0x145   :  { %2698 = vmatpush.bf16.msra.mxu2 %v5044_v42  ;;  %v6567_v42 = vld [vmem:[#allocation4 + $0x750] sm:$0xf0]  ;;  %s7165_s17 = sld [smem:[#allocation9 + $0x33]] }
 0x146   :  { %2711 = vmatpush.bf16.msra.mxu3 %v5204_v47  ;;  %v5424_v47 = vor.u32 %v6527_v17, %v5423_v36  ;;  %v5584_v48 = vor.u32 %v6567_v42, %v5583_v40  ;;  %v6587_v36 = vld [vmem:[#allocation4 + $0x7f0] sm:$0xf0]  ;;  %v5823_v40 = vld [vmem:[#allocation4 + $0x920] sm:$0xf] }
 0x147   :  { %2673 = vmatpush.bf16.msra.mxu0 %v4704_v56  ;;  %v6562_v56 = vld [vmem:[#allocation4 + $0x728] sm:$0xf0] }
 0x148   :  { %2686 = vmatpush.bf16.msra.mxu1 %v4864_v59  ;;  %v5883_v59 = vld [vmem:[#allocation4 + $0x998] sm:$0xf] }
 0x149   :  { %2699 = vmatpush.bf16.msra.mxu2 %v5024_v61  ;;  %v6642_v61 = vld [vmem:[#allocation4 + $0x9a8] sm:$0xf0] }
 0x14a   :  { %2712 = vmatpush.bf16.msra.mxu3 %v5184_v27  ;;  %v5564_v27 = vor.u32 %v6562_v56, %v5563_v51  ;;  %v5884_v30 = vor.u32 %v6642_v61, %v5883_v59  ;;  %v5643_v51 = vld [vmem:[#allocation4 + $0x7b8] sm:$0xf]  ;;  %v6622_v56 = vld [vmem:[#allocation4 + $0x908] sm:$0xf0] }
 0x14b   :  { %2674 = vmatpush.bf16.msra.mxu0 %v4684_v6  ;;  %v6557_v6 = vld [vmem:[#allocation4 + $0x700] sm:$0xf0] }
 0x14c   :  { %2687 = vmatpush.bf16.msra.mxu1 %v4844_v55  ;;  %v5863_v55 = vld [vmem:[#allocation4 + $0x970] sm:$0xf]  ;;  %v5544_v11 = vor.u32 %v6557_v6, %v5543_v4  ;;  %v6577_v4 = vld [vmem:[#allocation4 + $0x7a0] sm:$0xf0] }
 0x14d   :  { %2700 = vmatpush.bf16.msra.mxu2 %v5004_v8  ;;  %v6637_v8 = vld [vmem:[#allocation4 + $0x980] sm:$0xf0] }
 0x14e   :  { %2713 = vmatpush.bf16.msra.mxu3 %v5164_v20  ;;  %v5363_v20 = vld [vmem:[#allocation4 + $0x588] sm:$0xf]  ;;  %v5864_v23 = vor.u32 %v6637_v8, %v5863_v55 }
 0x14f   :  { %2675 = vmatpush.bf16.msra.mxu0 %v4664_v60  ;;  %v7093_v9 = vpop.f32.mrf.mxu0  ;;  %v5843_v60 = vld [vmem:[#allocation4 + $0x948] sm:$0xf]  ;;  %v5364_v29 = vor.u32 %v6512_v18, %v5363_v20 }
 0x150   :  { %2688 = vmatpush.bf16.msra.mxu1 %v4824_v13  ;;  %v7095_v19 = vpop.f32.mrf.mxu1  ;;  %v5684_v13 = vor.u32 %v6592_v22, %v5683_v25  ;;  %v2470_v6 = vadd.f32 %v7093_v9, %v562_v58  ;;  %v6687_v9 = vld [vmem:[#allocation1 + $0x24] sm:$0xff]  ;;  %v6688_v18 = vld [vmem:[#allocation1 + $0x2d] sm:$0xff] }
 0x151   :  { %2701 = vmatpush.bf16.msra.mxu2 %v4984_v28  ;;  %v5343_v28 = vld [vmem:[#allocation4 + $0x560] sm:$0xf] }
 0x152   :  { %2714 = vmatpush.bf16.msra.mxu3 %v5144_v14  ;;  %2676 = vmatmul.bf16.vlgmr.msra.gmra.mxu0 %v6683_v62  ;;  %v5344_v42 = vor.u32 %v6507_v37, %v5343_v28 }
 0x153   :  { %2720 = vmatpush.bf16.msrb.mxu0 %v5444_v5  ;;  %2689 = vmatmul.bf16.vlgmr.msra.gmra.mxu1 %v6685_v0  ;;  %v5844_v5 = vor.u32 %v6632_v26, %v5843_v60  ;;  %v5463_v0 = vld [vmem:[#allocation4 + $0x650] sm:$0xf] }
 0x154   :  { %2733 = vmatpush.bf16.msrb.mxu1 %v5604_v34  ;;  %2702 = vmatmul.bf16.vlgmr.msra.gmra.mxu2 %v6682_v53  ;;  %v6547_v34 = vld [vmem:[#allocation4 + $0x6b0] sm:$0xf0]  ;;  %v5803_v53 = vld [vmem:[#allocation4 + $0x8f8] sm:$0xf]  ;;  %v5464_v8 = vor.u32 %v6537_v2, %v5463_v0 }
 0x155   :  { %2746 = vmatpush.bf16.msrb.mxu2 %v5764_v35  ;;  %2715 = vmatmul.bf16.vlgmr.msra.gmra.mxu3 %v6684_v39  ;;  %v5663_v35 = vld [vmem:[#allocation4 + $0x7e0] sm:$0xf]  ;;  %v5504_v44 = vor.u32 %v6547_v34, %v5503_v38  ;;  %v5303_v39 = vld [vmem:[#allocation4 + $0x510] sm:$0xf]  ;;  %v2842_v34 = vstv %s7104_s18  ;;  %s7190_s18 = sld [smem:[#allocation9 + $0x36]] }
 0x156   :  { %2759 = vmatpush.bf16.msrb.mxu3 %v5924_v41  ;;  %v6627_v41 = vld [vmem:[#allocation4 + $0x930] sm:$0xf0]  ;;  %v5664_v45 = vor.u32 %v6587_v36, %v5663_v35  ;;  %v2946_v35 = vstv %s7106_s19  ;;  %v2834_v36 = vstv %s7135_s29  ;;  %s7199_s19 = sld [smem:[#allocation9 + $0x4f]] }
 0x157   :  { %2721 = vmatpush.bf16.msrb.mxu0 %v5424_v47  ;;  %v2495_v14 = vpop.f32.mrf.mxu2  ;;  %v2471_v43 = vpop.f32.mrf.mxu0  ;;  %v6502_v47 = vld [vmem:[#allocation4 + $0x548] sm:$0xf0]  ;;  %v5824_v16 = vor.u32 %v6627_v41, %v5823_v40  ;;  %v3042_v40 = vstv %s7149_s15  ;;  %v3146_v41 = vstv %s7155_s7  ;;  %s7325_s29 = sld [smem:[#allocation9 + $0x21]] }
 0x158   :  { %2734 = vmatpush.bf16.msrb.mxu1 %v5584_v48  ;;  %v7097_v17 = vpop.f32.mrf.mxu3  ;;  %v5483_v48 = vld [vmem:[#allocation4 + $0x678] sm:$0xf]  ;;  %v5324_v59 = vor.u32 %v6502_v47, %v5323_v46  ;;  %v3154_v43 = vstv %s7110_s8  ;;  %v7193_v47 = vmul.f32 %v2842_v34, %v7047_v31  ;;  %s7216_s8 = sld [smem:[#allocation9 + $0x1e]] }
 0x159   :  { %2747 = vmatpush.bf16.msrb.mxu2 %v5744_v49  ;;  %v2484_v49 = vpop.f32.mrf.mxu1  ;;  %v5484_v61 = vor.u32 %v6542_v50, %v5483_v48  ;;  %v7196_v48 = vmul.f32 %v2946_v35, %v7047_v31  ;;  %s7333_s15 = sld [smem:[#allocation9 + $0x9]] }
 0x15a   :  { %2760 = vmatpush.bf16.msrb.mxu3 %v5904_v52  ;;  %v6582_v52 = vld [vmem:[#allocation4 + $0x7c8] sm:$0xf0]  ;;  %v2936_v49 = vstv %s7139_s4  ;;  %s7327_s4 = sld [smem:[#allocation9 + $0x3a]] }
 0x15b   :  { %2722 = vmatpush.bf16.msrb.mxu0 %v5404_v63  ;;  %v5644_v62 = vor.u32 %v6582_v52, %v5643_v51  ;;  %v6497_v63 = vld [vmem:[#allocation4 + $0x520] sm:$0xf0]  ;;  %v3040_v52 = vstv %s7143_s5  ;;  %s7331_s5 = sld [smem:[#allocation9 + $0x6c]] }
 0x15c   :  { %2735 = vmatpush.bf16.msrb.mxu1 %v5564_v27  ;;  %v5304_v55 = vor.u32 %v6497_v63, %v5303_v39  ;;  %v3046_v39 = vstv %s7165_s17  ;;  %v3150_v63 = vstv %s7169_s12  ;;  %s9422_s12 = sld [smem:[#allocation27_spill]] }
 0x15d   :  { %2748 = vmatpush.bf16.msrb.mxu2 %v5724_v1  ;;  %v5804_v1 = vor.u32 %v6622_v56, %v5803_v53  ;;  %v3144_v53 = vstv %s7153_s16  ;;  %s9423_s17 = sld [smem:[#allocation28_spill]] }
 0x15e   :  { %2761 = vmatpush.bf16.msrb.mxu3 %v5884_v30  ;;  %s7337_s16 = sld [smem:[#allocation9 + $0x22]] }
 0x15f   :  { %2723 = vmatpush.bf16.msrb.mxu0 %v5384_v10  ;;  %v2497_v27 = vpop.f32.mrf.mxu2  ;;  %v5624_v10 = vor.u32 %v6577_v4, %v5623_v3  ;;  %v2862_v3 = vstv %s7115_s22  ;;  %s7239_s22 = sld [smem:[#allocation9 + $0x1f]] }
 0x160   :  { %2736 = vmatpush.bf16.msrb.mxu1 %v5544_v11  ;;  %v2510_v30 = vpop.f32.mrf.mxu3  ;;  %v5784_v11 = vor.u32 %v6617_v7, %v5783_v33  ;;  %v3248_v27 = vstv %s7157_s9  ;;  %s7339_s7 = sld [smem:[#allocation9 + $0x3b]] }
 0x161   :  { %2749 = vmatpush.bf16.msrb.mxu2 %v5704_v12  ;;  %v2483_v12 = vadd.f32 %v7095_v19, %v2470_v6  ;;  %s7341_s9 = sld [smem:[#allocation9 + $0x54]] }
 0x162   :  { %2762 = vmatpush.bf16.msrb.mxu3 %v5864_v23  ;;  %v6690_v23 = vld [vmem:[#allocation1 + $0x3f] sm:$0xff] }
 0x163   :  { %2724 = vmatpush.bf16.msrb.mxu0 %v5364_v29  ;;  %v2496_v20 = vadd.f32 %v2495_v14, %v2483_v12 }
 0x164   :  { %2737 = vmatpush.bf16.msrb.mxu1 %v5524_v32 }
 0x165   :  { %2750 = vmatpush.bf16.msrb.mxu2 %v5684_v13  ;;  %v2509_v19 = vadd.f32 %v7097_v17, %v2496_v20  ;;  %v2938_v17 = vstv %s7141_s30  ;;  %v3155_v20 = vmul.f32 %v3154_v43, %v7047_v31  ;;  %s7329_s30 = sld [smem:[#allocation9 + $0x53]] }
 0x166   :  { %2763 = vmatpush.bf16.msrb.mxu3 %v5844_v5 }
 0x167   :  { %2725 = vmatpush.bf16.msrb.mxu0 %v5344_v42  ;;  %v3050_v42 = vstv %s7108_s20  ;;  %s7209_s20 = sld [smem:[#allocation9 + $0x5]] }
 0x168   :  { %2738 = vmatpush.bf16.msrb.mxu1 %v5504_v44  ;;  %v3258_v44 = vstv %s7112_s21  ;;  %v3051_v2 = vmul.f32 %v3050_v42, %v7047_v31  ;;  %s7231_s21 = sld [smem:[#allocation9 + $0x6]] }
 0x169   :  { %2751 = vmatpush.bf16.msrb.mxu2 %v5664_v45  ;;  %v2832_v45 = vstv %s7133_s28  ;;  %s7323_s28 = sld [smem:[#allocation9 + $0x8]] }
 0x16a   :  { %2764 = vmatpush.bf16.msrb.mxu3 %v5824_v16 }
 0x16b   :  { %2726 = vmatpush.bf16.msrb.mxu0 %v5324_v59 }
 0x16c   :  { %2739 = vmatpush.bf16.msrb.mxu1 %v5484_v61 }
 0x16d   :  { %2752 = vmatpush.bf16.msrb.mxu2 %v5644_v62 }
 0x16e   :  { %2765 = vmatpush.bf16.msrb.mxu3 %v5804_v1  ;;  %v7211_v0 = vpop.permute.xlu1 %2795  ;;  %v3254_v1 = vstv %s7171_s10  ;;  %s7221_s10 = sld [smem:[#allocation9 + $0x50]] }
 0x16f   :  { %2727 = vmatpush.bf16.msrb.mxu0 %v5304_v55  ;;  %v2521_v24 = vpop.f32.mrf.mxu0  ;;  %v2792_v5 = vpop.permute.xlu0 %2791 }
 0x170   :  { %2740 = vmatpush.bf16.msrb.mxu1 %v5464_v8  ;;  %v2522_v25 = vadd.f32 %v2521_v24, %v2509_v19  ;;  %v2534_v22 = vpop.f32.mrf.mxu1  ;;  %v2835_v16 = vmul.f32 %v2834_v36, %v2792_v5  ;;  %v2939_v50 = vmul.f32 %v2938_v17, %v2792_v5  ;;  %v3043_v51 = vmul.f32 %v3042_v40, %v2792_v5 }
 0x171   :  { %2753 = vmatpush.bf16.msrb.mxu2 %v5624_v10  ;;  %v3147_v56 = vmul.f32 %v3146_v41, %v2792_v5  ;;  %v3070_v19 = vstv %s7119_s1  ;;  %v3174_v24 = vstv %s7121_s24  ;;  %v2954_v36 = vstv %s7183_s3  ;;  %s9425_s1 = smov 1   ;;  %s9426_s24 = smov 127  }
 0x172   :  { %2766 = vmatpush.bf16.msrb.mxu3 %v5784_v11  ;;  %2728 = vmatmul.bf16.vlgmr.msrb.gmra.mxu0 %v6687_v9  ;;  %v2535_v60 = vadd.f32 %v2534_v22, %v2522_v25  ;;  %v2836_v4 = vadd.f32 %v2835_v16, %v2832_v45  ;;  %v2940_v30 = vadd.f32 %v2939_v50, %v2936_v49  ;;  %v3278_v25 = vstv %s7123_s25  ;;  %s7391_s25 = sld [smem:[#allocation9 + $0x6f]] }
 0x173   :  { %2741 = vmatmul.bf16.vlgmr.msrb.gmra.mxu1 %v6688_v18  ;;  %v3044_v6 = vadd.f32 %v3043_v51, %v3040_v52  ;;  %v3148_v7 = vadd.f32 %v3147_v56, %v3144_v53  ;;  %v3259_v18 = vmul.f32 %v3258_v44, %v7047_v31  ;;  %v2846_v22 = vstv %s7125_s2  ;;  %s7256_s2 = sld [smem:[#allocation9 + $0x38]] }
 0x174   :  { %2754 = vmatmul.bf16.vlgmr.msrb.gmra.mxu2 %v6689_v21  ;;  %v3058_v17 = vstv %s7190_s18  ;;  %v3162_v40 = vstv %s7199_s19  ;;  %v2854_v44 = vstv %s7209_s20  ;;  %v2958_v45 = vstv %s7216_s8  ;;  %s7343_s18 = sld [smem:[#allocation9 + $0x6d]] }
 0x175   :  { %2767 = vmatmul.bf16.vlgmr.msrb.gmra.mxu3 %v6690_v23  ;;  %v2966_v23 = vstv %s7117_s23  ;;  %v3166_v52 = vstv %s7221_s10  ;;  %v2847_v56 = vmul.f32 %v2846_v22, %v7211_v0  ;;  %s9424_s23 = smov 2   ;;  %s7345_s19 = sld [smem:[#allocation9 + $0xc]] }
 0x176   :  { %v2798_v49 = vpop.permute.xlu1 %2797  ;;  %s7350_s20 = sld [smem:[#allocation9 + $0x3e]] }
 0x177   :  { %v2547_v26 = vpop.f32.mrf.mxu2  ;;  %v2523_v28 = vpop.f32.mrf.mxu0  ;;  %s7352_s8 = sld [smem:[#allocation9 + $0x57]] }
 0x178   :  { %v2548_v29 = vadd.f32 %v2547_v26, %v2535_v60  ;;  %v2560_v32 = vpop.f32.mrf.mxu3  ;;  %v2536_v37 = vpop.f32.mrf.mxu1  ;;  %v2950_v60 = vstv %s7127_s26  ;;  %v7242_v26 = vmul.f32 %v2862_v3, %v7078_v54  ;;  %s7269_s26 = sld [smem:[#allocation9 + $0x6a]]  ;;  %v2858_v3 = vstv %s7231_s21 }
 0x179   :  { %v2794_v59 = vpop.permute.xlu0 %2793  ;;  %s7356_s10 = sld [smem:[#allocation9 + $0xa]] }
 0x17a   :  { %v7137_v13 = vadd.f32 %v2560_v32, %v2548_v29  ;;  %v3047_v8 = vmul.f32 %v3046_v39, %v2794_v59  ;;  %v3151_v10 = vmul.f32 %v3150_v63, %v2794_v59  ;;  %v3255_v9 = vmul.f32 %v3254_v1, %v2794_v59  ;;  %s7368_s21 = sld [smem:[#allocation9 + $0x6e]] }
 0x17b   :  { %v3054_v29 = vstv %s9422_s12  ;;  %s7358_s12 = sld [smem:[#allocation9 + $0x23]] }
 0x17c   :  { %2807 = vrot.lane.b32.xlu2 %v7137_v13, %s9284_s11  ;;  %2809 = vrot.lane.b32.xlu0 %v7137_v13, %s9282_s6  ;;  %s7159_s6 = sld [smem:[#allocation9 + $0x64]]  ;;  %v3048_v28 = vadd.f32 %v3047_v8, %v3044_v6  ;;  %v3152_v37 = vadd.f32 %v3151_v10, %v3148_v7  ;;  %v3055_v39 = vmul.f32 %v3054_v29, %v7211_v0 }
 0x17d   :  { %2811 = vrot.lane.b32.xlu1 %v7137_v13, %s9286_s0  ;;  %s7161_s11 = sld [smem:[#allocation9 + $0x1]]  ;;  %v3163_v8 = vmul.f32 %v3162_v40, %v2798_v49 }
 0x17e   :  { %s7163_s0 = sld [smem:[#allocation9 + $0x1a]]  ;;  %v3052_v50 = vadd.f32 %v3051_v2, %v3048_v28  ;;  %v3156_v51 = vadd.f32 %v3155_v20, %v3152_v37 }
 0x17f   :  { %v2549_v38 = vpop.f32.mrf.mxu2  ;;  %s7496_s3 = sld [smem:[#allocation9 + $0x16]] }
 0x180   :  { %v2562_v14 = vpop.f32.mrf.mxu3  ;;  %v3158_v38 = vstv %s9423_s17  ;;  %s7366_s17 = sld [smem:[#allocation9 + $0x55]] }
 0x181   :  { %v3262_v14 = vstv %s7173_s14  ;;  %s7262_s14 = sld [smem:[#allocation9 + $0x51]] }
 0x182   :  { %v3250_v46 = vstv %s7159_s6  ;;  %s7203_s6 = sld [smem:[#allocation9 + $0x68]]  ;;  %v3263_v63 = vmul.f32 %v3262_v14, %v7211_v0 }
 0x183   :  { %v2838_v58 = vstv %s7161_s11  ;;  %v3251_v61 = vmul.f32 %v3250_v46, %v2792_v5  ;;  %s7227_s11 = sld [smem:[#allocation9 + $0x69]]  ;;  %v2850_v5 = vstv %s7180_s27 }
 0x184   :  { %2813 = vrot.lane.b32.xlu2 %v7137_v13, %s9421_s13  ;;  %v2942_v62 = vstv %s7163_s0  ;;  %v2839_v33 = vmul.f32 %v2838_v58, %v2794_v59  ;;  %s7219_s0 = sld [smem:[#allocation9 + $0x37]]  ;;  %v2851_v1 = vmul.f32 %v2850_v5, %v2798_v49 }
 0x185   :  { %v2943_v55 = vmul.f32 %v2942_v62, %v2794_v59  ;;  %v3252_v12 = vadd.f32 %v3251_v61, %v3248_v27  ;;  %v2951_v62 = vmul.f32 %v2950_v60, %v7211_v0  ;;  %s9427_s27 = sld [smem:[#allocation90_spill]] }
 0x186   :  { %v2840_v31 = vadd.f32 %v2839_v33, %v2836_v4  ;;  %v2962_v4 = vstv %s7239_s22  ;;  %v3056_v33 = vadd.f32 %v3055_v39, %v3052_v50  ;;  %s7372_s22 = sld [smem:[#allocation9 + $0xb]] }
 0x187   :  { %v2944_v32 = vadd.f32 %v2943_v55, %v2940_v30  ;;  %v3256_v34 = vadd.f32 %v3255_v9, %v3252_v12  ;;  %v2955_v30 = vmul.f32 %v2954_v36, %v2798_v49  ;;  %v3059_v55 = vmul.f32 %v3058_v17, %v2798_v49 }
 0x188   :  { %v3266_v41 = vstv %s7203_s6  ;;  %v2844_v43 = vadd.f32 %v7193_v47, %v2840_v31  ;;  %v563_v47 = vperm.slane %v7099_v57, 3  ;;  %v3170_v28 = vstv %s7262_s14  ;;  %s7348_s6 = sld [smem:[#allocation9 + $0x25]] }
 0x189   :  { %v2948_v16 = vadd.f32 %v7196_v48, %v2944_v32  ;;  %v3260_v58 = vadd.f32 %v3259_v18, %v3256_v34  ;;  %v3270_v59 = vstv %s7227_s11  ;;  %v3159_v48 = vmul.f32 %v3158_v38, %v7211_v0  ;;  %s7362_s11 = sld [smem:[#allocation9 + $0x3c]] }
 0x18a   :  { %v3062_v46 = vstv %s7219_s0  ;;  %v2848_v2 = vadd.f32 %v2847_v56, %v2844_v43  ;;  %v3267_v31 = vmul.f32 %v3266_v41, %v2798_v49  ;;  %v3066_v32 = vstv %s7256_s2  ;;  %s7354_s0 = sld [smem:[#allocation9 + $0x70]] }
 0x18b   :  { %v2952_v6 = vadd.f32 %v2951_v62, %v2948_v16  ;;  %v3160_v7 = vadd.f32 %v3159_v48, %v3156_v51  ;;  %v3264_v10 = vadd.f32 %v3263_v63, %v3260_v58  ;;  %v3060_v38 = vadd.f32 %v3059_v55, %v3056_v33  ;;  %s7377_s2 = sld [smem:[#allocation9 + $0x24]] }
 0x18c   :  { %v2852_v29 = vadd.f32 %v2851_v1, %v2848_v2  ;;  %v3274_v36 = vstv %s7269_s26  ;;  %v2967_v17 = vmul.f32 %v2966_v23, %v7078_v54  ;;  %v3279_v62 = vmul.f32 %v3278_v25, %v7078_v54  ;;  %s7380_s14 = sld [smem:[#allocation9 + $0x3d]] }
 0x18d   :  { %v2956_v37 = vadd.f32 %v2955_v30, %v2952_v6  ;;  %v3164_v14 = vadd.f32 %v3163_v8, %v3160_v7  ;;  %v3268_v34 = vadd.f32 %v3267_v31, %v3264_v10  ;;  %v2777_v7 = vrot.slane %v7137_v13, 4  ;;  %s7387_s26 = sld [smem:[#allocation9 + $0x56]] }
 0x18f   :  { %v7223_v11 = vpop.f32.mrf.mxu0 }
 0x190   :  { %v7229_v21 = vpop.f32.mrf.mxu1  ;;  %v2574_v12 = vadd.f32 %v7223_v11, %v563_v47 }
 0x192   :  { %v2587_v11 = vadd.f32 %v7229_v21, %v2574_v12  ;;  %v3175_v21 = vmul.f32 %v3174_v24, %v7078_v54 }
 0x196   :  { %v2800_v27 = vpop.permute.xlu2 %2799 }
 0x197   :  { %v7248_v35 = vpop.f32.mrf.mxu2  ;;  %v2575_v53 = vpop.f32.mrf.mxu0  ;;  %v2855_v9 = vmul.f32 %v2854_v44, %v2800_v27  ;;  %v2959_v0 = vmul.f32 %v2958_v45, %v2800_v27  ;;  %v3063_v18 = vmul.f32 %v3062_v46, %v2800_v27  ;;  %v3167_v22 = vmul.f32 %v3166_v52, %v2800_v27 }
 0x198   :  { %v7254_v42 = vpop.f32.mrf.mxu3  ;;  %v2588_v61 = vpop.f32.mrf.mxu1  ;;  %v3271_v5 = vmul.f32 %v3270_v59, %v2800_v27  ;;  %v3071_v53 = vmul.f32 %v3070_v19, %v7078_v54  ;;  %v2600_v47 = vadd.f32 %v7248_v35, %v2587_v11 }
 0x199   :  { %v2856_v40 = vadd.f32 %v2855_v9, %v2852_v29  ;;  %v2960_v43 = vadd.f32 %v2959_v0, %v2956_v37  ;;  %v3064_v44 = vadd.f32 %v3063_v18, %v3060_v38  ;;  %v3168_v41 = vadd.f32 %v3167_v22, %v3164_v14 }
 0x19a   :  { %v3272_v51 = vadd.f32 %v3271_v5, %v3268_v34  ;;  %v2613_v27 = vadd.f32 %v7254_v42, %v2600_v47  ;;  %v564_v22 = vperm.slane %v7099_v57, 4  ;;  %v2970_v57 = vstv %s7325_s29  ;;  %s7430_s29 = sld [smem:[#allocation9 + $0xe]] }
 0x19b   :  { %v3074_v37 = vstv %s7327_s4  ;;  %v3178_v38 = vstv %s7329_s30  ;;  %v2882_v5 = vstv %s7345_s19  ;;  %v3282_v34 = vstv %s7331_s5  ;;  %s7432_s4 = sld [smem:[#allocation9 + $0x27]] }
 0x19c   :  { %s7436_s30 = sld [smem:[#allocation9 + $0x59]] }
 0x19d   :  { %s7438_s5 = sld [smem:[#allocation9 + $0x72]] }
 0x19e   :  { %v2802_v45 = vpop.permute.xlu2 %2801  ;;  %s5963_s19 = sld [smem:[#allocation9 + $0x26]] }
 0x19f   :  { %v2601_v20 = vpop.f32.mrf.mxu2  ;;  %v2859_v46 = vmul.f32 %v2858_v3, %v2802_v45  ;;  %v2963_v49 = vmul.f32 %v2962_v4, %v2802_v45  ;;  %v3067_v16 = vmul.f32 %v3066_v32, %v2802_v45  ;;  %v3171_v50 = vmul.f32 %v3170_v28, %v2802_v45 }
 0x1a0   :  { %v2614_v60 = vpop.f32.mrf.mxu3  ;;  %v3275_v52 = vmul.f32 %v3274_v36, %v2802_v45  ;;  %v2866_v32 = vstv %s7323_s28  ;;  %s7498_s28 = sld [smem:[#allocation9 + $0x2f]] }
 0x1a1   :  { %v2860_v56 = vadd.f32 %v2859_v46, %v2856_v40  ;;  %v2964_v23 = vadd.f32 %v2963_v49, %v2960_v43  ;;  %v3068_v58 = vadd.f32 %v3067_v16, %v3064_v44  ;;  %v3172_v59 = vadd.f32 %v3171_v50, %v3168_v41 }
 0x1a2   :  { %v3276_v61 = vadd.f32 %v3275_v52, %v3272_v51  ;;  %v2870_v44 = vstv %s7333_s15  ;;  %v2974_v41 = vstv %s7337_s16  ;;  %v3078_v46 = vstv %s7339_s7  ;;  %s7440_s15 = sld [smem:[#allocation9 + $0x11]] }
 0x1a3   :  { %v7296_v39 = vadd.f32 %v7242_v26, %v2860_v56  ;;  %v7298_v48 = vadd.f32 %v2967_v17, %v2964_v23  ;;  %v7300_v63 = vadd.f32 %v3071_v53, %v3068_v58  ;;  %v7302_v19 = vadd.f32 %v3175_v21, %v3172_v59  ;;  %s7442_s16 = sld [smem:[#allocation9 + $0x2a]] }
 0x1a4   :  { %v7304_v24 = vadd.f32 %v3279_v62, %v3276_v61  ;;  %v2986_v17 = vstv %s7348_s6  ;;  %v3090_v49 = vstv %s7350_s20  ;;  %v3194_v16 = vstv %s7352_s8  ;;  %s7444_s7 = sld [smem:[#allocation9 + $0x43]] }
 0x1a5   :  { %v3298_v50 = vstv %s7354_s0  ;;  %v3182_v52 = vstv %s7341_s9  ;;  %v3286_v53 = vstv %s7343_s18  ;;  %s7446_s9 = sld [smem:[#allocation9 + $0x5c]] }
 0x1a6   :  { %s5937_s18 = sld [smem:[#allocation9 + $0xd]] }
 0x1a7   :  { %s5989_s6 = sld [smem:[#allocation9 + $0x3f]] }
 0x1a8   :  { %s6015_s20 = sld [smem:[#allocation9 + $0x58]] }
 0x1a9   :  { %s6041_s8 = sld [smem:[#allocation9 + $0x71]] }
 0x1aa   :  { %s7448_s0 = sld [smem:[#allocation9 + $0x75]] }
 0x1af   :  { %v2625_v1 = vpop.f32.mrf.mxu0  ;;  %v2804_v28 = vpop.permute.xlu0 %2803 }
 0x1b0   :  { %v2626_v2 = vadd.f32 %v2625_v1, %v2613_v27  ;;  %v2638_v35 = vpop.f32.mrf.mxu1  ;;  %v2867_v11 = vmul.f32 %v2866_v32, %v2804_v28  ;;  %v2971_v36 = vmul.f32 %v2970_v57, %v2804_v28  ;;  %v3075_v40 = vmul.f32 %v3074_v37, %v2804_v28  ;;  %v2806_v45 = vpop.permute.xlu1 %2805 }
 0x1b1   :  { %v3179_v43 = vmul.f32 %v3178_v38, %v2804_v28  ;;  %v3283_v51 = vmul.f32 %v3282_v34, %v2804_v28  ;;  %v2871_v58 = vmul.f32 %v2870_v44, %v2806_v45  ;;  %v2975_v59 = vmul.f32 %v2974_v41, %v2806_v45 }
 0x1b2   :  { %v2639_v3 = vadd.f32 %v2638_v35, %v2626_v2  ;;  %v2868_v56 = vadd.f32 %v2867_v11, %v7296_v39  ;;  %v2972_v23 = vadd.f32 %v2971_v36, %v7298_v48  ;;  %v3076_v47 = vadd.f32 %v3075_v40, %v7300_v63 }
 0x1b3   :  { %v3180_v61 = vadd.f32 %v3179_v43, %v7302_v19  ;;  %v3079_v62 = vmul.f32 %v3078_v46, %v2806_v45  ;;  %v2874_v27 = vstv %s7356_s10  ;;  %v3183_v2 = vmul.f32 %v3182_v52, %v2806_v45  ;;  %s7450_s10 = sld [smem:[#allocation9 + $0xf]] }
 0x1b4   :  { %v2978_v35 = vstv %s7358_s12  ;;  %v3284_v39 = vadd.f32 %v3283_v51, %v7304_v24  ;;  %v2987_v63 = vmul.f32 %v2986_v17, %v7137_v13  ;;  %v2872_v19 = vadd.f32 %v2871_v58, %v2868_v56  ;;  %s7452_s12 = sld [smem:[#allocation9 + $0x28]] }
 0x1b5   :  { %v3091_v32 = vmul.f32 %v3090_v49, %v7137_v13  ;;  %v3195_v46 = vmul.f32 %v3194_v16, %v7137_v13  ;;  %v3299_v58 = vmul.f32 %v3298_v50, %v7137_v13 }
 0x1b7   :  { %v2651_v4 = vpop.f32.mrf.mxu2  ;;  %v2627_v26 = vpop.f32.mrf.mxu0 }
 0x1b8   :  { %v2652_v30 = vadd.f32 %v2651_v4, %v2639_v3  ;;  %v2664_v54 = vpop.f32.mrf.mxu3  ;;  %v2640_v6 = vpop.f32.mrf.mxu1  ;;  %v3082_v3 = vstv %s7362_s11  ;;  %v3186_v4 = vstv %s7366_s17  ;;  %v3287_v26 = vmul.f32 %v3286_v53, %v2806_v45  ;;  %s7454_s11 = sld [smem:[#allocation9 + $0x41]] }
 0x1b9   :  { %v3290_v6 = vstv %s7368_s21  ;;  %s7456_s17 = sld [smem:[#allocation9 + $0x5a]] }
 0x1ba   :  { %v7307_v25 = vadd.f32 %v2664_v54, %v2652_v30  ;;  %v2883_v54 = vmul.f32 %v2882_v5, %v7137_v13  ;;  %s7458_s21 = sld [smem:[#allocation9 + $0x73]] }
 0x1bc   :  { %2815 = vrot.lane.b32.xlu0 %v7307_v25, %s9424_s23  ;;  %2817 = vrot.lane.b32.xlu1 %v7307_v25, %s9425_s1  ;;  %v2778_v55 = vrot.slane %v7307_v25, 2 }
 0x1bd   :  { %2819 = vrot.lane.b32.xlu2 %v7307_v25, %s9426_s24 }
 0x1be   :  { %v2782_v8 = vsel %vm2781_vm1, %v2777_v7, %v2778_v55 }
 0x1bf   :  { %v2653_v42 = vpop.f32.mrf.mxu2  ;;  %v2784_v10 = vsel %vm2783_vm2, %v7089_v15, %v2782_v8 }
 0x1c0   :  { %v2666_v33 = vpop.f32.mrf.mxu3  ;;  %2786 = vst [vmem:[%s9427_s27] sm:$0xff] %v2784_v10  ;;  %v2976_v10 = vadd.f32 %v2975_v59, %v2972_v23 }
 0x1c4   :  { %2821 = vrot.lane.b32.xlu0 %v7307_v25, %s9421_s13 }
 0x1cf   :  { %v2677_v12 = vpop.f32.mrf.mxu0 }
 0x1d0   :  { %v2690_v20 = vpop.f32.mrf.mxu1  ;;  %v2678_v29 = vadd.f32 %v2677_v12, %v564_v22  ;;  %v3080_v12 = vadd.f32 %v3079_v62, %v3076_v47  ;;  %v3190_v22 = vstv %s7387_s26  ;;  %s7468_s26 = sld [smem:[#allocation9 + $0x5b]] }
 0x1d2   :  { %v2691_v14 = vadd.f32 %v2690_v20, %v2678_v29  ;;  %v3184_v20 = vadd.f32 %v3183_v2, %v3180_v61  ;;  %v3294_v29 = vstv %s7391_s25  ;;  %s7472_s25 = sld [smem:[#allocation9 + $0x74]] }
 0x1d6   :  { %v2808_v1 = vpop.permute.xlu2 %2807 }
 0x1d7   :  { %v2703_v9 = vpop.f32.mrf.mxu2  ;;  %v2679_v0 = vpop.f32.mrf.mxu0  ;;  %v2875_v42 = vmul.f32 %v2874_v27, %v2808_v1  ;;  %v2979_v7 = vmul.f32 %v2978_v35, %v2808_v1  ;;  %v3083_v55 = vmul.f32 %v3082_v3, %v2808_v1  ;;  %v3187_v24 = vmul.f32 %v3186_v4, %v2808_v1 }
 0x1d8   :  { %v7335_v15 = vpop.f32.mrf.mxu3  ;;  %v2692_v18 = vpop.f32.mrf.mxu1  ;;  %v2704_v21 = vadd.f32 %v2703_v9, %v2691_v14  ;;  %v2878_v9 = vstv %s7372_s22  ;;  %v2982_v0 = vstv %s7377_s2  ;;  %v2886_v27 = vstv %s5937_s18  ;;  %s7460_s22 = sld [smem:[#allocation9 + $0x10]] }
 0x1d9   :  { %v3086_v18 = vstv %s7380_s14  ;;  %v2980_v57 = vadd.f32 %v2979_v7, %v2976_v10  ;;  %v3084_v28 = vadd.f32 %v3083_v55, %v3080_v12  ;;  %v3188_v37 = vadd.f32 %v3187_v24, %v3184_v20  ;;  %s7462_s2 = sld [smem:[#allocation9 + $0x29]] }
 0x1da   :  { %v2717_v48 = vadd.f32 %v7335_v15, %v2704_v21  ;;  %v3291_v15 = vmul.f32 %v3290_v6, %v2808_v1  ;;  %v2990_v1 = vstv %s5963_s19  ;;  %v3094_v35 = vstv %s5989_s6  ;;  %s7464_s14 = sld [smem:[#allocation9 + $0x42]] }
 0x1db   :  { %v3198_v3 = vstv %s6015_s20  ;;  %v3302_v4 = vstv %s6041_s8  ;;  %v3202_v55 = vstv %s7436_s30  ;;  %v3110_v24 = vstv %s7444_s7  ;;  %s7506_s30 = sld [smem:[#allocation9 + $0x12]] }
 0x1dc   :  { %v3306_v10 = vstv %s7438_s5  ;;  %s7508_s5 = sld [smem:[#allocation9 + $0x2b]] }
 0x1dd   :  { %s7514_s7 = sld [smem:[#allocation9 + $0x76]] }
 0x1de   :  { %v2814_v6 = vpop.permute.xlu2 %2813  ;;  %s7518_s18 = sld [smem:[#allocation9 + $0x2c]] }
 0x1df   :  { %v2705_v60 = vpop.f32.mrf.mxu2  ;;  %s7520_s19 = sld [smem:[#allocation9 + $0x45]] }
 0x1e0   :  { %v2718_v31 = vpop.f32.mrf.mxu3  ;;  %v3288_v60 = vadd.f32 %v3287_v26, %v3284_v39  ;;  %v2994_v26 = vstv %s7432_s4  ;;  %s7502_s4 = sld [smem:[#allocation9 + $0x61]] }
 0x1e1   :  { %v2876_v31 = vadd.f32 %v2875_v42, %v2872_v19  ;;  %v2890_v19 = vstv %s7430_s29  ;;  %s7500_s29 = sld [smem:[#allocation9 + $0x48]] }
 0x1e2   :  { %v3292_v40 = vadd.f32 %v3291_v15, %v3288_v60  ;;  %v2891_v15 = vmul.f32 %v2890_v19, %v2814_v6  ;;  %s7522_s6 = sld [smem:[#allocation9 + $0x5e]] }
 0x1e3   :  { %s7524_s20 = sld [smem:[#allocation9 + $0x77]] }
 0x1e4   :  { %s7526_s8 = sld [smem:[#allocation9 + $0x15]] }
 0x1ee   :  { %v2810_v14 = vpop.permute.xlu0 %2809 }
 0x1ef   :  { %v2729_v30 = vpop.f32.mrf.mxu0  ;;  %v2879_v34 = vmul.f32 %v2878_v9, %v2810_v14  ;;  %v2983_v11 = vmul.f32 %v2982_v0, %v2810_v14  ;;  %v3087_v36 = vmul.f32 %v3086_v18, %v2810_v14  ;;  %v3191_v17 = vmul.f32 %v3190_v22, %v2810_v14  ;;  %v2812_v2 = vpop.permute.xlu1 %2811 }
 0x1f0   :  { %v2742_v33 = vpop.f32.mrf.mxu1  ;;  %v2730_v8 = vadd.f32 %v2729_v30, %v2717_v48  ;;  %v3295_v45 = vmul.f32 %v3294_v29, %v2810_v14  ;;  %v2887_v39 = vmul.f32 %v2886_v27, %v2812_v2  ;;  %v2991_v48 = vmul.f32 %v2990_v1, %v2812_v2 }
 0x1f1   :  { %v2880_v49 = vadd.f32 %v2879_v34, %v2876_v31  ;;  %v2984_v52 = vadd.f32 %v2983_v11, %v2980_v57  ;;  %v3088_v53 = vadd.f32 %v3087_v36, %v3084_v28  ;;  %v3192_v21 = vadd.f32 %v3191_v17, %v3188_v37 }
 0x1f2   :  { %v2743_v38 = vadd.f32 %v2742_v33, %v2730_v8  ;;  %v3296_v23 = vadd.f32 %v3295_v45, %v3292_v40  ;;  %v3095_v30 = vmul.f32 %v3094_v35, %v2812_v2  ;;  %v3199_v42 = vmul.f32 %v3198_v3, %v2812_v2 }
 0x1f3   :  { %v2884_v59 = vadd.f32 %v2883_v54, %v2880_v49  ;;  %v2988_v47 = vadd.f32 %v2987_v63, %v2984_v52  ;;  %v3092_v61 = vadd.f32 %v3091_v32, %v3088_v53  ;;  %v7416_v62 = vadd.f32 %v3195_v46, %v3192_v21 }
 0x1f4   :  { %v3300_v16 = vadd.f32 %v3299_v58, %v3296_v23  ;;  %v2902_v54 = vstv %s7440_s15  ;;  %v3006_v63 = vstv %s7442_s16  ;;  %v3303_v33 = vmul.f32 %v3302_v4, %v2812_v2  ;;  %s7510_s15 = sld [smem:[#allocation9 + $0x44]] }
 0x1f5   :  { %v3214_v8 = vstv %s7446_s9  ;;  %v2888_v12 = vadd.f32 %v2887_v39, %v2884_v59  ;;  %v2992_v20 = vadd.f32 %v2991_v48, %v2988_v47  ;;  %v3318_v9 = vstv %s7448_s0  ;;  %s7512_s16 = sld [smem:[#allocation9 + $0x5d]] }
 0x1f6   :  { %v2995_v0 = vmul.f32 %v2994_v26, %v2814_v6  ;;  %v3096_v18 = vadd.f32 %v3095_v30, %v3092_v61  ;;  %v2903_v22 = vmul.f32 %v2902_v54, %v7307_v25  ;;  %v3203_v31 = vmul.f32 %v3202_v55, %v2814_v6  ;;  %s7516_s9 = sld [smem:[#allocation9 + $0x13]] }
 0x1f7   :  { %v2755_v5 = vpop.f32.mrf.mxu2  ;;  %v2731_v41 = vpop.f32.mrf.mxu0  ;;  %v3200_v29 = vadd.f32 %v3199_v42, %v7416_v62  ;;  %v3304_v32 = vadd.f32 %v3303_v33, %v3300_v16  ;;  %v3307_v57 = vmul.f32 %v3306_v10, %v2814_v6  ;;  %v2894_v28 = vstv %s7450_s10  ;;  %s7528_s0 = sld [smem:[#allocation9 + $0x2e]] }
 0x1f8   :  { %v2756_v43 = vadd.f32 %v2755_v5, %v2743_v38  ;;  %v2768_v44 = vpop.f32.mrf.mxu3  ;;  %v2744_v51 = vpop.f32.mrf.mxu1  ;;  %v2998_v37 = vstv %s7452_s12  ;;  %v3102_v38 = vstv %s7454_s11  ;;  %v3206_v14 = vstv %s7456_s17  ;;  %s7530_s10 = sld [smem:[#allocation9 + $0x47]] }
 0x1f9   :  { %v3310_v5 = vstv %s7458_s21  ;;  %v2892_v34 = vadd.f32 %v2891_v15, %v2888_v12  ;;  %v2996_v11 = vadd.f32 %v2995_v0, %v2992_v20  ;;  %v2898_v17 = vstv %s7460_s22  ;;  %s7532_s12 = sld [smem:[#allocation9 + $0x60]] }
 0x1fa   :  { %v7411_v56 = vadd.f32 %v2768_v44, %v2756_v43  ;;  %v3002_v40 = vstv %s7462_s2  ;;  %v3106_v43 = vstv %s7464_s14  ;;  %v3204_v41 = vadd.f32 %v3203_v31, %v3200_v29  ;;  %s7534_s11 = sld [smem:[#allocation9 + $0x79]] }
 0x1fb   :  { %v3308_v45 = vadd.f32 %v3307_v57, %v3304_v32  ;;  %v3210_v46 = vstv %s7468_s26  ;;  %v3314_v51 = vstv %s7472_s25  ;;  %v3007_v1 = vmul.f32 %v3006_v63, %v7307_v25  ;;  %s7536_s17 = sld [smem:[#allocation9 + $0x14]] }
 0x1fc   :  { %2787 = vst [vmem:[%s9427_s27 + $0x8] sm:$0x3] %v7411_v56  ;;  %2825 = vrot.lane.b32.xlu2 %v7411_v56, %s9425_s1  ;;  %2823 = vrot.lane.b32.xlu1 %v7411_v56, %s9424_s23  ;;  %s7434_s27 = sld [smem:[#allocation9 + $0x40]]  ;;  %v3111_v3 = vmul.f32 %v3110_v24, %v7307_v25  ;;  %v3215_v30 = vmul.f32 %v3214_v8, %v7307_v25  ;;  %v3026_v63 = vstv %s7498_s28 }
 0x1fd   :  { %2827 = vrot.lane.b32.xlu0 %v7411_v56, %s9426_s24  ;;  %v3319_v54 = vmul.f32 %v3318_v9, %v7307_v25  ;;  %v2922_v25 = vstv %s7496_s3  ;;  %s7539_s21 = sld [smem:[#allocation9 + $0x2d]]  ;;  %v3130_v24 = vstv %s7500_s29  ;;  %v3234_v8 = vstv %s7502_s4 }
 0x1fe   :  { %v2906_v10 = vstv %s7506_s30  ;;  %v3010_v12 = vstv %s7508_s5  ;;  %s7546_s22 = sld [smem:[#allocation9 + $0x46]]  ;;  %v3114_v15 = vstv %s7510_s15  ;;  %v3218_v0 = vstv %s7512_s16 }
 0x1ff   :  { %v2757_v13 = vpop.f32.mrf.mxu2  ;;  %s7552_s2 = sld [smem:[#allocation9 + $0x5f]]  ;;  %v7561_v29 = vmul.f32 %v3026_v63, %v7411_v56  ;;  %v7564_v32 = vmul.f32 %v3130_v24, %v7411_v56  ;;  %v7567_v57 = vmul.f32 %v3234_v8, %v7411_v56 }
 0x200   :  { %v2770_v50 = vpop.f32.mrf.mxu3  ;;  %s7558_s14 = sld [smem:[#allocation9 + $0x78]] }
 0x201   :  { %s7572_s26 = sld [smem:[#allocation9 + $0x17]] }
 0x202   :  { %v3098_v7 = vstv %s7434_s27  ;;  %s7504_s27 = sld [smem:[#allocation9 + $0x7a]] }
 0x203   :  { %v3099_v60 = vmul.f32 %v3098_v7, %v2814_v6  ;;  %s7580_s25 = sld [smem:[#allocation9 + $0x30]] }
 0x204   :  { %2829 = vrot.lane.b32.xlu1 %v7411_v56, %s9421_s13  ;;  %s7586_s3 = sld [smem:[#allocation9 + $0x18]] }
 0x205   :  { %v3100_v36 = vadd.f32 %v3099_v60, %v3096_v18  ;;  %v3322_v18 = vstv %s7514_s7  ;;  %v2910_v60 = vstv %s7516_s9  ;;  %s7590_s28 = sld [smem:[#allocation9 + $0x31]] }
 0x206   :  { %s5999_s29 = sld [smem:[#allocation9 + $0x49]] }
 0x207   :  { %s6000_s4 = sld [smem:[#allocation9 + $0x4a]] }
 0x208   :  { %v3338_v9 = vstv %s7504_s27  ;;  %s6025_s27 = sld [smem:[#allocation9 + $0x62]] }
 0x209   :  { %s6026_s30 = sld [smem:[#allocation9 + $0x63]] }
 0x20a   :  { %s6051_s5 = sld [smem:[#allocation9 + $0x7b]] }
 0x20b   :  { %s7637_s15 = sld [smem:[#allocation9 + $0x7c]] }
 0x20c   :  { %s7639_s16 = sld [smem:[#allocation12 + $0x2]] }
 0x20d   :  { %s7641_s7 = sld [smem:[#allocation12 + $0x1b]] }
 0x20e   :  { %s7643_s9 = sld [smem:[#allocation12 + $0x34]] }
 0x217   :  { %v2820_v20 = vpop.permute.xlu2 %2819 }
 0x22e   :  { %v2816_v44 = vpop.permute.xlu0 %2815  ;;  %v2818_v49 = vpop.permute.xlu1 %2817 }
 0x22f   :  { %v2895_v52 = vmul.f32 %v2894_v28, %v2816_v44  ;;  %v2999_v53 = vmul.f32 %v2998_v37, %v2816_v44  ;;  %v3103_v21 = vmul.f32 %v3102_v38, %v2816_v44  ;;  %v3207_v23 = vmul.f32 %v3206_v14, %v2816_v44 }
 0x230   :  { %v3311_v58 = vmul.f32 %v3310_v5, %v2816_v44  ;;  %v2899_v59 = vmul.f32 %v2898_v17, %v2818_v49  ;;  %v3003_v47 = vmul.f32 %v3002_v40, %v2818_v49  ;;  %v3107_v61 = vmul.f32 %v3106_v43, %v2818_v49 }
 0x231   :  { %v2896_v62 = vadd.f32 %v2895_v52, %v2892_v34  ;;  %v3000_v16 = vadd.f32 %v2999_v53, %v2996_v11  ;;  %v3104_v13 = vadd.f32 %v3103_v21, %v3100_v36  ;;  %v3208_v50 = vadd.f32 %v3207_v23, %v3204_v41 }
 0x232   :  { %v3312_v27 = vadd.f32 %v3311_v58, %v3308_v45  ;;  %v3211_v2 = vmul.f32 %v3210_v46, %v2818_v49  ;;  %v3315_v35 = vmul.f32 %v3314_v51, %v2818_v49  ;;  %v2907_v28 = vmul.f32 %v2906_v10, %v2820_v20 }
 0x233   :  { %v2900_v4 = vadd.f32 %v2899_v59, %v2896_v62  ;;  %v3004_v39 = vadd.f32 %v3003_v47, %v3000_v16  ;;  %v3108_v48 = vadd.f32 %v3107_v61, %v3104_v13  ;;  %v3014_v37 = vstv %s7518_s18  ;;  %s7649_s18 = sld [smem:[#allocation12 + $0x4d]] }
 0x234   :  { %v3212_v19 = vadd.f32 %v3211_v2, %v3208_v50  ;;  %v3316_v26 = vadd.f32 %v3315_v35, %v3312_v27  ;;  %v3118_v38 = vstv %s7520_s19  ;;  %v3222_v14 = vstv %s7522_s6  ;;  %s7655_s19 = sld [smem:[#allocation12 + $0x66]] }
 0x235   :  { %v2904_v6 = vadd.f32 %v2903_v22, %v2900_v4  ;;  %v3008_v42 = vadd.f32 %v3007_v1, %v3004_v39  ;;  %v3112_v33 = vadd.f32 %v3111_v3, %v3108_v48  ;;  %v7555_v22 = vmul.f32 %v2922_v25, %v7411_v56  ;;  %s7660_s6 = sld [smem:[#allocation12 + $0x7]] }
 0x236   :  { %v3216_v7 = vadd.f32 %v3215_v30, %v3212_v19  ;;  %v3320_v55 = vadd.f32 %v3319_v54, %v3316_v26  ;;  %v2822_v31 = vpop.permute.xlu0 %2821  ;;  %v3011_v5 = vmul.f32 %v3010_v12, %v2820_v20  ;;  %v3115_v34 = vmul.f32 %v3114_v15, %v2820_v20 }
 0x237   :  { %v3219_v11 = vmul.f32 %v3218_v0, %v2820_v20  ;;  %v3326_v36 = vstv %s7524_s20  ;;  %v3323_v17 = vmul.f32 %v3322_v18, %v2820_v20  ;;  %v2908_v40 = vadd.f32 %v2907_v28, %v2904_v6  ;;  %s7662_s20 = sld [smem:[#allocation12 + $0x20]] }
 0x238   :  { %v2911_v43 = vmul.f32 %v2910_v60, %v2822_v31  ;;  %v2918_v44 = vstv %s7526_s8  ;;  %v3012_v41 = vadd.f32 %v3011_v5, %v3008_v42  ;;  %v3015_v45 = vmul.f32 %v3014_v37, %v2822_v31  ;;  %s7665_s8 = sld [smem:[#allocation12 + $0x39]] }
 0x239   :  { %v3116_v46 = vadd.f32 %v3115_v34, %v3112_v33  ;;  %v3119_v51 = vmul.f32 %v3118_v38, %v2822_v31  ;;  %v3220_v49 = vadd.f32 %v3219_v11, %v3216_v7  ;;  %v3223_v52 = vmul.f32 %v3222_v14, %v2822_v31 }
 0x23a   :  { %v3324_v53 = vadd.f32 %v3323_v17, %v3320_v55  ;;  %v3327_v21 = vmul.f32 %v3326_v36, %v2822_v31  ;;  %v3022_v23 = vstv %s7528_s0  ;;  %v3126_v58 = vstv %s7530_s10  ;;  %s7667_s0 = sld [smem:[#allocation12 + $0x52]] }
 0x23b   :  { %v3230_v59 = vstv %s7532_s12  ;;  %v3334_v47 = vstv %s7534_s11  ;;  %v2914_v62 = vstv %s7536_s17  ;;  %v3018_v16 = vstv %s7539_s21  ;;  %s7669_s10 = sld [smem:[#allocation12 + $0x6b]] }
 0x23c   :  { %v3122_v13 = vstv %s7546_s22  ;;  %v3226_v50 = vstv %s7552_s2  ;;  %v2912_v27 = vadd.f32 %v2911_v43, %v2908_v40  ;;  %v3016_v1 = vadd.f32 %v3015_v45, %v3012_v41  ;;  %s7671_s12 = sld [smem:[#allocation12 + $0xc]] }
 0x23d   :  { %v3120_v2 = vadd.f32 %v3119_v51, %v3116_v46  ;;  %v3330_v35 = vstv %s7558_s14  ;;  %v3224_v3 = vadd.f32 %v3223_v52, %v3220_v49  ;;  %v3328_v4 = vadd.f32 %v3327_v21, %v3324_v53  ;;  %s7673_s11 = sld [smem:[#allocation12 + $0x25]] }
 0x23e   :  { %v2926_v30 = vstv %s7572_s26  ;;  %v3339_v15 = vmul.f32 %v3338_v9, %v7411_v56  ;;  %v2788_v0 = vlaneseq  ;;  %v3030_v38 = vstv %s7580_s25  ;;  %s7680_s17 = sld [smem:[#allocation12 + $0x3e]] }
 0x23f   :  { %v2930_v5 = vstv %s7586_s3  ;;  %v3138_v52 = vstv %s6000_s4  ;;  %s7685_s21 = sld [smem:[#allocation12 + $0x57]] }
 0x240   :  { %v7608_v43 = vand.u32 127, %v2788_v0  ;;  %s7687_s22 = sld [smem:[#allocation12 + $0x70]] }
 0x241   :  { %s7691_s2 = sld [smem:[#allocation12 + $0x11]] }
 0x242   :  { %9428 = vst [vmem:[#allocation29_spill] sm:$0xff] %v7608_v43  ;;  %vm2790_vm3 = vcmp.lt.s32.totalorder %v7608_v43, 100  ;;  %s7693_s14 = sld [smem:[#allocation12 + $0x2a]] }
 0x243   :  { %s7695_s26 = sld [smem:[#allocation12 + $0x43]] }
 0x244   :  { %s7697_s25 = sld [smem:[#allocation12 + $0x5c]]  ;;  %v3650_v0 = vstv %s7680_s17 }
 0x245   :  { %s7703_s3 = sld [smem:[#allocation12 + $0x75]] }
 0x246   :  { %s7715_s4 = sld [smem:[#allocation12 + $0x48]] }
 0x24c   :  { %9431 = sst [smem:[#allocation30_spill]] %s7715_s4 }
 0x24d   :  { %s7735_s4 = sld [smem:[#allocation12 + $0x19]] }
 0x253   :  { %9437 = sst [smem:[#allocation36_spill]] %s7735_s4 }
 0x254   :  { %s7777_s4 = sld [smem:[#allocation12 + $0x1c]] }
 0x256   :  { %v2826_v61 = vpop.permute.xlu2 %2825 }
 0x257   :  { %v2919_v39 = vmul.f32 %v2918_v44, %v2826_v61  ;;  %v3023_v42 = vmul.f32 %v3022_v23, %v2826_v61  ;;  %v3127_v33 = vmul.f32 %v3126_v58, %v2826_v61  ;;  %v3231_v7 = vmul.f32 %v3230_v59, %v2826_v61 }
 0x258   :  { %v3335_v12 = vmul.f32 %v3334_v47, %v2826_v61  ;;  %v3034_v44 = vstv %s7590_s28  ;;  %s7709_s28 = sld [smem:[#allocation12 + $0x16]] }
 0x25a   :  { %9455 = sst [smem:[#allocation54_spill]] %s7777_s4 }
 0x25b   :  { %s7991_s4 = sld [smem:[#allocation12 + $0x5e]] }
 0x25e   :  { %9429 = sst [smem:[#allocation27_spill]] %s7709_s28 }
 0x25f   :  { %s7729_s28 = sld [smem:[#allocation13 + $0x1]] }
 0x265   :  { %9436 = sst [smem:[#allocation35_spill]] %s7729_s28 }
 0x266   :  { %s7747_s28 = sld [smem:[#allocation13 + $0x4]] }
 0x26c   :  { %9442 = sst [smem:[#allocation41_spill]] %s7747_s28 }
 0x26d   :  { %s7767_s28 = sld [smem:[#allocation12 + $0x21]] }
 0x26e   :  { %v2824_v48 = vpop.permute.xlu1 %2823 }
 0x26f   :  { %v2915_v54 = vmul.f32 %v2914_v62, %v2824_v48  ;;  %v3019_v19 = vmul.f32 %v3018_v16, %v2824_v48  ;;  %v3123_v26 = vmul.f32 %v3122_v13, %v2824_v48  ;;  %v3227_v6 = vmul.f32 %v3226_v50, %v2824_v48  ;;  %v7592_v10 = vpop.permute.xlu0 %2827 }
 0x270   :  { %v3331_v55 = vmul.f32 %v3330_v35, %v2824_v48  ;;  %v2927_v14 = vmul.f32 %v2926_v30, %v7592_v10  ;;  %v3031_v41 = vmul.f32 %v3030_v38, %v7592_v10  ;;  %v3238_v62 = vstv %s6025_s27  ;;  %s7717_s27 = sld [smem:[#allocation12 + $0x61]] }
 0x271   :  { %v2916_v25 = vadd.f32 %v2915_v54, %v2912_v27  ;;  %v3020_v63 = vadd.f32 %v3019_v19, %v3016_v1  ;;  %v3124_v24 = vadd.f32 %v3123_v26, %v3120_v2  ;;  %v3228_v8 = vadd.f32 %v3227_v6, %v3224_v3 }
 0x272   :  { %v3332_v20 = vadd.f32 %v3331_v55, %v3328_v4  ;;  %v3242_v13 = vstv %s6026_s30  ;;  %v3239_v50 = vmul.f32 %v3238_v62, %v7592_v10  ;;  %v3342_v2 = vstv %s6051_s5  ;;  %s7719_s30 = sld [smem:[#allocation12 + $0x7a]] }
 0x273   :  { %v2920_v18 = vadd.f32 %v2919_v39, %v2916_v25  ;;  %v3024_v60 = vadd.f32 %v3023_v42, %v3020_v63  ;;  %v3128_v31 = vadd.f32 %v3127_v33, %v3124_v24  ;;  %v3232_v28 = vadd.f32 %v3231_v7, %v3228_v8  ;;  %s7721_s5 = sld [smem:[#allocation13]] }
 0x274   :  { %v3336_v37 = vadd.f32 %v3335_v12, %v3332_v20  ;;  %v3346_v3 = vstv %s7637_s15  ;;  %v3343_v4 = vmul.f32 %v3342_v2, %v7592_v10  ;;  %s7723_s15 = sld [smem:[#allocation12]]  ;;  %v3402_v42 = vstv %s7639_s16 }
 0x275   :  { %v2924_v34 = vadd.f32 %v7555_v22, %v2920_v18  ;;  %v3028_v11 = vadd.f32 %v7561_v29, %v3024_v60  ;;  %v3132_v36 = vadd.f32 %v7564_v32, %v3128_v31  ;;  %v3236_v56 = vadd.f32 %v7567_v57, %v3232_v28  ;;  %9450 = sst [smem:[#allocation49_spill]] %s7767_s28 }
 0x276   :  { %v7604_v9 = vadd.f32 %v3339_v15, %v3336_v37  ;;  %v7606_v17 = vpop.permute.xlu1 %2829  ;;  %v3134_v57 = vstv %s5999_s29  ;;  %s7713_s29 = sld [smem:[#allocation12 + $0x2f]]  ;;  %v3506_v33 = vstv %s7641_s7  ;;  %v3610_v7 = vstv %s7643_s9 }
 0x277   :  { %v2928_v40 = vadd.f32 %v2927_v14, %v2924_v34  ;;  %v2931_v45 = vmul.f32 %v2930_v5, %v7606_v17  ;;  %v3032_v22 = vadd.f32 %v3031_v41, %v3028_v11  ;;  %v3035_v29 = vmul.f32 %v3034_v44, %v7606_v17  ;;  %9432 = sst [smem:[#allocation31_spill]] %s7717_s27 }
 0x278   :  { %v3135_v53 = vmul.f32 %v3134_v57, %v7592_v10  ;;  %v3139_v58 = vmul.f32 %v3138_v52, %v7606_v17  ;;  %v3240_v27 = vadd.f32 %v3239_v50, %v3236_v56  ;;  %v3243_v1 = vmul.f32 %v3242_v13, %v7606_v17  ;;  %9433 = sst [smem:[#allocation32_spill]] %s7719_s30 }
 0x279   :  { %v2932_v46 = vadd.f32 %v2931_v45, %v2928_v40  ;;  %v3036_v49 = vadd.f32 %v3035_v29, %v3032_v22  ;;  %v3344_v39 = vadd.f32 %v3343_v4, %v7604_v9  ;;  %v3347_v30 = vmul.f32 %v3346_v3, %v7606_v17  ;;  %9434 = sst [smem:[#allocation33_spill]] %s7721_s5 }
 0x27a   :  { %v3136_v21 = vadd.f32 %v3135_v53, %v3132_v36  ;;  %v3244_v35 = vadd.f32 %v3243_v1, %v3240_v27  ;;  %9435 = sst [smem:[#allocation34_spill]] %s7723_s15  ;;  %v3714_v55 = vstv %s7649_s18  ;;  %v3818_v25 = vstv %s7655_s19 }
 0x27b   :  { %v2933_v32 = vmax.f32 %v2932_v46, 0.0  ;;  %v3037_v23 = vmax.f32 %v3036_v49, 0.0  ;;  %v3348_v19 = vadd.f32 %v3347_v30, %v3344_v39  ;;  %s7739_s5 = sld [smem:[#allocation13 + $0x2]]  ;;  %v3422_v63 = vstv %s7660_s6 }
 0x27c   :  { %v3140_v47 = vadd.f32 %v3139_v58, %v3136_v21  ;;  %v3245_v48 = vmax.f32 %v3244_v35, 0.0  ;;  %9430 = sst [smem:[#allocation28_spill]] %s7713_s29  ;;  %v3526_v24 = vstv %s7662_s20  ;;  %v3630_v8 = vstv %s7665_s8 }
 0x27d   :  { %v7617_v51 = vsel %vm2790_vm3, %v2933_v32, 0.0  ;;  %v7629_v59 = vsel %vm2790_vm3, %v3037_v23, 0.0  ;;  %v3349_v26 = vmax.f32 %v3348_v19, 0.0  ;;  %s7741_s15 = sld [smem:[#allocation12 + $0x32]]  ;;  %v3734_v10 = vstv %s7667_s0 }
 0x27e   :  { %3355 = vrot.lane.b32.xlu1 %v7617_v51, %s9426_s24  ;;  %3353 = vrot.lane.b32.xlu0 %v7617_v51, %s9425_s1  ;;  %v3141_v61 = vmax.f32 %v3140_v47, 0.0  ;;  %v7701_v54 = vsel %vm2790_vm3, %v3245_v48, 0.0  ;;  %s7743_s30 = sld [smem:[#allocation13 + $0x3]]  ;;  %v3838_v12 = vstv %s7669_s10  ;;  %v3442_v20 = vstv %s7671_s12 }
 0x27f   :  { %3351 = vrot.lane.b32.xlu2 %v7617_v51, %s9424_s23  ;;  %v7727_v6 = vsel %vm2790_vm3, %v3349_v26, 0.0  ;;  %s7745_s27 = sld [smem:[#allocation12 + $0x4b]]  ;;  %v3546_v15 = vstv %s7673_s11  ;;  %v3754_v18 = vstv %s7685_s21  ;;  %v3858_v60 = vstv %s7687_s22 }
 0x280   :  { %v7647_v16 = vsel %vm2790_vm3, %v3141_v61, 0.0  ;;  %s7749_s29 = sld [smem:[#allocation12 + $0x64]]  ;;  %v3462_v31 = vstv %s7691_s2  ;;  %v3566_v28 = vstv %s7693_s14  ;;  %v3670_v37 = vstv %s7695_s26 }
 0x281   :  { %9438 = sst [smem:[#allocation37_spill]] %s7739_s5  ;;  %v3774_v38 = vstv %s7697_s25  ;;  %v3878_v14 = vstv %s7703_s3  ;;  %v7860_v56 = vmul.f32 %v3402_v42, %v7617_v51  ;;  %v7863_v9 = vmul.f32 %v3506_v33, %v7617_v51 }
 0x282   :  { %s7759_s5 = sld [smem:[#allocation12 + $0x36]]  ;;  %v7866_v17 = vmul.f32 %v3610_v7, %v7617_v51  ;;  %v7872_v44 = vmul.f32 %v3714_v55, %v7617_v51  ;;  %v7875_v41 = vmul.f32 %v3818_v25, %v7617_v51  ;;  %v7880_v45 = vmul.f32 %v3422_v63, %v7629_v59 }
 0x283   :  { %9439 = sst [smem:[#allocation38_spill]] %s7741_s15  ;;  %v7883_v22 = vmul.f32 %v3526_v24, %v7629_v59  ;;  %v7888_v46 = vmul.f32 %v3630_v8, %v7629_v59  ;;  %v7891_v29 = vmul.f32 %v3734_v10, %v7629_v59  ;;  %v7894_v32 = vmul.f32 %v3838_v12, %v7629_v59 }
 0x284   :  { %9440 = sst [smem:[#allocation39_spill]] %s7743_s30  ;;  %v7897_v57 = vmul.f32 %v3442_v20, %v7647_v16  ;;  %v7905_v49 = vmul.f32 %v3650_v0, %v7647_v16  ;;  %v7908_v52 = vmul.f32 %v3754_v18, %v7647_v16  ;;  %v7911_v53 = vmul.f32 %v3858_v60, %v7647_v16 }
 0x285   :  { %9441 = sst [smem:[#allocation40_spill]] %s7745_s27  ;;  %v7916_v23 = vmul.f32 %v3462_v31, %v7701_v54  ;;  %v7919_v58 = vmul.f32 %v3566_v28, %v7701_v54  ;;  %v7925_v47 = vmul.f32 %v3774_v38, %v7701_v54  ;;  %v7930_v61 = vmul.f32 %v3878_v14, %v7701_v54 }
 0x286   :  { %3361 = vrot.lane.b32.xlu1 %v7629_v59, %s9425_s1  ;;  %3359 = vrot.lane.b32.xlu0 %v7629_v59, %s9424_s23  ;;  %9443 = sst [smem:[#allocation42_spill]] %s7749_s29 }
 0x287   :  { %3357 = vrot.lane.b32.xlu2 %v7617_v51, %s9421_s13  ;;  %s7761_s15 = sld [smem:[#allocation12 + $0x4f]]  ;;  %v7902_v51 = vmul.f32 %v3546_v15, %v7647_v16 }
 0x288   :  { %9446 = sst [smem:[#allocation45_spill]] %s7759_s5 }
 0x289   :  { %s7763_s30 = sld [smem:[#allocation12 + $0x68]] }
 0x28a   :  { %s7765_s27 = sld [smem:[#allocation12 + $0x8]] }
 0x28b   :  { %s7769_s29 = sld [smem:[#allocation12 + $0x3a]] }
 0x28c   :  { %s7781_s5 = sld [smem:[#allocation12 + $0x4e]] }
 0x28d   :  { %9447 = sst [smem:[#allocation46_spill]] %s7761_s15 }
 0x28e   :  { %3367 = vrot.lane.b32.xlu1 %v7647_v16, %s9424_s23  ;;  %3365 = vrot.lane.b32.xlu0 %v7629_v59, %s9421_s13  ;;  %s7783_s15 = sld [smem:[#allocation12 + $0x67]] }
 0x28f   :  { %3363 = vrot.lane.b32.xlu2 %v7629_v59, %s9426_s24  ;;  %9448 = sst [smem:[#allocation47_spill]] %s7763_s30  ;;  %v7922_v59 = vmul.f32 %v3670_v37, %v7701_v54 }
 0x290   :  { %9449 = sst [smem:[#allocation48_spill]] %s7765_s27 }
 0x291   :  { %9451 = sst [smem:[#allocation50_spill]] %s7769_s29 }
 0x292   :  { %9457 = sst [smem:[#allocation56_spill]] %s7781_s5 }
 0x293   :  { %s7785_s30 = sld [smem:[#allocation12 + $0x1]] }
 0x294   :  { %9458 = sst [smem:[#allocation57_spill]] %s7783_s15 }
 0x295   :  { %s7787_s27 = sld [smem:[#allocation12 + $0x1a]] }
 0x296   :  { %3373 = vrot.lane.b32.xlu1 %v7647_v16, %s9421_s13  ;;  %3371 = vrot.lane.b32.xlu0 %v7647_v16, %s9426_s24  ;;  %s7789_s28 = sld [smem:[#allocation12 + $0x33]] }
 0x297   :  { %3369 = vrot.lane.b32.xlu2 %v7647_v16, %s9425_s1  ;;  %s7791_s29 = sld [smem:[#allocation12 + $0x4c]] }
 0x298   :  { %s7799_s5 = sld [smem:[#allocation12 + $0x3d]] }
 0x299   :  { %s7801_s15 = sld [smem:[#allocation12 + $0x56]]  ;;  %v3398_v18 = vstv %s7785_s30 }
 0x29a   :  { %s7835_s16 = sld [smem:[#allocation12 + $0x28]] }
 0x29b   :  { %9459 = sst [smem:[#allocation58_spill]] %s7787_s27 }
 0x29c   :  { %9460 = sst [smem:[#allocation59_spill]] %s7789_s28 }
 0x29d   :  { %9461 = sst [smem:[#allocation60_spill]] %s7791_s29 }
 0x29e   :  { %3379 = vrot.lane.b32.xlu1 %v7701_v54, %s9426_s24  ;;  %3377 = vrot.lane.b32.xlu0 %v7701_v54, %s9425_s1  ;;  %9465 = sst [smem:[#allocation64_spill]] %s7799_s5 }
 0x29f   :  { %3375 = vrot.lane.b32.xlu2 %v7701_v54, %s9424_s23  ;;  %9466 = sst [smem:[#allocation65_spill]] %s7801_s15 }
 0x2a0   :  { %s7803_s27 = sld [smem:[#allocation12 + $0x6f]] }
 0x2a1   :  { %s7805_s28 = sld [smem:[#allocation12 + $0x6]] }
 0x2a2   :  { %s7807_s29 = sld [smem:[#allocation12 + $0x1f]] }
 0x2a3   :  { %s7815_s5 = sld [smem:[#allocation12 + $0x5]] }
 0x2a4   :  { %s7817_s15 = sld [smem:[#allocation12 + $0x1e]] }
 0x2a5   :  { %9479 = sst [smem:[#allocation78_spill]] %s7835_s16 }
 0x2a6   :  { %3385 = vrot.lane.b32.xlu1 %v7727_v6, %s9425_s1  ;;  %3383 = vrot.lane.b32.xlu0 %v7727_v6, %s9424_s23  ;;  %s7751_s1 = sld [smem:[#allocation12 + $0x4]] }
 0x2a7   :  { %3381 = vrot.lane.b32.xlu2 %v7701_v54, %s9421_s13  ;;  %s7755_s23 = sld [smem:[#allocation12 + $0x1d]] }
 0x2a8   :  { %9467 = sst [smem:[#allocation66_spill]] %s7803_s27 }
 0x2a9   :  { %9468 = sst [smem:[#allocation67_spill]] %s7805_s28 }
 0x2aa   :  { %9469 = sst [smem:[#allocation68_spill]] %s7807_s29 }
 0x2ab   :  { %9473 = sst [smem:[#allocation72_spill]] %s7815_s5 }
 0x2ac   :  { %9444 = sst [smem:[#allocation43_spill]] %s7751_s1 }
 0x2ad   :  { %9445 = sst [smem:[#allocation44_spill]] %s7755_s23 }
 0x2ae   :  { %3389 = vrot.lane.b32.xlu0 %v7727_v6, %s9421_s13  ;;  %s7771_s1 = sld [smem:[#allocation12 + $0x53]] }
 0x2af   :  { %3387 = vrot.lane.b32.xlu2 %v7727_v6, %s9426_s24  ;;  %s7773_s13 = sld [smem:[#allocation12 + $0x6c]] }
 0x2b0   :  { %s7775_s23 = sld [smem:[#allocation12 + $0x3]] }
 0x2b1   :  { %s7779_s24 = sld [smem:[#allocation12 + $0x35]] }
 0x2b2   :  { %9474 = sst [smem:[#allocation73_spill]] %s7817_s15 }
 0x2b3   :  { %s7819_s27 = sld [smem:[#allocation12 + $0x37]] }
 0x2b4   :  { %9452 = sst [smem:[#allocation51_spill]] %s7771_s1  ;;  %v3738_v24 = vstv %s7771_s1 }
 0x2b5   :  { %9453 = sst [smem:[#allocation52_spill]] %s7773_s13 }
 0x2b6   :  { %9454 = sst [smem:[#allocation53_spill]] %s7775_s23 }
 0x2b7   :  { %9456 = sst [smem:[#allocation55_spill]] %s7779_s24 }
 0x2b8   :  { %s7793_s13 = sld [smem:[#allocation12 + $0x65]] }
 0x2b9   :  { %s7795_s23 = sld [smem:[#allocation12 + $0xb]] }
 0x2ba   :  { %s7797_s24 = sld [smem:[#allocation12 + $0x24]] }
 0x2bb   :  { %9475 = sst [smem:[#allocation74_spill]] %s7819_s27 }
 0x2bc   :  { %s7821_s28 = sld [smem:[#allocation12 + $0x50]] }
 0x2bd   :  { %s7830_s5 = sld [smem:[#allocation12 + $0xf]] }
 0x2be   :  { %9462 = sst [smem:[#allocation61_spill]] %s7793_s13 }
 0x2bf   :  { %9463 = sst [smem:[#allocation62_spill]] %s7795_s23 }
 0x2c0   :  { %9464 = sst [smem:[#allocation63_spill]] %s7797_s24 }
 0x2c1   :  { %s7809_s13 = sld [smem:[#allocation12 + $0x38]] }
 0x2c2   :  { %s7811_s23 = sld [smem:[#allocation12 + $0x51]] }
 0x2c3   :  { %s7813_s24 = sld [smem:[#allocation12 + $0x6a]] }
 0x2c4   :  { %9476 = sst [smem:[#allocation75_spill]] %s7821_s28 }
 0x2c5   :  { %9478 = sst [smem:[#allocation77_spill]] %s7830_s5 }
 0x2c6   :  { %s9480_s7 = sld [smem:[#allocation27_spill]] }
 0x2c7   :  { %9470 = sst [smem:[#allocation69_spill]] %s7809_s13 }
 0x2c8   :  { %9471 = sst [smem:[#allocation70_spill]] %s7811_s23 }
 0x2c9   :  { %9472 = sst [smem:[#allocation71_spill]] %s7813_s24 }
 0x2ca   :  { %s7827_s24 = sld [smem:[#allocation12 + $0x69]] }
 0x2cb   :  { %s9481_s9 = sld [smem:[#allocation28_spill]] }
 0x2cc   :  { %s9482_s18 = sld [smem:[#allocation30_spill]]  ;;  %v3482_v5 = vstv %s9480_s7 }
 0x2cd   :  { %s9483_s28 = sld [smem:[#allocation31_spill]]  ;;  %v7933_v62 = vmul.f32 %v3482_v5, %v7727_v6 }
 0x2ce   :  { %s7841_s19 = sld [smem:[#allocation12 + $0x41]] }
 0x2cf   :  { %s9485_s6 = sld [smem:[#allocation32_spill]] }
 0x2d0   :  { %9477 = sst [smem:[#allocation76_spill]] %s7827_s24 }
 0x2d1   :  { %s7847_s20 = sld [smem:[#allocation12 + $0x5a]]  ;;  %v3586_v34 = vstv %s9481_s9 }
 0x2d2   :  { %s7853_s8 = sld [smem:[#allocation12 + $0x73]]  ;;  %v3690_v11 = vstv %s9482_s18  ;;  %v7936_v16 = vmul.f32 %v3586_v34, %v7727_v6 }
 0x2d3   :  { %v3794_v36 = vstv %s9483_s28  ;;  %s7868_s0 = sld [smem:[#allocation12 + $0xa]]  ;;  %v7939_v13 = vmul.f32 %v3690_v11, %v7727_v6 }
 0x2d4   :  { %9484 = sst [smem:[#allocation27_spill]] %s7841_s19  ;;  %v7946_v1 = vmul.f32 %v3794_v36, %v7727_v6 }
 0x2d5   :  { %v3898_v40 = vstv %s9485_s6  ;;  %s7877_s10 = sld [smem:[#allocation12 + $0x23]] }
 0x2d6   :  { %s7885_s12 = sld [smem:[#allocation12 + $0x3c]]  ;;  %v7949_v2 = vmul.f32 %v3898_v40, %v7727_v6 }
 0x2d7   :  { %9486 = sst [smem:[#allocation28_spill]] %s7847_s20 }
 0x2d8   :  { %9487 = sst [smem:[#allocation30_spill]] %s7853_s8 }
 0x2d9   :  { %9488 = sst [smem:[#allocation31_spill]] %s7868_s0  ;;  %v3352_v21 = vpop.permute.xlu2 %3351 }
 0x2da   :  { %s7899_s11 = sld [smem:[#allocation12 + $0x55]] }
 0x2db   :  { %9489 = sst [smem:[#allocation32_spill]] %s7877_s10 }
 0x2dc   :  { %9490 = sst [smem:[#allocation79_spill]] %s7885_s12 }
 0x2dd   :  { %s9492_s17 = sld [smem:[#allocation33_spill]] }
 0x2de   :  { %s9493_s21 = sld [smem:[#allocation34_spill]] }
 0x2df   :  { %s9494_s22 = sld [smem:[#allocation35_spill]] }
 0x2e0   :  { %9491 = sst [smem:[#allocation80_spill]] %s7899_s11 }
 0x2e1   :  { %s7913_s2 = sld [smem:[#allocation12 + $0x6e]]  ;;  %v3358_v60 = vpop.permute.xlu2 %3357 }
 0x2e2   :  { %s9496_s14 = sld [smem:[#allocation36_spill]] }
 0x2e3   :  { %s9497_s26 = sld [smem:[#allocation37_spill]]  ;;  %v3392_v50 = vstv %s9492_s17 }
 0x2e4   :  { %s9498_s25 = sld [smem:[#allocation38_spill]]  ;;  %v3394_v27 = vstv %s9493_s21 }
 0x2e5   :  { %s9499_s3 = sld [smem:[#allocation39_spill]]  ;;  %v3496_v35 = vstv %s9494_s22  ;;  %v3395_v14 = vmul.f32 %v3394_v27, %v3352_v21  ;;  %v3522_v27 = vstv %s7807_s29 }
 0x2e6   :  { %s7927_s28 = sld [smem:[#allocation12 + $0x9]] }
 0x2e7   :  { %9495 = sst [smem:[#allocation33_spill]] %s7913_s2 }
 0x2e8   :  { %s9501_s7 = sld [smem:[#allocation40_spill]]  ;;  %v3498_v3 = vstv %s9496_s14 }
 0x2e9   :  { %s9502_s9 = sld [smem:[#allocation41_spill]]  ;;  %v3600_v4 = vstv %s9497_s26  ;;  %v3499_v5 = vmul.f32 %v3498_v3, %v3352_v21 }
 0x2ea   :  { %s9503_s18 = sld [smem:[#allocation42_spill]]  ;;  %v3602_v39 = vstv %s9498_s25 }
 0x2eb   :  { %s9504_s6 = sld [smem:[#allocation43_spill]]  ;;  %v3704_v48 = vstv %s9499_s3  ;;  %v3603_v36 = vmul.f32 %v3602_v39, %v3352_v21 }
 0x2ec   :  { %9500 = sst [smem:[#allocation34_spill]] %s7927_s28 }
 0x2ed   :  { %s9505_s2 = sld [smem:[#allocation44_spill]]  ;;  %v3604_v15 = vadd.f32 %v3603_v36, %v3600_v4 }
 0x2ee   :  { %s9506_s28 = sld [smem:[#allocation45_spill]]  ;;  %v3706_v30 = vstv %s9501_s7 }
 0x2ef   :  { %s7943_s11 = sld [smem:[#allocation12 + $0x22]]  ;;  %v3808_v54 = vstv %s9502_s9  ;;  %v3707_v40 = vmul.f32 %v3706_v30, %v3352_v21 }
 0x2f0   :  { %s9508_s12 = sld [smem:[#allocation46_spill]]  ;;  %v3810_v19 = vstv %s9503_s18 }
 0x2f1   :  { %s9509_s10 = sld [smem:[#allocation47_spill]]  ;;  %v3410_v26 = vstv %s9504_s6  ;;  %v3811_v0 = vmul.f32 %v3810_v19, %v3352_v21  ;;  %v8012_v21 = vadd.f32 %v3395_v14, %v3392_v50  ;;  %v8014_v19 = vadd.f32 %v3499_v5, %v3496_v35  ;;  %v3354_v50 = vpop.permute.xlu0 %3353 }
 0x2f2   :  { %s9510_s0 = sld [smem:[#allocation48_spill]]  ;;  %v8020_v11 = vadd.f32 %v3707_v40, %v3704_v48  ;;  %v8033_v4 = vmul.f32 %v3410_v26, %v3358_v60 }
 0x2f3   :  { %s9511_s8 = sld [smem:[#allocation49_spill]]  ;;  %v3514_v6 = vstv %s9505_s2  ;;  %v8022_v39 = vadd.f32 %v3811_v0, %v3808_v54  ;;  %v3364_v0 = vpop.permute.xlu2 %3363 }
 0x2f4   :  { %s9512_s20 = sld [smem:[#allocation50_spill]]  ;;  %v3618_v42 = vstv %s9506_s28  ;;  %v8035_v48 = vmul.f32 %v3514_v6, %v3358_v60  ;;  %v8090_v54 = vmul.f32 %v3738_v24, %v3364_v0 }
 0x2f5   :  { %9507 = sst [smem:[#allocation35_spill]] %s7943_s11  ;;  %v8043_v36 = vmul.f32 %v3618_v42, %v3358_v60 }
 0x2f6   :  { %s7955_s17 = sld [smem:[#allocation12 + $0x3b]]  ;;  %v3722_v33 = vstv %s9508_s12 }
 0x2f7   :  { %s9513_s21 = sld [smem:[#allocation52_spill]]  ;;  %v3826_v7 = vstv %s9509_s10  ;;  %v8047_v40 = vmul.f32 %v3722_v33, %v3358_v60 }
 0x2f8   :  { %s7961_s19 = sld [smem:[#allocation12 + $0x54]]  ;;  %v3426_v55 = vstv %s9510_s0  ;;  %v8051_v26 = vmul.f32 %v3826_v7, %v3358_v60 }
 0x2f9   :  { %s7967_s26 = sld [smem:[#allocation12 + $0x6d]]  ;;  %v3530_v25 = vstv %s9511_s8  ;;  %v8074_v14 = vmul.f32 %v3426_v55, %v3364_v0 }
 0x2fa   :  { %s9520_s25 = sld [smem:[#allocation58_spill]]  ;;  %v3634_v63 = vstv %s9512_s20  ;;  %v8078_v42 = vmul.f32 %v3530_v25, %v3364_v0  ;;  %v3356_v25 = vpop.permute.xlu1 %3355 }
 0x2fb   :  { %s9521_s3 = sld [smem:[#allocation59_spill]]  ;;  %v8086_v5 = vmul.f32 %v3634_v63, %v3364_v0  ;;  %v3399_v63 = vmul.f32 %v3398_v18, %v3354_v50 }
 0x2fc   :  { %s9522_s7 = sld [smem:[#allocation60_spill]] }
 0x2fd   :  { %s9523_s9 = sld [smem:[#allocation61_spill]]  ;;  %v3842_v8 = vstv %s9513_s21  ;;  %v3400_v60 = vadd.f32 %v3399_v63, %v8012_v21 }
 0x2fe   :  { %9515 = sst [smem:[#allocation36_spill]] %s7961_s19  ;;  %v8094_v55 = vmul.f32 %v3842_v8, %v3364_v0 }
 0x2ff   :  { %9519 = sst [smem:[#allocation37_spill]] %s7967_s26  ;;  %v3404_v6 = vadd.f32 %v7860_v56, %v3400_v60 }
 0x300   :  { %s7973_s18 = sld [smem:[#allocation12 + $0x13]]  ;;  %v3502_v31 = vstv %s9520_s25 }
 0x301   :  { %s9525_s2 = sld [smem:[#allocation62_spill]]  ;;  %v3606_v28 = vstv %s9521_s3  ;;  %v3503_v24 = vmul.f32 %v3502_v31, %v3354_v50 }
 0x302   :  { %s7979_s19 = sld [smem:[#allocation12 + $0x2c]]  ;;  %v3710_v37 = vstv %s9522_s7  ;;  %v3607_v3 = vmul.f32 %v3606_v28, %v3354_v50  ;;  %v3362_v60 = vpop.permute.xlu1 %3361 }
 0x303   :  { %s7985_s26 = sld [smem:[#allocation12 + $0x45]]  ;;  %v3814_v38 = vstv %s9523_s9  ;;  %v3711_v8 = vmul.f32 %v3710_v37, %v3354_v50  ;;  %v3504_v33 = vadd.f32 %v3503_v24, %v8014_v19 }
 0x304   :  { %s9532_s1 = sld [smem:[#allocation67_spill]]  ;;  %v3815_v0 = vmul.f32 %v3814_v38, %v3354_v50  ;;  %v3608_v18 = vadd.f32 %v3607_v3, %v3604_v15  ;;  %v3370_v15 = vpop.permute.xlu2 %3369 }
 0x305   :  { %9533 = sst [smem:[#allocation41_spill]] %s7991_s4  ;;  %v3712_v20 = vadd.f32 %v3711_v8, %v8020_v11  ;;  %v3508_v21 = vadd.f32 %v7863_v9, %v3504_v33  ;;  %v3360_v9 = vpop.permute.xlu0 %3359 }
 0x306   :  { %9524 = sst [smem:[#allocation38_spill]] %s7973_s18  ;;  %v3816_v37 = vadd.f32 %v3815_v0, %v8022_v39  ;;  %v3612_v19 = vadd.f32 %v7866_v17, %v3608_v18 }
 0x307   :  { %v3438_v34 = vstv %s9525_s2  ;;  %s7995_s16 = sld [smem:[#allocation12 + $0x77]] }
 0x308   :  { %9527 = sst [smem:[#allocation39_spill]] %s7979_s19  ;;  %v3820_v56 = vadd.f32 %v7875_v41, %v3816_v37 }
 0x309   :  { %9529 = sst [smem:[#allocation40_spill]] %s7985_s26 }
 0x30a   :  { %s7998_s11 = sld [smem:[#allocation12 + $0xe]]  ;;  %v3418_v10 = vstv %s9532_s1 }
 0x30b   :  { %s8004_s7 = sld [smem:[#allocation12 + $0x27]]  ;;  %v3419_v41 = vmul.f32 %v3418_v10, %v3362_v60 }
 0x30c   :  { %s8010_s3 = sld [smem:[#allocation12 + $0x40]] }
 0x30d   :  { %9536 = sst [smem:[#allocation42_spill]] %s7995_s16 }
 0x30e   :  { %s8018_s0 = sld [smem:[#allocation12 + $0x59]] }
 0x30f   :  { %s9542_s14 = sld [smem:[#allocation31_spill]] }
 0x310   :  { %s8025_s23 = sld [smem:[#allocation12 + $0x72]] }
 0x311   :  { %s9544_s13 = sld [smem:[#allocation32_spill]] }
 0x312   :  { %s8031_s29 = sld [smem:[#allocation12 + $0xd]] }
 0x313   :  { %s9548_s1 = sld [smem:[#allocation34_spill]] }
 0x314   :  { %s9549_s25 = sld [smem:[#allocation35_spill]] }
 0x315   :  { %s9550_s9 = sld [smem:[#allocation36_spill]] }
 0x316   :  { %9543 = sst [smem:[#allocation43_spill]] %s8025_s23 }
 0x317   :  { %s8039_s24 = sld [smem:[#allocation12 + $0x26]] }
 0x318   :  { %s9551_s5 = sld [smem:[#allocation37_spill]] }
 0x319   :  { %s8054_s8 = sld [smem:[#allocation12 + $0x3f]] }
 0x31a   :  { %s8060_s28 = sld [smem:[#allocation12 + $0x58]] }
 0x31b   :  { %s8070_s6 = sld [smem:[#allocation12 + $0x71]] }
 0x31c   :  { %s8082_s15 = sld [smem:[#allocation12 + $0x17]] }
 0x31d   :  { %s9561_s20 = sld [smem:[#allocation53_spill]]  ;;  %v3550_v35 = vstv %s8039_s24 }
 0x31e   :  { %s9562_s2 = sld [smem:[#allocation54_spill]] }
 0x31f   :  { %s9563_s12 = sld [smem:[#allocation55_spill]] }
 0x320   :  { %s9564_s21 = sld [smem:[#allocation56_spill]]  ;;  %v3758_v7 = vstv %s8060_s28 }
 0x321   :  { %s9568_s27 = sld [smem:[#allocation57_spill]]  ;;  %v3862_v11 = vstv %s8070_s6 }
 0x322   :  { %9559 = sst [smem:[#allocation44_spill]] %s8082_s15 }
 0x323   :  { %v9565_v12 = vstv %s9561_s20  ;;  %s9570_s22 = sld [smem:[#allocation63_spill]] }
 0x324   :  { %v3407_v31 = vmul.f32 %v9565_v12, %v3356_v25  ;;  %v9566_v30 = vstv %s9562_s2  ;;  %s9574_s10 = sld [smem:[#allocation72_spill]] }
 0x325   :  { %v3511_v28 = vmul.f32 %v9566_v30, %v3356_v25  ;;  %v9567_v38 = vstv %s9563_s12  ;;  %v3716_v30 = vadd.f32 %v7872_v44, %v3712_v20  ;;  %s8133_s20 = sld [smem:[#allocation12 + $0x12]]  ;;  %v8142_v20 = vmul.f32 %v3438_v34, %v3370_v15 }
 0x326   :  { %v3615_v50 = vmul.f32 %v9567_v38, %v3356_v25  ;;  %v9571_v3 = vstv %s9564_s21  ;;  %s9575_s2 = sld [smem:[#allocation73_spill]]  ;;  %v3408_v33 = vadd.f32 %v3407_v31, %v3404_v6  ;;  %v3523_v6 = vmul.f32 %v3522_v27, %v3362_v60 }
 0x327   :  { %v3719_v12 = vmul.f32 %v9571_v3, %v3356_v25  ;;  %s9576_s12 = sld [smem:[#allocation74_spill]]  ;;  %v3512_v17 = vadd.f32 %v3511_v28, %v3508_v21  ;;  %v9577_v24 = vstv %s9568_s27 }
 0x328   :  { %v3616_v63 = vadd.f32 %v3615_v50, %v3612_v19  ;;  %s8136_s21 = sld [smem:[#allocation12 + $0x2b]]  ;;  %v3823_v44 = vmul.f32 %v9577_v24, %v3356_v25  ;;  %v3412_v18 = vadd.f32 %v8033_v4, %v3408_v33 }
 0x329   :  { %s9578_s16 = sld [smem:[#allocation75_spill]]  ;;  %v9579_v8 = vstv %s9570_s22  ;;  %v3516_v34 = vadd.f32 %v8035_v48, %v3512_v17  ;;  %v3720_v21 = vadd.f32 %v3719_v12, %v3716_v30 }
 0x32a   :  { %s9580_s15 = sld [smem:[#allocation76_spill]]  ;;  %v8146_v0 = vmul.f32 %v9579_v8, %v3370_v15  ;;  %v9582_v31 = vstv %s9574_s10  ;;  %v3620_v38 = vadd.f32 %v8043_v36, %v3616_v63  ;;  %v3824_v3 = vadd.f32 %v3823_v44, %v3820_v56 }
 0x32b   :  { %s9581_s4 = sld [smem:[#allocation69_spill]]  ;;  %v3415_v28 = vmul.f32 %v9582_v31, %v3360_v9 }
 0x32c   :  { %s8150_s19 = sld [smem:[#allocation12 + $0x44]]  ;;  %v9585_v25 = vstv %s9575_s2  ;;  %v3828_v56 = vadd.f32 %v8051_v26, %v3824_v3 }
 0x32d   :  { %s9583_s27 = sld [smem:[#allocation64_spill]]  ;;  %v3519_v37 = vmul.f32 %v9585_v25, %v3360_v9  ;;  %v9587_v10 = vstv %s9576_s12  ;;  %v3416_v19 = vadd.f32 %v3415_v28, %v3412_v18  ;;  %v3724_v25 = vadd.f32 %v8047_v40, %v3720_v21  ;;  %v3366_v21 = vpop.permute.xlu0 %3365 }
 0x32e   :  { %s9584_s30 = sld [smem:[#allocation65_spill]]  ;;  %v3623_v50 = vmul.f32 %v9587_v10, %v3360_v9 }
 0x32f   :  { %s8158_s23 = sld [smem:[#allocation12 + $0x5d]]  ;;  %v9588_v27 = vstv %s9578_s16  ;;  %v3520_v17 = vadd.f32 %v3519_v37, %v3516_v34  ;;  %v3420_v30 = vadd.f32 %v3419_v41, %v3416_v19  ;;  %v3466_v19 = vstv %s8133_s20 }
 0x330   :  { %s9586_s22 = sld [smem:[#allocation70_spill]]  ;;  %v3727_v4 = vmul.f32 %v9588_v27, %v3360_v9  ;;  %v9591_v33 = vstv %s9580_s15  ;;  %v3624_v31 = vadd.f32 %v3623_v50, %v3620_v38  ;;  %v3368_v50 = vpop.permute.xlu1 %3367 }
 0x331   :  { %s9589_s26 = sld [smem:[#allocation66_spill]]  ;;  %v3831_v24 = vmul.f32 %v9591_v33, %v3360_v9  ;;  %v9592_v8 = vstv %s9581_s4  ;;  %v3524_v18 = vadd.f32 %v3523_v6, %v3520_v17  ;;  %v3424_v26 = vadd.f32 %v7880_v45, %v3420_v30 }
 0x332   :  { %s9590_s18 = sld [smem:[#allocation71_spill]]  ;;  %v3627_v48 = vmul.f32 %v9592_v8, %v3362_v60  ;;  %v3728_v34 = vadd.f32 %v3727_v4, %v3724_v25  ;;  %v3570_v6 = vstv %s8136_s21  ;;  %v3674_v27 = vstv %s8150_s19 }
 0x333   :  { %v9593_v39 = vstv %s9583_s27  ;;  %v3832_v10 = vadd.f32 %v3831_v24, %v3828_v56  ;;  %v9598_v4 = vstv %s9542_s14  ;;  %s9599_s4 = sld [smem:[#allocation77_spill]]  ;;  %v3376_v24 = vpop.permute.xlu2 %3375  ;;  %v9600_v8 = vstv %s9548_s1 }
 0x334   :  { %v8174_v36 = vmul.f32 %v9593_v39, %v3370_v15  ;;  %v9594_v63 = vstv %s9584_s30  ;;  %v3628_v28 = vadd.f32 %v3627_v48, %v3624_v31  ;;  %v3435_v33 = vmul.f32 %v9598_v4, %v3368_v50  ;;  %s9602_s15 = sld [smem:[#allocation79_spill]] }
 0x335   :  { %v8178_v12 = vmul.f32 %v9594_v63, %v3370_v15  ;;  %v3431_v48 = vmul.f32 %v9600_v8, %v3366_v21  ;;  %v3528_v17 = vadd.f32 %v7883_v22, %v3524_v18  ;;  %v9601_v45 = vstv %s9549_s25  ;;  %s8203_s16 = sld [smem:[#allocation12 + $0x76]] }
 0x336   :  { %v9595_v44 = vstv %s9586_s22  ;;  %v3535_v31 = vmul.f32 %v9601_v45, %v3366_v21  ;;  %v3632_v25 = vadd.f32 %v7888_v46, %v3628_v28  ;;  %v9603_v63 = vstv %s7955_s17  ;;  %s9605_s14 = sld [smem:[#allocation80_spill]]  ;;  %v3372_v45 = vpop.permute.xlu0 %3371 }
 0x337   :  { %v3731_v9 = vmul.f32 %v9595_v44, %v3362_v60  ;;  %v9596_v40 = vstv %s9589_s26  ;;  %v3639_v30 = vmul.f32 %v9603_v63, %v3366_v21  ;;  %s9606_s10 = sld [smem:[#allocation33_spill]]  ;;  %v3532_v22 = vadd.f32 %v8078_v42, %v3528_v17 }
 0x338   :  { %v8185_v37 = vmul.f32 %v9596_v40, %v3370_v15  ;;  %v9597_v39 = vstv %s9590_s18  ;;  %v3428_v15 = vadd.f32 %v8074_v14, %v3424_v26  ;;  %v9604_v14 = vstv %s9550_s9  ;;  %s9609_s1 = sld [smem:[#allocation78_spill]] }
 0x339   :  { %v3835_v38 = vmul.f32 %v9597_v39, %v3362_v60  ;;  %v3732_v41 = vadd.f32 %v3731_v9, %v3728_v34  ;;  %v3778_v60 = vstv %s8158_s23  ;;  %v3743_v44 = vmul.f32 %v9604_v14, %v3366_v21  ;;  %s9611_s17 = sld [smem:[#allocation27_spill]] }
 0x33a   :  { %v3432_v34 = vadd.f32 %v3431_v48, %v3428_v15  ;;  %v3636_v18 = vadd.f32 %v8086_v5, %v3632_v25  ;;  %v9607_v40 = vstv %s9551_s5  ;;  %v9608_v46 = vstv %s9599_s4  ;;  %s9613_s25 = sld [smem:[#allocation28_spill]] }
 0x33b   :  { %v3836_v3 = vadd.f32 %v3835_v38, %v3832_v10  ;;  %v3736_v56 = vadd.f32 %v7891_v29, %v3732_v41  ;;  %v3847_v39 = vmul.f32 %v9607_v40, %v3366_v21  ;;  %v8217_v28 = vmul.f32 %v9608_v46, %v3376_v24  ;;  %s9614_s9 = sld [smem:[#allocation30_spill]] }
 0x33c   :  { %v9610_v38 = vstv %s9544_s13  ;;  %v9612_v41 = vstv %s9602_s15  ;;  %v3536_v42 = vadd.f32 %v3535_v31, %v3532_v22  ;;  %v3640_v5 = vadd.f32 %v3639_v30, %v3636_v18  ;;  %s8225_s5 = sld [smem:[#allocation12 + $0x10]] }
 0x33d   :  { %v3840_v9 = vadd.f32 %v7894_v32, %v3836_v3  ;;  %v3539_v29 = vmul.f32 %v9610_v38, %v3368_v50  ;;  %v3740_v10 = vadd.f32 %v8090_v54, %v3736_v56  ;;  %v3643_v32 = vmul.f32 %v9612_v41, %v3368_v50  ;;  %s8231_s13 = sld [smem:[#allocation12 + $0x29]] }
 0x33e   :  { %v3436_v3 = vadd.f32 %v3435_v33, %v3432_v34  ;;  %v9615_v21 = vstv %s9605_s14  ;;  %v9616_v15 = vstv %s9606_s10  ;;  %v9617_v54 = vstv %s9609_s1  ;;  %s8241_s2 = sld [smem:[#allocation12 + $0x42]]  ;;  %v3374_v34 = vpop.permute.xlu1 %3373  ;;  %s9641_s1 = smov 127  }
 0x33f   :  { %v3844_v26 = vadd.f32 %v8094_v55, %v3840_v9  ;;  %v3747_v4 = vmul.f32 %v9615_v21, %v3368_v50  ;;  %v3851_v8 = vmul.f32 %v9616_v15, %v3368_v50  ;;  %v3744_v48 = vadd.f32 %v3743_v44, %v3740_v10  ;;  %s8251_s12 = sld [smem:[#allocation12 + $0x5b]] }
 0x340   :  { %v8235_v55 = vmul.f32 %v9617_v54, %v3376_v24  ;;  %v9618_v33 = vstv %s9611_s17  ;;  %v3540_v25 = vadd.f32 %v3539_v29, %v3536_v42  ;;  %v3644_v63 = vadd.f32 %v3643_v32, %v3640_v5  ;;  %s8258_s27 = sld [smem:[#allocation12 + $0x74]]  ;;  %s9642_s17 = smov 1  }
 0x341   :  { %v3848_v17 = vadd.f32 %v3847_v39, %v3844_v26  ;;  %v8239_v31 = vmul.f32 %v9618_v33, %v3376_v24  ;;  %v9619_v50 = vstv %s9613_s25  ;;  %v9620_v56 = vstv %s9614_s9  ;;  %s8266_s30 = sld [smem:[#allocation12 + $0x15]]  ;;  %s9643_s25 = smov 2  }
 0x342   :  { %v8245_v30 = vmul.f32 %v9619_v50, %v3376_v24  ;;  %v8249_v14 = vmul.f32 %v9620_v56, %v3376_v24  ;;  %v3748_v44 = vadd.f32 %v3747_v4, %v3744_v48  ;;  %v3440_v22 = vadd.f32 %v8142_v20, %v3436_v3  ;;  %s8273_s24 = sld [smem:[#allocation12 + $0x2e]]  ;;  %v3378_v48 = vpop.permute.xlu0 %3377 }
 0x343   :  { %v3852_v9 = vadd.f32 %v3851_v8, %v3848_v17  ;;  %v9621_v18 = vstv %s8031_s29  ;;  %v3544_v39 = vadd.f32 %v8146_v0, %v3540_v25  ;;  %v3882_v46 = vstv %s8203_s16  ;;  %s9624_s29 = sld [smem:[#allocation43_spill]] }
 0x344   :  { %v3447_v40 = vmul.f32 %v9621_v18, %v3372_v45  ;;  %v3551_v24 = vmul.f32 %v3550_v35, %v3372_v45  ;;  %v3648_v38 = vadd.f32 %v8174_v36, %v3644_v63  ;;  %v9622_v29 = vstv %s8054_s8  ;;  %s8281_s8 = sld [smem:[#allocation12 + $0x47]] }
 0x345   :  { %v3655_v10 = vmul.f32 %v9622_v29, %v3372_v45  ;;  %v3752_v26 = vadd.f32 %v8178_v12, %v3748_v44  ;;  %v3444_v20 = vadd.f32 %v7897_v57, %v3440_v22  ;;  %v3548_v0 = vadd.f32 %v7902_v51, %v3544_v39  ;;  %v3382_v57 = vpop.permute.xlu2 %3381  ;;  %s9626_s28 = sld [smem:[#allocation38_spill]] }
 0x346   :  { %v3759_v41 = vmul.f32 %v3758_v7, %v3372_v45  ;;  %v3856_v32 = vadd.f32 %v8185_v37, %v3852_v9  ;;  %v9623_v35 = vstv %s7998_s11  ;;  %v3652_v3 = vadd.f32 %v7905_v49, %v3648_v38  ;;  %s9627_s22 = sld [smem:[#allocation39_spill]]  ;;  %v3380_v29 = vpop.permute.xlu1 %3379 }
 0x347   :  { %v3451_v36 = vmul.f32 %v9623_v35, %v3374_v34  ;;  %v3756_v12 = vadd.f32 %v7908_v52, %v3752_v26  ;;  %v3863_v42 = vmul.f32 %v3862_v11, %v3372_v45  ;;  %v9625_v51 = vstv %s8004_s7  ;;  %s8286_s11 = sld [smem:[#allocation12 + $0x60]] }
 0x348   :  { %v3555_v5 = vmul.f32 %v9625_v51, %v3374_v34  ;;  %v3448_v7 = vadd.f32 %v3447_v40, %v3444_v20  ;;  %v3552_v37 = vadd.f32 %v3551_v24, %v3548_v0  ;;  %v3860_v21 = vadd.f32 %v7911_v53, %v3856_v32  ;;  %s9630_s26 = sld [smem:[#allocation40_spill]] }
 0x349   :  { %v9628_v4 = vstv %s8010_s3  ;;  %v9629_v15 = vstv %s8018_s0  ;;  %s9631_s6 = sld [smem:[#allocation41_spill]]  ;;  %v3656_v11 = vadd.f32 %v3655_v10, %v3652_v3  ;;  %v3760_v8 = vadd.f32 %v3759_v41, %v3756_v12 }
 0x34a   :  { %v3659_v49 = vmul.f32 %v9628_v4, %v3374_v34  ;;  %v3763_v52 = vmul.f32 %v9629_v15, %v3374_v34  ;;  %s9632_s18 = sld [smem:[#allocation42_spill]]  ;;  %v9633_v17 = vstv %s9624_s29  ;;  %v3452_v54 = vadd.f32 %v3451_v36, %v3448_v7 }
 0x34b   :  { %s8292_s7 = sld [smem:[#allocation12 + $0x79]]  ;;  %v3867_v45 = vmul.f32 %v9633_v17, %v3374_v34  ;;  %v3556_v53 = vadd.f32 %v3555_v5, %v3552_v37  ;;  %v3864_v33 = vadd.f32 %v3863_v42, %v3860_v21  ;;  %v9634_v25 = vstv %s9626_s28 }
 0x34c   :  { %s8296_s3 = sld [smem:[#allocation12 + $0x14]]  ;;  %v8300_v63 = vmul.f32 %v9634_v25, %v3382_v57  ;;  %v9635_v50 = vstv %s9627_s22  ;;  %v3660_v44 = vadd.f32 %v3659_v49, %v3656_v11  ;;  %v3764_v9 = vadd.f32 %v3763_v52, %v3760_v8 }
 0x34d   :  { %v8304_v56 = vmul.f32 %v9635_v50, %v3382_v57  ;;  %s8306_s0 = sld [smem:[#allocation12 + $0x2d]]  ;;  %v3868_v38 = vadd.f32 %v3867_v45, %v3864_v33  ;;  %v3458_v10 = vstv %s8225_s5  ;;  %v3562_v26 = vstv %s8231_s13  ;;  %s9644_s13 = smov 126  }
 0x34e   :  { %v9636_v34 = vstv %s9630_s26  ;;  %s8320_s4 = sld [smem:[#allocation12 + $0x46]]  ;;  %v3666_v20 = vstv %s8241_s2  ;;  %v3770_v0 = vstv %s8251_s12  ;;  %v3874_v41 = vstv %s8258_s27  ;;  %v3386_v25 = vpop.permute.xlu1 %3385 }
 0x34f   :  { %v8310_v22 = vmul.f32 %v9636_v34, %v3382_v57  ;;  %v9637_v18 = vstv %s9631_s6  ;;  %s8326_s15 = sld [smem:[#allocation12 + $0x5f]]  ;;  %v3456_v32 = vadd.f32 %v8217_v28, %v3452_v54  ;;  %v3459_v35 = vmul.f32 %v3458_v10, %v3378_v48 }
 0x350   :  { %v8314_v40 = vmul.f32 %v9637_v18, %v3382_v57  ;;  %v9638_v39 = vstv %s9632_s18  ;;  %v3560_v36 = vadd.f32 %v8235_v55, %v3556_v53  ;;  %s8331_s14 = sld [smem:[#allocation12 + $0x78]]  ;;  %v3563_v3 = vmul.f32 %v3562_v26, %v3378_v48 }
 0x351   :  { %v8318_v24 = vmul.f32 %v9638_v39, %v3382_v57  ;;  %v3664_v12 = vadd.f32 %v8239_v31, %v3660_v44  ;;  %v3667_v42 = vmul.f32 %v3666_v20, %v3378_v48  ;;  %v3768_v57 = vadd.f32 %v8245_v30, %v3764_v9  ;;  %s8353_s19 = sld [smem:[#allocation12 + $0x18]] }
 0x352   :  { %v3460_v51 = vadd.f32 %v3459_v35, %v3456_v32  ;;  %v3771_v5 = vmul.f32 %v3770_v0, %v3378_v48  ;;  %v3872_v7 = vadd.f32 %v8249_v14, %v3868_v38  ;;  %v3875_v37 = vmul.f32 %v3874_v41, %v3378_v48  ;;  %v3384_v14 = vpop.permute.xlu0 %3383  ;;  %s8359_s23 = sld [smem:[#allocation12 + $0x30]]  ;;  %v8371_v32 = vpop.permute.xlu2 %3387 }
 0x353   :  { %v3467_v28 = vmul.f32 %v3466_v19, %v3380_v29  ;;  %v3571_v55 = vmul.f32 %v3570_v6, %v3380_v29  ;;  %v3564_v21 = vadd.f32 %v3563_v3, %v3560_v36  ;;  %v3668_v4 = vadd.f32 %v3667_v42, %v3664_v12  ;;  %s8365_s20 = sld [smem:[#allocation12 + $0x31]] }
 0x354   :  { %v3675_v31 = vmul.f32 %v3674_v27, %v3380_v29  ;;  %v3464_v30 = vadd.f32 %v7916_v23, %v3460_v51  ;;  %v3772_v49 = vadd.f32 %v3771_v5, %v3768_v57  ;;  %v3876_v15 = vadd.f32 %v3875_v37, %v3872_v7  ;;  %s9639_s21 = sld [smem:[#allocation44_spill]] }
 0x355   :  { %v3779_v19 = vmul.f32 %v3778_v60, %v3380_v29  ;;  %v3883_v6 = vmul.f32 %v3882_v46, %v3380_v29  ;;  %v3568_v52 = vadd.f32 %v7919_v58, %v3564_v21  ;;  %v3672_v11 = vadd.f32 %v7922_v59, %v3668_v4  ;;  %s6127_s16 = sld [smem:[#allocation12 + $0x49]] }
 0x356   :  { %v3776_v27 = vadd.f32 %v7925_v47, %v3772_v49  ;;  %v3880_v23 = vadd.f32 %v7930_v61, %v3876_v15  ;;  %v3478_v8 = vstv %s8266_s30  ;;  %v3582_v48 = vstv %s8273_s24  ;;  %s6128_s10 = sld [smem:[#allocation12 + $0x4a]] }
 0x357   :  { %v3686_v17 = vstv %s8281_s8  ;;  %v3790_v45 = vstv %s8286_s11  ;;  %v3894_v54 = vstv %s8292_s7  ;;  %v3474_v60 = vstv %s8296_s3  ;;  %s6153_s9 = sld [smem:[#allocation12 + $0x62]] }
 0x358   :  { %v3578_v46 = vstv %s8306_s0  ;;  %v3682_v53 = vstv %s8320_s4  ;;  %v3786_v33 = vstv %s8326_s15  ;;  %v3890_v58 = vstv %s8331_s14  ;;  %s6154_s5 = sld [smem:[#allocation12 + $0x63]] }
 0x359   :  { %v3468_v59 = vadd.f32 %v3467_v28, %v3464_v30  ;;  %v3475_v50 = vmul.f32 %v3474_v60, %v3384_v14  ;;  %v3572_v47 = vadd.f32 %v3571_v55, %v3568_v52  ;;  %v3579_v44 = vmul.f32 %v3578_v46, %v3384_v14  ;;  %s6179_s2 = sld [smem:[#allocation12 + $0x7b]] }
 0x35a   :  { %v3676_v61 = vadd.f32 %v3675_v31, %v3672_v11  ;;  %v3683_v9 = vmul.f32 %v3682_v53, %v3384_v14  ;;  %v3780_v34 = vadd.f32 %v3779_v19, %v3776_v27  ;;  %v3787_v18 = vmul.f32 %v3786_v33, %v3384_v14  ;;  %v8375_v51 = vpop.permute.xlu0 %3389  ;;  %s8412_s12 = sld [smem:[#allocation12 + $0x7c]] }
 0x35b   :  { %v3472_v39 = vadd.f32 %v8300_v63, %v3468_v59  ;;  %v3576_v38 = vadd.f32 %v8304_v56, %v3572_v47  ;;  %v3884_v29 = vadd.f32 %v3883_v6, %v3880_v23  ;;  %v3891_v10 = vmul.f32 %v3890_v58, %v3384_v14  ;;  %s8414_s27 = sld [smem:[#allocation15 + $0x2]] }
 0x35c   :  { %v3479_v26 = vmul.f32 %v3478_v8, %v3386_v25  ;;  %v3583_v20 = vmul.f32 %v3582_v48, %v3386_v25  ;;  %v3680_v0 = vadd.f32 %v8310_v22, %v3676_v61  ;;  %v3784_v41 = vadd.f32 %v8314_v40, %v3780_v34  ;;  %s8416_s30 = sld [smem:[#allocation15 + $0x1b]] }
 0x35d   :  { %v3687_v35 = vmul.f32 %v3686_v17, %v3386_v25  ;;  %v3476_v36 = vadd.f32 %v3475_v50, %v3472_v39  ;;  %v3580_v3 = vadd.f32 %v3579_v44, %v3576_v38  ;;  %v3888_v63 = vadd.f32 %v8318_v24, %v3884_v29  ;;  %s8418_s24 = sld [smem:[#allocation15 + $0x34]] }
 0x35e   :  { %v3791_v12 = vmul.f32 %v3790_v45, %v3386_v25  ;;  %v3684_v42 = vadd.f32 %v3683_v9, %v3680_v0  ;;  %v3788_v56 = vadd.f32 %v3787_v18, %v3784_v41  ;;  %v3490_v57 = vstv %s8353_s19  ;;  %s8424_s29 = sld [smem:[#allocation15 + $0x4d]] }
 0x35f   :  { %v3895_v5 = vmul.f32 %v3894_v54, %v3386_v25  ;;  %v3480_v22 = vadd.f32 %v3479_v26, %v3476_v36  ;;  %v3584_v7 = vadd.f32 %v3583_v20, %v3580_v3  ;;  %v3892_v37 = vadd.f32 %v3891_v10, %v3888_v63  ;;  %s8430_s8 = sld [smem:[#allocation15 + $0x66]] }
 0x360   :  { %v3590_v40 = vstv %s8359_s23  ;;  %v9640_v28 = vstv %s9639_s21  ;;  %v3688_v21 = vadd.f32 %v3687_v35, %v3684_v42  ;;  %v3792_v4 = vadd.f32 %v3791_v12, %v3788_v56  ;;  %s8435_s28 = sld [smem:[#allocation15 + $0x7]] }
 0x361   :  { %v3487_v55 = vmul.f32 %v9640_v28, %v8371_v32  ;;  %v3896_v31 = vadd.f32 %v3895_v5, %v3892_v37  ;;  %v3484_v24 = vadd.f32 %v7933_v62, %v3480_v22  ;;  %v3491_v30 = vmul.f32 %v3490_v57, %v8375_v51  ;;  %s8437_s22 = sld [smem:[#allocation15 + $0x20]] }
 0x362   :  { %v3588_v49 = vadd.f32 %v7936_v16, %v3584_v7  ;;  %v3594_v15 = vstv %s8365_s20  ;;  %v3692_v14 = vadd.f32 %v7939_v13, %v3688_v21  ;;  %v3796_v19 = vadd.f32 %v7946_v1, %v3792_v4  ;;  %s8440_s11 = sld [smem:[#allocation15 + $0x39]] }
 0x363   :  { %v3591_v6 = vmul.f32 %v3590_v40, %v8371_v32  ;;  %v3488_v52 = vadd.f32 %v3487_v55, %v3484_v24  ;;  %v3900_v11 = vadd.f32 %v7949_v2, %v3896_v31  ;;  %v3595_v8 = vmul.f32 %v3594_v15, %v8375_v51  ;;  %s8442_s26 = sld [smem:[#allocation15 + $0x52]] }
 0x364   :  { %v3694_v48 = vstv %s6127_s16  ;;  %v3698_v45 = vstv %s6128_s10  ;;  %v3798_v33 = vstv %s6153_s9  ;;  %v3802_v25 = vstv %s6154_s5  ;;  %s8444_s6 = sld [smem:[#allocation15 + $0x6b]] }
 0x365   :  { %v3492_v27 = vadd.f32 %v3491_v30, %v3488_v52  ;;  %v3592_v23 = vadd.f32 %v3591_v6, %v3588_v49  ;;  %v3695_v13 = vmul.f32 %v3694_v48, %v8371_v32  ;;  %v3699_v54 = vmul.f32 %v3698_v45, %v8375_v51  ;;  %s8446_s18 = sld [smem:[#allocation15 + $0xc]] }
 0x366   :  { %v3799_v59 = vmul.f32 %v3798_v33, %v8371_v32  ;;  %v3803_v47 = vmul.f32 %v3802_v25, %v8375_v51  ;;  %v3902_v44 = vstv %s6179_s2  ;;  %s8448_s7 = sld [smem:[#allocation15 + $0x25]]  ;;  %v3906_v9 = vstv %s8412_s12 }
 0x367   :  { %v3493_v62 = vmax.f32 %v3492_v27, 0.0  ;;  %v3596_v17 = vadd.f32 %v3595_v8, %v3592_v23  ;;  %v3696_v2 = vadd.f32 %v3695_v13, %v3692_v14  ;;  %s8455_s3 = sld [smem:[#allocation15 + $0x3e]]  ;;  %v3903_v34 = vmul.f32 %v3902_v44, %v8371_v32 }
 0x368   :  { %v3800_v50 = vadd.f32 %v3799_v59, %v3796_v19  ;;  %s8460_s0 = sld [smem:[#allocation15 + $0x57]]  ;;  %v3907_v38 = vmul.f32 %v3906_v9, %v8375_v51  ;;  %v3962_v0 = vstv %s8414_s27  ;;  %v4066_v41 = vstv %s8416_s30 }
 0x369   :  { %v8392_v16 = vsel %vm2790_vm3, %v3493_v62, 0.0  ;;  %v3597_v1 = vmax.f32 %v3596_v17, 0.0  ;;  %v3700_v46 = vadd.f32 %v3699_v54, %v3696_v2  ;;  %s8462_s4 = sld [smem:[#allocation15 + $0x70]]  ;;  %v3904_v39 = vadd.f32 %v3903_v34, %v3900_v11 }
 0x36a   :  { %3915 = vrot.lane.b32.xlu0 %v8392_v16, %s9641_s1  ;;  %3913 = vrot.lane.b32.xlu2 %v8392_v16, %s9642_s17  ;;  %v3804_v61 = vadd.f32 %v3803_v47, %v3800_v50  ;;  %s8465_s15 = sld [smem:[#allocation15 + $0x11]]  ;;  %v4170_v32 = vstv %s8418_s24  ;;  %v4274_v35 = vstv %s8424_s29  ;;  %v8621_v51 = vmul.f32 %v3962_v0, %v8392_v16 }
 0x36b   :  { %3911 = vrot.lane.b32.xlu1 %v8392_v16, %s9643_s25  ;;  %v8404_v60 = vsel %vm2790_vm3, %v3597_v1, 0.0  ;;  %v3701_v53 = vmax.f32 %v3700_v46, 0.0  ;;  %s8467_s14 = sld [smem:[#allocation15 + $0x2a]]  ;;  %v3908_v10 = vadd.f32 %v3907_v38, %v3904_v39  ;;  %v4378_v36 = vstv %s8430_s8 }
 0x36c   :  { %v3805_v18 = vmax.f32 %v3804_v61, 0.0  ;;  %s8469_s19 = sld [smem:[#allocation15 + $0x43]]  ;;  %v3982_v3 = vstv %s8435_s28  ;;  %v4086_v63 = vstv %s8437_s22  ;;  %v4190_v12 = vstv %s8440_s11 }
 0x36d   :  { %v8422_v58 = vsel %vm2790_vm3, %v3701_v53, 0.0  ;;  %s8471_s23 = sld [smem:[#allocation15 + $0x5c]]  ;;  %v3909_v26 = vmax.f32 %v3908_v10, 0.0  ;;  %v4294_v42 = vstv %s8442_s26  ;;  %v4398_v56 = vstv %s8444_s6 }
 0x36e   :  { %v8475_v29 = vsel %vm2790_vm3, %v3805_v18, 0.0  ;;  %s8477_s20 = sld [smem:[#allocation15 + $0x75]]  ;;  %v4002_v57 = vstv %s8446_s18  ;;  %v8624_v5 = vmul.f32 %v4066_v41, %v8392_v16  ;;  %v8627_v22 = vmul.f32 %v4170_v32, %v8392_v16 }
 0x36f   :  { %s8483_s21 = sld [smem:[#allocation15 + $0x16]]  ;;  %v8501_v20 = vsel %vm2790_vm3, %v3909_v26, 0.0  ;;  %v4106_v7 = vstv %s8448_s7  ;;  %v8631_v37 = vmul.f32 %v4274_v35, %v8392_v16  ;;  %v8634_v40 = vmul.f32 %v4378_v36, %v8392_v16 }
 0x370   :  { %s8487_s16 = sld [smem:[#allocation15 + $0x2f]]  ;;  %v8639_v28 = vmul.f32 %v3982_v3, %v8404_v60  ;;  %v8642_v55 = vmul.f32 %v4086_v63, %v8404_v60  ;;  %v8647_v21 = vmul.f32 %v4190_v12, %v8404_v60  ;;  %v8650_v4 = vmul.f32 %v4294_v42, %v8404_v60 }
 0x371   :  { %s8489_s10 = sld [smem:[#allocation15 + $0x48]]  ;;  %v8653_v31 = vmul.f32 %v4398_v56, %v8404_v60  ;;  %v8656_v24 = vmul.f32 %v4002_v57, %v8422_v58  ;;  %v8661_v30 = vmul.f32 %v4106_v7, %v8422_v58  ;;  %v4210_v49 = vstv %s8455_s3 }
 0x372   :  { %3921 = vrot.lane.b32.xlu0 %v8404_v60, %s9642_s17  ;;  %3919 = vrot.lane.b32.xlu2 %v8404_v60, %s9643_s25  ;;  %s8491_s9 = sld [smem:[#allocation15 + $0x61]]  ;;  %v4314_v15 = vstv %s8460_s0  ;;  %v4418_v14 = vstv %s8462_s4 }
 0x373   :  { %3917 = vrot.lane.b32.xlu1 %v8392_v16, %s9644_s13  ;;  %s8493_s5 = sld [smem:[#allocation15 + $0x7a]]  ;;  %v4022_v6 = vstv %s8465_s15  ;;  %v4126_v52 = vstv %s8467_s14  ;;  %v4230_v11 = vstv %s8469_s19  ;;  %v8683_v16 = vmul.f32 %v4210_v49, %v8422_v58 }
 0x374   :  { %s8495_s2 = sld [smem:[#allocation15 + $0x1]]  ;;  %v4334_v27 = vstv %s8471_s23  ;;  %v4438_v23 = vstv %s8477_s20  ;;  %v8686_v17 = vmul.f32 %v4314_v15, %v8422_v58  ;;  %v8689_v45 = vmul.f32 %v4418_v14, %v8422_v58 }
 0x375   :  { %9645 = sst [smem:[#allocation45_spill]] %s8483_s21  ;;  %v8695_v1 = vmul.f32 %v4022_v6, %v8475_v29  ;;  %v8698_v2 = vmul.f32 %v4126_v52, %v8475_v29  ;;  %v8701_v54 = vmul.f32 %v4230_v11, %v8475_v29  ;;  %v8709_v46 = vmul.f32 %v4438_v23, %v8475_v29 }
 0x376   :  { %9646 = sst [smem:[#allocation46_spill]] %s8487_s16 }
 0x377   :  { %9647 = sst [smem:[#allocation47_spill]] %s8489_s10 }
 0x378   :  { %9648 = sst [smem:[#allocation52_spill]] %s8491_s9 }
 0x379   :  { %9649 = sst [smem:[#allocation31_spill]] %s8493_s5 }
 0x37a   :  { %3927 = vrot.lane.b32.xlu0 %v8422_v58, %s9643_s25  ;;  %3925 = vrot.lane.b32.xlu2 %v8404_v60, %s9644_s13  ;;  %9650 = sst [smem:[#allocation32_spill]] %s8495_s2 }
 0x37b   :  { %3923 = vrot.lane.b32.xlu1 %v8404_v60, %s9641_s1  ;;  %s8497_s12 = sld [smem:[#allocation15 + $0x1a]]  ;;  %v8704_v60 = vmul.f32 %v4334_v27, %v8475_v29 }
 0x37c   :  { %s8503_s21 = sld [smem:[#allocation15 + $0x33]] }
 0x37d   :  { %s8509_s10 = sld [smem:[#allocation15 + $0x4c]] }
 0x37e   :  { %s8513_s5 = sld [smem:[#allocation15 + $0x65]] }
 0x37f   :  { %s8517_s2 = sld [smem:[#allocation15 + $0x1e]] }
 0x380   :  { %s8519_s9 = sld [smem:[#allocation15 + $0x37]] }
 0x381   :  { %9651 = sst [smem:[#allocation34_spill]] %s8497_s12 }
 0x382   :  { %3933 = vrot.lane.b32.xlu0 %v8422_v58, %s9644_s13  ;;  %3931 = vrot.lane.b32.xlu2 %v8422_v58, %s9641_s1  ;;  %9652 = sst [smem:[#allocation35_spill]] %s8503_s21 }
 0x383   :  { %3929 = vrot.lane.b32.xlu1 %v8422_v58, %s9642_s17  ;;  %9653 = sst [smem:[#allocation36_spill]] %s8509_s10 }
 0x384   :  { %9654 = sst [smem:[#allocation37_spill]] %s8513_s5 }
 0x385   :  { %s8515_s12 = sld [smem:[#allocation15 + $0x5]] }
 0x386   :  { %9656 = sst [smem:[#allocation49_spill]] %s8517_s2 }
 0x387   :  { %9657 = sst [smem:[#allocation50_spill]] %s8519_s9 }
 0x388   :  { %s8521_s21 = sld [smem:[#allocation15 + $0x50]] }
 0x389   :  { %s8523_s16 = sld [smem:[#allocation15 + $0x69]] }
 0x38a   :  { %3939 = vrot.lane.b32.xlu0 %v8475_v29, %s9641_s1  ;;  %3937 = vrot.lane.b32.xlu2 %v8475_v29, %s9642_s17  ;;  %s8533_s5 = sld [smem:[#allocation15 + $0x3b]] }
 0x38b   :  { %3935 = vrot.lane.b32.xlu1 %v8475_v29, %s9643_s25  ;;  %9655 = sst [smem:[#allocation48_spill]] %s8515_s12 }
 0x38c   :  { %s8535_s12 = sld [smem:[#allocation15 + $0x54]] }
 0x38d   :  { %s8537_s2 = sld [smem:[#allocation15 + $0x6d]] }
 0x38e   :  { %9658 = sst [smem:[#allocation51_spill]] %s8521_s21 }
 0x38f   :  { %9659 = sst [smem:[#allocation58_spill]] %s8523_s16 }
 0x390   :  { %9662 = sst [smem:[#allocation61_spill]] %s8533_s5 }
 0x391   :  { %s8539_s9 = sld [smem:[#allocation15 + $0x3]] }
 0x392   :  { %3945 = vrot.lane.b32.xlu0 %v8501_v20, %s9642_s17  ;;  %3943 = vrot.lane.b32.xlu2 %v8501_v20, %s9643_s25  ;;  %s8525_s17 = sld [smem:[#allocation15 + $0x9]] }
 0x393   :  { %3941 = vrot.lane.b32.xlu1 %v8475_v29, %s9644_s13  ;;  %s8529_s25 = sld [smem:[#allocation15 + $0x22]] }
 0x394   :  { %9663 = sst [smem:[#allocation53_spill]] %s8535_s12 }
 0x395   :  { %9664 = sst [smem:[#allocation54_spill]] %s8537_s2 }
 0x396   :  { %s8541_s21 = sld [smem:[#allocation15 + $0x1c]] }
 0x397   :  { %9665 = sst [smem:[#allocation55_spill]] %s8539_s9 }
 0x398   :  { %9660 = sst [smem:[#allocation59_spill]] %s8525_s17 }
 0x399   :  { %9661 = sst [smem:[#allocation60_spill]] %s8529_s25 }
 0x39a   :  { %3949 = vrot.lane.b32.xlu2 %v8501_v20, %s9644_s13  ;;  %s8543_s16 = sld [smem:[#allocation15 + $0x35]] }
 0x39b   :  { %3947 = vrot.lane.b32.xlu1 %v8501_v20, %s9641_s1  ;;  %s8545_s17 = sld [smem:[#allocation15 + $0x4e]] }
 0x39c   :  { %9666 = sst [smem:[#allocation56_spill]] %s8541_s21 }
 0x39d   :  { %s8547_s13 = sld [smem:[#allocation15 + $0x67]] }
 0x39e   :  { %s8549_s25 = sld [smem:[#allocation15 + $0xd]] }
 0x39f   :  { %s8551_s10 = sld [smem:[#allocation15 + $0x26]] }
 0x3a0   :  { %9667 = sst [smem:[#allocation57_spill]] %s8543_s16 }
 0x3a1   :  { %9668 = sst [smem:[#allocation62_spill]] %s8545_s17 }
 0x3a2   :  { %s8553_s1 = sld [smem:[#allocation15 + $0x3f]] }
 0x3a3   :  { %9669 = sst [smem:[#allocation63_spill]] %s8547_s13 }
 0x3a4   :  { %9670 = sst [smem:[#allocation67_spill]] %s8549_s25 }
 0x3a5   :  { %9671 = sst [smem:[#allocation68_spill]] %s8551_s10 }
 0x3a6   :  { %s8555_s5 = sld [smem:[#allocation15 + $0x58]] }
 0x3a7   :  { %s8557_s12 = sld [smem:[#allocation15 + $0x71]] }
 0x3a8   :  { %9672 = sst [smem:[#allocation72_spill]] %s8553_s1 }
 0x3a9   :  { %s8559_s2 = sld [smem:[#allocation16]] }
 0x3aa   :  { %s8561_s9 = sld [smem:[#allocation15]] }
 0x3ab   :  { %s8563_s21 = sld [smem:[#allocation16 + $0x1]] }
 0x3ac   :  { %9673 = sst [smem:[#allocation73_spill]] %s8555_s5 }
 0x3ad   :  { %9674 = sst [smem:[#allocation74_spill]] %s8557_s12 }
 0x3ae   :  { %s8565_s16 = sld [smem:[#allocation15 + $0x19]] }
 0x3af   :  { %9675 = sst [smem:[#allocation75_spill]] %s8559_s2 }
 0x3b0   :  { %9676 = sst [smem:[#allocation76_spill]] %s8561_s9 }
 0x3b1   :  { %9677 = sst [smem:[#allocation69_spill]] %s8563_s21 }
 0x3b2   :  { %s8567_s17 = sld [smem:[#allocation16 + $0x2]] }
 0x3b3   :  { %s8569_s13 = sld [smem:[#allocation15 + $0x32]] }
 0x3b4   :  { %s8571_s10 = sld [smem:[#allocation16 + $0x3]]  ;;  %v4058_v11 = vstv %s8565_s16 }
 0x3b5   :  { %s8573_s1 = sld [smem:[#allocation15 + $0x4b]] }
 0x3b6   :  { %s8575_s5 = sld [smem:[#allocation16 + $0x4]] }
 0x3b7   :  { %s8577_s2 = sld [smem:[#allocation15 + $0x64]] }
 0x3b8   :  { %9678 = sst [smem:[#allocation64_spill]] %s8567_s17 }
 0x3b9   :  { %9679 = sst [smem:[#allocation65_spill]] %s8569_s13 }
 0x3ba   :  { %9680 = sst [smem:[#allocation70_spill]] %s8571_s10 }
 0x3bb   :  { %9681 = sst [smem:[#allocation66_spill]] %s8573_s1 }
 0x3bc   :  { %9682 = sst [smem:[#allocation71_spill]] %s8575_s5 }
 0x3bd   :  { %9683 = sst [smem:[#allocation77_spill]] %s8577_s2 }
 0x3be   :  { %s8579_s9 = sld [smem:[#allocation15 + $0x6]] }
 0x3bf   :  { %s8581_s21 = sld [smem:[#allocation15 + $0x1f]] }
 0x3c0   :  { %s8583_s17 = sld [smem:[#allocation15 + $0x38]] }
 0x3c1   :  { %s8585_s13 = sld [smem:[#allocation15 + $0x51]] }
 0x3c2   :  { %s8587_s10 = sld [smem:[#allocation15 + $0x6a]] }
 0x3c3   :  { %s8589_s1 = sld [smem:[#allocation15 + $0x10]] }
 0x3c4   :  { %9684 = sst [smem:[#allocation79_spill]] %s8579_s9  ;;  %v8666_v19 = vpop.permute.xlu2 %3913 }
 0x3c5   :  { %9685 = sst [smem:[#allocation80_spill]] %s8581_s21 }
 0x3c6   :  { %9686 = sst [smem:[#allocation33_spill]] %s8583_s17 }
 0x3c7   :  { %9687 = sst [smem:[#allocation78_spill]] %s8585_s13 }
 0x3c8   :  { %9688 = sst [smem:[#allocation27_spill]] %s8587_s10 }
 0x3c9   :  { %9689 = sst [smem:[#allocation28_spill]] %s8589_s1 }
 0x3ca   :  { %s8591_s5 = sld [smem:[#allocation15 + $0x29]] }
 0x3cb   :  { %s8593_s2 = sld [smem:[#allocation15 + $0x42]] }
 0x3cc   :  { %s8595_s9 = sld [smem:[#allocation15 + $0x5b]]  ;;  %v3920_v32 = vpop.permute.xlu2 %3919 }
 0x3cd   :  { %s8597_s21 = sld [smem:[#allocation15 + $0x74]] }
 0x3ce   :  { %s8599_s17 = sld [smem:[#allocation15 + $0x4]] }
 0x3cf   :  { %s8603_s13 = sld [smem:[#allocation15 + $0x1d]] }
 0x3d0   :  { %9690 = sst [smem:[#allocation30_spill]] %s8591_s5 }
 0x3d1   :  { %9691 = sst [smem:[#allocation43_spill]] %s8593_s2 }
 0x3d2   :  { %9692 = sst [smem:[#allocation38_spill]] %s8595_s9 }
 0x3d3   :  { %9693 = sst [smem:[#allocation39_spill]] %s8597_s21 }
 0x3d4   :  { %9694 = sst [smem:[#allocation40_spill]] %s8599_s17 }
 0x3d5   :  { %9695 = sst [smem:[#allocation41_spill]] %s8603_s13 }
 0x3d6   :  { %s8606_s1 = sld [smem:[#allocation15 + $0x36]] }
 0x3d7   :  { %s8612_s2 = sld [smem:[#allocation15 + $0x4f]] }
 0x3d8   :  { %s8618_s21 = sld [smem:[#allocation15 + $0x68]] }
 0x3d9   :  { %s8636_s27 = sld [smem:[#allocation15 + $0xa]] }
 0x3da   :  { %s8644_s30 = sld [smem:[#allocation15 + $0x23]] }
 0x3db   :  { %s9701_s24 = sld [smem:[#allocation45_spill]] }
 0x3dc   :  { %9696 = sst [smem:[#allocation42_spill]] %s8606_s1 }
 0x3dd   :  { %9697 = sst [smem:[#allocation44_spill]] %s8612_s2 }
 0x3de   :  { %9698 = sst [smem:[#allocation81_spill]] %s8618_s21 }
 0x3df   :  { %9699 = sst [smem:[#allocation82_spill]] %s8636_s27 }
 0x3e0   :  { %9700 = sst [smem:[#allocation83_spill]] %s8644_s30 }
 0x3e1   :  { %s9702_s29 = sld [smem:[#allocation46_spill]]  ;;  %v4042_v8 = vstv %s9701_s24 }
 0x3e2   :  { %s9703_s8 = sld [smem:[#allocation47_spill]]  ;;  %v8712_v53 = vmul.f32 %v4042_v8, %v8501_v20 }
 0x3e3   :  { %s8658_s28 = sld [smem:[#allocation15 + $0x3c]] }
 0x3e4   :  { %s9705_s22 = sld [smem:[#allocation52_spill]] }
 0x3e5   :  { %s8668_s11 = sld [smem:[#allocation15 + $0x55]] }
 0x3e6   :  { %s8674_s26 = sld [smem:[#allocation15 + $0x6e]] }
 0x3e7   :  { %v4146_v62 = vstv %s9702_s29  ;;  %s9708_s6 = sld [smem:[#allocation32_spill]] }
 0x3e8   :  { %v4250_v48 = vstv %s9703_s8  ;;  %s8680_s18 = sld [smem:[#allocation15 + $0x14]]  ;;  %v8715_v33 = vmul.f32 %v4146_v62, %v8501_v20 }
 0x3e9   :  { %9704 = sst [smem:[#allocation45_spill]] %s8658_s28  ;;  %v8718_v58 = vmul.f32 %v4250_v48, %v8501_v20 }
 0x3ea   :  { %s9710_s7 = sld [smem:[#allocation34_spill]]  ;;  %v4354_v13 = vstv %s9705_s22 }
 0x3eb   :  { %9706 = sst [smem:[#allocation46_spill]] %s8668_s11  ;;  %9722 = vst [vmem:[#allocation84_spill] sm:$0xff] %v8718_v58  ;;  %v8725_v50 = vmul.f32 %v4354_v13, %v8501_v20 }
 0x3ec   :  { %9707 = sst [smem:[#allocation47_spill]] %s8674_s26 }
 0x3ed   :  { %s9712_s0 = sld [smem:[#allocation35_spill]]  ;;  %v3958_v25 = vstv %s9708_s6  ;;  %9728 = vst [vmem:[#allocation85_spill] sm:$0xff] %v8725_v50 }
 0x3ee   :  { %9709 = sst [smem:[#allocation52_spill]] %s8680_s18  ;;  %v8783_v7 = vmul.f32 %v3958_v25, %v8666_v19 }
 0x3ef   :  { %s8692_s4 = sld [smem:[#allocation15 + $0x2d]] }
 0x3f0   :  { %s9714_s15 = sld [smem:[#allocation36_spill]]  ;;  %v4062_v59 = vstv %s9710_s7 }
 0x3f1   :  { %s9715_s14 = sld [smem:[#allocation37_spill]]  ;;  %v8786_v57 = vmul.f32 %v4062_v59, %v8666_v19 }
 0x3f2   :  { %s9716_s19 = sld [smem:[#allocation48_spill]] }
 0x3f3   :  { %s9717_s23 = sld [smem:[#allocation49_spill]]  ;;  %v4166_v44 = vstv %s9712_s0 }
 0x3f4   :  { %s8706_s20 = sld [smem:[#allocation15 + $0x46]]  ;;  %v8789_v56 = vmul.f32 %v4166_v44, %v8666_v19  ;;  %v3926_v44 = vpop.permute.xlu2 %3925 }
 0x3f5   :  { %9713 = sst [smem:[#allocation32_spill]] %s8692_s4 }
 0x3f6   :  { %s9719_s24 = sld [smem:[#allocation50_spill]]  ;;  %v4270_v61 = vstv %s9714_s15 }
 0x3f7   :  { %s9720_s29 = sld [smem:[#allocation51_spill]]  ;;  %v4374_v9 = vstv %s9715_s14  ;;  %v8795_v49 = vmul.f32 %v4270_v61, %v8666_v19 }
 0x3f8   :  { %s9721_s8 = sld [smem:[#allocation58_spill]]  ;;  %v3974_v34 = vstv %s9716_s19  ;;  %v8798_v15 = vmul.f32 %v4374_v9, %v8666_v19 }
 0x3f9   :  { %s9723_s22 = sld [smem:[#allocation59_spill]]  ;;  %v4078_v18 = vstv %s9717_s23  ;;  %v8818_v59 = vmul.f32 %v3974_v34, %v3920_v32 }
 0x3fa   :  { %9718 = sst [smem:[#allocation34_spill]] %s8706_s20  ;;  %v8820_v12 = vmul.f32 %v4078_v18, %v3920_v32 }
 0x3fb   :  { %s9724_s4 = sld [smem:[#allocation60_spill]] }
 0x3fc   :  { %s9725_s20 = sld [smem:[#allocation61_spill]]  ;;  %v4182_v39 = vstv %s9719_s24 }
 0x3fd   :  { %s8722_s18 = sld [smem:[#allocation15 + $0x5f]]  ;;  %v4286_v38 = vstv %s9720_s29  ;;  %v8822_v47 = vmul.f32 %v4182_v39, %v3920_v32 }
 0x3fe   :  { %s9727_s26 = sld [smem:[#allocation53_spill]]  ;;  %v4390_v29 = vstv %s9721_s8  ;;  %v8829_v25 = vmul.f32 %v4286_v38, %v3920_v32 }
 0x3ff   :  { %s9729_s11 = sld [smem:[#allocation54_spill]]  ;;  %v3990_v10 = vstv %s9723_s22  ;;  %v8833_v34 = vmul.f32 %v4390_v29, %v3920_v32  ;;  %v3916_v32 = vpop.permute.xlu0 %3915 }
 0x400   :  { %s9730_s28 = sld [smem:[#allocation55_spill]]  ;;  %v8857_v63 = vmul.f32 %v3990_v10, %v3926_v44 }
 0x401   :  { %s9731_s30 = sld [smem:[#allocation56_spill]]  ;;  %v4094_v26 = vstv %s9724_s4 }
 0x402   :  { %s8732_s21 = sld [smem:[#allocation15 + $0x78]]  ;;  %v4198_v0 = vstv %s9725_s20  ;;  %v8861_v38 = vmul.f32 %v4094_v26, %v3926_v44  ;;  %v3912_v26 = vpop.permute.xlu1 %3911 }
 0x403   :  { %9726 = sst [smem:[#allocation35_spill]] %s8722_s18  ;;  %v8865_v18 = vmul.f32 %v4198_v0, %v3926_v44 }
 0x404   :  { %s8738_s2 = sld [smem:[#allocation15 + $0x8]]  ;;  %v4302_v41 = vstv %s9727_s26 }
 0x405   :  { %s9740_s14 = sld [smem:[#allocation75_spill]]  ;;  %v4406_v35 = vstv %s9729_s11  ;;  %v8872_v19 = vmul.f32 %v4302_v41, %v3926_v44 }
 0x406   :  { %s8744_s3 = sld [smem:[#allocation15 + $0x21]]  ;;  %v3966_v36 = vstv %s9730_s28  ;;  %v8876_v10 = vmul.f32 %v4406_v35, %v3926_v44  ;;  %v4059_v44 = vmul.f32 %v4058_v11, %v3912_v26  ;;  %v3932_v11 = vpop.permute.xlu2 %3931 }
 0x407   :  { %s9742_s23 = sld [smem:[#allocation76_spill]]  ;;  %v4070_v3 = vstv %s9731_s30 }
 0x408   :  { %9733 = sst [smem:[#allocation36_spill]] %s8732_s21  ;;  %v4071_v9 = vmul.f32 %v4070_v3, %v3916_v32 }
 0x409   :  { %s9743_s24 = sld [smem:[#allocation69_spill]] }
 0x40a   :  { %9737 = sst [smem:[#allocation37_spill]] %s8738_s2 }
 0x40b   :  { %s9744_s21 = sld [smem:[#allocation64_spill]]  ;;  %v3952_v14 = vstv %s9740_s14 }
 0x40c   :  { %9741 = sst [smem:[#allocation48_spill]] %s8744_s3 }
 0x40d   :  { %s8750_s2 = sld [smem:[#allocation15 + $0x3a]]  ;;  %v3954_v6 = vstv %s9742_s23 }
 0x40e   :  { %s9745_s22 = sld [smem:[#allocation65_spill]]  ;;  %v3955_v35 = vmul.f32 %v3954_v6, %v3912_v26  ;;  %v3967_v6 = vmul.f32 %v3966_v36, %v3916_v32 }
 0x40f   :  { %s9746_s4 = sld [smem:[#allocation70_spill]]  ;;  %v4056_v52 = vstv %s9743_s24 }
 0x410   :  { %s9747_s20 = sld [smem:[#allocation66_spill]]  ;;  %v3956_v0 = vadd.f32 %v3955_v35, %v3952_v14  ;;  %v4060_v42 = vadd.f32 %v4059_v44, %v4056_v52 }
 0x411   :  { %s8756_s3 = sld [smem:[#allocation15 + $0x53]]  ;;  %v4160_v27 = vstv %s9744_s21 }
 0x412   :  { %s9749_s8 = sld [smem:[#allocation77_spill]]  ;;  %v3960_v3 = vadd.f32 %v8783_v7, %v3956_v0 }
 0x413   :  { %s8762_s27 = sld [smem:[#allocation15 + $0x6c]] }
 0x414   :  { %s8768_s25 = sld [smem:[#allocation15 + $0xe]]  ;;  %v4162_v23 = vstv %s9745_s22 }
 0x415   :  { %v4264_v8 = vstv %s9746_s4  ;;  %s8774_s15 = sld [smem:[#allocation15 + $0x27]]  ;;  %v4163_v48 = vmul.f32 %v4162_v23, %v3912_v26 }
 0x416   :  { %v4266_v62 = vstv %s9747_s20  ;;  %s8780_s6 = sld [smem:[#allocation15 + $0x40]] }
 0x417   :  { %s8792_s11 = sld [smem:[#allocation15 + $0x59]]  ;;  %v4267_v39 = vmul.f32 %v4266_v62, %v3912_v26  ;;  %v4164_v23 = vadd.f32 %v4163_v48, %v4160_v27 }
 0x418   :  { %v4370_v13 = vstv %s9749_s8  ;;  %s8802_s28 = sld [smem:[#allocation15 + $0x72]] }
 0x419   :  { %s9765_s7 = sld [smem:[#allocation82_spill]]  ;;  %v4371_v29 = vmul.f32 %v4370_v13, %v3912_v26  ;;  %v4268_v62 = vadd.f32 %v4267_v39, %v4264_v8 }
 0x41a   :  { %9754 = sst [smem:[#allocation49_spill]] %s8768_s25 }
 0x41b   :  { %9756 = sst [smem:[#allocation50_spill]] %s8774_s15 }
 0x41c   :  { %9759 = sst [smem:[#allocation51_spill]] %s8780_s6 }
 0x41d   :  { %9761 = sst [smem:[#allocation76_spill]] %s8792_s11 }
 0x41e   :  { %9763 = sst [smem:[#allocation86_spill]] %s8802_s28 }
 0x41f   :  { %s8808_s24 = sld [smem:[#allocation15 + $0xb]] }
 0x420   :  { %s8814_s20 = sld [smem:[#allocation15 + $0x24]] }
 0x421   :  { %s9775_s13 = sld [smem:[#allocation37_spill]] }
 0x422   :  { %s8825_s1 = sld [smem:[#allocation15 + $0x3d]] }
 0x423   :  { %s9777_s26 = sld [smem:[#allocation48_spill]] }
 0x424   :  { %s8837_s17 = sld [smem:[#allocation15 + $0x56]] }
 0x425   :  { %s8843_s29 = sld [smem:[#allocation15 + $0x6f]] }
 0x426   :  { %s8853_s10 = sld [smem:[#allocation15 + $0x12]] }
 0x427   :  { %s8868_s9 = sld [smem:[#allocation15 + $0x2b]] }
 0x428   :  { %9776 = sst [smem:[#allocation58_spill]] %s8825_s1 }
 0x429   :  { %s9783_s5 = sld [smem:[#allocation58_spill]] }
 0x42a   :  { %s8880_s12 = sld [smem:[#allocation15 + $0x44]] }
 0x42b   :  { %s8886_s4 = sld [smem:[#allocation15 + $0x5d]] }
 0x42c   :  { %s9793_s15 = sld [smem:[#allocation71_spill]] }
 0x42d   :  { %s9794_s21 = sld [smem:[#allocation57_spill]] }
 0x42e   :  { %s8894_s6 = sld [smem:[#allocation15 + $0x76]] }
 0x42f   :  { %s9795_s11 = sld [smem:[#allocation62_spill]] }
 0x430   :  { %s9796_s28 = sld [smem:[#allocation63_spill]] }
 0x431   :  { %s9797_s23 = sld [smem:[#allocation67_spill]] }
 0x432   :  { %s9798_s16 = sld [smem:[#allocation68_spill]]  ;;  %v9801_v13 = vstv %s9793_s15 }
 0x433   :  { %s9799_s19 = sld [smem:[#allocation72_spill]]  ;;  %v4372_v26 = vadd.f32 %v4371_v29, %v9801_v13  ;;  %v9802_v36 = vstv %s9794_s21  ;;  %v4064_v29 = vadd.f32 %v8786_v57, %v4060_v42 }
 0x434   :  { %s9800_s22 = sld [smem:[#allocation73_spill]]  ;;  %v4175_v41 = vmul.f32 %v9802_v36, %v3916_v32  ;;  %v4272_v36 = vadd.f32 %v8795_v49, %v4268_v62 }
 0x435   :  { %s8918_s18 = sld [smem:[#allocation15 + $0xf]]  ;;  %v9804_v43 = vstv %s9795_s11  ;;  %v4068_v49 = vadd.f32 %v8624_v5, %v4064_v29 }
 0x436   :  { %s9803_s30 = sld [smem:[#allocation74_spill]]  ;;  %v4279_v14 = vmul.f32 %v9804_v43, %v3916_v32  ;;  %v9805_v52 = vstv %s9796_s28  ;;  %v4168_v43 = vadd.f32 %v8789_v56, %v4164_v23  ;;  %v3964_v23 = vadd.f32 %v8621_v51, %v3960_v3 }
 0x437   :  { %v4383_v35 = vmul.f32 %v9805_v52, %v3916_v32  ;;  %s8927_s8 = sld [smem:[#allocation15 + $0x28]]  ;;  %v9806_v27 = vstv %s9797_s23  ;;  %v3922_v32 = vpop.permute.xlu0 %3921  ;;  %v4376_v52 = vadd.f32 %v8798_v15, %v4372_v26  ;;  %v4276_v3 = vadd.f32 %v8631_v37, %v4272_v36 }
 0x438   :  { %s9807_s25 = sld [smem:[#allocation40_spill]]  ;;  %v8931_v8 = vmul.f32 %v9806_v27, %v3932_v11  ;;  %v9808_v48 = vstv %s9798_s16  ;;  %v3918_v27 = vpop.permute.xlu1 %3917  ;;  %v4172_v26 = vadd.f32 %v8627_v22, %v4168_v43  ;;  %v3968_v51 = vadd.f32 %v3967_v6, %v3964_v23 }
 0x439   :  { %v8935_v39 = vmul.f32 %v9808_v48, %v3932_v11  ;;  %s9809_s21 = sld [smem:[#allocation41_spill]]  ;;  %v9810_v44 = vstv %s9799_s19  ;;  %v4380_v58 = vadd.f32 %v8634_v40, %v4376_v52  ;;  %v4072_v5 = vadd.f32 %v4071_v9, %v4068_v49  ;;  %v3938_v40 = vpop.permute.xlu2 %3937 }
 0x43a   :  { %v8941_v13 = vmul.f32 %v9810_v44, %v3932_v11  ;;  %v9811_v7 = vstv %s9800_s22  ;;  %s9812_s28 = sld [smem:[#allocation42_spill]]  ;;  %v4176_v29 = vadd.f32 %v4175_v41, %v4172_v26 }
 0x43b   :  { %v8945_v0 = vmul.f32 %v9811_v7, %v3932_v11  ;;  %s9814_s11 = sld [smem:[#allocation44_spill]]  ;;  %v4014_v43 = vstv %s8918_s18  ;;  %v4384_v56 = vadd.f32 %v4383_v35, %v4380_v58 }
 0x43c   :  { %v9813_v48 = vstv %s9803_s30  ;;  %s9816_s0 = sld [smem:[#allocation81_spill]] }
 0x43d   :  { %v8951_v61 = vmul.f32 %v9813_v48, %v3932_v11  ;;  %s9819_s15 = sld [smem:[#allocation79_spill]]  ;;  %v4118_v6 = vstv %s8927_s8 }
 0x43e   :  { %v9815_v44 = vstv %s9807_s25  ;;  %s9820_s14 = sld [smem:[#allocation80_spill]] }
 0x43f   :  { %v3971_v50 = vmul.f32 %v9815_v44, %v3918_v27  ;;  %v9817_v62 = vstv %s9809_s21  ;;  %s8967_s1 = sld [smem:[#allocation15 + $0x41]]  ;;  %v3928_v35 = vpop.permute.xlu0 %3927 }
 0x440   :  { %v4075_v15 = vmul.f32 %v9817_v62, %v3918_v27  ;;  %v9818_v11 = vstv %s9812_s28  ;;  %s9822_s23 = sld [smem:[#allocation33_spill]] }
 0x441   :  { %v4179_v48 = vmul.f32 %v9818_v11, %v3918_v27  ;;  %v9821_v44 = vstv %s9814_s11  ;;  %s8973_s16 = sld [smem:[#allocation15 + $0x5a]]  ;;  %v3972_v7 = vadd.f32 %v3971_v50, %v3968_v51  ;;  %v4280_v11 = vadd.f32 %v4279_v14, %v4276_v3 }
 0x442   :  { %v4283_v57 = vmul.f32 %v9821_v44, %v3918_v27  ;;  %v9823_v62 = vstv %s9816_s0  ;;  %s9824_s19 = sld [smem:[#allocation78_spill]]  ;;  %v4076_v52 = vadd.f32 %v4075_v15, %v4072_v5 }
 0x443   :  { %v4387_v22 = vmul.f32 %v9823_v62, %v3918_v27  ;;  %s9825_s22 = sld [smem:[#allocation27_spill]]  ;;  %v9826_v23 = vstv %s9819_s15  ;;  %v4180_v42 = vadd.f32 %v4179_v48, %v4176_v29  ;;  %v3976_v50 = vadd.f32 %v8818_v59, %v3972_v7  ;;  %v3924_v27 = vpop.permute.xlu1 %3923 }
 0x444   :  { %v3979_v37 = vmul.f32 %v9826_v23, %v3922_v32  ;;  %v9827_v36 = vstv %s9820_s14  ;;  %s9828_s30 = sld [smem:[#allocation28_spill]]  ;;  %v4284_v58 = vadd.f32 %v4283_v57, %v4280_v11  ;;  %v4080_v51 = vadd.f32 %v8820_v12, %v4076_v52 }
 0x445   :  { %v4083_v44 = vmul.f32 %v9827_v36, %v3922_v32  ;;  %s9829_s25 = sld [smem:[#allocation30_spill]]  ;;  %v4388_v14 = vadd.f32 %v4387_v22, %v4384_v56  ;;  %v4184_v59 = vadd.f32 %v8822_v47, %v4180_v42  ;;  %v4222_v47 = vstv %s8967_s1 }
 0x446   :  { %s8983_s21 = sld [smem:[#allocation15 + $0x73]]  ;;  %v9830_v9 = vstv %s9822_s23  ;;  %v4288_v5 = vadd.f32 %v8829_v25, %v4284_v58  ;;  %v3980_v42 = vadd.f32 %v3979_v37, %v3976_v50  ;;  %v9841_v36 = vstv %s9775_s13 }
 0x447   :  { %s9831_s28 = sld [smem:[#allocation43_spill]]  ;;  %v4187_v41 = vmul.f32 %v9830_v9, %v3922_v32  ;;  %v4392_v29 = vadd.f32 %v8833_v34, %v4388_v14  ;;  %v3987_v52 = vmul.f32 %v9841_v36, %v3924_v27  ;;  %v4084_v9 = vadd.f32 %v4083_v44, %v4080_v51 }
 0x448   :  { %s9832_s11 = sld [smem:[#allocation38_spill]]  ;;  %v9834_v49 = vstv %s9824_s19  ;;  %v4326_v25 = vstv %s8973_s16  ;;  %v9842_v58 = vstv %s9777_s26  ;;  %v9843_v14 = vstv %s8750_s2 }
 0x449   :  { %s9833_s0 = sld [smem:[#allocation39_spill]]  ;;  %v4291_v15 = vmul.f32 %v9834_v49, %v3922_v32  ;;  %v9835_v26 = vstv %s9825_s22  ;;  %v4091_v49 = vmul.f32 %v9842_v58, %v3924_v27  ;;  %v4188_v34 = vadd.f32 %v4187_v41, %v4184_v59 }
 0x44a   :  { %s8988_s15 = sld [smem:[#allocation15 + $0x15]]  ;;  %v4395_v48 = vmul.f32 %v9835_v26, %v3922_v32  ;;  %v9836_v7 = vstv %s9828_s30  ;;  %v4195_v26 = vmul.f32 %v9843_v14, %v3924_v27  ;;  %v9847_v51 = vstv %s8762_s27 }
 0x44b   :  { %v8998_v57 = vmul.f32 %v9836_v7, %v3938_v40  ;;  %v9837_v56 = vstv %s9829_s25  ;;  %s9844_s14 = sld [smem:[#allocation83_spill]]  ;;  %v4292_v7 = vadd.f32 %v4291_v15, %v4288_v5  ;;  %v4192_v44 = vadd.f32 %v8647_v21, %v4188_v34  ;;  %v3934_v34 = vpop.permute.xlu0 %3933 }
 0x44c   :  { %v9002_v3 = vmul.f32 %v9837_v56, %v3938_v40  ;;  %v4088_v56 = vadd.f32 %v8642_v55, %v4084_v9  ;;  %s9846_s23 = sld [smem:[#allocation45_spill]]  ;;  %v4396_v37 = vadd.f32 %v4395_v48, %v4392_v29  ;;  %v4430_v41 = vstv %s8983_s21  ;;  %v3944_v29 = vpop.permute.xlu2 %3943  ;;  %s9890_s21 = smov 127  }
 0x44d   :  { %v9838_v62 = vstv %s9831_s28  ;;  %v4296_v50 = vadd.f32 %v8650_v4, %v4292_v7  ;;  %s9848_s13 = sld [smem:[#allocation46_spill]]  ;;  %v9851_v5 = vstv %s9765_s7  ;;  %v4196_v4 = vadd.f32 %v4195_v26, %v4192_v44 }
 0x44e   :  { %v9008_v22 = vmul.f32 %v9838_v62, %v3938_v40  ;;  %v9839_v32 = vstv %s9832_s11  ;;  %v9845_v62 = vstv %s8756_s3  ;;  %s9849_s2 = sld [smem:[#allocation47_spill]]  ;;  %v4092_v36 = vadd.f32 %v4091_v49, %v4088_v56 }
 0x44f   :  { %v9012_v11 = vmul.f32 %v9839_v32, %v3938_v40  ;;  %v9840_v12 = vstv %s9833_s0  ;;  %v4299_v32 = vmul.f32 %v9845_v62, %v3924_v27  ;;  %v4400_v15 = vadd.f32 %v8653_v31, %v4396_v37  ;;  %s9850_s26 = sld [smem:[#allocation52_spill]] }
 0x450   :  { %v9016_v23 = vmul.f32 %v9840_v12, %v3938_v40  ;;  %v3984_v40 = vadd.f32 %v8639_v28, %v3980_v42  ;;  %v4403_v12 = vmul.f32 %v9847_v51, %v3924_v27  ;;  %v3930_v28 = vpop.permute.xlu1 %3929  ;;  %v4038_v55 = vstv %s8988_s15  ;;  %s9852_s3 = sld [smem:[#allocation32_spill]]  ;;  %s9891_s15 = smov 1  }
 0x451   :  { %v3995_v42 = vmul.f32 %v9851_v5, %v3928_v35  ;;  %v9853_v48 = vstv %s9844_s14  ;;  %s9854_s19 = sld [smem:[#allocation34_spill]]  ;;  %v4300_v27 = vadd.f32 %v4299_v32, %v4296_v50  ;;  %v4096_v31 = vadd.f32 %v8861_v38, %v4092_v36 }
 0x452   :  { %v3988_v59 = vadd.f32 %v3987_v52, %v3984_v40  ;;  %v4099_v21 = vmul.f32 %v9853_v48, %v3928_v35  ;;  %s9855_s22 = sld [smem:[#allocation35_spill]]  ;;  %v9856_v9 = vstv %s9846_s23  ;;  %v4404_v49 = vadd.f32 %v4403_v12, %v4400_v15  ;;  %s9892_s23 = smov 2  }
 0x453   :  { %v4203_v52 = vmul.f32 %v9856_v9, %v3928_v35  ;;  %v9857_v14 = vstv %s9848_s13  ;;  %v4200_v62 = vadd.f32 %v8865_v18, %v4196_v4  ;;  %v4304_v26 = vadd.f32 %v8872_v19, %v4300_v27  ;;  %s9862_s27 = sld [smem:[#allocation49_spill]] }
 0x454   :  { %v3992_v58 = vadd.f32 %v8857_v63, %v3988_v59  ;;  %v4307_v7 = vmul.f32 %v9857_v14, %v3928_v35  ;;  %v9858_v40 = vstv %s9849_s2  ;;  %v4408_v51 = vadd.f32 %v8876_v10, %v4404_v49  ;;  %s9864_s7 = sld [smem:[#allocation50_spill]]  ;;  %s9893_s2 = smov 126  }
 0x455   :  { %v4411_v56 = vmul.f32 %v9858_v40, %v3928_v35  ;;  %v9859_v32 = vstv %s9850_s26  ;;  %v9865_v59 = vstv %s8808_s24  ;;  %v4100_v36 = vadd.f32 %v4099_v21, %v4096_v31  ;;  %s9867_s30 = sld [smem:[#allocation51_spill]] }
 0x456   :  { %v9053_v37 = vmul.f32 %v9859_v32, %v3944_v29  ;;  %v9860_v44 = vstv %s9852_s3  ;;  %v3996_v18 = vadd.f32 %v3995_v42, %v3992_v58  ;;  %v3999_v19 = vmul.f32 %v9865_v59, %v3930_v28  ;;  %s9074_s25 = sld [smem:[#allocation15 + $0x2e]] }
 0x457   :  { %v9057_v63 = vmul.f32 %v9860_v44, %v3944_v29  ;;  %v9861_v38 = vstv %s9854_s19  ;;  %v9866_v15 = vstv %s8814_s20  ;;  %v4204_v48 = vadd.f32 %v4203_v52, %v4200_v62  ;;  %s9870_s28 = sld [smem:[#allocation76_spill]] }
 0x458   :  { %v9061_v50 = vmul.f32 %v9861_v38, %v3944_v29  ;;  %v9863_v12 = vstv %s9855_s22  ;;  %v4103_v5 = vmul.f32 %v9866_v15, %v3930_v28  ;;  %v9868_v4 = vstv %s9783_s5  ;;  %s9871_s11 = sld [smem:[#allocation86_spill]] }
 0x459   :  { %v9066_v35 = vmul.f32 %v9863_v12, %v3944_v29  ;;  %v4207_v27 = vmul.f32 %v9868_v4, %v3930_v28  ;;  %v4308_v9 = vadd.f32 %v4307_v7, %v4304_v26  ;;  %v4000_v14 = vadd.f32 %v3999_v19, %v3996_v18  ;;  %s9080_s24 = sld [smem:[#allocation15 + $0x47]]  ;;  %v3936_v7 = vpop.permute.xlu1 %3935 }
 0x45a   :  { %v9869_v40 = vstv %s8837_s17  ;;  %v4412_v49 = vadd.f32 %v4411_v56, %v4408_v51  ;;  %v9872_v32 = vstv %s8843_s29  ;;  %v9873_v21 = vstv %s9862_s27  ;;  %s9086_s5 = sld [smem:[#allocation15 + $0x13]] }
 0x45b   :  { %v4311_v10 = vmul.f32 %v9869_v40, %v3930_v28  ;;  %v4415_v42 = vmul.f32 %v9872_v32, %v3930_v28  ;;  %v4011_v58 = vmul.f32 %v9873_v21, %v3934_v34  ;;  %v9874_v31 = vstv %s9864_s7  ;;  %s9091_s17 = sld [smem:[#allocation15 + $0x2c]] }
 0x45c   :  { %v4115_v44 = vmul.f32 %v9874_v31, %v3934_v34  ;;  %v4104_v52 = vadd.f32 %v4103_v5, %v4100_v36  ;;  %v4208_v62 = vadd.f32 %v4207_v27, %v4204_v48  ;;  %v9875_v26 = vstv %s9867_s30  ;;  %s9099_s20 = sld [smem:[#allocation15 + $0x45]] }
 0x45d   :  { %v4219_v38 = vmul.f32 %v9875_v26, %v3934_v34  ;;  %v4004_v12 = vadd.f32 %v8656_v24, %v4000_v14  ;;  %v4312_v56 = vadd.f32 %v4311_v10, %v4308_v9  ;;  %v4416_v51 = vadd.f32 %v4415_v42, %v4412_v49  ;;  %s9878_s29 = sld [smem:[#allocation36_spill]] }
 0x45e   :  { %v9876_v28 = vstv %s9870_s28  ;;  %v9877_v59 = vstv %s9871_s11  ;;  %v4108_v36 = vadd.f32 %v8661_v30, %v4104_v52  ;;  %v4212_v15 = vadd.f32 %v8683_v16, %v4208_v62  ;;  %s9106_s0 = sld [smem:[#allocation15 + $0x5e]] }
 0x45f   :  { %v4323_v18 = vmul.f32 %v9876_v28, %v3934_v34  ;;  %v4427_v19 = vmul.f32 %v9877_v59, %v3934_v34  ;;  %v4316_v24 = vadd.f32 %v8686_v17, %v4312_v56  ;;  %v4420_v5 = vadd.f32 %v8689_v45, %v4416_v51  ;;  %v3940_v34 = vpop.permute.xlu0 %3939  ;;  %s9114_s14 = sld [smem:[#allocation15 + $0x77]] }
 0x460   :  { %v4008_v48 = vadd.f32 %v8931_v8, %v4004_v12  ;;  %v4015_v4 = vmul.f32 %v4014_v43, %v3936_v7  ;;  %v4112_v30 = vadd.f32 %v8935_v39, %v4108_v36  ;;  %v4119_v16 = vmul.f32 %v4118_v6, %v3936_v7  ;;  %s9127_s18 = sld [smem:[#allocation15 + $0x60]] }
 0x461   :  { %v4216_v27 = vadd.f32 %v8941_v13, %v4212_v15  ;;  %v4223_v17 = vmul.f32 %v4222_v47, %v3936_v7  ;;  %v4320_v8 = vadd.f32 %v8945_v0, %v4316_v24  ;;  %v4327_v43 = vmul.f32 %v4326_v25, %v3936_v7  ;;  %s9133_s8 = sld [smem:[#allocation15 + $0x79]] }
 0x462   :  { %v4012_v45 = vadd.f32 %v4011_v58, %v4008_v48  ;;  %v4424_v9 = vadd.f32 %v8951_v61, %v4420_v5  ;;  %v4116_v6 = vadd.f32 %v4115_v44, %v4112_v30  ;;  %v4431_v13 = vmul.f32 %v4430_v41, %v3936_v7  ;;  %v3942_v41 = vpop.permute.xlu1 %3941  ;;  %s6255_s1 = sld [smem:[#allocation15 + $0x49]] }
 0x463   :  { %v9879_v14 = vstv %s9878_s29  ;;  %v4220_v40 = vadd.f32 %v4219_v38, %v4216_v27  ;;  %v4324_v10 = vadd.f32 %v4323_v18, %v4320_v8  ;;  %v4142_v32 = vstv %s9074_s25  ;;  %s6256_s16 = sld [smem:[#allocation15 + $0x4a]] }
 0x464   :  { %v9122_v39 = vmul.f32 %v9879_v14, %v3944_v29  ;;  %v4016_v47 = vadd.f32 %v4015_v4, %v4012_v45  ;;  %v4428_v49 = vadd.f32 %v4427_v19, %v4424_v9  ;;  %v9880_v0 = vstv %s8853_s10  ;;  %s9144_s10 = sld [smem:[#allocation15 + $0x17]] }
 0x465   :  { %v4027_v25 = vmul.f32 %v9880_v0, %v3940_v34  ;;  %v9881_v42 = vstv %s8868_s9  ;;  %v4120_v21 = vadd.f32 %v4119_v16, %v4116_v6  ;;  %v4224_v29 = vadd.f32 %v4223_v17, %v4220_v40  ;;  %s9154_s9 = sld [smem:[#allocation15 + $0x30]] }
 0x466   :  { %v4131_v61 = vmul.f32 %v9881_v42, %v3940_v34  ;;  %v9882_v58 = vstv %s8880_s12  ;;  %v4020_v44 = vadd.f32 %v8998_v57, %v4016_v47  ;;  %v4328_v52 = vadd.f32 %v4327_v43, %v4324_v10  ;;  %s9158_s12 = sld [smem:[#allocation15 + $0x18]] }
 0x467   :  { %v4235_v31 = vmul.f32 %v9882_v58, %v3940_v34  ;;  %v4432_v62 = vadd.f32 %v4431_v13, %v4428_v49  ;;  %v9883_v7 = vstv %s8886_s4  ;;  %v9884_v38 = vstv %s8894_s6  ;;  %s9167_s6 = sld [smem:[#allocation15 + $0x31]] }
 0x468   :  { %v4339_v26 = vmul.f32 %v9883_v7, %v3940_v34  ;;  %v4443_v12 = vmul.f32 %v9884_v38, %v3940_v34  ;;  %v4124_v56 = vadd.f32 %v9002_v3, %v4120_v21  ;;  %v4228_v51 = vadd.f32 %v9008_v22, %v4224_v29  ;;  %s9885_s4 = sld [smem:[#allocation31_spill]] }
 0x469   :  { %v4332_v28 = vadd.f32 %v9012_v11, %v4328_v52  ;;  %v4436_v18 = vadd.f32 %v9016_v23, %v4432_v62  ;;  %v4246_v59 = vstv %s9080_s24  ;;  %v4030_v19 = vstv %s9086_s5  ;;  %v3946_v11 = vpop.permute.xlu0 %3945  ;;  %s6281_s13 = sld [smem:[#allocation15 + $0x62]] }
 0x46a   :  { %v4134_v36 = vstv %s9091_s17  ;;  %v4238_v57 = vstv %s9099_s20  ;;  %v4342_v15 = vstv %s9106_s0  ;;  %v4446_v24 = vstv %s9114_s14  ;;  %v9170_v10 = vpop.permute.xlu1 %3947  ;;  %s6282_s26 = sld [smem:[#allocation15 + $0x63]] }
 0x46b   :  { %v4024_v3 = vadd.f32 %v8695_v1, %v4020_v44  ;;  %v4031_v5 = vmul.f32 %v4030_v19, %v3942_v41  ;;  %v4128_v22 = vadd.f32 %v8698_v2, %v4124_v56  ;;  %v4135_v48 = vmul.f32 %v4134_v36, %v3942_v41  ;;  %v9888_v56 = vld [vmem:[#allocation85_spill] sm:$0xff]  ;;  %s6307_s3 = sld [smem:[#allocation15 + $0x7b]] }
 0x46c   :  { %v4232_v23 = vadd.f32 %v8701_v54, %v4228_v51  ;;  %v4239_v4 = vmul.f32 %v4238_v57, %v3942_v41  ;;  %v4336_v34 = vadd.f32 %v8704_v60, %v4332_v28  ;;  %v4343_v30 = vmul.f32 %v4342_v15, %v3942_v41  ;;  %s6308_s19 = sld [smem:[#allocation15 + $0x7c]] }
 0x46d   :  { %v4028_v16 = vadd.f32 %v4027_v25, %v4024_v3  ;;  %v4132_v27 = vadd.f32 %v4131_v61, %v4128_v22  ;;  %v4440_v17 = vadd.f32 %v8709_v46, %v4436_v18  ;;  %v4447_v1 = vmul.f32 %v4446_v24, %v3942_v41  ;;  %s4513_s22 = sld [smem:[#allocation18]] }
 0x46e   :  { %v4350_v45 = vstv %s9127_s18  ;;  %v4454_v8 = vstv %s9133_s8  ;;  %v4236_v2 = vadd.f32 %v4235_v31, %v4232_v23  ;;  %v4340_v43 = vadd.f32 %v4339_v26, %v4336_v34  ;;  %s6309_s27 = sld [smem:[#allocation18 + $0x1]] }
 0x46f   :  { %v4039_v9 = vmul.f32 %v4038_v55, %v3946_v11  ;;  %v4032_v14 = vadd.f32 %v4031_v5, %v4028_v16  ;;  %v4136_v6 = vadd.f32 %v4135_v48, %v4132_v27  ;;  %v4444_v54 = vadd.f32 %v4443_v12, %v4440_v17  ;;  %s6310_s7 = sld [smem:[#allocation18 + $0x2]] }
 0x470   :  { %v4143_v60 = vmul.f32 %v4142_v32, %v3946_v11  ;;  %v4240_v40 = vadd.f32 %v4239_v4, %v4236_v2  ;;  %v4344_v13 = vadd.f32 %v4343_v30, %v4340_v43  ;;  %v4046_v47 = vstv %s9144_s10  ;;  %s6311_s30 = sld [smem:[#allocation18 + $0x3]] }
 0x471   :  { %v4247_v46 = vmul.f32 %v4246_v59, %v3946_v11  ;;  %v4036_v49 = vadd.f32 %v9053_v37, %v4032_v14  ;;  %v4140_v0 = vadd.f32 %v9057_v63, %v4136_v6  ;;  %v4448_v25 = vadd.f32 %v4447_v1, %v4444_v54  ;;  %v3950_v37 = vpop.permute.xlu2 %3949  ;;  %s6312_s25 = sld [smem:[#allocation18 + $0x4]] }
 0x472   :  { %v4351_v55 = vmul.f32 %v4350_v45, %v3946_v11  ;;  %v4244_v42 = vadd.f32 %v9061_v50, %v4240_v40  ;;  %v4348_v61 = vadd.f32 %v9066_v35, %v4344_v13  ;;  %v4150_v21 = vstv %s9154_s9  ;;  %s9894_s24 = sld [smem:[#allocation87_spill]] }
 0x473   :  { %v4455_v32 = vmul.f32 %v4454_v8, %v3946_v11  ;;  %v4452_v29 = vadd.f32 %v9122_v39, %v4448_v25  ;;  %v4047_v41 = vmul.f32 %v4046_v47, %v9170_v10  ;;  %v4040_v58 = vadd.f32 %v4039_v9, %v4036_v49  ;;  %v9887_v39 = vld [vmem:[#allocation84_spill] sm:$0xff]  ;;  %s6313_s5 = sld [smem:[#allocation18 + $0x5]] }
 0x474   :  { %v4050_v31 = vstv %s9158_s12  ;;  %v4144_v44 = vadd.f32 %v4143_v60, %v4140_v0  ;;  %v4248_v63 = vadd.f32 %v4247_v46, %v4244_v42  ;;  %v4352_v52 = vadd.f32 %v4351_v55, %v4348_v61  ;;  %s6314_s17 = sld [smem:[#allocation18 + $0x6]] }
 0x475   :  { %v4151_v62 = vmul.f32 %v4150_v21, %v9170_v10  ;;  %v4044_v50 = vadd.f32 %v8712_v53, %v4040_v58  ;;  %v4456_v7 = vadd.f32 %v4455_v32, %v4452_v29  ;;  %v9886_v35 = vstv %s9885_s4  ;;  %s6315_s20 = sld [smem:[#allocation18 + $0x7]] }
 0x476   :  { %v4459_v26 = vmul.f32 %v9886_v35, %v8501_v20  ;;  %v4148_v38 = vadd.f32 %v8715_v33, %v4144_v44  ;;  %v4252_v12 = vadd.f32 %v9887_v39, %v4248_v63  ;;  %v4356_v51 = vadd.f32 %v9888_v56, %v4352_v52  ;;  %s6316_s29 = sld [smem:[#allocation18 + $0x8]] }
 0x477   :  { %v4051_v28 = vmul.f32 %v4050_v31, %v3950_v37  ;;  %v4048_v18 = vadd.f32 %v4047_v41, %v4044_v50  ;;  %v4154_v19 = vstv %s9167_s6  ;;  %v4254_v15 = vstv %s6255_s1  ;;  %s6317_s0 = sld [smem:[#allocation18 + $0x9]] }
 0x478   :  { %v4460_v59 = vadd.f32 %v4459_v26, %v4456_v7  ;;  %v4152_v57 = vadd.f32 %v4151_v62, %v4148_v38  ;;  %v4155_v24 = vmul.f32 %v4154_v19, %v3950_v37  ;;  %v4255_v3 = vmul.f32 %v4254_v15, %v9170_v10  ;;  %s6318_s14 = sld [smem:[#allocation18 + $0xa]] }
 0x479   :  { %v4052_v36 = vadd.f32 %v4051_v28, %v4048_v18  ;;  %v4258_v22 = vstv %s6256_s16  ;;  %v4358_v16 = vstv %s6281_s13  ;;  %v4362_v1 = vstv %s6282_s26  ;;  %s6319_s18 = sld [smem:[#allocation18 + $0xb]] }
 0x47a   :  { %v4156_v33 = vadd.f32 %v4155_v24, %v4152_v57  ;;  %v4256_v11 = vadd.f32 %v4255_v3, %v4252_v12  ;;  %v4259_v23 = vmul.f32 %v4258_v22, %v3950_v37  ;;  %v4359_v27 = vmul.f32 %v4358_v16, %v9170_v10  ;;  %s6320_s8 = sld [smem:[#allocation18 + $0xc]] }
 0x47b   :  { %v4053_v53 = vmax.f32 %v4052_v36, 0.0  ;;  %v4462_v8 = vstv %s6307_s3  ;;  %v4363_v2 = vmul.f32 %v4362_v1, %v3950_v37  ;;  %v4466_v14 = vstv %s6308_s19  ;;  %s6321_s10 = sld [smem:[#allocation18 + $0xd]] }
 0x47c   :  { %v4157_v48 = vmax.f32 %v4156_v33, 0.0  ;;  %v4260_v34 = vadd.f32 %v4259_v23, %v4256_v11  ;;  %v4360_v45 = vadd.f32 %v4359_v27, %v4356_v51  ;;  %v4463_v43 = vmul.f32 %v4462_v8, %v9170_v10  ;;  %s6322_s9 = sld [smem:[#allocation18 + $0xe]] }
 0x47d   :  { %v9192_v20 = vsel %vm2790_vm3, %v4053_v53, 0.0  ;;  %v4467_v60 = vmul.f32 %v4466_v14, %v3950_v37  ;;  %v4514_v49 = vstv %s4513_s22  ;;  %v4518_v25 = vstv %s6309_s27  ;;  %s6323_s12 = sld [smem:[#allocation18 + $0xf]] }
 0x47e   :  { %4475 = vrot.lane.b32.xlu2 %v9192_v20, %s9890_s21  ;;  %4473 = vrot.lane.b32.xlu1 %v9192_v20, %s9891_s15  ;;  %v9202_v4 = vsel %vm2790_vm3, %v4157_v48, 0.0  ;;  %v4261_v30 = vmax.f32 %v4260_v34, 0.0  ;;  %v4364_v9 = vadd.f32 %v4363_v2, %v4360_v45  ;;  %v4464_v54 = vadd.f32 %v4463_v43, %v4460_v59  ;;  %s6324_s6 = sld [smem:[#allocation18 + $0x10]] }
 0x47f   :  { %4471 = vrot.lane.b32.xlu0 %v9192_v20, %s9892_s23  ;;  %v4512_v55 = vstv %s9894_s24  ;;  %v4522_v32 = vstv %s6310_s7  ;;  %v4526_v58 = vstv %s6311_s30  ;;  %s6325_s4 = sld [smem:[#allocation18 + $0x11]] }
 0x480   :  { %v9213_v17 = vsel %vm2790_vm3, %v4261_v30, 0.0  ;;  %v4365_v6 = vmax.f32 %v4364_v9, 0.0  ;;  %v4468_v13 = vadd.f32 %v4467_v60, %v4464_v54  ;;  %v4523_v37 = vmul.f32 %v4522_v32, %v9192_v20  ;;  %s6326_s1 = sld [smem:[#allocation18 + $0x12]] }
 0x481   :  { %v4530_v44 = vstv %s6312_s25  ;;  %v4534_v50 = vstv %s6313_s5  ;;  %v4538_v38 = vstv %s6314_s17  ;;  %v4542_v51 = vstv %s6315_s20  ;;  %s6327_s16 = sld [smem:[#allocation18 + $0x13]] }
 0x482   :  { %v9230_v40 = vsel %vm2790_vm3, %v4365_v6, 0.0  ;;  %v4469_v47 = vmax.f32 %v4468_v13, 0.0  ;;  %v4546_v59 = vstv %s6316_s29  ;;  %v4543_v36 = vmul.f32 %v4542_v51, %v9202_v4  ;;  %s6331_s13 = sld [smem:[#allocation18 + $0x17]] }
 0x483   :  { %v4550_v15 = vstv %s6317_s0  ;;  %v4554_v33 = vstv %s6318_s14  ;;  %v4558_v11 = vstv %s6319_s18  ;;  %v4562_v30 = vstv %s6320_s8  ;;  %s9895_s19 = sld [smem:[#allocation88_spill]] }
 0x484   :  { %v9240_v10 = vsel %vm2790_vm3, %v4469_v47, 0.0  ;;  %v4566_v1 = vstv %s6321_s10  ;;  %v4563_v45 = vmul.f32 %v4562_v30, %v9213_v17  ;;  %v4570_v2 = vstv %s6322_s9  ;;  %s9896_s7 = sld [smem:[#allocation89_spill]] }
 0x485   :  { %v4574_v14 = vstv %s6323_s12  ;;  %v4578_v47 = vstv %s6324_s6 }
 0x486   :  { %4481 = vrot.lane.b32.xlu2 %v9202_v4, %s9891_s15  ;;  %4479 = vrot.lane.b32.xlu1 %v9202_v4, %s9892_s23 }
 0x487   :  { %4477 = vrot.lane.b32.xlu0 %v9192_v20, %s9893_s2  ;;  %v4590_v32 = vstv %s6327_s16 }
 0x48e   :  { %4487 = vrot.lane.b32.xlu2 %v9213_v17, %s9892_s23  ;;  %4485 = vrot.lane.b32.xlu1 %v9202_v4, %s9893_s2 }
 0x48f   :  { %4483 = vrot.lane.b32.xlu0 %v9202_v4, %s9890_s21 }
 0x496   :  { %4493 = vrot.lane.b32.xlu2 %v9213_v17, %s9893_s2  ;;  %4491 = vrot.lane.b32.xlu1 %v9213_v17, %s9890_s21 }
 0x497   :  { %4489 = vrot.lane.b32.xlu0 %v9213_v17, %s9891_s15 }
 0x49e   :  { %4499 = vrot.lane.b32.xlu2 %v9230_v40, %s9890_s21  ;;  %4497 = vrot.lane.b32.xlu1 %v9230_v40, %s9891_s15 }
 0x49f   :  { %4495 = vrot.lane.b32.xlu0 %v9230_v40, %s9892_s23 }
 0x4a6   :  { %4505 = vrot.lane.b32.xlu2 %v9240_v10, %s9891_s15  ;;  %4503 = vrot.lane.b32.xlu1 %v9240_v10, %s9892_s23  ;;  %s6329_s15 = sld [smem:[#allocation18 + $0x15]] }
 0x4a7   :  { %4501 = vrot.lane.b32.xlu0 %v9230_v40, %s9893_s2  ;;  %s6330_s23 = sld [smem:[#allocation18 + $0x16]] }
 0x4ae   :  { %4509 = vrot.lane.b32.xlu1 %v9240_v10, %s9893_s2  ;;  %s6332_s2 = sld [smem:[#allocation18 + $0x18]] }
 0x4af   :  { %4507 = vrot.lane.b32.xlu0 %v9240_v10, %s9890_s21  ;;  %s6328_s21 = sld [smem:[#allocation18 + $0x14]] }
 0x4d8   :  { %v4476_v46 = vpop.permute.xlu2 %4475 }
 0x4d9   :  { %v4527_v63 = vmul.f32 %v4526_v58, %v4476_v46 }
 0x4e0   :  { %v4482_v21 = vpop.permute.xlu2 %4481 }
 0x4e1   :  { %v4539_v28 = vmul.f32 %v4538_v38, %v4482_v21 }
 0x4e8   :  { %v4488_v56 = vpop.permute.xlu2 %4487 }
 0x4e9   :  { %v4555_v23 = vmul.f32 %v4554_v33, %v4488_v56  ;;  %v4610_v56 = vstv %s6332_s2 }
 0x4f0   :  { %v4474_v0 = vpop.permute.xlu1 %4473  ;;  %v4494_v48 = vpop.permute.xlu2 %4493 }
 0x4f1   :  { %v4472_v42 = vpop.permute.xlu0 %4471  ;;  %v4519_v29 = vmul.f32 %v4518_v25, %v4474_v0  ;;  %v4571_v6 = vmul.f32 %v4570_v2, %v4494_v48  ;;  %v4582_v25 = vstv %s6325_s4 }
 0x4f2   :  { %v4515_v61 = vmul.f32 %v4514_v49, %v4472_v42  ;;  %v4586_v42 = vstv %s6326_s1  ;;  %v4583_v21 = vmul.f32 %v4582_v25, %v9230_v40 }
 0x4f4   :  { %v4516_v41 = vadd.f32 %v4515_v61, %v4512_v55 }
 0x4f6   :  { %v4520_v31 = vadd.f32 %v4519_v29, %v4516_v41 }
 0x4f8   :  { %v4480_v52 = vpop.permute.xlu1 %4479  ;;  %v4524_v62 = vadd.f32 %v4523_v37, %v4520_v31  ;;  %v4500_v13 = vpop.permute.xlu2 %4499  ;;  %v4594_v31 = vstv %s6328_s21 }
 0x4f9   :  { %v4478_v7 = vpop.permute.xlu0 %4477  ;;  %v4535_v39 = vmul.f32 %v4534_v50, %v4480_v52  ;;  %v4587_v29 = vmul.f32 %v4586_v42, %v4500_v13  ;;  %v4598_v52 = vstv %s6329_s15 }
 0x4fa   :  { %v4528_v35 = vadd.f32 %v4527_v63, %v4524_v62  ;;  %v4531_v26 = vmul.f32 %v4530_v44, %v4478_v7 }
 0x4fc   :  { %v4532_v12 = vadd.f32 %v4531_v26, %v4528_v35  ;;  %v4602_v35 = vstv %s6330_s23 }
 0x4fd   :  { %v4603_v40 = vmul.f32 %v4602_v35, %v9240_v10 }
 0x4fe   :  { %v4536_v18 = vadd.f32 %v4535_v39, %v4532_v12  ;;  %v4606_v39 = vstv %s6331_s13 }
 0x500   :  { %v4486_v19 = vpop.permute.xlu1 %4485  ;;  %v4540_v57 = vadd.f32 %v4539_v28, %v4536_v18  ;;  %v4506_v62 = vpop.permute.xlu2 %4505 }
 0x501   :  { %v4484_v24 = vpop.permute.xlu0 %4483  ;;  %v4551_v5 = vmul.f32 %v4550_v15, %v4486_v19  ;;  %v4599_v26 = vmul.f32 %v4598_v52, %v4506_v62  ;;  %v6669_v15 = vld [vmem:[#allocation19] ss:$0 sm:$0xff] }
 0x502   :  { %v4544_v53 = vadd.f32 %v4543_v36, %v4540_v57  ;;  %v4547_v3 = vmul.f32 %v4546_v59, %v4484_v24 }
 0x504   :  { %v4548_v20 = vadd.f32 %v4547_v3, %v4544_v53 }
 0x506   :  { %v4552_v22 = vadd.f32 %v4551_v5, %v4548_v20  ;;  %v4623_v5 = vstv %s9895_s19 }
 0x508   :  { %v4492_v34 = vpop.permute.xlu1 %4491  ;;  %v4556_v4 = vadd.f32 %v4555_v23, %v4552_v22 }
 0x509   :  { %v4490_v16 = vpop.permute.xlu0 %4489  ;;  %v4567_v43 = vmul.f32 %v4566_v1, %v4492_v34 }
 0x50a   :  { %v4559_v27 = vmul.f32 %v4558_v11, %v4490_v16 }
 0x50c   :  { %v4560_v8 = vadd.f32 %v4559_v27, %v4556_v4 }
 0x50e   :  { %v4564_v9 = vadd.f32 %v4563_v45, %v4560_v8 }
 0x510   :  { %v4498_v54 = vpop.permute.xlu1 %4497  ;;  %v4568_v60 = vadd.f32 %v4567_v43, %v4564_v9 }
 0x511   :  { %v4496_v46 = vpop.permute.xlu0 %4495  ;;  %v4579_v55 = vmul.f32 %v4578_v47, %v4498_v54 }
 0x512   :  { %v4572_v49 = vadd.f32 %v4571_v6, %v4568_v60  ;;  %v4575_v0 = vmul.f32 %v4574_v14, %v4496_v46 }
 0x514   :  { %v4576_v17 = vadd.f32 %v4575_v0, %v4572_v49 }
 0x516   :  { %v4580_v61 = vadd.f32 %v4579_v55, %v4576_v17 }
 0x518   :  { %v4504_v41 = vpop.permute.xlu1 %4503  ;;  %v4584_v58 = vadd.f32 %v4583_v21, %v4580_v61 }
 0x519   :  { %v4502_v37 = vpop.permute.xlu0 %4501  ;;  %v4595_v50 = vmul.f32 %v4594_v31, %v4504_v41 }
 0x51a   :  { %v4588_v44 = vadd.f32 %v4587_v29, %v4584_v58  ;;  %v4591_v63 = vmul.f32 %v4590_v32, %v4502_v37 }
 0x51c   :  { %v4592_v7 = vadd.f32 %v4591_v63, %v4588_v44 }
 0x51e   :  { %v4596_v38 = vadd.f32 %v4595_v50, %v4592_v7 }
 0x520   :  { %v4600_v12 = vadd.f32 %v4599_v26, %v4596_v38  ;;  %v4510_v51 = vpop.permute.xlu1 %4509 }
 0x521   :  { %v4508_v28 = vpop.permute.xlu0 %4507  ;;  %v4611_v19 = vmul.f32 %v4610_v56, %v4510_v51 }
 0x522   :  { %v4604_v18 = vadd.f32 %v4603_v40, %v4600_v12  ;;  %v4607_v59 = vmul.f32 %v4606_v39, %v4508_v28 }
 0x524   :  { %v4608_v36 = vadd.f32 %v4607_v59, %v4604_v18 }
 0x526   :  { %v4612_v57 = vadd.f32 %v4611_v19, %v4608_v36 }
 0x528   :  { %v4613_v24 = vmax.f32 %v4612_v57, 0.0 }
 0x52a   :  { %v4618_v53 = vmul.f32 %v6669_v15, %v4613_v24 }
 0x52c   :  { %v4619_v3 = vsel %vm2779_vm0, %v4618_v53, 0.0 }
 0x52d   :  { %4620 = vadd.xlane.f32.xlu2 %v4619_v3 }
 0x5a0   :  { %v4621_v10 = vpop.xlane.xlu2 %4620 }
 0x5a1   :  { %v4624_v20 = vadd.f32 %v4623_v5, %v4621_v10 }
 0x5a3   :  { %v4625_v33 = vsub.f32 0.0, %v4624_v20 }
 0x5a5   :  { %v4626_v22 = vmul.f32 1.442695, %v4625_v33 }
 0x5a7   :  { %6670 = vpow2.f32 %v4626_v22 }
 0x5ad   :  { %v6671_v48 = vpop.eup %6670 }
 0x5ae   :  { %v4628_v11 = vadd.f32 1.0, %v6671_v48 }
 0x5b0   :  { %6672 = vrcp.f32 %v4628_v11 }
 0x5b6   :  { %v6673_v23 = vpop.eup %6672 }
 0x5b7   :  { %4630 = vst [vmem:[%s9896_s7] sm:$0x3] %v6673_v23 }
 0x5b8   :  { %4639 = vsyncpa [#allocation5], 1 }
 0x5b9   :  { %4640 = vsyncpa [#allocation8], 1 }
 0x5ba   :  { %4641 = vsyncpa [#allocation6], 1 }
 0x5bb   :  { %4642 = vsyncpa [#allocation11], 1 }
 0x5bc   :  { %4643 = vsyncpa [#allocation14], 1 }
 0x5bd   :  { %4644 = vsyncpa [#allocation17], 1 }

</bundles_post_ra>
